<compile_context>
chip_gen: v5e
topology: v5e:2x2
jax: 0.10.0
libtpu: 0.0.40
codegen_flags: <defaults>
</compile_context>

<pallas_src>
import functools
import math

import jax
import jax.numpy as jnp
from jax.experimental import pallas as pl
from jax.experimental.pallas import tpu as pltpu  # noqa: F401  (TPU backend)


NUM_HEADS = 2


# -----------------------------------------------------------------------------
# Fully fused RE_LCKG kernel: BiGRU + mini-BERT + classification head + loss
# -----------------------------------------------------------------------------
def re_lckg_kernel(x_ref,
                   wih0_ref, whh0_ref, bih0_ref, bhh0_ref,
                   wih1_ref, whh1_ref, bih1_ref, bhh1_ref,
                   emb_ref, maskb_ref,
                   lng_ref, lnb_ref,
                   wqkv_ref, bqkv_ref,
                   wo_ref, bo_ref,
                   ln1g_ref, ln1b_ref,
                   w1_ref, b1_ref, w2_ref, b2_ref,
                   ln2g_ref, ln2b_ref,
                   wp_ref, bp_ref,
                   wc_ref, bc_ref,
                   dw_ref, db_ref,
                   onehot_ref,
                   logits_ref, loss_ref,
                   *, L, B, H, num_heads):
    """Single fused forward.

    GRU layer weights (per layer):
      wih : (In, 6H)   columns = [r_f z_f n_f | r_b z_b n_b]
      whh : (2H, 6H)   block-diagonal: [[Whh_f, 0], [0, Whh_b]]
      bih : (1, 6H)    bhh: (1, 6H)
    """
    H3 = 3 * H
    dh = H // num_heads
    scale = 1.0 / math.sqrt(dh)

    # ------------------------- LCKG branch: 2-layer BiGRU -------------------
    def gru_cell(gi, gh, hprev):
        r = jax.nn.sigmoid(gi[:, :H] + gh[:, :H])
        z = jax.nn.sigmoid(gi[:, H:2 * H] + gh[:, H:2 * H])
        n = jnp.tanh(gi[:, 2 * H:] + r * gh[:, 2 * H:])
        return (1.0 - z) * n + z * hprev

    def run_layer(x_flat, wih, bih, whh_bd, bhh):
        # Hoisted input projection: all timesteps, both directions, all gates.
        gi = jnp.dot(x_flat, wih, preferred_element_type=jnp.float32) + bih  # (L*B, 6H)
        h = jnp.zeros((B, 2 * H), jnp.float32)      # [h_fwd | h_bwd]
        outs_f = [None] * L
        outs_b = [None] * L
        for t in range(L):                           # fully unrolled recurrence
            tb = L - 1 - t
            gh = jnp.dot(h, whh_bd, preferred_element_type=jnp.float32) + bhh  # (B, 6H)
            gi_f = gi[t * B:(t + 1) * B, :H3]
            gi_b = gi[tb * B:(tb + 1) * B, H3:]
            h_f = gru_cell(gi_f, gh[:, :H3], h[:, :H])
            h_b = gru_cell(gi_b, gh[:, H3:], h[:, H:])
            h = jnp.concatenate([h_f, h_b], axis=-1)
            outs_f[t] = h_f
            outs_b[tb] = h_b
        return h, outs_f, outs_b

    x0 = x_ref[...]
    _, f0, b0 = run_layer(x0, wih0_ref[...], bih0_ref[...],
                          whh0_ref[...], bhh0_ref[...])
    # Layer-1 input: concat(fwd, bwd) per timestep, lane width 2H.
    x1 = jnp.concatenate(
        [jnp.concatenate([f0[t], b0[t]], axis=-1) for t in range(L)], axis=0)
    lckg, _, _ = run_layer(x1, wih1_ref[...], bih1_ref[...],
                           whh1_ref[...], bhh1_ref[...])          # (B, 2H)
    # dropout = identity (eval mode)

    # --------------------- mini-BERT branch + head + loss -------------------
    def layernorm(x, g, b):
        mu = jnp.mean(x, axis=-1, keepdims=True)
        var = jnp.mean((x - mu) ** 2, axis=-1, keepdims=True)
        return (x - mu) * jax.lax.rsqrt(var + 1e-12) * g + b

    def gelu_tanh(x):
        c = math.sqrt(2.0 / math.pi)
        return 0.5 * x * (1.0 + jnp.tanh(c * (x + 0.044715 * x * x * x)))

    # Embedding LayerNorm.
    h0 = layernorm(emb_ref[...], lng_ref[...], lnb_ref[...])            # (B*L, H)

    # Fused QKV projection (lane-dense 3H output).
    qkv = jnp.dot(h0, wqkv_ref[...], preferred_element_type=jnp.float32) + bqkv_ref[...]

    # Multi-head self-attention, all (batch, head) tiles unrolled.
    ctx_rows = []
    for b in range(B):
        rows = qkv[b * L:(b + 1) * L, :]                                # (L, 3H)
        bias = maskb_ref[b:b + 1, :]                                    # (1, L) key bias
        head_out = []
        for hi in range(num_heads):
            q = rows[:, hi * dh:(hi + 1) * dh]
            k = rows[:, H + hi * dh:H + (hi + 1) * dh]
            v = rows[:, 2 * H + hi * dh:2 * H + (hi + 1) * dh]
            s = jax.lax.dot_general(q, k, (((1,), (1,)), ((), ())),
                                    preferred_element_type=jnp.float32) * scale
            s = s + bias
            s = s - jnp.max(s, axis=-1, keepdims=True)
            p = jnp.exp(s)
            p = p / jnp.sum(p, axis=-1, keepdims=True)
            head_out.append(jnp.dot(p, v, preferred_element_type=jnp.float32))
        ctx_rows.append(jnp.concatenate(head_out, axis=-1))             # (L, H)
    ctx = jnp.concatenate(ctx_rows, axis=0)                             # (B*L, H)

    # Attention output projection + residual + LN (fused epilogue).
    attn_out = jnp.dot(ctx, wo_ref[...], preferred_element_type=jnp.float32) + bo_ref[...]
    h1 = layernorm(h0 + attn_out, ln1g_ref[...], ln1b_ref[...])

    # Feed-forward + residual + LN.
    ff = jnp.dot(h1, w1_ref[...], preferred_element_type=jnp.float32) + b1_ref[...]
    ff = gelu_tanh(ff)
    ff = jnp.dot(ff, w2_ref[...], preferred_element_type=jnp.float32) + b2_ref[...]
    h2 = layernorm(h1 + ff, ln2g_ref[...], ln2b_ref[...])

    # BERT pooler on [CLS] tokens, then cls_mlp + tanh (dropout = identity).
    cls_tok = jnp.concatenate([h2[b * L:b * L + 1, :] for b in range(B)], axis=0)  # (B, H)
    pooled = jnp.tanh(
        jnp.dot(cls_tok, wp_ref[...], preferred_element_type=jnp.float32) + bp_ref[...])
    cls_reps = jnp.tanh(
        jnp.dot(pooled, wc_ref[...], preferred_element_type=jnp.float32) + bc_ref[...])

    # Final classifier + cross-entropy (mean over batch).
    reps = jnp.concatenate([cls_reps, lckg], axis=-1)                   # (B, 3H)
    logits = jnp.dot(reps, dw_ref[...], preferred_element_type=jnp.float32) + db_ref[...]
    logits_ref[...] = logits

    m = jnp.max(logits, axis=-1, keepdims=True)
    lse = jnp.log(jnp.sum(jnp.exp(logits - m), axis=-1, keepdims=True)) + m
    nll = jnp.sum((lse - logits) * onehot_ref[...], axis=-1, keepdims=True)   # (B, 1)
    loss_ref[...] = jnp.mean(nll, keepdims=True)


# -----------------------------------------------------------------------------
# GRU weight packing helpers (plain JAX, runs once under jit)
# -----------------------------------------------------------------------------
def _cat_gates(w3):
    # (3, In, H) or (3, 1, H) -> (In, 3H) / (1, 3H), gate order (r, z, n).
    return jnp.concatenate([w3[0], w3[1], w3[2]], axis=-1)


def _prep_gru_layer(pf, pb, H):
    wih_f, whh_f, bih_f, bhh_f = pf
    wih_b, whh_b, bih_b, bhh_b = pb
    wih = jnp.concatenate([_cat_gates(wih_f), _cat_gates(wih_b)], axis=-1)     # (In, 6H)
    bih = jnp.concatenate([_cat_gates(bih_f), _cat_gates(bih_b)], axis=-1)     # (1, 6H)
    whh_fc = _cat_gates(whh_f)                                                 # (H, 3H)
    whh_bc = _cat_gates(whh_b)
    z = jnp.zeros((H, 3 * H), jnp.float32)
    whh = jnp.concatenate([jnp.concatenate([whh_fc, z], axis=-1),
                           jnp.concatenate([z, whh_bc], axis=-1)], axis=0)     # (2H, 6H)
    bhh = jnp.concatenate([_cat_gates(bhh_f), _cat_gates(bhh_b)], axis=-1)     # (1, 6H)
    return wih, whh, bih, bhh


# -----------------------------------------------------------------------------
# RE_LCKG forward  (1 pallas_call launch total)
# -----------------------------------------------------------------------------
def re_lckg_forward(params, data, label, num_heads=NUM_HEADS):
    B, _, L = data.shape
    input_ids = data[:, 0, :]
    mask = data[:, 1, :]
    input_ids_lckg = data[:, 2, :]

    bp = params["bert"]
    H = bp["wq"].shape[0]
    C = params["dense_w"].shape[1]

    # ---- LCKG branch inputs: embedding lookup, time-major flatten ----------
    x_embed = jnp.take(params["lckg_emb"], input_ids_lckg, axis=0).astype(jnp.float32)
    x_tm = jnp.transpose(x_embed, (1, 0, 2)).reshape(L * B, -1)          # (L*B, E)
    layer0 = _prep_gru_layer(params["gru_l0_f"], params["gru_l0_b"], H)
    layer1 = _prep_gru_layer(params["gru_l1_f"], params["gru_l1_b"], H)

    # ---- BERT branch inputs: embedding sum, attention-mask bias ------------
    attention_mask = (mask > 0).astype(jnp.float32)
    token_type_ids = (mask > -1).astype(jnp.int32)      # matches reference spec
    we = jnp.take(bp["word_emb"], input_ids, axis=0)                     # (B, L, H)
    pe = bp["pos_emb"][:L][None, :, :]
    te = jnp.take(bp["type_emb"], token_type_ids, axis=0)
    emb = (we + pe + te).reshape(B * L, H)
    mask_bias = (1.0 - attention_mask) * -1e9                            # (B, L)
    onehot = jax.nn.one_hot(label, C, dtype=jnp.float32)

    wqkv = jnp.concatenate([bp["wq"], bp["wk"], bp["wv"]], axis=-1)      # (H, 3H)
    bqkv = jnp.concatenate([bp["bq"], bp["bk"], bp["bv"]], axis=-1).reshape(1, 3 * H)
    r = lambda v: v.reshape(1, -1)

    kernel = functools.partial(re_lckg_kernel, L=L, B=B, H=H, num_heads=num_heads)
    logits, loss2d = pl.pallas_call(
        kernel,
        out_shape=(jax.ShapeDtypeStruct((B, C), jnp.float32),
                   jax.ShapeDtypeStruct((1, 1), jnp.float32)),
    )(x_tm, *layer0, *layer1,
      emb, mask_bias,
      bp["ln_emb_g"], bp["ln_emb_b"],
      wqkv, bqkv,
      bp["wo"], r(bp["bo"]),
      bp["ln1_g"], bp["ln1_b"],
      bp["w1"], r(bp["b1"]),
      bp["w2"], r(bp["b2"]),
      bp["ln2_g"], bp["ln2_b"],
      bp["wp"], r(bp["bp"]),
      params["cls_w"], r(params["cls_b"]),
      params["dense_w"], r(params["dense_b"]),
      onehot)
    return loss2d[0, 0], logits


# -----------------------------------------------------------------------------
# Deterministic parameter initialization
# -----------------------------------------------------------------------------
def init_params(key, *, lckg_vocab, embed_dim, hidden, bert_vocab, max_len, class_num):
    keys = iter(jax.random.split(key, 64))

    def nk():
        return next(keys)

    def normal(shape, std=0.02):
        return std * jax.random.normal(nk(), shape, jnp.float32)

    def uniform(shape, bound):
        return jax.random.uniform(nk(), shape, jnp.float32, -bound, bound)

    def xavier(shape):
        bound = math.sqrt(6.0 / (shape[0] + shape[1]))
        return uniform(shape, bound)

    kgru = 1.0 / math.sqrt(hidden)

    def gru_dir(in_dim):
        return (uniform((3, in_dim, hidden), kgru),
                uniform((3, hidden, hidden), kgru),
                uniform((3, 1, hidden), kgru),
                uniform((3, 1, hidden), kgru))

    bert = dict(
        word_emb=normal((bert_vocab, hidden)),
        pos_emb=normal((max_len, hidden)),
        type_emb=normal((2, hidden)),
        ln_emb_g=jnp.ones((1, hidden)), ln_emb_b=jnp.zeros((1, hidden)),
        wq=normal((hidden, hidden)), bq=jnp.zeros((hidden,)),
        wk=normal((hidden, hidden)), bk=jnp.zeros((hidden,)),
        wv=normal((hidden, hidden)), bv=jnp.zeros((hidden,)),
        wo=normal((hidden, hidden)), bo=jnp.zeros((hidden,)),
        ln1_g=jnp.ones((1, hidden)), ln1_b=jnp.zeros((1, hidden)),
        w1=normal((hidden, 4 * hidden)), b1=jnp.zeros((4 * hidden,)),
        w2=normal((4 * hidden, hidden)), b2=jnp.zeros((hidden,)),
        ln2_g=jnp.ones((1, hidden)), ln2_b=jnp.zeros((1, hidden)),
        wp=normal((hidden, hidden)), bp=jnp.zeros((hidden,)),
    )
    return dict(
        lckg_emb=normal((lckg_vocab, embed_dim), std=1.0),
        gru_l0_f=gru_dir(embed_dim), gru_l0_b=gru_dir(embed_dim),
        gru_l1_f=gru_dir(2 * hidden), gru_l1_b=gru_dir(2 * hidden),
        bert=bert,
        cls_w=xavier((hidden, hidden)), cls_b=jnp.zeros((hidden,)),
        dense_w=xavier((3 * hidden, class_num)), dense_b=jnp.zeros((class_num,)),
    )


# -----------------------------------------------------------------------------
if __name__ == "__main__":
    B, L = 2, 8          # batch, max_len
    E = 16               # lckg embedding dim
    H = 32               # bert hidden size (= GRU hidden size)
    CLASS_NUM = 3
    LCKG_VOCAB = 50
    BERT_VOCAB = 64

    key = jax.random.PRNGKey(0)
    k1, k2, k3 = jax.random.split(key, 3)

    input_ids = jax.random.randint(k1, (B, L), 0, BERT_VOCAB, dtype=jnp.int32)
    lens = jnp.array([L, L - 3], dtype=jnp.int32)
    mask = (jnp.arange(L)[None, :] < lens[:, None]).astype(jnp.int32)
    input_ids_lckg = jax.random.randint(k2, (B, L), 0, LCKG_VOCAB, dtype=jnp.int32)
    data = jnp.stack([input_ids, mask, input_ids_lckg], axis=1)   # (B, 3, L)
    label = jax.random.randint(k3, (B,), 0, CLASS_NUM, dtype=jnp.int32)

    params = init_params(
        jax.random.PRNGKey(42),
        lckg_vocab=LCKG_VOCAB, embed_dim=E, hidden=H,
        bert_vocab=BERT_VOCAB, max_len=L, class_num=CLASS_NUM)

    forward = jax.jit(re_lckg_forward)
    loss, logits = forward(params, data, label)
    jax.block_until_ready((loss, logits))
    assert logits.shape == (B, CLASS_NUM)
    assert loss.shape == ()
    print("KERNEL_OK")
</pallas_src>

<mosaic_0001>
module attributes {stable_mosaic.version = 11 : i64} {
  func.func @re_lckg_kernel(%arg0: memref<16x16xf32, #tpu.memory_space<vmem>>, %arg1: memref<16x192xf32, #tpu.memory_space<vmem>>, %arg2: memref<64x192xf32, #tpu.memory_space<vmem>>, %arg3: memref<1x192xf32, #tpu.memory_space<vmem>>, %arg4: memref<1x192xf32, #tpu.memory_space<vmem>>, %arg5: memref<64x192xf32, #tpu.memory_space<vmem>>, %arg6: memref<64x192xf32, #tpu.memory_space<vmem>>, %arg7: memref<1x192xf32, #tpu.memory_space<vmem>>, %arg8: memref<1x192xf32, #tpu.memory_space<vmem>>, %arg9: memref<16x32xf32, #tpu.memory_space<vmem>>, %arg10: memref<2x8xf32, #tpu.memory_space<vmem>>, %arg11: memref<1x32xf32, #tpu.memory_space<vmem>>, %arg12: memref<1x32xf32, #tpu.memory_space<vmem>>, %arg13: memref<32x96xf32, #tpu.memory_space<vmem>>, %arg14: memref<1x96xf32, #tpu.memory_space<vmem>>, %arg15: memref<32x32xf32, #tpu.memory_space<vmem>>, %arg16: memref<1x32xf32, #tpu.memory_space<vmem>>, %arg17: memref<1x32xf32, #tpu.memory_space<vmem>>, %arg18: memref<1x32xf32, #tpu.memory_space<vmem>>, %arg19: memref<32x128xf32, #tpu.memory_space<vmem>>, %arg20: memref<1x128xf32, #tpu.memory_space<vmem>>, %arg21: memref<128x32xf32, #tpu.memory_space<vmem>>, %arg22: memref<1x32xf32, #tpu.memory_space<vmem>>, %arg23: memref<1x32xf32, #tpu.memory_space<vmem>>, %arg24: memref<1x32xf32, #tpu.memory_space<vmem>>, %arg25: memref<32x32xf32, #tpu.memory_space<vmem>>, %arg26: memref<1x32xf32, #tpu.memory_space<vmem>>, %arg27: memref<32x32xf32, #tpu.memory_space<vmem>>, %arg28: memref<1x32xf32, #tpu.memory_space<vmem>>, %arg29: memref<96x3xf32, #tpu.memory_space<vmem>>, %arg30: memref<1x3xf32, #tpu.memory_space<vmem>>, %arg31: memref<2x3xf32, #tpu.memory_space<vmem>>, %arg32: memref<2x3xf32, #tpu.memory_space<vmem>>, %arg33: memref<1x1xf32, #tpu.memory_space<vmem>>) attributes {dimension_semantics = [], scalar_prefetch = 0 : i64, scratch_operands = 0 : i64, tpu.core_type = #tpu.core_type<tc>} {
    %c0 = arith.constant 0 : index
    %c0_0 = arith.constant 0 : index
    %0 = vector.load %arg0[%c0, %c0_0] : memref<16x16xf32, #tpu.memory_space<vmem>>, vector<16x16xf32>
    %c0_1 = arith.constant 0 : index
    %c0_2 = arith.constant 0 : index
    %1 = vector.load %arg1[%c0_1, %c0_2] : memref<16x192xf32, #tpu.memory_space<vmem>>, vector<16x192xf32>
    %c0_3 = arith.constant 0 : index
    %c0_4 = arith.constant 0 : index
    %2 = vector.load %arg3[%c0_3, %c0_4] : memref<1x192xf32, #tpu.memory_space<vmem>>, vector<1x192xf32>
    %c0_5 = arith.constant 0 : index
    %c0_6 = arith.constant 0 : index
    %3 = vector.load %arg2[%c0_5, %c0_6] : memref<64x192xf32, #tpu.memory_space<vmem>>, vector<64x192xf32>
    %c0_7 = arith.constant 0 : index
    %c0_8 = arith.constant 0 : index
    %4 = vector.load %arg4[%c0_7, %c0_8] : memref<1x192xf32, #tpu.memory_space<vmem>>, vector<1x192xf32>
    %cst = arith.constant dense<0.000000e+00> : vector<16x192xf32>
    %5 = tpu.matmul %0, %1, %cst {dimension_numbers = #tpu.dot_dimension_numbers<[1], [0], [0], [1], [0, 0, 1, 1], [], []>} : vector<16x16xf32>, vector<16x192xf32>, vector<16x192xf32> -> vector<16x192xf32>
    %6 = vector.broadcast %2 : vector<1x192xf32> to vector<16x192xf32>
    %7 = arith.addf %5, %6 : vector<16x192xf32>
    %cst_9 = arith.constant 0.000000e+00 : f32
    %8 = vector.broadcast %cst_9 : f32 to vector<2x64xf32>
    %cst_10 = arith.constant dense<0.000000e+00> : vector<2x192xf32>
    %9 = tpu.matmul %8, %3, %cst_10 {dimension_numbers = #tpu.dot_dimension_numbers<[1], [0], [0], [1], [0, 0, 1, 1], [], []>} : vector<2x64xf32>, vector<64x192xf32>, vector<2x192xf32> -> vector<2x192xf32>
    %10 = vector.broadcast %4 : vector<1x192xf32> to vector<2x192xf32>
    %11 = arith.addf %9, %10 : vector<2x192xf32>
    %12 = vector.extract_strided_slice %7 {offsets = [0, 0], sizes = [2, 96], strides = [1, 1]} : vector<16x192xf32> to vector<2x96xf32>
    %13 = vector.extract_strided_slice %7 {offsets = [14, 96], sizes = [2, 96], strides = [1, 1]} : vector<16x192xf32> to vector<2x96xf32>
    %14 = vector.extract_strided_slice %11 {offsets = [0, 0], sizes = [2, 96], strides = [1, 1]} : vector<2x192xf32> to vector<2x96xf32>
    %15 = vector.extract_strided_slice %8 {offsets = [0, 0], sizes = [2, 32], strides = [1, 1]} : vector<2x64xf32> to vector<2x32xf32>
    %16 = vector.extract_strided_slice %12 {offsets = [0, 0], sizes = [2, 32], strides = [1, 1]} : vector<2x96xf32> to vector<2x32xf32>
    %17 = vector.extract_strided_slice %14 {offsets = [0, 0], sizes = [2, 32], strides = [1, 1]} : vector<2x96xf32> to vector<2x32xf32>
    %18 = arith.addf %16, %17 : vector<2x32xf32>
    %19 = arith.negf %18 : vector<2x32xf32>
    %20 = math.exp %19 : vector<2x32xf32>
    %cst_11 = arith.constant 1.000000e+00 : f32
    %21 = vector.broadcast %cst_11 : f32 to vector<2x32xf32>
    %22 = arith.addf %21, %20 : vector<2x32xf32>
    %23 = arith.divf %21, %22 : vector<2x32xf32>
    %24 = vector.extract_strided_slice %12 {offsets = [0, 32], sizes = [2, 32], strides = [1, 1]} : vector<2x96xf32> to vector<2x32xf32>
    %25 = vector.extract_strided_slice %14 {offsets = [0, 32], sizes = [2, 32], strides = [1, 1]} : vector<2x96xf32> to vector<2x32xf32>
    %26 = arith.addf %24, %25 : vector<2x32xf32>
    %27 = arith.negf %26 : vector<2x32xf32>
    %28 = math.exp %27 : vector<2x32xf32>
    %cst_12 = arith.constant 1.000000e+00 : f32
    %29 = vector.broadcast %cst_12 : f32 to vector<2x32xf32>
    %30 = arith.addf %29, %28 : vector<2x32xf32>
    %31 = arith.divf %29, %30 : vector<2x32xf32>
    %32 = vector.extract_strided_slice %12 {offsets = [0, 64], sizes = [2, 32], strides = [1, 1]} : vector<2x96xf32> to vector<2x32xf32>
    %33 = vector.extract_strided_slice %14 {offsets = [0, 64], sizes = [2, 32], strides = [1, 1]} : vector<2x96xf32> to vector<2x32xf32>
    %34 = arith.mulf %23, %33 : vector<2x32xf32>
    %35 = arith.addf %32, %34 : vector<2x32xf32>
    %36 = math.tanh %35 : vector<2x32xf32>
    %cst_13 = arith.constant 1.000000e+00 : f32
    %37 = vector.broadcast %cst_13 : f32 to vector<2x32xf32>
    %38 = arith.subf %37, %31 : vector<2x32xf32>
    %39 = arith.mulf %38, %36 : vector<2x32xf32>
    %40 = arith.mulf %31, %15 : vector<2x32xf32>
    %41 = arith.addf %39, %40 : vector<2x32xf32>
    %42 = vector.extract_strided_slice %11 {offsets = [0, 96], sizes = [2, 96], strides = [1, 1]} : vector<2x192xf32> to vector<2x96xf32>
    %43 = vector.extract_strided_slice %8 {offsets = [0, 32], sizes = [2, 32], strides = [1, 1]} : vector<2x64xf32> to vector<2x32xf32>
    %44 = vector.extract_strided_slice %13 {offsets = [0, 0], sizes = [2, 32], strides = [1, 1]} : vector<2x96xf32> to vector<2x32xf32>
    %45 = vector.extract_strided_slice %42 {offsets = [0, 0], sizes = [2, 32], strides = [1, 1]} : vector<2x96xf32> to vector<2x32xf32>
    %46 = arith.addf %44, %45 : vector<2x32xf32>
    %47 = arith.negf %46 : vector<2x32xf32>
    %48 = math.exp %47 : vector<2x32xf32>
    %cst_14 = arith.constant 1.000000e+00 : f32
    %49 = vector.broadcast %cst_14 : f32 to vector<2x32xf32>
    %50 = arith.addf %49, %48 : vector<2x32xf32>
    %51 = arith.divf %49, %50 : vector<2x32xf32>
    %52 = vector.extract_strided_slice %13 {offsets = [0, 32], sizes = [2, 32], strides = [1, 1]} : vector<2x96xf32> to vector<2x32xf32>
    %53 = vector.extract_strided_slice %42 {offsets = [0, 32], sizes = [2, 32], strides = [1, 1]} : vector<2x96xf32> to vector<2x32xf32>
    %54 = arith.addf %52, %53 : vector<2x32xf32>
    %55 = arith.negf %54 : vector<2x32xf32>
    %56 = math.exp %55 : vector<2x32xf32>
    %cst_15 = arith.constant 1.000000e+00 : f32
    %57 = vector.broadcast %cst_15 : f32 to vector<2x32xf32>
    %58 = arith.addf %57, %56 : vector<2x32xf32>
    %59 = arith.divf %57, %58 : vector<2x32xf32>
    %60 = vector.extract_strided_slice %13 {offsets = [0, 64], sizes = [2, 32], strides = [1, 1]} : vector<2x96xf32> to vector<2x32xf32>
    %61 = vector.extract_strided_slice %42 {offsets = [0, 64], sizes = [2, 32], strides = [1, 1]} : vector<2x96xf32> to vector<2x32xf32>
    %62 = arith.mulf %51, %61 : vector<2x32xf32>
    %63 = arith.addf %60, %62 : vector<2x32xf32>
    %64 = math.tanh %63 : vector<2x32xf32>
    %cst_16 = arith.constant 1.000000e+00 : f32
    %65 = vector.broadcast %cst_16 : f32 to vector<2x32xf32>
    %66 = arith.subf %65, %59 : vector<2x32xf32>
    %67 = arith.mulf %66, %64 : vector<2x32xf32>
    %68 = arith.mulf %59, %43 : vector<2x32xf32>
    %69 = arith.addf %67, %68 : vector<2x32xf32>
    %70 = tpu.concatenate %41, %69 in 1 : vector<2x32xf32>, vector<2x32xf32> -> vector<2x64xf32>
    %cst_17 = arith.constant dense<0.000000e+00> : vector<2x192xf32>
    %71 = tpu.matmul %70, %3, %cst_17 {dimension_numbers = #tpu.dot_dimension_numbers<[1], [0], [0], [1], [0, 0, 1, 1], [], []>} : vector<2x64xf32>, vector<64x192xf32>, vector<2x192xf32> -> vector<2x192xf32>
    %72 = vector.broadcast %4 : vector<1x192xf32> to vector<2x192xf32>
    %73 = arith.addf %71, %72 : vector<2x192xf32>
    %74 = vector.extract_strided_slice %7 {offsets = [2, 0], sizes = [2, 96], strides = [1, 1]} : vector<16x192xf32> to vector<2x96xf32>
    %75 = vector.extract_strided_slice %7 {offsets = [12, 96], sizes = [2, 96], strides = [1, 1]} : vector<16x192xf32> to vector<2x96xf32>
    %76 = vector.extract_strided_slice %73 {offsets = [0, 0], sizes = [2, 96], strides = [1, 1]} : vector<2x192xf32> to vector<2x96xf32>
    %77 = vector.extract_strided_slice %70 {offsets = [0, 0], sizes = [2, 32], strides = [1, 1]} : vector<2x64xf32> to vector<2x32xf32>
    %78 = vector.extract_strided_slice %74 {offsets = [0, 0], sizes = [2, 32], strides = [1, 1]} : vector<2x96xf32> to vector<2x32xf32>
    %79 = vector.extract_strided_slice %76 {offsets = [0, 0], sizes = [2, 32], strides = [1, 1]} : vector<2x96xf32> to vector<2x32xf32>
    %80 = arith.addf %78, %79 : vector<2x32xf32>
    %81 = arith.negf %80 : vector<2x32xf32>
    %82 = math.exp %81 : vector<2x32xf32>
    %cst_18 = arith.constant 1.000000e+00 : f32
    %83 = vector.broadcast %cst_18 : f32 to vector<2x32xf32>
    %84 = arith.addf %83, %82 : vector<2x32xf32>
    %85 = arith.divf %83, %84 : vector<2x32xf32>
    %86 = vector.extract_strided_slice %74 {offsets = [0, 32], sizes = [2, 32], strides = [1, 1]} : vector<2x96xf32> to vector<2x32xf32>
    %87 = vector.extract_strided_slice %76 {offsets = [0, 32], sizes = [2, 32], strides = [1, 1]} : vector<2x96xf32> to vector<2x32xf32>
    %88 = arith.addf %86, %87 : vector<2x32xf32>
    %89 = arith.negf %88 : vector<2x32xf32>
    %90 = math.exp %89 : vector<2x32xf32>
    %cst_19 = arith.constant 1.000000e+00 : f32
    %91 = vector.broadcast %cst_19 : f32 to vector<2x32xf32>
    %92 = arith.addf %91, %90 : vector<2x32xf32>
    %93 = arith.divf %91, %92 : vector<2x32xf32>
    %94 = vector.extract_strided_slice %74 {offsets = [0, 64], sizes = [2, 32], strides = [1, 1]} : vector<2x96xf32> to vector<2x32xf32>
    %95 = vector.extract_strided_slice %76 {offsets = [0, 64], sizes = [2, 32], strides = [1, 1]} : vector<2x96xf32> to vector<2x32xf32>
    %96 = arith.mulf %85, %95 : vector<2x32xf32>
    %97 = arith.addf %94, %96 : vector<2x32xf32>
    %98 = math.tanh %97 : vector<2x32xf32>
    %cst_20 = arith.constant 1.000000e+00 : f32
    %99 = vector.broadcast %cst_20 : f32 to vector<2x32xf32>
    %100 = arith.subf %99, %93 : vector<2x32xf32>
    %101 = arith.mulf %100, %98 : vector<2x32xf32>
    %102 = arith.mulf %93, %77 : vector<2x32xf32>
    %103 = arith.addf %101, %102 : vector<2x32xf32>
    %104 = vector.extract_strided_slice %73 {offsets = [0, 96], sizes = [2, 96], strides = [1, 1]} : vector<2x192xf32> to vector<2x96xf32>
    %105 = vector.extract_strided_slice %70 {offsets = [0, 32], sizes = [2, 32], strides = [1, 1]} : vector<2x64xf32> to vector<2x32xf32>
    %106 = vector.extract_strided_slice %75 {offsets = [0, 0], sizes = [2, 32], strides = [1, 1]} : vector<2x96xf32> to vector<2x32xf32>
    %107 = vector.extract_strided_slice %104 {offsets = [0, 0], sizes = [2, 32], strides = [1, 1]} : vector<2x96xf32> to vector<2x32xf32>
    %108 = arith.addf %106, %107 : vector<2x32xf32>
    %109 = arith.negf %108 : vector<2x32xf32>
    %110 = math.exp %109 : vector<2x32xf32>
    %cst_21 = arith.constant 1.000000e+00 : f32
    %111 = vector.broadcast %cst_21 : f32 to vector<2x32xf32>
    %112 = arith.addf %111, %110 : vector<2x32xf32>
    %113 = arith.divf %111, %112 : vector<2x32xf32>
    %114 = vector.extract_strided_slice %75 {offsets = [0, 32], sizes = [2, 32], strides = [1, 1]} : vector<2x96xf32> to vector<2x32xf32>
    %115 = vector.extract_strided_slice %104 {offsets = [0, 32], sizes = [2, 32], strides = [1, 1]} : vector<2x96xf32> to vector<2x32xf32>
    %116 = arith.addf %114, %115 : vector<2x32xf32>
    %117 = arith.negf %116 : vector<2x32xf32>
    %118 = math.exp %117 : vector<2x32xf32>
    %cst_22 = arith.constant 1.000000e+00 : f32
    %119 = vector.broadcast %cst_22 : f32 to vector<2x32xf32>
    %120 = arith.addf %119, %118 : vector<2x32xf32>
    %121 = arith.divf %119, %120 : vector<2x32xf32>
    %122 = vector.extract_strided_slice %75 {offsets = [0, 64], sizes = [2, 32], strides = [1, 1]} : vector<2x96xf32> to vector<2x32xf32>
    %123 = vector.extract_strided_slice %104 {offsets = [0, 64], sizes = [2, 32], strides = [1, 1]} : vector<2x96xf32> to vector<2x32xf32>
    %124 = arith.mulf %113, %123 : vector<2x32xf32>
    %125 = arith.addf %122, %124 : vector<2x32xf32>
    %126 = math.tanh %125 : vector<2x32xf32>
    %cst_23 = arith.constant 1.000000e+00 : f32
    %127 = vector.broadcast %cst_23 : f32 to vector<2x32xf32>
    %128 = arith.subf %127, %121 : vector<2x32xf32>
    %129 = arith.mulf %128, %126 : vector<2x32xf32>
    %130 = arith.mulf %121, %105 : vector<2x32xf32>
    %131 = arith.addf %129, %130 : vector<2x32xf32>
    %132 = tpu.concatenate %103, %131 in 1 : vector<2x32xf32>, vector<2x32xf32> -> vector<2x64xf32>
    %cst_24 = arith.constant dense<0.000000e+00> : vector<2x192xf32>
    %133 = tpu.matmul %132, %3, %cst_24 {dimension_numbers = #tpu.dot_dimension_numbers<[1], [0], [0], [1], [0, 0, 1, 1], [], []>} : vector<2x64xf32>, vector<64x192xf32>, vector<2x192xf32> -> vector<2x192xf32>
    %134 = vector.broadcast %4 : vector<1x192xf32> to vector<2x192xf32>
    %135 = arith.addf %133, %134 : vector<2x192xf32>
    %136 = vector.extract_strided_slice %7 {offsets = [4, 0], sizes = [2, 96], strides = [1, 1]} : vector<16x192xf32> to vector<2x96xf32>
    %137 = vector.extract_strided_slice %7 {offsets = [10, 96], sizes = [2, 96], strides = [1, 1]} : vector<16x192xf32> to vector<2x96xf32>
    %138 = vector.extract_strided_slice %135 {offsets = [0, 0], sizes = [2, 96], strides = [1, 1]} : vector<2x192xf32> to vector<2x96xf32>
    %139 = vector.extract_strided_slice %132 {offsets = [0, 0], sizes = [2, 32], strides = [1, 1]} : vector<2x64xf32> to vector<2x32xf32>
    %140 = vector.extract_strided_slice %136 {offsets = [0, 0], sizes = [2, 32], strides = [1, 1]} : vector<2x96xf32> to vector<2x32xf32>
    %141 = vector.extract_strided_slice %138 {offsets = [0, 0], sizes = [2, 32], strides = [1, 1]} : vector<2x96xf32> to vector<2x32xf32>
    %142 = arith.addf %140, %141 : vector<2x32xf32>
    %143 = arith.negf %142 : vector<2x32xf32>
    %144 = math.exp %143 : vector<2x32xf32>
    %cst_25 = arith.constant 1.000000e+00 : f32
    %145 = vector.broadcast %cst_25 : f32 to vector<2x32xf32>
    %146 = arith.addf %145, %144 : vector<2x32xf32>
    %147 = arith.divf %145, %146 : vector<2x32xf32>
    %148 = vector.extract_strided_slice %136 {offsets = [0, 32], sizes = [2, 32], strides = [1, 1]} : vector<2x96xf32> to vector<2x32xf32>
    %149 = vector.extract_strided_slice %138 {offsets = [0, 32], sizes = [2, 32], strides = [1, 1]} : vector<2x96xf32> to vector<2x32xf32>
    %150 = arith.addf %148, %149 : vector<2x32xf32>
    %151 = arith.negf %150 : vector<2x32xf32>
    %152 = math.exp %151 : vector<2x32xf32>
    %cst_26 = arith.constant 1.000000e+00 : f32
    %153 = vector.broadcast %cst_26 : f32 to vector<2x32xf32>
    %154 = arith.addf %153, %152 : vector<2x32xf32>
    %155 = arith.divf %153, %154 : vector<2x32xf32>
    %156 = vector.extract_strided_slice %136 {offsets = [0, 64], sizes = [2, 32], strides = [1, 1]} : vector<2x96xf32> to vector<2x32xf32>
    %157 = vector.extract_strided_slice %138 {offsets = [0, 64], sizes = [2, 32], strides = [1, 1]} : vector<2x96xf32> to vector<2x32xf32>
    %158 = arith.mulf %147, %157 : vector<2x32xf32>
    %159 = arith.addf %156, %158 : vector<2x32xf32>
    %160 = math.tanh %159 : vector<2x32xf32>
    %cst_27 = arith.constant 1.000000e+00 : f32
    %161 = vector.broadcast %cst_27 : f32 to vector<2x32xf32>
    %162 = arith.subf %161, %155 : vector<2x32xf32>
    %163 = arith.mulf %162, %160 : vector<2x32xf32>
    %164 = arith.mulf %155, %139 : vector<2x32xf32>
    %165 = arith.addf %163, %164 : vector<2x32xf32>
    %166 = vector.extract_strided_slice %135 {offsets = [0, 96], sizes = [2, 96], strides = [1, 1]} : vector<2x192xf32> to vector<2x96xf32>
    %167 = vector.extract_strided_slice %132 {offsets = [0, 32], sizes = [2, 32], strides = [1, 1]} : vector<2x64xf32> to vector<2x32xf32>
    %168 = vector.extract_strided_slice %137 {offsets = [0, 0], sizes = [2, 32], strides = [1, 1]} : vector<2x96xf32> to vector<2x32xf32>
    %169 = vector.extract_strided_slice %166 {offsets = [0, 0], sizes = [2, 32], strides = [1, 1]} : vector<2x96xf32> to vector<2x32xf32>
    %170 = arith.addf %168, %169 : vector<2x32xf32>
    %171 = arith.negf %170 : vector<2x32xf32>
    %172 = math.exp %171 : vector<2x32xf32>
    %cst_28 = arith.constant 1.000000e+00 : f32
    %173 = vector.broadcast %cst_28 : f32 to vector<2x32xf32>
    %174 = arith.addf %173, %172 : vector<2x32xf32>
    %175 = arith.divf %173, %174 : vector<2x32xf32>
    %176 = vector.extract_strided_slice %137 {offsets = [0, 32], sizes = [2, 32], strides = [1, 1]} : vector<2x96xf32> to vector<2x32xf32>
    %177 = vector.extract_strided_slice %166 {offsets = [0, 32], sizes = [2, 32], strides = [1, 1]} : vector<2x96xf32> to vector<2x32xf32>
    %178 = arith.addf %176, %177 : vector<2x32xf32>
    %179 = arith.negf %178 : vector<2x32xf32>
    %180 = math.exp %179 : vector<2x32xf32>
    %cst_29 = arith.constant 1.000000e+00 : f32
    %181 = vector.broadcast %cst_29 : f32 to vector<2x32xf32>
    %182 = arith.addf %181, %180 : vector<2x32xf32>
    %183 = arith.divf %181, %182 : vector<2x32xf32>
    %184 = vector.extract_strided_slice %137 {offsets = [0, 64], sizes = [2, 32], strides = [1, 1]} : vector<2x96xf32> to vector<2x32xf32>
    %185 = vector.extract_strided_slice %166 {offsets = [0, 64], sizes = [2, 32], strides = [1, 1]} : vector<2x96xf32> to vector<2x32xf32>
    %186 = arith.mulf %175, %185 : vector<2x32xf32>
    %187 = arith.addf %184, %186 : vector<2x32xf32>
    %188 = math.tanh %187 : vector<2x32xf32>
    %cst_30 = arith.constant 1.000000e+00 : f32
    %189 = vector.broadcast %cst_30 : f32 to vector<2x32xf32>
    %190 = arith.subf %189, %183 : vector<2x32xf32>
    %191 = arith.mulf %190, %188 : vector<2x32xf32>
    %192 = arith.mulf %183, %167 : vector<2x32xf32>
    %193 = arith.addf %191, %192 : vector<2x32xf32>
    %194 = tpu.concatenate %165, %193 in 1 : vector<2x32xf32>, vector<2x32xf32> -> vector<2x64xf32>
    %cst_31 = arith.constant dense<0.000000e+00> : vector<2x192xf32>
    %195 = tpu.matmul %194, %3, %cst_31 {dimension_numbers = #tpu.dot_dimension_numbers<[1], [0], [0], [1], [0, 0, 1, 1], [], []>} : vector<2x64xf32>, vector<64x192xf32>, vector<2x192xf32> -> vector<2x192xf32>
    %196 = vector.broadcast %4 : vector<1x192xf32> to vector<2x192xf32>
    %197 = arith.addf %195, %196 : vector<2x192xf32>
    %198 = vector.extract_strided_slice %7 {offsets = [6, 0], sizes = [2, 96], strides = [1, 1]} : vector<16x192xf32> to vector<2x96xf32>
    %199 = vector.extract_strided_slice %7 {offsets = [8, 96], sizes = [2, 96], strides = [1, 1]} : vector<16x192xf32> to vector<2x96xf32>
    %200 = vector.extract_strided_slice %197 {offsets = [0, 0], sizes = [2, 96], strides = [1, 1]} : vector<2x192xf32> to vector<2x96xf32>
    %201 = vector.extract_strided_slice %194 {offsets = [0, 0], sizes = [2, 32], strides = [1, 1]} : vector<2x64xf32> to vector<2x32xf32>
    %202 = vector.extract_strided_slice %198 {offsets = [0, 0], sizes = [2, 32], strides = [1, 1]} : vector<2x96xf32> to vector<2x32xf32>
    %203 = vector.extract_strided_slice %200 {offsets = [0, 0], sizes = [2, 32], strides = [1, 1]} : vector<2x96xf32> to vector<2x32xf32>
    %204 = arith.addf %202, %203 : vector<2x32xf32>
    %205 = arith.negf %204 : vector<2x32xf32>
    %206 = math.exp %205 : vector<2x32xf32>
    %cst_32 = arith.constant 1.000000e+00 : f32
    %207 = vector.broadcast %cst_32 : f32 to vector<2x32xf32>
    %208 = arith.addf %207, %206 : vector<2x32xf32>
    %209 = arith.divf %207, %208 : vector<2x32xf32>
    %210 = vector.extract_strided_slice %198 {offsets = [0, 32], sizes = [2, 32], strides = [1, 1]} : vector<2x96xf32> to vector<2x32xf32>
    %211 = vector.extract_strided_slice %200 {offsets = [0, 32], sizes = [2, 32], strides = [1, 1]} : vector<2x96xf32> to vector<2x32xf32>
    %212 = arith.addf %210, %211 : vector<2x32xf32>
    %213 = arith.negf %212 : vector<2x32xf32>
    %214 = math.exp %213 : vector<2x32xf32>
    %cst_33 = arith.constant 1.000000e+00 : f32
    %215 = vector.broadcast %cst_33 : f32 to vector<2x32xf32>
    %216 = arith.addf %215, %214 : vector<2x32xf32>
    %217 = arith.divf %215, %216 : vector<2x32xf32>
    %218 = vector.extract_strided_slice %198 {offsets = [0, 64], sizes = [2, 32], strides = [1, 1]} : vector<2x96xf32> to vector<2x32xf32>
    %219 = vector.extract_strided_slice %200 {offsets = [0, 64], sizes = [2, 32], strides = [1, 1]} : vector<2x96xf32> to vector<2x32xf32>
    %220 = arith.mulf %209, %219 : vector<2x32xf32>
    %221 = arith.addf %218, %220 : vector<2x32xf32>
    %222 = math.tanh %221 : vector<2x32xf32>
    %cst_34 = arith.constant 1.000000e+00 : f32
    %223 = vector.broadcast %cst_34 : f32 to vector<2x32xf32>
    %224 = arith.subf %223, %217 : vector<2x32xf32>
    %225 = arith.mulf %224, %222 : vector<2x32xf32>
    %226 = arith.mulf %217, %201 : vector<2x32xf32>
    %227 = arith.addf %225, %226 : vector<2x32xf32>
    %228 = vector.extract_strided_slice %197 {offsets = [0, 96], sizes = [2, 96], strides = [1, 1]} : vector<2x192xf32> to vector<2x96xf32>
    %229 = vector.extract_strided_slice %194 {offsets = [0, 32], sizes = [2, 32], strides = [1, 1]} : vector<2x64xf32> to vector<2x32xf32>
    %230 = vector.extract_strided_slice %199 {offsets = [0, 0], sizes = [2, 32], strides = [1, 1]} : vector<2x96xf32> to vector<2x32xf32>
    %231 = vector.extract_strided_slice %228 {offsets = [0, 0], sizes = [2, 32], strides = [1, 1]} : vector<2x96xf32> to vector<2x32xf32>
    %232 = arith.addf %230, %231 : vector<2x32xf32>
    %233 = arith.negf %232 : vector<2x32xf32>
    %234 = math.exp %233 : vector<2x32xf32>
    %cst_35 = arith.constant 1.000000e+00 : f32
    %235 = vector.broadcast %cst_35 : f32 to vector<2x32xf32>
    %236 = arith.addf %235, %234 : vector<2x32xf32>
    %237 = arith.divf %235, %236 : vector<2x32xf32>
    %238 = vector.extract_strided_slice %199 {offsets = [0, 32], sizes = [2, 32], strides = [1, 1]} : vector<2x96xf32> to vector<2x32xf32>
    %239 = vector.extract_strided_slice %228 {offsets = [0, 32], sizes = [2, 32], strides = [1, 1]} : vector<2x96xf32> to vector<2x32xf32>
    %240 = arith.addf %238, %239 : vector<2x32xf32>
    %241 = arith.negf %240 : vector<2x32xf32>
    %242 = math.exp %241 : vector<2x32xf32>
    %cst_36 = arith.constant 1.000000e+00 : f32
    %243 = vector.broadcast %cst_36 : f32 to vector<2x32xf32>
    %244 = arith.addf %243, %242 : vector<2x32xf32>
    %245 = arith.divf %243, %244 : vector<2x32xf32>
    %246 = vector.extract_strided_slice %199 {offsets = [0, 64], sizes = [2, 32], strides = [1, 1]} : vector<2x96xf32> to vector<2x32xf32>
    %247 = vector.extract_strided_slice %228 {offsets = [0, 64], sizes = [2, 32], strides = [1, 1]} : vector<2x96xf32> to vector<2x32xf32>
    %248 = arith.mulf %237, %247 : vector<2x32xf32>
    %249 = arith.addf %246, %248 : vector<2x32xf32>
    %250 = math.tanh %249 : vector<2x32xf32>
    %cst_37 = arith.constant 1.000000e+00 : f32
    %251 = vector.broadcast %cst_37 : f32 to vector<2x32xf32>
    %252 = arith.subf %251, %245 : vector<2x32xf32>
    %253 = arith.mulf %252, %250 : vector<2x32xf32>
    %254 = arith.mulf %245, %229 : vector<2x32xf32>
    %255 = arith.addf %253, %254 : vector<2x32xf32>
    %256 = tpu.concatenate %227, %255 in 1 : vector<2x32xf32>, vector<2x32xf32> -> vector<2x64xf32>
    %cst_38 = arith.constant dense<0.000000e+00> : vector<2x192xf32>
    %257 = tpu.matmul %256, %3, %cst_38 {dimension_numbers = #tpu.dot_dimension_numbers<[1], [0], [0], [1], [0, 0, 1, 1], [], []>} : vector<2x64xf32>, vector<64x192xf32>, vector<2x192xf32> -> vector<2x192xf32>
    %258 = vector.broadcast %4 : vector<1x192xf32> to vector<2x192xf32>
    %259 = arith.addf %257, %258 : vector<2x192xf32>
    %260 = vector.extract_strided_slice %7 {offsets = [8, 0], sizes = [2, 96], strides = [1, 1]} : vector<16x192xf32> to vector<2x96xf32>
    %261 = vector.extract_strided_slice %7 {offsets = [6, 96], sizes = [2, 96], strides = [1, 1]} : vector<16x192xf32> to vector<2x96xf32>
    %262 = vector.extract_strided_slice %259 {offsets = [0, 0], sizes = [2, 96], strides = [1, 1]} : vector<2x192xf32> to vector<2x96xf32>
    %263 = vector.extract_strided_slice %256 {offsets = [0, 0], sizes = [2, 32], strides = [1, 1]} : vector<2x64xf32> to vector<2x32xf32>
    %264 = vector.extract_strided_slice %260 {offsets = [0, 0], sizes = [2, 32], strides = [1, 1]} : vector<2x96xf32> to vector<2x32xf32>
    %265 = vector.extract_strided_slice %262 {offsets = [0, 0], sizes = [2, 32], strides = [1, 1]} : vector<2x96xf32> to vector<2x32xf32>
    %266 = arith.addf %264, %265 : vector<2x32xf32>
    %267 = arith.negf %266 : vector<2x32xf32>
    %268 = math.exp %267 : vector<2x32xf32>
    %cst_39 = arith.constant 1.000000e+00 : f32
    %269 = vector.broadcast %cst_39 : f32 to vector<2x32xf32>
    %270 = arith.addf %269, %268 : vector<2x32xf32>
    %271 = arith.divf %269, %270 : vector<2x32xf32>
    %272 = vector.extract_strided_slice %260 {offsets = [0, 32], sizes = [2, 32], strides = [1, 1]} : vector<2x96xf32> to vector<2x32xf32>
    %273 = vector.extract_strided_slice %262 {offsets = [0, 32], sizes = [2, 32], strides = [1, 1]} : vector<2x96xf32> to vector<2x32xf32>
    %274 = arith.addf %272, %273 : vector<2x32xf32>
    %275 = arith.negf %274 : vector<2x32xf32>
    %276 = math.exp %275 : vector<2x32xf32>
    %cst_40 = arith.constant 1.000000e+00 : f32
    %277 = vector.broadcast %cst_40 : f32 to vector<2x32xf32>
    %278 = arith.addf %277, %276 : vector<2x32xf32>
    %279 = arith.divf %277, %278 : vector<2x32xf32>
    %280 = vector.extract_strided_slice %260 {offsets = [0, 64], sizes = [2, 32], strides = [1, 1]} : vector<2x96xf32> to vector<2x32xf32>
    %281 = vector.extract_strided_slice %262 {offsets = [0, 64], sizes = [2, 32], strides = [1, 1]} : vector<2x96xf32> to vector<2x32xf32>
    %282 = arith.mulf %271, %281 : vector<2x32xf32>
    %283 = arith.addf %280, %282 : vector<2x32xf32>
    %284 = math.tanh %283 : vector<2x32xf32>
    %cst_41 = arith.constant 1.000000e+00 : f32
    %285 = vector.broadcast %cst_41 : f32 to vector<2x32xf32>
    %286 = arith.subf %285, %279 : vector<2x32xf32>
    %287 = arith.mulf %286, %284 : vector<2x32xf32>
    %288 = arith.mulf %279, %263 : vector<2x32xf32>
    %289 = arith.addf %287, %288 : vector<2x32xf32>
    %290 = vector.extract_strided_slice %259 {offsets = [0, 96], sizes = [2, 96], strides = [1, 1]} : vector<2x192xf32> to vector<2x96xf32>
    %291 = vector.extract_strided_slice %256 {offsets = [0, 32], sizes = [2, 32], strides = [1, 1]} : vector<2x64xf32> to vector<2x32xf32>
    %292 = vector.extract_strided_slice %261 {offsets = [0, 0], sizes = [2, 32], strides = [1, 1]} : vector<2x96xf32> to vector<2x32xf32>
    %293 = vector.extract_strided_slice %290 {offsets = [0, 0], sizes = [2, 32], strides = [1, 1]} : vector<2x96xf32> to vector<2x32xf32>
    %294 = arith.addf %292, %293 : vector<2x32xf32>
    %295 = arith.negf %294 : vector<2x32xf32>
    %296 = math.exp %295 : vector<2x32xf32>
    %cst_42 = arith.constant 1.000000e+00 : f32
    %297 = vector.broadcast %cst_42 : f32 to vector<2x32xf32>
    %298 = arith.addf %297, %296 : vector<2x32xf32>
    %299 = arith.divf %297, %298 : vector<2x32xf32>
    %300 = vector.extract_strided_slice %261 {offsets = [0, 32], sizes = [2, 32], strides = [1, 1]} : vector<2x96xf32> to vector<2x32xf32>
    %301 = vector.extract_strided_slice %290 {offsets = [0, 32], sizes = [2, 32], strides = [1, 1]} : vector<2x96xf32> to vector<2x32xf32>
    %302 = arith.addf %300, %301 : vector<2x32xf32>
    %303 = arith.negf %302 : vector<2x32xf32>
    %304 = math.exp %303 : vector<2x32xf32>
    %cst_43 = arith.constant 1.000000e+00 : f32
    %305 = vector.broadcast %cst_43 : f32 to vector<2x32xf32>
    %306 = arith.addf %305, %304 : vector<2x32xf32>
    %307 = arith.divf %305, %306 : vector<2x32xf32>
    %308 = vector.extract_strided_slice %261 {offsets = [0, 64], sizes = [2, 32], strides = [1, 1]} : vector<2x96xf32> to vector<2x32xf32>
    %309 = vector.extract_strided_slice %290 {offsets = [0, 64], sizes = [2, 32], strides = [1, 1]} : vector<2x96xf32> to vector<2x32xf32>
    %310 = arith.mulf %299, %309 : vector<2x32xf32>
    %311 = arith.addf %308, %310 : vector<2x32xf32>
    %312 = math.tanh %311 : vector<2x32xf32>
    %cst_44 = arith.constant 1.000000e+00 : f32
    %313 = vector.broadcast %cst_44 : f32 to vector<2x32xf32>
    %314 = arith.subf %313, %307 : vector<2x32xf32>
    %315 = arith.mulf %314, %312 : vector<2x32xf32>
    %316 = arith.mulf %307, %291 : vector<2x32xf32>
    %317 = arith.addf %315, %316 : vector<2x32xf32>
    %318 = tpu.concatenate %289, %317 in 1 : vector<2x32xf32>, vector<2x32xf32> -> vector<2x64xf32>
    %cst_45 = arith.constant dense<0.000000e+00> : vector<2x192xf32>
    %319 = tpu.matmul %318, %3, %cst_45 {dimension_numbers = #tpu.dot_dimension_numbers<[1], [0], [0], [1], [0, 0, 1, 1], [], []>} : vector<2x64xf32>, vector<64x192xf32>, vector<2x192xf32> -> vector<2x192xf32>
    %320 = vector.broadcast %4 : vector<1x192xf32> to vector<2x192xf32>
    %321 = arith.addf %319, %320 : vector<2x192xf32>
    %322 = vector.extract_strided_slice %7 {offsets = [10, 0], sizes = [2, 96], strides = [1, 1]} : vector<16x192xf32> to vector<2x96xf32>
    %323 = vector.extract_strided_slice %7 {offsets = [4, 96], sizes = [2, 96], strides = [1, 1]} : vector<16x192xf32> to vector<2x96xf32>
    %324 = vector.extract_strided_slice %321 {offsets = [0, 0], sizes = [2, 96], strides = [1, 1]} : vector<2x192xf32> to vector<2x96xf32>
    %325 = vector.extract_strided_slice %318 {offsets = [0, 0], sizes = [2, 32], strides = [1, 1]} : vector<2x64xf32> to vector<2x32xf32>
    %326 = vector.extract_strided_slice %322 {offsets = [0, 0], sizes = [2, 32], strides = [1, 1]} : vector<2x96xf32> to vector<2x32xf32>
    %327 = vector.extract_strided_slice %324 {offsets = [0, 0], sizes = [2, 32], strides = [1, 1]} : vector<2x96xf32> to vector<2x32xf32>
    %328 = arith.addf %326, %327 : vector<2x32xf32>
    %329 = arith.negf %328 : vector<2x32xf32>
    %330 = math.exp %329 : vector<2x32xf32>
    %cst_46 = arith.constant 1.000000e+00 : f32
    %331 = vector.broadcast %cst_46 : f32 to vector<2x32xf32>
    %332 = arith.addf %331, %330 : vector<2x32xf32>
    %333 = arith.divf %331, %332 : vector<2x32xf32>
    %334 = vector.extract_strided_slice %322 {offsets = [0, 32], sizes = [2, 32], strides = [1, 1]} : vector<2x96xf32> to vector<2x32xf32>
    %335 = vector.extract_strided_slice %324 {offsets = [0, 32], sizes = [2, 32], strides = [1, 1]} : vector<2x96xf32> to vector<2x32xf32>
    %336 = arith.addf %334, %335 : vector<2x32xf32>
    %337 = arith.negf %336 : vector<2x32xf32>
    %338 = math.exp %337 : vector<2x32xf32>
    %cst_47 = arith.constant 1.000000e+00 : f32
    %339 = vector.broadcast %cst_47 : f32 to vector<2x32xf32>
    %340 = arith.addf %339, %338 : vector<2x32xf32>
    %341 = arith.divf %339, %340 : vector<2x32xf32>
    %342 = vector.extract_strided_slice %322 {offsets = [0, 64], sizes = [2, 32], strides = [1, 1]} : vector<2x96xf32> to vector<2x32xf32>
    %343 = vector.extract_strided_slice %324 {offsets = [0, 64], sizes = [2, 32], strides = [1, 1]} : vector<2x96xf32> to vector<2x32xf32>
    %344 = arith.mulf %333, %343 : vector<2x32xf32>
    %345 = arith.addf %342, %344 : vector<2x32xf32>
    %346 = math.tanh %345 : vector<2x32xf32>
    %cst_48 = arith.constant 1.000000e+00 : f32
    %347 = vector.broadcast %cst_48 : f32 to vector<2x32xf32>
    %348 = arith.subf %347, %341 : vector<2x32xf32>
    %349 = arith.mulf %348, %346 : vector<2x32xf32>
    %350 = arith.mulf %341, %325 : vector<2x32xf32>
    %351 = arith.addf %349, %350 : vector<2x32xf32>
    %352 = vector.extract_strided_slice %321 {offsets = [0, 96], sizes = [2, 96], strides = [1, 1]} : vector<2x192xf32> to vector<2x96xf32>
    %353 = vector.extract_strided_slice %318 {offsets = [0, 32], sizes = [2, 32], strides = [1, 1]} : vector<2x64xf32> to vector<2x32xf32>
    %354 = vector.extract_strided_slice %323 {offsets = [0, 0], sizes = [2, 32], strides = [1, 1]} : vector<2x96xf32> to vector<2x32xf32>
    %355 = vector.extract_strided_slice %352 {offsets = [0, 0], sizes = [2, 32], strides = [1, 1]} : vector<2x96xf32> to vector<2x32xf32>
    %356 = arith.addf %354, %355 : vector<2x32xf32>
    %357 = arith.negf %356 : vector<2x32xf32>
    %358 = math.exp %357 : vector<2x32xf32>
    %cst_49 = arith.constant 1.000000e+00 : f32
    %359 = vector.broadcast %cst_49 : f32 to vector<2x32xf32>
    %360 = arith.addf %359, %358 : vector<2x32xf32>
    %361 = arith.divf %359, %360 : vector<2x32xf32>
    %362 = vector.extract_strided_slice %323 {offsets = [0, 32], sizes = [2, 32], strides = [1, 1]} : vector<2x96xf32> to vector<2x32xf32>
    %363 = vector.extract_strided_slice %352 {offsets = [0, 32], sizes = [2, 32], strides = [1, 1]} : vector<2x96xf32> to vector<2x32xf32>
    %364 = arith.addf %362, %363 : vector<2x32xf32>
    %365 = arith.negf %364 : vector<2x32xf32>
    %366 = math.exp %365 : vector<2x32xf32>
    %cst_50 = arith.constant 1.000000e+00 : f32
    %367 = vector.broadcast %cst_50 : f32 to vector<2x32xf32>
    %368 = arith.addf %367, %366 : vector<2x32xf32>
    %369 = arith.divf %367, %368 : vector<2x32xf32>
    %370 = vector.extract_strided_slice %323 {offsets = [0, 64], sizes = [2, 32], strides = [1, 1]} : vector<2x96xf32> to vector<2x32xf32>
    %371 = vector.extract_strided_slice %352 {offsets = [0, 64], sizes = [2, 32], strides = [1, 1]} : vector<2x96xf32> to vector<2x32xf32>
    %372 = arith.mulf %361, %371 : vector<2x32xf32>
    %373 = arith.addf %370, %372 : vector<2x32xf32>
    %374 = math.tanh %373 : vector<2x32xf32>
    %cst_51 = arith.constant 1.000000e+00 : f32
    %375 = vector.broadcast %cst_51 : f32 to vector<2x32xf32>
    %376 = arith.subf %375, %369 : vector<2x32xf32>
    %377 = arith.mulf %376, %374 : vector<2x32xf32>
    %378 = arith.mulf %369, %353 : vector<2x32xf32>
    %379 = arith.addf %377, %378 : vector<2x32xf32>
    %380 = tpu.concatenate %351, %379 in 1 : vector<2x32xf32>, vector<2x32xf32> -> vector<2x64xf32>
    %cst_52 = arith.constant dense<0.000000e+00> : vector<2x192xf32>
    %381 = tpu.matmul %380, %3, %cst_52 {dimension_numbers = #tpu.dot_dimension_numbers<[1], [0], [0], [1], [0, 0, 1, 1], [], []>} : vector<2x64xf32>, vector<64x192xf32>, vector<2x192xf32> -> vector<2x192xf32>
    %382 = vector.broadcast %4 : vector<1x192xf32> to vector<2x192xf32>
    %383 = arith.addf %381, %382 : vector<2x192xf32>
    %384 = vector.extract_strided_slice %7 {offsets = [12, 0], sizes = [2, 96], strides = [1, 1]} : vector<16x192xf32> to vector<2x96xf32>
    %385 = vector.extract_strided_slice %7 {offsets = [2, 96], sizes = [2, 96], strides = [1, 1]} : vector<16x192xf32> to vector<2x96xf32>
    %386 = vector.extract_strided_slice %383 {offsets = [0, 0], sizes = [2, 96], strides = [1, 1]} : vector<2x192xf32> to vector<2x96xf32>
    %387 = vector.extract_strided_slice %380 {offsets = [0, 0], sizes = [2, 32], strides = [1, 1]} : vector<2x64xf32> to vector<2x32xf32>
    %388 = vector.extract_strided_slice %384 {offsets = [0, 0], sizes = [2, 32], strides = [1, 1]} : vector<2x96xf32> to vector<2x32xf32>
    %389 = vector.extract_strided_slice %386 {offsets = [0, 0], sizes = [2, 32], strides = [1, 1]} : vector<2x96xf32> to vector<2x32xf32>
    %390 = arith.addf %388, %389 : vector<2x32xf32>
    %391 = arith.negf %390 : vector<2x32xf32>
    %392 = math.exp %391 : vector<2x32xf32>
    %cst_53 = arith.constant 1.000000e+00 : f32
    %393 = vector.broadcast %cst_53 : f32 to vector<2x32xf32>
    %394 = arith.addf %393, %392 : vector<2x32xf32>
    %395 = arith.divf %393, %394 : vector<2x32xf32>
    %396 = vector.extract_strided_slice %384 {offsets = [0, 32], sizes = [2, 32], strides = [1, 1]} : vector<2x96xf32> to vector<2x32xf32>
    %397 = vector.extract_strided_slice %386 {offsets = [0, 32], sizes = [2, 32], strides = [1, 1]} : vector<2x96xf32> to vector<2x32xf32>
    %398 = arith.addf %396, %397 : vector<2x32xf32>
    %399 = arith.negf %398 : vector<2x32xf32>
    %400 = math.exp %399 : vector<2x32xf32>
    %cst_54 = arith.constant 1.000000e+00 : f32
    %401 = vector.broadcast %cst_54 : f32 to vector<2x32xf32>
    %402 = arith.addf %401, %400 : vector<2x32xf32>
    %403 = arith.divf %401, %402 : vector<2x32xf32>
    %404 = vector.extract_strided_slice %384 {offsets = [0, 64], sizes = [2, 32], strides = [1, 1]} : vector<2x96xf32> to vector<2x32xf32>
    %405 = vector.extract_strided_slice %386 {offsets = [0, 64], sizes = [2, 32], strides = [1, 1]} : vector<2x96xf32> to vector<2x32xf32>
    %406 = arith.mulf %395, %405 : vector<2x32xf32>
    %407 = arith.addf %404, %406 : vector<2x32xf32>
    %408 = math.tanh %407 : vector<2x32xf32>
    %cst_55 = arith.constant 1.000000e+00 : f32
    %409 = vector.broadcast %cst_55 : f32 to vector<2x32xf32>
    %410 = arith.subf %409, %403 : vector<2x32xf32>
    %411 = arith.mulf %410, %408 : vector<2x32xf32>
    %412 = arith.mulf %403, %387 : vector<2x32xf32>
    %413 = arith.addf %411, %412 : vector<2x32xf32>
    %414 = vector.extract_strided_slice %383 {offsets = [0, 96], sizes = [2, 96], strides = [1, 1]} : vector<2x192xf32> to vector<2x96xf32>
    %415 = vector.extract_strided_slice %380 {offsets = [0, 32], sizes = [2, 32], strides = [1, 1]} : vector<2x64xf32> to vector<2x32xf32>
    %416 = vector.extract_strided_slice %385 {offsets = [0, 0], sizes = [2, 32], strides = [1, 1]} : vector<2x96xf32> to vector<2x32xf32>
    %417 = vector.extract_strided_slice %414 {offsets = [0, 0], sizes = [2, 32], strides = [1, 1]} : vector<2x96xf32> to vector<2x32xf32>
    %418 = arith.addf %416, %417 : vector<2x32xf32>
    %419 = arith.negf %418 : vector<2x32xf32>
    %420 = math.exp %419 : vector<2x32xf32>
    %cst_56 = arith.constant 1.000000e+00 : f32
    %421 = vector.broadcast %cst_56 : f32 to vector<2x32xf32>
    %422 = arith.addf %421, %420 : vector<2x32xf32>
    %423 = arith.divf %421, %422 : vector<2x32xf32>
    %424 = vector.extract_strided_slice %385 {offsets = [0, 32], sizes = [2, 32], strides = [1, 1]} : vector<2x96xf32> to vector<2x32xf32>
    %425 = vector.extract_strided_slice %414 {offsets = [0, 32], sizes = [2, 32], strides = [1, 1]} : vector<2x96xf32> to vector<2x32xf32>
    %426 = arith.addf %424, %425 : vector<2x32xf32>
    %427 = arith.negf %426 : vector<2x32xf32>
    %428 = math.exp %427 : vector<2x32xf32>
    %cst_57 = arith.constant 1.000000e+00 : f32
    %429 = vector.broadcast %cst_57 : f32 to vector<2x32xf32>
    %430 = arith.addf %429, %428 : vector<2x32xf32>
    %431 = arith.divf %429, %430 : vector<2x32xf32>
    %432 = vector.extract_strided_slice %385 {offsets = [0, 64], sizes = [2, 32], strides = [1, 1]} : vector<2x96xf32> to vector<2x32xf32>
    %433 = vector.extract_strided_slice %414 {offsets = [0, 64], sizes = [2, 32], strides = [1, 1]} : vector<2x96xf32> to vector<2x32xf32>
    %434 = arith.mulf %423, %433 : vector<2x32xf32>
    %435 = arith.addf %432, %434 : vector<2x32xf32>
    %436 = math.tanh %435 : vector<2x32xf32>
    %cst_58 = arith.constant 1.000000e+00 : f32
    %437 = vector.broadcast %cst_58 : f32 to vector<2x32xf32>
    %438 = arith.subf %437, %431 : vector<2x32xf32>
    %439 = arith.mulf %438, %436 : vector<2x32xf32>
    %440 = arith.mulf %431, %415 : vector<2x32xf32>
    %441 = arith.addf %439, %440 : vector<2x32xf32>
    %442 = tpu.concatenate %413, %441 in 1 : vector<2x32xf32>, vector<2x32xf32> -> vector<2x64xf32>
    %cst_59 = arith.constant dense<0.000000e+00> : vector<2x192xf32>
    %443 = tpu.matmul %442, %3, %cst_59 {dimension_numbers = #tpu.dot_dimension_numbers<[1], [0], [0], [1], [0, 0, 1, 1], [], []>} : vector<2x64xf32>, vector<64x192xf32>, vector<2x192xf32> -> vector<2x192xf32>
    %444 = vector.broadcast %4 : vector<1x192xf32> to vector<2x192xf32>
    %445 = arith.addf %443, %444 : vector<2x192xf32>
    %446 = vector.extract_strided_slice %7 {offsets = [14, 0], sizes = [2, 96], strides = [1, 1]} : vector<16x192xf32> to vector<2x96xf32>
    %447 = vector.extract_strided_slice %7 {offsets = [0, 96], sizes = [2, 96], strides = [1, 1]} : vector<16x192xf32> to vector<2x96xf32>
    %448 = vector.extract_strided_slice %445 {offsets = [0, 0], sizes = [2, 96], strides = [1, 1]} : vector<2x192xf32> to vector<2x96xf32>
    %449 = vector.extract_strided_slice %442 {offsets = [0, 0], sizes = [2, 32], strides = [1, 1]} : vector<2x64xf32> to vector<2x32xf32>
    %450 = vector.extract_strided_slice %446 {offsets = [0, 0], sizes = [2, 32], strides = [1, 1]} : vector<2x96xf32> to vector<2x32xf32>
    %451 = vector.extract_strided_slice %448 {offsets = [0, 0], sizes = [2, 32], strides = [1, 1]} : vector<2x96xf32> to vector<2x32xf32>
    %452 = arith.addf %450, %451 : vector<2x32xf32>
    %453 = arith.negf %452 : vector<2x32xf32>
    %454 = math.exp %453 : vector<2x32xf32>
    %cst_60 = arith.constant 1.000000e+00 : f32
    %455 = vector.broadcast %cst_60 : f32 to vector<2x32xf32>
    %456 = arith.addf %455, %454 : vector<2x32xf32>
    %457 = arith.divf %455, %456 : vector<2x32xf32>
    %458 = vector.extract_strided_slice %446 {offsets = [0, 32], sizes = [2, 32], strides = [1, 1]} : vector<2x96xf32> to vector<2x32xf32>
    %459 = vector.extract_strided_slice %448 {offsets = [0, 32], sizes = [2, 32], strides = [1, 1]} : vector<2x96xf32> to vector<2x32xf32>
    %460 = arith.addf %458, %459 : vector<2x32xf32>
    %461 = arith.negf %460 : vector<2x32xf32>
    %462 = math.exp %461 : vector<2x32xf32>
    %cst_61 = arith.constant 1.000000e+00 : f32
    %463 = vector.broadcast %cst_61 : f32 to vector<2x32xf32>
    %464 = arith.addf %463, %462 : vector<2x32xf32>
    %465 = arith.divf %463, %464 : vector<2x32xf32>
    %466 = vector.extract_strided_slice %446 {offsets = [0, 64], sizes = [2, 32], strides = [1, 1]} : vector<2x96xf32> to vector<2x32xf32>
    %467 = vector.extract_strided_slice %448 {offsets = [0, 64], sizes = [2, 32], strides = [1, 1]} : vector<2x96xf32> to vector<2x32xf32>
    %468 = arith.mulf %457, %467 : vector<2x32xf32>
    %469 = arith.addf %466, %468 : vector<2x32xf32>
    %470 = math.tanh %469 : vector<2x32xf32>
    %cst_62 = arith.constant 1.000000e+00 : f32
    %471 = vector.broadcast %cst_62 : f32 to vector<2x32xf32>
    %472 = arith.subf %471, %465 : vector<2x32xf32>
    %473 = arith.mulf %472, %470 : vector<2x32xf32>
    %474 = arith.mulf %465, %449 : vector<2x32xf32>
    %475 = arith.addf %473, %474 : vector<2x32xf32>
    %476 = vector.extract_strided_slice %445 {offsets = [0, 96], sizes = [2, 96], strides = [1, 1]} : vector<2x192xf32> to vector<2x96xf32>
    %477 = vector.extract_strided_slice %442 {offsets = [0, 32], sizes = [2, 32], strides = [1, 1]} : vector<2x64xf32> to vector<2x32xf32>
    %478 = vector.extract_strided_slice %447 {offsets = [0, 0], sizes = [2, 32], strides = [1, 1]} : vector<2x96xf32> to vector<2x32xf32>
    %479 = vector.extract_strided_slice %476 {offsets = [0, 0], sizes = [2, 32], strides = [1, 1]} : vector<2x96xf32> to vector<2x32xf32>
    %480 = arith.addf %478, %479 : vector<2x32xf32>
    %481 = arith.negf %480 : vector<2x32xf32>
    %482 = math.exp %481 : vector<2x32xf32>
    %cst_63 = arith.constant 1.000000e+00 : f32
    %483 = vector.broadcast %cst_63 : f32 to vector<2x32xf32>
    %484 = arith.addf %483, %482 : vector<2x32xf32>
    %485 = arith.divf %483, %484 : vector<2x32xf32>
    %486 = vector.extract_strided_slice %447 {offsets = [0, 32], sizes = [2, 32], strides = [1, 1]} : vector<2x96xf32> to vector<2x32xf32>
    %487 = vector.extract_strided_slice %476 {offsets = [0, 32], sizes = [2, 32], strides = [1, 1]} : vector<2x96xf32> to vector<2x32xf32>
    %488 = arith.addf %486, %487 : vector<2x32xf32>
    %489 = arith.negf %488 : vector<2x32xf32>
    %490 = math.exp %489 : vector<2x32xf32>
    %cst_64 = arith.constant 1.000000e+00 : f32
    %491 = vector.broadcast %cst_64 : f32 to vector<2x32xf32>
    %492 = arith.addf %491, %490 : vector<2x32xf32>
    %493 = arith.divf %491, %492 : vector<2x32xf32>
    %494 = vector.extract_strided_slice %447 {offsets = [0, 64], sizes = [2, 32], strides = [1, 1]} : vector<2x96xf32> to vector<2x32xf32>
    %495 = vector.extract_strided_slice %476 {offsets = [0, 64], sizes = [2, 32], strides = [1, 1]} : vector<2x96xf32> to vector<2x32xf32>
    %496 = arith.mulf %485, %495 : vector<2x32xf32>
    %497 = arith.addf %494, %496 : vector<2x32xf32>
    %498 = math.tanh %497 : vector<2x32xf32>
    %cst_65 = arith.constant 1.000000e+00 : f32
    %499 = vector.broadcast %cst_65 : f32 to vector<2x32xf32>
    %500 = arith.subf %499, %493 : vector<2x32xf32>
    %501 = arith.mulf %500, %498 : vector<2x32xf32>
    %502 = arith.mulf %493, %477 : vector<2x32xf32>
    %503 = arith.addf %501, %502 : vector<2x32xf32>
    %504 = tpu.concatenate %41, %503 in 1 : vector<2x32xf32>, vector<2x32xf32> -> vector<2x64xf32>
    %505 = tpu.concatenate %103, %441 in 1 : vector<2x32xf32>, vector<2x32xf32> -> vector<2x64xf32>
    %506 = tpu.concatenate %165, %379 in 1 : vector<2x32xf32>, vector<2x32xf32> -> vector<2x64xf32>
    %507 = tpu.concatenate %227, %317 in 1 : vector<2x32xf32>, vector<2x32xf32> -> vector<2x64xf32>
    %508 = tpu.concatenate %289, %255 in 1 : vector<2x32xf32>, vector<2x32xf32> -> vector<2x64xf32>
    %509 = tpu.concatenate %351, %193 in 1 : vector<2x32xf32>, vector<2x32xf32> -> vector<2x64xf32>
    %510 = tpu.concatenate %413, %131 in 1 : vector<2x32xf32>, vector<2x32xf32> -> vector<2x64xf32>
    %511 = tpu.concatenate %475, %69 in 1 : vector<2x32xf32>, vector<2x32xf32> -> vector<2x64xf32>
    %512 = tpu.concatenate %504, %505, %506, %507, %508, %509, %510, %511 in 0 : vector<2x64xf32>, vector<2x64xf32>, vector<2x64xf32>, vector<2x64xf32>, vector<2x64xf32>, vector<2x64xf32>, vector<2x64xf32>, vector<2x64xf32> -> vector<16x64xf32>
    %c0_66 = arith.constant 0 : index
    %c0_67 = arith.constant 0 : index
    %513 = vector.load %arg5[%c0_66, %c0_67] : memref<64x192xf32, #tpu.memory_space<vmem>>, vector<64x192xf32>
    %c0_68 = arith.constant 0 : index
    %c0_69 = arith.constant 0 : index
    %514 = vector.load %arg7[%c0_68, %c0_69] : memref<1x192xf32, #tpu.memory_space<vmem>>, vector<1x192xf32>
    %c0_70 = arith.constant 0 : index
    %c0_71 = arith.constant 0 : index
    %515 = vector.load %arg6[%c0_70, %c0_71] : memref<64x192xf32, #tpu.memory_space<vmem>>, vector<64x192xf32>
    %c0_72 = arith.constant 0 : index
    %c0_73 = arith.constant 0 : index
    %516 = vector.load %arg8[%c0_72, %c0_73] : memref<1x192xf32, #tpu.memory_space<vmem>>, vector<1x192xf32>
    %cst_74 = arith.constant dense<0.000000e+00> : vector<16x192xf32>
    %517 = tpu.matmul %512, %513, %cst_74 {dimension_numbers = #tpu.dot_dimension_numbers<[1], [0], [0], [1], [0, 0, 1, 1], [], []>} : vector<16x64xf32>, vector<64x192xf32>, vector<16x192xf32> -> vector<16x192xf32>
    %518 = vector.broadcast %514 : vector<1x192xf32> to vector<16x192xf32>
    %519 = arith.addf %517, %518 : vector<16x192xf32>
    %cst_75 = arith.constant 0.000000e+00 : f32
    %520 = vector.broadcast %cst_75 : f32 to vector<2x64xf32>
    %cst_76 = arith.constant dense<0.000000e+00> : vector<2x192xf32>
    %521 = tpu.matmul %520, %515, %cst_76 {dimension_numbers = #tpu.dot_dimension_numbers<[1], [0], [0], [1], [0, 0, 1, 1], [], []>} : vector<2x64xf32>, vector<64x192xf32>, vector<2x192xf32> -> vector<2x192xf32>
    %522 = vector.broadcast %516 : vector<1x192xf32> to vector<2x192xf32>
    %523 = arith.addf %521, %522 : vector<2x192xf32>
    %524 = vector.extract_strided_slice %519 {offsets = [0, 0], sizes = [2, 96], strides = [1, 1]} : vector<16x192xf32> to vector<2x96xf32>
    %525 = vector.extract_strided_slice %519 {offsets = [14, 96], sizes = [2, 96], strides = [1, 1]} : vector<16x192xf32> to vector<2x96xf32>
    %526 = vector.extract_strided_slice %523 {offsets = [0, 0], sizes = [2, 96], strides = [1, 1]} : vector<2x192xf32> to vector<2x96xf32>
    %527 = vector.extract_strided_slice %520 {offsets = [0, 0], sizes = [2, 32], strides = [1, 1]} : vector<2x64xf32> to vector<2x32xf32>
    %528 = vector.extract_strided_slice %524 {offsets = [0, 0], sizes = [2, 32], strides = [1, 1]} : vector<2x96xf32> to vector<2x32xf32>
    %529 = vector.extract_strided_slice %526 {offsets = [0, 0], sizes = [2, 32], strides = [1, 1]} : vector<2x96xf32> to vector<2x32xf32>
    %530 = arith.addf %528, %529 : vector<2x32xf32>
    %531 = arith.negf %530 : vector<2x32xf32>
    %532 = math.exp %531 : vector<2x32xf32>
    %cst_77 = arith.constant 1.000000e+00 : f32
    %533 = vector.broadcast %cst_77 : f32 to vector<2x32xf32>
    %534 = arith.addf %533, %532 : vector<2x32xf32>
    %535 = arith.divf %533, %534 : vector<2x32xf32>
    %536 = vector.extract_strided_slice %524 {offsets = [0, 32], sizes = [2, 32], strides = [1, 1]} : vector<2x96xf32> to vector<2x32xf32>
    %537 = vector.extract_strided_slice %526 {offsets = [0, 32], sizes = [2, 32], strides = [1, 1]} : vector<2x96xf32> to vector<2x32xf32>
    %538 = arith.addf %536, %537 : vector<2x32xf32>
    %539 = arith.negf %538 : vector<2x32xf32>
    %540 = math.exp %539 : vector<2x32xf32>
    %cst_78 = arith.constant 1.000000e+00 : f32
    %541 = vector.broadcast %cst_78 : f32 to vector<2x32xf32>
    %542 = arith.addf %541, %540 : vector<2x32xf32>
    %543 = arith.divf %541, %542 : vector<2x32xf32>
    %544 = vector.extract_strided_slice %524 {offsets = [0, 64], sizes = [2, 32], strides = [1, 1]} : vector<2x96xf32> to vector<2x32xf32>
    %545 = vector.extract_strided_slice %526 {offsets = [0, 64], sizes = [2, 32], strides = [1, 1]} : vector<2x96xf32> to vector<2x32xf32>
    %546 = arith.mulf %535, %545 : vector<2x32xf32>
    %547 = arith.addf %544, %546 : vector<2x32xf32>
    %548 = math.tanh %547 : vector<2x32xf32>
    %cst_79 = arith.constant 1.000000e+00 : f32
    %549 = vector.broadcast %cst_79 : f32 to vector<2x32xf32>
    %550 = arith.subf %549, %543 : vector<2x32xf32>
    %551 = arith.mulf %550, %548 : vector<2x32xf32>
    %552 = arith.mulf %543, %527 : vector<2x32xf32>
    %553 = arith.addf %551, %552 : vector<2x32xf32>
    %554 = vector.extract_strided_slice %523 {offsets = [0, 96], sizes = [2, 96], strides = [1, 1]} : vector<2x192xf32> to vector<2x96xf32>
    %555 = vector.extract_strided_slice %520 {offsets = [0, 32], sizes = [2, 32], strides = [1, 1]} : vector<2x64xf32> to vector<2x32xf32>
    %556 = vector.extract_strided_slice %525 {offsets = [0, 0], sizes = [2, 32], strides = [1, 1]} : vector<2x96xf32> to vector<2x32xf32>
    %557 = vector.extract_strided_slice %554 {offsets = [0, 0], sizes = [2, 32], strides = [1, 1]} : vector<2x96xf32> to vector<2x32xf32>
    %558 = arith.addf %556, %557 : vector<2x32xf32>
    %559 = arith.negf %558 : vector<2x32xf32>
    %560 = math.exp %559 : vector<2x32xf32>
    %cst_80 = arith.constant 1.000000e+00 : f32
    %561 = vector.broadcast %cst_80 : f32 to vector<2x32xf32>
    %562 = arith.addf %561, %560 : vector<2x32xf32>
    %563 = arith.divf %561, %562 : vector<2x32xf32>
    %564 = vector.extract_strided_slice %525 {offsets = [0, 32], sizes = [2, 32], strides = [1, 1]} : vector<2x96xf32> to vector<2x32xf32>
    %565 = vector.extract_strided_slice %554 {offsets = [0, 32], sizes = [2, 32], strides = [1, 1]} : vector<2x96xf32> to vector<2x32xf32>
    %566 = arith.addf %564, %565 : vector<2x32xf32>
    %567 = arith.negf %566 : vector<2x32xf32>
    %568 = math.exp %567 : vector<2x32xf32>
    %cst_81 = arith.constant 1.000000e+00 : f32
    %569 = vector.broadcast %cst_81 : f32 to vector<2x32xf32>
    %570 = arith.addf %569, %568 : vector<2x32xf32>
    %571 = arith.divf %569, %570 : vector<2x32xf32>
    %572 = vector.extract_strided_slice %525 {offsets = [0, 64], sizes = [2, 32], strides = [1, 1]} : vector<2x96xf32> to vector<2x32xf32>
    %573 = vector.extract_strided_slice %554 {offsets = [0, 64], sizes = [2, 32], strides = [1, 1]} : vector<2x96xf32> to vector<2x32xf32>
    %574 = arith.mulf %563, %573 : vector<2x32xf32>
    %575 = arith.addf %572, %574 : vector<2x32xf32>
    %576 = math.tanh %575 : vector<2x32xf32>
    %cst_82 = arith.constant 1.000000e+00 : f32
    %577 = vector.broadcast %cst_82 : f32 to vector<2x32xf32>
    %578 = arith.subf %577, %571 : vector<2x32xf32>
    %579 = arith.mulf %578, %576 : vector<2x32xf32>
    %580 = arith.mulf %571, %555 : vector<2x32xf32>
    %581 = arith.addf %579, %580 : vector<2x32xf32>
    %582 = tpu.concatenate %553, %581 in 1 : vector<2x32xf32>, vector<2x32xf32> -> vector<2x64xf32>
    %cst_83 = arith.constant dense<0.000000e+00> : vector<2x192xf32>
    %583 = tpu.matmul %582, %515, %cst_83 {dimension_numbers = #tpu.dot_dimension_numbers<[1], [0], [0], [1], [0, 0, 1, 1], [], []>} : vector<2x64xf32>, vector<64x192xf32>, vector<2x192xf32> -> vector<2x192xf32>
    %584 = vector.broadcast %516 : vector<1x192xf32> to vector<2x192xf32>
    %585 = arith.addf %583, %584 : vector<2x192xf32>
    %586 = vector.extract_strided_slice %519 {offsets = [2, 0], sizes = [2, 96], strides = [1, 1]} : vector<16x192xf32> to vector<2x96xf32>
    %587 = vector.extract_strided_slice %519 {offsets = [12, 96], sizes = [2, 96], strides = [1, 1]} : vector<16x192xf32> to vector<2x96xf32>
    %588 = vector.extract_strided_slice %585 {offsets = [0, 0], sizes = [2, 96], strides = [1, 1]} : vector<2x192xf32> to vector<2x96xf32>
    %589 = vector.extract_strided_slice %582 {offsets = [0, 0], sizes = [2, 32], strides = [1, 1]} : vector<2x64xf32> to vector<2x32xf32>
    %590 = vector.extract_strided_slice %586 {offsets = [0, 0], sizes = [2, 32], strides = [1, 1]} : vector<2x96xf32> to vector<2x32xf32>
    %591 = vector.extract_strided_slice %588 {offsets = [0, 0], sizes = [2, 32], strides = [1, 1]} : vector<2x96xf32> to vector<2x32xf32>
    %592 = arith.addf %590, %591 : vector<2x32xf32>
    %593 = arith.negf %592 : vector<2x32xf32>
    %594 = math.exp %593 : vector<2x32xf32>
    %cst_84 = arith.constant 1.000000e+00 : f32
    %595 = vector.broadcast %cst_84 : f32 to vector<2x32xf32>
    %596 = arith.addf %595, %594 : vector<2x32xf32>
    %597 = arith.divf %595, %596 : vector<2x32xf32>
    %598 = vector.extract_strided_slice %586 {offsets = [0, 32], sizes = [2, 32], strides = [1, 1]} : vector<2x96xf32> to vector<2x32xf32>
    %599 = vector.extract_strided_slice %588 {offsets = [0, 32], sizes = [2, 32], strides = [1, 1]} : vector<2x96xf32> to vector<2x32xf32>
    %600 = arith.addf %598, %599 : vector<2x32xf32>
    %601 = arith.negf %600 : vector<2x32xf32>
    %602 = math.exp %601 : vector<2x32xf32>
    %cst_85 = arith.constant 1.000000e+00 : f32
    %603 = vector.broadcast %cst_85 : f32 to vector<2x32xf32>
    %604 = arith.addf %603, %602 : vector<2x32xf32>
    %605 = arith.divf %603, %604 : vector<2x32xf32>
    %606 = vector.extract_strided_slice %586 {offsets = [0, 64], sizes = [2, 32], strides = [1, 1]} : vector<2x96xf32> to vector<2x32xf32>
    %607 = vector.extract_strided_slice %588 {offsets = [0, 64], sizes = [2, 32], strides = [1, 1]} : vector<2x96xf32> to vector<2x32xf32>
    %608 = arith.mulf %597, %607 : vector<2x32xf32>
    %609 = arith.addf %606, %608 : vector<2x32xf32>
    %610 = math.tanh %609 : vector<2x32xf32>
    %cst_86 = arith.constant 1.000000e+00 : f32
    %611 = vector.broadcast %cst_86 : f32 to vector<2x32xf32>
    %612 = arith.subf %611, %605 : vector<2x32xf32>
    %613 = arith.mulf %612, %610 : vector<2x32xf32>
    %614 = arith.mulf %605, %589 : vector<2x32xf32>
    %615 = arith.addf %613, %614 : vector<2x32xf32>
    %616 = vector.extract_strided_slice %585 {offsets = [0, 96], sizes = [2, 96], strides = [1, 1]} : vector<2x192xf32> to vector<2x96xf32>
    %617 = vector.extract_strided_slice %582 {offsets = [0, 32], sizes = [2, 32], strides = [1, 1]} : vector<2x64xf32> to vector<2x32xf32>
    %618 = vector.extract_strided_slice %587 {offsets = [0, 0], sizes = [2, 32], strides = [1, 1]} : vector<2x96xf32> to vector<2x32xf32>
    %619 = vector.extract_strided_slice %616 {offsets = [0, 0], sizes = [2, 32], strides = [1, 1]} : vector<2x96xf32> to vector<2x32xf32>
    %620 = arith.addf %618, %619 : vector<2x32xf32>
    %621 = arith.negf %620 : vector<2x32xf32>
    %622 = math.exp %621 : vector<2x32xf32>
    %cst_87 = arith.constant 1.000000e+00 : f32
    %623 = vector.broadcast %cst_87 : f32 to vector<2x32xf32>
    %624 = arith.addf %623, %622 : vector<2x32xf32>
    %625 = arith.divf %623, %624 : vector<2x32xf32>
    %626 = vector.extract_strided_slice %587 {offsets = [0, 32], sizes = [2, 32], strides = [1, 1]} : vector<2x96xf32> to vector<2x32xf32>
    %627 = vector.extract_strided_slice %616 {offsets = [0, 32], sizes = [2, 32], strides = [1, 1]} : vector<2x96xf32> to vector<2x32xf32>
    %628 = arith.addf %626, %627 : vector<2x32xf32>
    %629 = arith.negf %628 : vector<2x32xf32>
    %630 = math.exp %629 : vector<2x32xf32>
    %cst_88 = arith.constant 1.000000e+00 : f32
    %631 = vector.broadcast %cst_88 : f32 to vector<2x32xf32>
    %632 = arith.addf %631, %630 : vector<2x32xf32>
    %633 = arith.divf %631, %632 : vector<2x32xf32>
    %634 = vector.extract_strided_slice %587 {offsets = [0, 64], sizes = [2, 32], strides = [1, 1]} : vector<2x96xf32> to vector<2x32xf32>
    %635 = vector.extract_strided_slice %616 {offsets = [0, 64], sizes = [2, 32], strides = [1, 1]} : vector<2x96xf32> to vector<2x32xf32>
    %636 = arith.mulf %625, %635 : vector<2x32xf32>
    %637 = arith.addf %634, %636 : vector<2x32xf32>
    %638 = math.tanh %637 : vector<2x32xf32>
    %cst_89 = arith.constant 1.000000e+00 : f32
    %639 = vector.broadcast %cst_89 : f32 to vector<2x32xf32>
    %640 = arith.subf %639, %633 : vector<2x32xf32>
    %641 = arith.mulf %640, %638 : vector<2x32xf32>
    %642 = arith.mulf %633, %617 : vector<2x32xf32>
    %643 = arith.addf %641, %642 : vector<2x32xf32>
    %644 = tpu.concatenate %615, %643 in 1 : vector<2x32xf32>, vector<2x32xf32> -> vector<2x64xf32>
    %cst_90 = arith.constant dense<0.000000e+00> : vector<2x192xf32>
    %645 = tpu.matmul %644, %515, %cst_90 {dimension_numbers = #tpu.dot_dimension_numbers<[1], [0], [0], [1], [0, 0, 1, 1], [], []>} : vector<2x64xf32>, vector<64x192xf32>, vector<2x192xf32> -> vector<2x192xf32>
    %646 = vector.broadcast %516 : vector<1x192xf32> to vector<2x192xf32>
    %647 = arith.addf %645, %646 : vector<2x192xf32>
    %648 = vector.extract_strided_slice %519 {offsets = [4, 0], sizes = [2, 96], strides = [1, 1]} : vector<16x192xf32> to vector<2x96xf32>
    %649 = vector.extract_strided_slice %519 {offsets = [10, 96], sizes = [2, 96], strides = [1, 1]} : vector<16x192xf32> to vector<2x96xf32>
    %650 = vector.extract_strided_slice %647 {offsets = [0, 0], sizes = [2, 96], strides = [1, 1]} : vector<2x192xf32> to vector<2x96xf32>
    %651 = vector.extract_strided_slice %644 {offsets = [0, 0], sizes = [2, 32], strides = [1, 1]} : vector<2x64xf32> to vector<2x32xf32>
    %652 = vector.extract_strided_slice %648 {offsets = [0, 0], sizes = [2, 32], strides = [1, 1]} : vector<2x96xf32> to vector<2x32xf32>
    %653 = vector.extract_strided_slice %650 {offsets = [0, 0], sizes = [2, 32], strides = [1, 1]} : vector<2x96xf32> to vector<2x32xf32>
    %654 = arith.addf %652, %653 : vector<2x32xf32>
    %655 = arith.negf %654 : vector<2x32xf32>
    %656 = math.exp %655 : vector<2x32xf32>
    %cst_91 = arith.constant 1.000000e+00 : f32
    %657 = vector.broadcast %cst_91 : f32 to vector<2x32xf32>
    %658 = arith.addf %657, %656 : vector<2x32xf32>
    %659 = arith.divf %657, %658 : vector<2x32xf32>
    %660 = vector.extract_strided_slice %648 {offsets = [0, 32], sizes = [2, 32], strides = [1, 1]} : vector<2x96xf32> to vector<2x32xf32>
    %661 = vector.extract_strided_slice %650 {offsets = [0, 32], sizes = [2, 32], strides = [1, 1]} : vector<2x96xf32> to vector<2x32xf32>
    %662 = arith.addf %660, %661 : vector<2x32xf32>
    %663 = arith.negf %662 : vector<2x32xf32>
    %664 = math.exp %663 : vector<2x32xf32>
    %cst_92 = arith.constant 1.000000e+00 : f32
    %665 = vector.broadcast %cst_92 : f32 to vector<2x32xf32>
    %666 = arith.addf %665, %664 : vector<2x32xf32>
    %667 = arith.divf %665, %666 : vector<2x32xf32>
    %668 = vector.extract_strided_slice %648 {offsets = [0, 64], sizes = [2, 32], strides = [1, 1]} : vector<2x96xf32> to vector<2x32xf32>
    %669 = vector.extract_strided_slice %650 {offsets = [0, 64], sizes = [2, 32], strides = [1, 1]} : vector<2x96xf32> to vector<2x32xf32>
    %670 = arith.mulf %659, %669 : vector<2x32xf32>
    %671 = arith.addf %668, %670 : vector<2x32xf32>
    %672 = math.tanh %671 : vector<2x32xf32>
    %cst_93 = arith.constant 1.000000e+00 : f32
    %673 = vector.broadcast %cst_93 : f32 to vector<2x32xf32>
    %674 = arith.subf %673, %667 : vector<2x32xf32>
    %675 = arith.mulf %674, %672 : vector<2x32xf32>
    %676 = arith.mulf %667, %651 : vector<2x32xf32>
    %677 = arith.addf %675, %676 : vector<2x32xf32>
    %678 = vector.extract_strided_slice %647 {offsets = [0, 96], sizes = [2, 96], strides = [1, 1]} : vector<2x192xf32> to vector<2x96xf32>
    %679 = vector.extract_strided_slice %644 {offsets = [0, 32], sizes = [2, 32], strides = [1, 1]} : vector<2x64xf32> to vector<2x32xf32>
    %680 = vector.extract_strided_slice %649 {offsets = [0, 0], sizes = [2, 32], strides = [1, 1]} : vector<2x96xf32> to vector<2x32xf32>
    %681 = vector.extract_strided_slice %678 {offsets = [0, 0], sizes = [2, 32], strides = [1, 1]} : vector<2x96xf32> to vector<2x32xf32>
    %682 = arith.addf %680, %681 : vector<2x32xf32>
    %683 = arith.negf %682 : vector<2x32xf32>
    %684 = math.exp %683 : vector<2x32xf32>
    %cst_94 = arith.constant 1.000000e+00 : f32
    %685 = vector.broadcast %cst_94 : f32 to vector<2x32xf32>
    %686 = arith.addf %685, %684 : vector<2x32xf32>
    %687 = arith.divf %685, %686 : vector<2x32xf32>
    %688 = vector.extract_strided_slice %649 {offsets = [0, 32], sizes = [2, 32], strides = [1, 1]} : vector<2x96xf32> to vector<2x32xf32>
    %689 = vector.extract_strided_slice %678 {offsets = [0, 32], sizes = [2, 32], strides = [1, 1]} : vector<2x96xf32> to vector<2x32xf32>
    %690 = arith.addf %688, %689 : vector<2x32xf32>
    %691 = arith.negf %690 : vector<2x32xf32>
    %692 = math.exp %691 : vector<2x32xf32>
    %cst_95 = arith.constant 1.000000e+00 : f32
    %693 = vector.broadcast %cst_95 : f32 to vector<2x32xf32>
    %694 = arith.addf %693, %692 : vector<2x32xf32>
    %695 = arith.divf %693, %694 : vector<2x32xf32>
    %696 = vector.extract_strided_slice %649 {offsets = [0, 64], sizes = [2, 32], strides = [1, 1]} : vector<2x96xf32> to vector<2x32xf32>
    %697 = vector.extract_strided_slice %678 {offsets = [0, 64], sizes = [2, 32], strides = [1, 1]} : vector<2x96xf32> to vector<2x32xf32>
    %698 = arith.mulf %687, %697 : vector<2x32xf32>
    %699 = arith.addf %696, %698 : vector<2x32xf32>
    %700 = math.tanh %699 : vector<2x32xf32>
    %cst_96 = arith.constant 1.000000e+00 : f32
    %701 = vector.broadcast %cst_96 : f32 to vector<2x32xf32>
    %702 = arith.subf %701, %695 : vector<2x32xf32>
    %703 = arith.mulf %702, %700 : vector<2x32xf32>
    %704 = arith.mulf %695, %679 : vector<2x32xf32>
    %705 = arith.addf %703, %704 : vector<2x32xf32>
    %706 = tpu.concatenate %677, %705 in 1 : vector<2x32xf32>, vector<2x32xf32> -> vector<2x64xf32>
    %cst_97 = arith.constant dense<0.000000e+00> : vector<2x192xf32>
    %707 = tpu.matmul %706, %515, %cst_97 {dimension_numbers = #tpu.dot_dimension_numbers<[1], [0], [0], [1], [0, 0, 1, 1], [], []>} : vector<2x64xf32>, vector<64x192xf32>, vector<2x192xf32> -> vector<2x192xf32>
    %708 = vector.broadcast %516 : vector<1x192xf32> to vector<2x192xf32>
    %709 = arith.addf %707, %708 : vector<2x192xf32>
    %710 = vector.extract_strided_slice %519 {offsets = [6, 0], sizes = [2, 96], strides = [1, 1]} : vector<16x192xf32> to vector<2x96xf32>
    %711 = vector.extract_strided_slice %519 {offsets = [8, 96], sizes = [2, 96], strides = [1, 1]} : vector<16x192xf32> to vector<2x96xf32>
    %712 = vector.extract_strided_slice %709 {offsets = [0, 0], sizes = [2, 96], strides = [1, 1]} : vector<2x192xf32> to vector<2x96xf32>
    %713 = vector.extract_strided_slice %706 {offsets = [0, 0], sizes = [2, 32], strides = [1, 1]} : vector<2x64xf32> to vector<2x32xf32>
    %714 = vector.extract_strided_slice %710 {offsets = [0, 0], sizes = [2, 32], strides = [1, 1]} : vector<2x96xf32> to vector<2x32xf32>
    %715 = vector.extract_strided_slice %712 {offsets = [0, 0], sizes = [2, 32], strides = [1, 1]} : vector<2x96xf32> to vector<2x32xf32>
    %716 = arith.addf %714, %715 : vector<2x32xf32>
    %717 = arith.negf %716 : vector<2x32xf32>
    %718 = math.exp %717 : vector<2x32xf32>
    %cst_98 = arith.constant 1.000000e+00 : f32
    %719 = vector.broadcast %cst_98 : f32 to vector<2x32xf32>
    %720 = arith.addf %719, %718 : vector<2x32xf32>
    %721 = arith.divf %719, %720 : vector<2x32xf32>
    %722 = vector.extract_strided_slice %710 {offsets = [0, 32], sizes = [2, 32], strides = [1, 1]} : vector<2x96xf32> to vector<2x32xf32>
    %723 = vector.extract_strided_slice %712 {offsets = [0, 32], sizes = [2, 32], strides = [1, 1]} : vector<2x96xf32> to vector<2x32xf32>
    %724 = arith.addf %722, %723 : vector<2x32xf32>
    %725 = arith.negf %724 : vector<2x32xf32>
    %726 = math.exp %725 : vector<2x32xf32>
    %cst_99 = arith.constant 1.000000e+00 : f32
    %727 = vector.broadcast %cst_99 : f32 to vector<2x32xf32>
    %728 = arith.addf %727, %726 : vector<2x32xf32>
    %729 = arith.divf %727, %728 : vector<2x32xf32>
    %730 = vector.extract_strided_slice %710 {offsets = [0, 64], sizes = [2, 32], strides = [1, 1]} : vector<2x96xf32> to vector<2x32xf32>
    %731 = vector.extract_strided_slice %712 {offsets = [0, 64], sizes = [2, 32], strides = [1, 1]} : vector<2x96xf32> to vector<2x32xf32>
    %732 = arith.mulf %721, %731 : vector<2x32xf32>
    %733 = arith.addf %730, %732 : vector<2x32xf32>
    %734 = math.tanh %733 : vector<2x32xf32>
    %cst_100 = arith.constant 1.000000e+00 : f32
    %735 = vector.broadcast %cst_100 : f32 to vector<2x32xf32>
    %736 = arith.subf %735, %729 : vector<2x32xf32>
    %737 = arith.mulf %736, %734 : vector<2x32xf32>
    %738 = arith.mulf %729, %713 : vector<2x32xf32>
    %739 = arith.addf %737, %738 : vector<2x32xf32>
    %740 = vector.extract_strided_slice %709 {offsets = [0, 96], sizes = [2, 96], strides = [1, 1]} : vector<2x192xf32> to vector<2x96xf32>
    %741 = vector.extract_strided_slice %706 {offsets = [0, 32], sizes = [2, 32], strides = [1, 1]} : vector<2x64xf32> to vector<2x32xf32>
    %742 = vector.extract_strided_slice %711 {offsets = [0, 0], sizes = [2, 32], strides = [1, 1]} : vector<2x96xf32> to vector<2x32xf32>
    %743 = vector.extract_strided_slice %740 {offsets = [0, 0], sizes = [2, 32], strides = [1, 1]} : vector<2x96xf32> to vector<2x32xf32>
    %744 = arith.addf %742, %743 : vector<2x32xf32>
    %745 = arith.negf %744 : vector<2x32xf32>
    %746 = math.exp %745 : vector<2x32xf32>
    %cst_101 = arith.constant 1.000000e+00 : f32
    %747 = vector.broadcast %cst_101 : f32 to vector<2x32xf32>
    %748 = arith.addf %747, %746 : vector<2x32xf32>
    %749 = arith.divf %747, %748 : vector<2x32xf32>
    %750 = vector.extract_strided_slice %711 {offsets = [0, 32], sizes = [2, 32], strides = [1, 1]} : vector<2x96xf32> to vector<2x32xf32>
    %751 = vector.extract_strided_slice %740 {offsets = [0, 32], sizes = [2, 32], strides = [1, 1]} : vector<2x96xf32> to vector<2x32xf32>
    %752 = arith.addf %750, %751 : vector<2x32xf32>
    %753 = arith.negf %752 : vector<2x32xf32>
    %754 = math.exp %753 : vector<2x32xf32>
    %cst_102 = arith.constant 1.000000e+00 : f32
    %755 = vector.broadcast %cst_102 : f32 to vector<2x32xf32>
    %756 = arith.addf %755, %754 : vector<2x32xf32>
    %757 = arith.divf %755, %756 : vector<2x32xf32>
    %758 = vector.extract_strided_slice %711 {offsets = [0, 64], sizes = [2, 32], strides = [1, 1]} : vector<2x96xf32> to vector<2x32xf32>
    %759 = vector.extract_strided_slice %740 {offsets = [0, 64], sizes = [2, 32], strides = [1, 1]} : vector<2x96xf32> to vector<2x32xf32>
    %760 = arith.mulf %749, %759 : vector<2x32xf32>
    %761 = arith.addf %758, %760 : vector<2x32xf32>
    %762 = math.tanh %761 : vector<2x32xf32>
    %cst_103 = arith.constant 1.000000e+00 : f32
    %763 = vector.broadcast %cst_103 : f32 to vector<2x32xf32>
    %764 = arith.subf %763, %757 : vector<2x32xf32>
    %765 = arith.mulf %764, %762 : vector<2x32xf32>
    %766 = arith.mulf %757, %741 : vector<2x32xf32>
    %767 = arith.addf %765, %766 : vector<2x32xf32>
    %768 = tpu.concatenate %739, %767 in 1 : vector<2x32xf32>, vector<2x32xf32> -> vector<2x64xf32>
    %cst_104 = arith.constant dense<0.000000e+00> : vector<2x192xf32>
    %769 = tpu.matmul %768, %515, %cst_104 {dimension_numbers = #tpu.dot_dimension_numbers<[1], [0], [0], [1], [0, 0, 1, 1], [], []>} : vector<2x64xf32>, vector<64x192xf32>, vector<2x192xf32> -> vector<2x192xf32>
    %770 = vector.broadcast %516 : vector<1x192xf32> to vector<2x192xf32>
    %771 = arith.addf %769, %770 : vector<2x192xf32>
    %772 = vector.extract_strided_slice %519 {offsets = [8, 0], sizes = [2, 96], strides = [1, 1]} : vector<16x192xf32> to vector<2x96xf32>
    %773 = vector.extract_strided_slice %519 {offsets = [6, 96], sizes = [2, 96], strides = [1, 1]} : vector<16x192xf32> to vector<2x96xf32>
    %774 = vector.extract_strided_slice %771 {offsets = [0, 0], sizes = [2, 96], strides = [1, 1]} : vector<2x192xf32> to vector<2x96xf32>
    %775 = vector.extract_strided_slice %768 {offsets = [0, 0], sizes = [2, 32], strides = [1, 1]} : vector<2x64xf32> to vector<2x32xf32>
    %776 = vector.extract_strided_slice %772 {offsets = [0, 0], sizes = [2, 32], strides = [1, 1]} : vector<2x96xf32> to vector<2x32xf32>
    %777 = vector.extract_strided_slice %774 {offsets = [0, 0], sizes = [2, 32], strides = [1, 1]} : vector<2x96xf32> to vector<2x32xf32>
    %778 = arith.addf %776, %777 : vector<2x32xf32>
    %779 = arith.negf %778 : vector<2x32xf32>
    %780 = math.exp %779 : vector<2x32xf32>
    %cst_105 = arith.constant 1.000000e+00 : f32
    %781 = vector.broadcast %cst_105 : f32 to vector<2x32xf32>
    %782 = arith.addf %781, %780 : vector<2x32xf32>
    %783 = arith.divf %781, %782 : vector<2x32xf32>
    %784 = vector.extract_strided_slice %772 {offsets = [0, 32], sizes = [2, 32], strides = [1, 1]} : vector<2x96xf32> to vector<2x32xf32>
    %785 = vector.extract_strided_slice %774 {offsets = [0, 32], sizes = [2, 32], strides = [1, 1]} : vector<2x96xf32> to vector<2x32xf32>
    %786 = arith.addf %784, %785 : vector<2x32xf32>
    %787 = arith.negf %786 : vector<2x32xf32>
    %788 = math.exp %787 : vector<2x32xf32>
    %cst_106 = arith.constant 1.000000e+00 : f32
    %789 = vector.broadcast %cst_106 : f32 to vector<2x32xf32>
    %790 = arith.addf %789, %788 : vector<2x32xf32>
    %791 = arith.divf %789, %790 : vector<2x32xf32>
    %792 = vector.extract_strided_slice %772 {offsets = [0, 64], sizes = [2, 32], strides = [1, 1]} : vector<2x96xf32> to vector<2x32xf32>
    %793 = vector.extract_strided_slice %774 {offsets = [0, 64], sizes = [2, 32], strides = [1, 1]} : vector<2x96xf32> to vector<2x32xf32>
    %794 = arith.mulf %783, %793 : vector<2x32xf32>
    %795 = arith.addf %792, %794 : vector<2x32xf32>
    %796 = math.tanh %795 : vector<2x32xf32>
    %cst_107 = arith.constant 1.000000e+00 : f32
    %797 = vector.broadcast %cst_107 : f32 to vector<2x32xf32>
    %798 = arith.subf %797, %791 : vector<2x32xf32>
    %799 = arith.mulf %798, %796 : vector<2x32xf32>
    %800 = arith.mulf %791, %775 : vector<2x32xf32>
    %801 = arith.addf %799, %800 : vector<2x32xf32>
    %802 = vector.extract_strided_slice %771 {offsets = [0, 96], sizes = [2, 96], strides = [1, 1]} : vector<2x192xf32> to vector<2x96xf32>
    %803 = vector.extract_strided_slice %768 {offsets = [0, 32], sizes = [2, 32], strides = [1, 1]} : vector<2x64xf32> to vector<2x32xf32>
    %804 = vector.extract_strided_slice %773 {offsets = [0, 0], sizes = [2, 32], strides = [1, 1]} : vector<2x96xf32> to vector<2x32xf32>
    %805 = vector.extract_strided_slice %802 {offsets = [0, 0], sizes = [2, 32], strides = [1, 1]} : vector<2x96xf32> to vector<2x32xf32>
    %806 = arith.addf %804, %805 : vector<2x32xf32>
    %807 = arith.negf %806 : vector<2x32xf32>
    %808 = math.exp %807 : vector<2x32xf32>
    %cst_108 = arith.constant 1.000000e+00 : f32
    %809 = vector.broadcast %cst_108 : f32 to vector<2x32xf32>
    %810 = arith.addf %809, %808 : vector<2x32xf32>
    %811 = arith.divf %809, %810 : vector<2x32xf32>
    %812 = vector.extract_strided_slice %773 {offsets = [0, 32], sizes = [2, 32], strides = [1, 1]} : vector<2x96xf32> to vector<2x32xf32>
    %813 = vector.extract_strided_slice %802 {offsets = [0, 32], sizes = [2, 32], strides = [1, 1]} : vector<2x96xf32> to vector<2x32xf32>
    %814 = arith.addf %812, %813 : vector<2x32xf32>
    %815 = arith.negf %814 : vector<2x32xf32>
    %816 = math.exp %815 : vector<2x32xf32>
    %cst_109 = arith.constant 1.000000e+00 : f32
    %817 = vector.broadcast %cst_109 : f32 to vector<2x32xf32>
    %818 = arith.addf %817, %816 : vector<2x32xf32>
    %819 = arith.divf %817, %818 : vector<2x32xf32>
    %820 = vector.extract_strided_slice %773 {offsets = [0, 64], sizes = [2, 32], strides = [1, 1]} : vector<2x96xf32> to vector<2x32xf32>
    %821 = vector.extract_strided_slice %802 {offsets = [0, 64], sizes = [2, 32], strides = [1, 1]} : vector<2x96xf32> to vector<2x32xf32>
    %822 = arith.mulf %811, %821 : vector<2x32xf32>
    %823 = arith.addf %820, %822 : vector<2x32xf32>
    %824 = math.tanh %823 : vector<2x32xf32>
    %cst_110 = arith.constant 1.000000e+00 : f32
    %825 = vector.broadcast %cst_110 : f32 to vector<2x32xf32>
    %826 = arith.subf %825, %819 : vector<2x32xf32>
    %827 = arith.mulf %826, %824 : vector<2x32xf32>
    %828 = arith.mulf %819, %803 : vector<2x32xf32>
    %829 = arith.addf %827, %828 : vector<2x32xf32>
    %830 = tpu.concatenate %801, %829 in 1 : vector<2x32xf32>, vector<2x32xf32> -> vector<2x64xf32>
    %cst_111 = arith.constant dense<0.000000e+00> : vector<2x192xf32>
    %831 = tpu.matmul %830, %515, %cst_111 {dimension_numbers = #tpu.dot_dimension_numbers<[1], [0], [0], [1], [0, 0, 1, 1], [], []>} : vector<2x64xf32>, vector<64x192xf32>, vector<2x192xf32> -> vector<2x192xf32>
    %832 = vector.broadcast %516 : vector<1x192xf32> to vector<2x192xf32>
    %833 = arith.addf %831, %832 : vector<2x192xf32>
    %834 = vector.extract_strided_slice %519 {offsets = [10, 0], sizes = [2, 96], strides = [1, 1]} : vector<16x192xf32> to vector<2x96xf32>
    %835 = vector.extract_strided_slice %519 {offsets = [4, 96], sizes = [2, 96], strides = [1, 1]} : vector<16x192xf32> to vector<2x96xf32>
    %836 = vector.extract_strided_slice %833 {offsets = [0, 0], sizes = [2, 96], strides = [1, 1]} : vector<2x192xf32> to vector<2x96xf32>
    %837 = vector.extract_strided_slice %830 {offsets = [0, 0], sizes = [2, 32], strides = [1, 1]} : vector<2x64xf32> to vector<2x32xf32>
    %838 = vector.extract_strided_slice %834 {offsets = [0, 0], sizes = [2, 32], strides = [1, 1]} : vector<2x96xf32> to vector<2x32xf32>
    %839 = vector.extract_strided_slice %836 {offsets = [0, 0], sizes = [2, 32], strides = [1, 1]} : vector<2x96xf32> to vector<2x32xf32>
    %840 = arith.addf %838, %839 : vector<2x32xf32>
    %841 = arith.negf %840 : vector<2x32xf32>
    %842 = math.exp %841 : vector<2x32xf32>
    %cst_112 = arith.constant 1.000000e+00 : f32
    %843 = vector.broadcast %cst_112 : f32 to vector<2x32xf32>
    %844 = arith.addf %843, %842 : vector<2x32xf32>
    %845 = arith.divf %843, %844 : vector<2x32xf32>
    %846 = vector.extract_strided_slice %834 {offsets = [0, 32], sizes = [2, 32], strides = [1, 1]} : vector<2x96xf32> to vector<2x32xf32>
    %847 = vector.extract_strided_slice %836 {offsets = [0, 32], sizes = [2, 32], strides = [1, 1]} : vector<2x96xf32> to vector<2x32xf32>
    %848 = arith.addf %846, %847 : vector<2x32xf32>
    %849 = arith.negf %848 : vector<2x32xf32>
    %850 = math.exp %849 : vector<2x32xf32>
    %cst_113 = arith.constant 1.000000e+00 : f32
    %851 = vector.broadcast %cst_113 : f32 to vector<2x32xf32>
    %852 = arith.addf %851, %850 : vector<2x32xf32>
    %853 = arith.divf %851, %852 : vector<2x32xf32>
    %854 = vector.extract_strided_slice %834 {offsets = [0, 64], sizes = [2, 32], strides = [1, 1]} : vector<2x96xf32> to vector<2x32xf32>
    %855 = vector.extract_strided_slice %836 {offsets = [0, 64], sizes = [2, 32], strides = [1, 1]} : vector<2x96xf32> to vector<2x32xf32>
    %856 = arith.mulf %845, %855 : vector<2x32xf32>
    %857 = arith.addf %854, %856 : vector<2x32xf32>
    %858 = math.tanh %857 : vector<2x32xf32>
    %cst_114 = arith.constant 1.000000e+00 : f32
    %859 = vector.broadcast %cst_114 : f32 to vector<2x32xf32>
    %860 = arith.subf %859, %853 : vector<2x32xf32>
    %861 = arith.mulf %860, %858 : vector<2x32xf32>
    %862 = arith.mulf %853, %837 : vector<2x32xf32>
    %863 = arith.addf %861, %862 : vector<2x32xf32>
    %864 = vector.extract_strided_slice %833 {offsets = [0, 96], sizes = [2, 96], strides = [1, 1]} : vector<2x192xf32> to vector<2x96xf32>
    %865 = vector.extract_strided_slice %830 {offsets = [0, 32], sizes = [2, 32], strides = [1, 1]} : vector<2x64xf32> to vector<2x32xf32>
    %866 = vector.extract_strided_slice %835 {offsets = [0, 0], sizes = [2, 32], strides = [1, 1]} : vector<2x96xf32> to vector<2x32xf32>
    %867 = vector.extract_strided_slice %864 {offsets = [0, 0], sizes = [2, 32], strides = [1, 1]} : vector<2x96xf32> to vector<2x32xf32>
    %868 = arith.addf %866, %867 : vector<2x32xf32>
    %869 = arith.negf %868 : vector<2x32xf32>
    %870 = math.exp %869 : vector<2x32xf32>
    %cst_115 = arith.constant 1.000000e+00 : f32
    %871 = vector.broadcast %cst_115 : f32 to vector<2x32xf32>
    %872 = arith.addf %871, %870 : vector<2x32xf32>
    %873 = arith.divf %871, %872 : vector<2x32xf32>
    %874 = vector.extract_strided_slice %835 {offsets = [0, 32], sizes = [2, 32], strides = [1, 1]} : vector<2x96xf32> to vector<2x32xf32>
    %875 = vector.extract_strided_slice %864 {offsets = [0, 32], sizes = [2, 32], strides = [1, 1]} : vector<2x96xf32> to vector<2x32xf32>
    %876 = arith.addf %874, %875 : vector<2x32xf32>
    %877 = arith.negf %876 : vector<2x32xf32>
    %878 = math.exp %877 : vector<2x32xf32>
    %cst_116 = arith.constant 1.000000e+00 : f32
    %879 = vector.broadcast %cst_116 : f32 to vector<2x32xf32>
    %880 = arith.addf %879, %878 : vector<2x32xf32>
    %881 = arith.divf %879, %880 : vector<2x32xf32>
    %882 = vector.extract_strided_slice %835 {offsets = [0, 64], sizes = [2, 32], strides = [1, 1]} : vector<2x96xf32> to vector<2x32xf32>
    %883 = vector.extract_strided_slice %864 {offsets = [0, 64], sizes = [2, 32], strides = [1, 1]} : vector<2x96xf32> to vector<2x32xf32>
    %884 = arith.mulf %873, %883 : vector<2x32xf32>
    %885 = arith.addf %882, %884 : vector<2x32xf32>
    %886 = math.tanh %885 : vector<2x32xf32>
    %cst_117 = arith.constant 1.000000e+00 : f32
    %887 = vector.broadcast %cst_117 : f32 to vector<2x32xf32>
    %888 = arith.subf %887, %881 : vector<2x32xf32>
    %889 = arith.mulf %888, %886 : vector<2x32xf32>
    %890 = arith.mulf %881, %865 : vector<2x32xf32>
    %891 = arith.addf %889, %890 : vector<2x32xf32>
    %892 = tpu.concatenate %863, %891 in 1 : vector<2x32xf32>, vector<2x32xf32> -> vector<2x64xf32>
    %cst_118 = arith.constant dense<0.000000e+00> : vector<2x192xf32>
    %893 = tpu.matmul %892, %515, %cst_118 {dimension_numbers = #tpu.dot_dimension_numbers<[1], [0], [0], [1], [0, 0, 1, 1], [], []>} : vector<2x64xf32>, vector<64x192xf32>, vector<2x192xf32> -> vector<2x192xf32>
    %894 = vector.broadcast %516 : vector<1x192xf32> to vector<2x192xf32>
    %895 = arith.addf %893, %894 : vector<2x192xf32>
    %896 = vector.extract_strided_slice %519 {offsets = [12, 0], sizes = [2, 96], strides = [1, 1]} : vector<16x192xf32> to vector<2x96xf32>
    %897 = vector.extract_strided_slice %519 {offsets = [2, 96], sizes = [2, 96], strides = [1, 1]} : vector<16x192xf32> to vector<2x96xf32>
    %898 = vector.extract_strided_slice %895 {offsets = [0, 0], sizes = [2, 96], strides = [1, 1]} : vector<2x192xf32> to vector<2x96xf32>
    %899 = vector.extract_strided_slice %892 {offsets = [0, 0], sizes = [2, 32], strides = [1, 1]} : vector<2x64xf32> to vector<2x32xf32>
    %900 = vector.extract_strided_slice %896 {offsets = [0, 0], sizes = [2, 32], strides = [1, 1]} : vector<2x96xf32> to vector<2x32xf32>
    %901 = vector.extract_strided_slice %898 {offsets = [0, 0], sizes = [2, 32], strides = [1, 1]} : vector<2x96xf32> to vector<2x32xf32>
    %902 = arith.addf %900, %901 : vector<2x32xf32>
    %903 = arith.negf %902 : vector<2x32xf32>
    %904 = math.exp %903 : vector<2x32xf32>
    %cst_119 = arith.constant 1.000000e+00 : f32
    %905 = vector.broadcast %cst_119 : f32 to vector<2x32xf32>
    %906 = arith.addf %905, %904 : vector<2x32xf32>
    %907 = arith.divf %905, %906 : vector<2x32xf32>
    %908 = vector.extract_strided_slice %896 {offsets = [0, 32], sizes = [2, 32], strides = [1, 1]} : vector<2x96xf32> to vector<2x32xf32>
    %909 = vector.extract_strided_slice %898 {offsets = [0, 32], sizes = [2, 32], strides = [1, 1]} : vector<2x96xf32> to vector<2x32xf32>
    %910 = arith.addf %908, %909 : vector<2x32xf32>
    %911 = arith.negf %910 : vector<2x32xf32>
    %912 = math.exp %911 : vector<2x32xf32>
    %cst_120 = arith.constant 1.000000e+00 : f32
    %913 = vector.broadcast %cst_120 : f32 to vector<2x32xf32>
    %914 = arith.addf %913, %912 : vector<2x32xf32>
    %915 = arith.divf %913, %914 : vector<2x32xf32>
    %916 = vector.extract_strided_slice %896 {offsets = [0, 64], sizes = [2, 32], strides = [1, 1]} : vector<2x96xf32> to vector<2x32xf32>
    %917 = vector.extract_strided_slice %898 {offsets = [0, 64], sizes = [2, 32], strides = [1, 1]} : vector<2x96xf32> to vector<2x32xf32>
    %918 = arith.mulf %907, %917 : vector<2x32xf32>
    %919 = arith.addf %916, %918 : vector<2x32xf32>
    %920 = math.tanh %919 : vector<2x32xf32>
    %cst_121 = arith.constant 1.000000e+00 : f32
    %921 = vector.broadcast %cst_121 : f32 to vector<2x32xf32>
    %922 = arith.subf %921, %915 : vector<2x32xf32>
    %923 = arith.mulf %922, %920 : vector<2x32xf32>
    %924 = arith.mulf %915, %899 : vector<2x32xf32>
    %925 = arith.addf %923, %924 : vector<2x32xf32>
    %926 = vector.extract_strided_slice %895 {offsets = [0, 96], sizes = [2, 96], strides = [1, 1]} : vector<2x192xf32> to vector<2x96xf32>
    %927 = vector.extract_strided_slice %892 {offsets = [0, 32], sizes = [2, 32], strides = [1, 1]} : vector<2x64xf32> to vector<2x32xf32>
    %928 = vector.extract_strided_slice %897 {offsets = [0, 0], sizes = [2, 32], strides = [1, 1]} : vector<2x96xf32> to vector<2x32xf32>
    %929 = vector.extract_strided_slice %926 {offsets = [0, 0], sizes = [2, 32], strides = [1, 1]} : vector<2x96xf32> to vector<2x32xf32>
    %930 = arith.addf %928, %929 : vector<2x32xf32>
    %931 = arith.negf %930 : vector<2x32xf32>
    %932 = math.exp %931 : vector<2x32xf32>
    %cst_122 = arith.constant 1.000000e+00 : f32
    %933 = vector.broadcast %cst_122 : f32 to vector<2x32xf32>
    %934 = arith.addf %933, %932 : vector<2x32xf32>
    %935 = arith.divf %933, %934 : vector<2x32xf32>
    %936 = vector.extract_strided_slice %897 {offsets = [0, 32], sizes = [2, 32], strides = [1, 1]} : vector<2x96xf32> to vector<2x32xf32>
    %937 = vector.extract_strided_slice %926 {offsets = [0, 32], sizes = [2, 32], strides = [1, 1]} : vector<2x96xf32> to vector<2x32xf32>
    %938 = arith.addf %936, %937 : vector<2x32xf32>
    %939 = arith.negf %938 : vector<2x32xf32>
    %940 = math.exp %939 : vector<2x32xf32>
    %cst_123 = arith.constant 1.000000e+00 : f32
    %941 = vector.broadcast %cst_123 : f32 to vector<2x32xf32>
    %942 = arith.addf %941, %940 : vector<2x32xf32>
    %943 = arith.divf %941, %942 : vector<2x32xf32>
    %944 = vector.extract_strided_slice %897 {offsets = [0, 64], sizes = [2, 32], strides = [1, 1]} : vector<2x96xf32> to vector<2x32xf32>
    %945 = vector.extract_strided_slice %926 {offsets = [0, 64], sizes = [2, 32], strides = [1, 1]} : vector<2x96xf32> to vector<2x32xf32>
    %946 = arith.mulf %935, %945 : vector<2x32xf32>
    %947 = arith.addf %944, %946 : vector<2x32xf32>
    %948 = math.tanh %947 : vector<2x32xf32>
    %cst_124 = arith.constant 1.000000e+00 : f32
    %949 = vector.broadcast %cst_124 : f32 to vector<2x32xf32>
    %950 = arith.subf %949, %943 : vector<2x32xf32>
    %951 = arith.mulf %950, %948 : vector<2x32xf32>
    %952 = arith.mulf %943, %927 : vector<2x32xf32>
    %953 = arith.addf %951, %952 : vector<2x32xf32>
    %954 = tpu.concatenate %925, %953 in 1 : vector<2x32xf32>, vector<2x32xf32> -> vector<2x64xf32>
    %cst_125 = arith.constant dense<0.000000e+00> : vector<2x192xf32>
    %955 = tpu.matmul %954, %515, %cst_125 {dimension_numbers = #tpu.dot_dimension_numbers<[1], [0], [0], [1], [0, 0, 1, 1], [], []>} : vector<2x64xf32>, vector<64x192xf32>, vector<2x192xf32> -> vector<2x192xf32>
    %956 = vector.broadcast %516 : vector<1x192xf32> to vector<2x192xf32>
    %957 = arith.addf %955, %956 : vector<2x192xf32>
    %958 = vector.extract_strided_slice %519 {offsets = [14, 0], sizes = [2, 96], strides = [1, 1]} : vector<16x192xf32> to vector<2x96xf32>
    %959 = vector.extract_strided_slice %519 {offsets = [0, 96], sizes = [2, 96], strides = [1, 1]} : vector<16x192xf32> to vector<2x96xf32>
    %960 = vector.extract_strided_slice %957 {offsets = [0, 0], sizes = [2, 96], strides = [1, 1]} : vector<2x192xf32> to vector<2x96xf32>
    %961 = vector.extract_strided_slice %954 {offsets = [0, 0], sizes = [2, 32], strides = [1, 1]} : vector<2x64xf32> to vector<2x32xf32>
    %962 = vector.extract_strided_slice %958 {offsets = [0, 0], sizes = [2, 32], strides = [1, 1]} : vector<2x96xf32> to vector<2x32xf32>
    %963 = vector.extract_strided_slice %960 {offsets = [0, 0], sizes = [2, 32], strides = [1, 1]} : vector<2x96xf32> to vector<2x32xf32>
    %964 = arith.addf %962, %963 : vector<2x32xf32>
    %965 = arith.negf %964 : vector<2x32xf32>
    %966 = math.exp %965 : vector<2x32xf32>
    %cst_126 = arith.constant 1.000000e+00 : f32
    %967 = vector.broadcast %cst_126 : f32 to vector<2x32xf32>
    %968 = arith.addf %967, %966 : vector<2x32xf32>
    %969 = arith.divf %967, %968 : vector<2x32xf32>
    %970 = vector.extract_strided_slice %958 {offsets = [0, 32], sizes = [2, 32], strides = [1, 1]} : vector<2x96xf32> to vector<2x32xf32>
    %971 = vector.extract_strided_slice %960 {offsets = [0, 32], sizes = [2, 32], strides = [1, 1]} : vector<2x96xf32> to vector<2x32xf32>
    %972 = arith.addf %970, %971 : vector<2x32xf32>
    %973 = arith.negf %972 : vector<2x32xf32>
    %974 = math.exp %973 : vector<2x32xf32>
    %cst_127 = arith.constant 1.000000e+00 : f32
    %975 = vector.broadcast %cst_127 : f32 to vector<2x32xf32>
    %976 = arith.addf %975, %974 : vector<2x32xf32>
    %977 = arith.divf %975, %976 : vector<2x32xf32>
    %978 = vector.extract_strided_slice %958 {offsets = [0, 64], sizes = [2, 32], strides = [1, 1]} : vector<2x96xf32> to vector<2x32xf32>
    %979 = vector.extract_strided_slice %960 {offsets = [0, 64], sizes = [2, 32], strides = [1, 1]} : vector<2x96xf32> to vector<2x32xf32>
    %980 = arith.mulf %969, %979 : vector<2x32xf32>
    %981 = arith.addf %978, %980 : vector<2x32xf32>
    %982 = math.tanh %981 : vector<2x32xf32>
    %cst_128 = arith.constant 1.000000e+00 : f32
    %983 = vector.broadcast %cst_128 : f32 to vector<2x32xf32>
    %984 = arith.subf %983, %977 : vector<2x32xf32>
    %985 = arith.mulf %984, %982 : vector<2x32xf32>
    %986 = arith.mulf %977, %961 : vector<2x32xf32>
    %987 = arith.addf %985, %986 : vector<2x32xf32>
    %988 = vector.extract_strided_slice %957 {offsets = [0, 96], sizes = [2, 96], strides = [1, 1]} : vector<2x192xf32> to vector<2x96xf32>
    %989 = vector.extract_strided_slice %954 {offsets = [0, 32], sizes = [2, 32], strides = [1, 1]} : vector<2x64xf32> to vector<2x32xf32>
    %990 = vector.extract_strided_slice %959 {offsets = [0, 0], sizes = [2, 32], strides = [1, 1]} : vector<2x96xf32> to vector<2x32xf32>
    %991 = vector.extract_strided_slice %988 {offsets = [0, 0], sizes = [2, 32], strides = [1, 1]} : vector<2x96xf32> to vector<2x32xf32>
    %992 = arith.addf %990, %991 : vector<2x32xf32>
    %993 = arith.negf %992 : vector<2x32xf32>
    %994 = math.exp %993 : vector<2x32xf32>
    %cst_129 = arith.constant 1.000000e+00 : f32
    %995 = vector.broadcast %cst_129 : f32 to vector<2x32xf32>
    %996 = arith.addf %995, %994 : vector<2x32xf32>
    %997 = arith.divf %995, %996 : vector<2x32xf32>
    %998 = vector.extract_strided_slice %959 {offsets = [0, 32], sizes = [2, 32], strides = [1, 1]} : vector<2x96xf32> to vector<2x32xf32>
    %999 = vector.extract_strided_slice %988 {offsets = [0, 32], sizes = [2, 32], strides = [1, 1]} : vector<2x96xf32> to vector<2x32xf32>
    %1000 = arith.addf %998, %999 : vector<2x32xf32>
    %1001 = arith.negf %1000 : vector<2x32xf32>
    %1002 = math.exp %1001 : vector<2x32xf32>
    %cst_130 = arith.constant 1.000000e+00 : f32
    %1003 = vector.broadcast %cst_130 : f32 to vector<2x32xf32>
    %1004 = arith.addf %1003, %1002 : vector<2x32xf32>
    %1005 = arith.divf %1003, %1004 : vector<2x32xf32>
    %1006 = vector.extract_strided_slice %959 {offsets = [0, 64], sizes = [2, 32], strides = [1, 1]} : vector<2x96xf32> to vector<2x32xf32>
    %1007 = vector.extract_strided_slice %988 {offsets = [0, 64], sizes = [2, 32], strides = [1, 1]} : vector<2x96xf32> to vector<2x32xf32>
    %1008 = arith.mulf %997, %1007 : vector<2x32xf32>
    %1009 = arith.addf %1006, %1008 : vector<2x32xf32>
    %1010 = math.tanh %1009 : vector<2x32xf32>
    %cst_131 = arith.constant 1.000000e+00 : f32
    %1011 = vector.broadcast %cst_131 : f32 to vector<2x32xf32>
    %1012 = arith.subf %1011, %1005 : vector<2x32xf32>
    %1013 = arith.mulf %1012, %1010 : vector<2x32xf32>
    %1014 = arith.mulf %1005, %989 : vector<2x32xf32>
    %1015 = arith.addf %1013, %1014 : vector<2x32xf32>
    %1016 = tpu.concatenate %987, %1015 in 1 : vector<2x32xf32>, vector<2x32xf32> -> vector<2x64xf32>
    %c0_132 = arith.constant 0 : index
    %c0_133 = arith.constant 0 : index
    %1017 = vector.load %arg9[%c0_132, %c0_133] : memref<16x32xf32, #tpu.memory_space<vmem>>, vector<16x32xf32>
    %c0_134 = arith.constant 0 : index
    %c0_135 = arith.constant 0 : index
    %1018 = vector.load %arg11[%c0_134, %c0_135] : memref<1x32xf32, #tpu.memory_space<vmem>>, vector<1x32xf32>
    %c0_136 = arith.constant 0 : index
    %c0_137 = arith.constant 0 : index
    %1019 = vector.load %arg12[%c0_136, %c0_137] : memref<1x32xf32, #tpu.memory_space<vmem>>, vector<1x32xf32>
    %cst_138 = arith.constant dense<0.000000e+00> : vector<16xf32>
    %1020 = vector.multi_reduction <add>, %1017, %cst_138 [1] : vector<16x32xf32> to vector<16xf32>
    %1021 = vector.shape_cast %1020 : vector<16xf32> to vector<16x1xf32>
    %cst_139 = arith.constant 3.200000e+01 : f32
    %1022 = vector.broadcast %cst_139 : f32 to vector<16x1xf32>
    %1023 = arith.divf %1021, %1022 : vector<16x1xf32>
    %1024 = vector.broadcast %1023 : vector<16x1xf32> to vector<16x32xf32>
    %1025 = arith.subf %1017, %1024 : vector<16x32xf32>
    %1026 = arith.mulf %1025, %1025 : vector<16x32xf32>
    %cst_140 = arith.constant dense<0.000000e+00> : vector<16xf32>
    %1027 = vector.multi_reduction <add>, %1026, %cst_140 [1] : vector<16x32xf32> to vector<16xf32>
    %1028 = vector.shape_cast %1027 : vector<16xf32> to vector<16x1xf32>
    %cst_141 = arith.constant 3.200000e+01 : f32
    %1029 = vector.broadcast %cst_141 : f32 to vector<16x1xf32>
    %1030 = arith.divf %1028, %1029 : vector<16x1xf32>
    %1031 = vector.broadcast %1023 : vector<16x1xf32> to vector<16x32xf32>
    %1032 = arith.subf %1017, %1031 : vector<16x32xf32>
    %cst_142 = arith.constant 9.99999996E-13 : f32
    %1033 = vector.broadcast %cst_142 : f32 to vector<16x1xf32>
    %1034 = arith.addf %1030, %1033 : vector<16x1xf32>
    %1035 = math.rsqrt %1034 : vector<16x1xf32>
    %1036 = vector.broadcast %1035 : vector<16x1xf32> to vector<16x32xf32>
    %1037 = arith.mulf %1032, %1036 : vector<16x32xf32>
    %1038 = vector.broadcast %1018 : vector<1x32xf32> to vector<16x32xf32>
    %1039 = arith.mulf %1037, %1038 : vector<16x32xf32>
    %1040 = vector.broadcast %1019 : vector<1x32xf32> to vector<16x32xf32>
    %1041 = arith.addf %1039, %1040 : vector<16x32xf32>
    %c0_143 = arith.constant 0 : index
    %c0_144 = arith.constant 0 : index
    %1042 = vector.load %arg13[%c0_143, %c0_144] : memref<32x96xf32, #tpu.memory_space<vmem>>, vector<32x96xf32>
    %cst_145 = arith.constant dense<0.000000e+00> : vector<16x96xf32>
    %1043 = tpu.matmul %1041, %1042, %cst_145 {dimension_numbers = #tpu.dot_dimension_numbers<[1], [0], [0], [1], [0, 0, 1, 1], [], []>} : vector<16x32xf32>, vector<32x96xf32>, vector<16x96xf32> -> vector<16x96xf32>
    %c0_146 = arith.constant 0 : index
    %c0_147 = arith.constant 0 : index
    %1044 = vector.load %arg14[%c0_146, %c0_147] : memref<1x96xf32, #tpu.memory_space<vmem>>, vector<1x96xf32>
    %1045 = vector.broadcast %1044 : vector<1x96xf32> to vector<16x96xf32>
    %1046 = arith.addf %1043, %1045 : vector<16x96xf32>
    %1047 = vector.extract_strided_slice %1046 {offsets = [0, 0], sizes = [8, 96], strides = [1, 1]} : vector<16x96xf32> to vector<8x96xf32>
    %c0_148 = arith.constant 0 : index
    %c0_149 = arith.constant 0 : index
    %1048 = vector.load %arg10[%c0_148, %c0_149] : memref<2x8xf32, #tpu.memory_space<vmem>>, vector<1x8xf32>
    %1049 = vector.extract_strided_slice %1047 {offsets = [0, 0], sizes = [8, 16], strides = [1, 1]} : vector<8x96xf32> to vector<8x16xf32>
    %1050 = vector.extract_strided_slice %1047 {offsets = [0, 32], sizes = [8, 16], strides = [1, 1]} : vector<8x96xf32> to vector<8x16xf32>
    %1051 = vector.extract_strided_slice %1047 {offsets = [0, 64], sizes = [8, 16], strides = [1, 1]} : vector<8x96xf32> to vector<8x16xf32>
    %cst_150 = arith.constant dense<0.000000e+00> : vector<8x8xf32>
    %1052 = tpu.matmul %1049, %1050, %cst_150 {dimension_numbers = #tpu.dot_dimension_numbers<[1], [1], [0], [0], [0, 0, 1, 0], [], []>} : vector<8x16xf32>, vector<8x16xf32>, vector<8x8xf32> -> vector<8x8xf32>
    %cst_151 = arith.constant 2.500000e-01 : f32
    %1053 = vector.broadcast %cst_151 : f32 to vector<8x8xf32>
    %1054 = arith.mulf %1052, %1053 : vector<8x8xf32>
    %1055 = vector.broadcast %1048 : vector<1x8xf32> to vector<8x8xf32>
    %1056 = arith.addf %1054, %1055 : vector<8x8xf32>
    %cst_152 = arith.constant dense<0xFF800000> : vector<8xf32>
    %1057 = vector.multi_reduction <maximumf>, %1056, %cst_152 [1] : vector<8x8xf32> to vector<8xf32>
    %1058 = vector.shape_cast %1057 : vector<8xf32> to vector<8x1xf32>
    %1059 = vector.broadcast %1058 : vector<8x1xf32> to vector<8x8xf32>
    %1060 = arith.subf %1056, %1059 : vector<8x8xf32>
    %1061 = math.exp %1060 : vector<8x8xf32>
    %cst_153 = arith.constant dense<0.000000e+00> : vector<8xf32>
    %1062 = vector.multi_reduction <add>, %1061, %cst_153 [1] : vector<8x8xf32> to vector<8xf32>
    %1063 = vector.shape_cast %1062 : vector<8xf32> to vector<8x1xf32>
    %1064 = vector.broadcast %1063 : vector<8x1xf32> to vector<8x8xf32>
    %1065 = arith.divf %1061, %1064 : vector<8x8xf32>
    %cst_154 = arith.constant dense<0.000000e+00> : vector<8x16xf32>
    %1066 = tpu.matmul %1065, %1051, %cst_154 {dimension_numbers = #tpu.dot_dimension_numbers<[1], [0], [0], [1], [0, 0, 1, 1], [], []>} : vector<8x8xf32>, vector<8x16xf32>, vector<8x16xf32> -> vector<8x16xf32>
    %1067 = vector.extract_strided_slice %1047 {offsets = [0, 16], sizes = [8, 16], strides = [1, 1]} : vector<8x96xf32> to vector<8x16xf32>
    %1068 = vector.extract_strided_slice %1047 {offsets = [0, 48], sizes = [8, 16], strides = [1, 1]} : vector<8x96xf32> to vector<8x16xf32>
    %1069 = vector.extract_strided_slice %1047 {offsets = [0, 80], sizes = [8, 16], strides = [1, 1]} : vector<8x96xf32> to vector<8x16xf32>
    %cst_155 = arith.constant dense<0.000000e+00> : vector<8x8xf32>
    %1070 = tpu.matmul %1067, %1068, %cst_155 {dimension_numbers = #tpu.dot_dimension_numbers<[1], [1], [0], [0], [0, 0, 1, 0], [], []>} : vector<8x16xf32>, vector<8x16xf32>, vector<8x8xf32> -> vector<8x8xf32>
    %cst_156 = arith.constant 2.500000e-01 : f32
    %1071 = vector.broadcast %cst_156 : f32 to vector<8x8xf32>
    %1072 = arith.mulf %1070, %1071 : vector<8x8xf32>
    %1073 = vector.broadcast %1048 : vector<1x8xf32> to vector<8x8xf32>
    %1074 = arith.addf %1072, %1073 : vector<8x8xf32>
    %cst_157 = arith.constant dense<0xFF800000> : vector<8xf32>
    %1075 = vector.multi_reduction <maximumf>, %1074, %cst_157 [1] : vector<8x8xf32> to vector<8xf32>
    %1076 = vector.shape_cast %1075 : vector<8xf32> to vector<8x1xf32>
    %1077 = vector.broadcast %1076 : vector<8x1xf32> to vector<8x8xf32>
    %1078 = arith.subf %1074, %1077 : vector<8x8xf32>
    %1079 = math.exp %1078 : vector<8x8xf32>
    %cst_158 = arith.constant dense<0.000000e+00> : vector<8xf32>
    %1080 = vector.multi_reduction <add>, %1079, %cst_158 [1] : vector<8x8xf32> to vector<8xf32>
    %1081 = vector.shape_cast %1080 : vector<8xf32> to vector<8x1xf32>
    %1082 = vector.broadcast %1081 : vector<8x1xf32> to vector<8x8xf32>
    %1083 = arith.divf %1079, %1082 : vector<8x8xf32>
    %cst_159 = arith.constant dense<0.000000e+00> : vector<8x16xf32>
    %1084 = tpu.matmul %1083, %1069, %cst_159 {dimension_numbers = #tpu.dot_dimension_numbers<[1], [0], [0], [1], [0, 0, 1, 1], [], []>} : vector<8x8xf32>, vector<8x16xf32>, vector<8x16xf32> -> vector<8x16xf32>
    %1085 = tpu.concatenate %1066, %1084 in 1 : vector<8x16xf32>, vector<8x16xf32> -> vector<8x32xf32>
    %1086 = vector.extract_strided_slice %1046 {offsets = [8, 0], sizes = [8, 96], strides = [1, 1]} : vector<16x96xf32> to vector<8x96xf32>
    %c1 = arith.constant 1 : index
    %c0_160 = arith.constant 0 : index
    %1087 = vector.load %arg10[%c1, %c0_160] : memref<2x8xf32, #tpu.memory_space<vmem>>, vector<1x8xf32>
    %1088 = vector.extract_strided_slice %1086 {offsets = [0, 0], sizes = [8, 16], strides = [1, 1]} : vector<8x96xf32> to vector<8x16xf32>
    %1089 = vector.extract_strided_slice %1086 {offsets = [0, 32], sizes = [8, 16], strides = [1, 1]} : vector<8x96xf32> to vector<8x16xf32>
    %1090 = vector.extract_strided_slice %1086 {offsets = [0, 64], sizes = [8, 16], strides = [1, 1]} : vector<8x96xf32> to vector<8x16xf32>
    %cst_161 = arith.constant dense<0.000000e+00> : vector<8x8xf32>
    %1091 = tpu.matmul %1088, %1089, %cst_161 {dimension_numbers = #tpu.dot_dimension_numbers<[1], [1], [0], [0], [0, 0, 1, 0], [], []>} : vector<8x16xf32>, vector<8x16xf32>, vector<8x8xf32> -> vector<8x8xf32>
    %cst_162 = arith.constant 2.500000e-01 : f32
    %1092 = vector.broadcast %cst_162 : f32 to vector<8x8xf32>
    %1093 = arith.mulf %1091, %1092 : vector<8x8xf32>
    %1094 = vector.broadcast %1087 : vector<1x8xf32> to vector<8x8xf32>
    %1095 = arith.addf %1093, %1094 : vector<8x8xf32>
    %cst_163 = arith.constant dense<0xFF800000> : vector<8xf32>
    %1096 = vector.multi_reduction <maximumf>, %1095, %cst_163 [1] : vector<8x8xf32> to vector<8xf32>
    %1097 = vector.shape_cast %1096 : vector<8xf32> to vector<8x1xf32>
    %1098 = vector.broadcast %1097 : vector<8x1xf32> to vector<8x8xf32>
    %1099 = arith.subf %1095, %1098 : vector<8x8xf32>
    %1100 = math.exp %1099 : vector<8x8xf32>
    %cst_164 = arith.constant dense<0.000000e+00> : vector<8xf32>
    %1101 = vector.multi_reduction <add>, %1100, %cst_164 [1] : vector<8x8xf32> to vector<8xf32>
    %1102 = vector.shape_cast %1101 : vector<8xf32> to vector<8x1xf32>
    %1103 = vector.broadcast %1102 : vector<8x1xf32> to vector<8x8xf32>
    %1104 = arith.divf %1100, %1103 : vector<8x8xf32>
    %cst_165 = arith.constant dense<0.000000e+00> : vector<8x16xf32>
    %1105 = tpu.matmul %1104, %1090, %cst_165 {dimension_numbers = #tpu.dot_dimension_numbers<[1], [0], [0], [1], [0, 0, 1, 1], [], []>} : vector<8x8xf32>, vector<8x16xf32>, vector<8x16xf32> -> vector<8x16xf32>
    %1106 = vector.extract_strided_slice %1086 {offsets = [0, 16], sizes = [8, 16], strides = [1, 1]} : vector<8x96xf32> to vector<8x16xf32>
    %1107 = vector.extract_strided_slice %1086 {offsets = [0, 48], sizes = [8, 16], strides = [1, 1]} : vector<8x96xf32> to vector<8x16xf32>
    %1108 = vector.extract_strided_slice %1086 {offsets = [0, 80], sizes = [8, 16], strides = [1, 1]} : vector<8x96xf32> to vector<8x16xf32>
    %cst_166 = arith.constant dense<0.000000e+00> : vector<8x8xf32>
    %1109 = tpu.matmul %1106, %1107, %cst_166 {dimension_numbers = #tpu.dot_dimension_numbers<[1], [1], [0], [0], [0, 0, 1, 0], [], []>} : vector<8x16xf32>, vector<8x16xf32>, vector<8x8xf32> -> vector<8x8xf32>
    %cst_167 = arith.constant 2.500000e-01 : f32
    %1110 = vector.broadcast %cst_167 : f32 to vector<8x8xf32>
    %1111 = arith.mulf %1109, %1110 : vector<8x8xf32>
    %1112 = vector.broadcast %1087 : vector<1x8xf32> to vector<8x8xf32>
    %1113 = arith.addf %1111, %1112 : vector<8x8xf32>
    %cst_168 = arith.constant dense<0xFF800000> : vector<8xf32>
    %1114 = vector.multi_reduction <maximumf>, %1113, %cst_168 [1] : vector<8x8xf32> to vector<8xf32>
    %1115 = vector.shape_cast %1114 : vector<8xf32> to vector<8x1xf32>
    %1116 = vector.broadcast %1115 : vector<8x1xf32> to vector<8x8xf32>
    %1117 = arith.subf %1113, %1116 : vector<8x8xf32>
    %1118 = math.exp %1117 : vector<8x8xf32>
    %cst_169 = arith.constant dense<0.000000e+00> : vector<8xf32>
    %1119 = vector.multi_reduction <add>, %1118, %cst_169 [1] : vector<8x8xf32> to vector<8xf32>
    %1120 = vector.shape_cast %1119 : vector<8xf32> to vector<8x1xf32>
    %1121 = vector.broadcast %1120 : vector<8x1xf32> to vector<8x8xf32>
    %1122 = arith.divf %1118, %1121 : vector<8x8xf32>
    %cst_170 = arith.constant dense<0.000000e+00> : vector<8x16xf32>
    %1123 = tpu.matmul %1122, %1108, %cst_170 {dimension_numbers = #tpu.dot_dimension_numbers<[1], [0], [0], [1], [0, 0, 1, 1], [], []>} : vector<8x8xf32>, vector<8x16xf32>, vector<8x16xf32> -> vector<8x16xf32>
    %1124 = tpu.concatenate %1105, %1123 in 1 : vector<8x16xf32>, vector<8x16xf32> -> vector<8x32xf32>
    %1125 = tpu.concatenate %1085, %1124 in 0 : vector<8x32xf32>, vector<8x32xf32> -> vector<16x32xf32>
    %c0_171 = arith.constant 0 : index
    %c0_172 = arith.constant 0 : index
    %1126 = vector.load %arg15[%c0_171, %c0_172] : memref<32x32xf32, #tpu.memory_space<vmem>>, vector<32x32xf32>
    %cst_173 = arith.constant dense<0.000000e+00> : vector<16x32xf32>
    %1127 = tpu.matmul %1125, %1126, %cst_173 {dimension_numbers = #tpu.dot_dimension_numbers<[1], [0], [0], [1], [0, 0, 1, 1], [], []>} : vector<16x32xf32>, vector<32x32xf32>, vector<16x32xf32> -> vector<16x32xf32>
    %c0_174 = arith.constant 0 : index
    %c0_175 = arith.constant 0 : index
    %1128 = vector.load %arg16[%c0_174, %c0_175] : memref<1x32xf32, #tpu.memory_space<vmem>>, vector<1x32xf32>
    %1129 = vector.broadcast %1128 : vector<1x32xf32> to vector<16x32xf32>
    %1130 = arith.addf %1127, %1129 : vector<16x32xf32>
    %1131 = arith.addf %1041, %1130 : vector<16x32xf32>
    %c0_176 = arith.constant 0 : index
    %c0_177 = arith.constant 0 : index
    %1132 = vector.load %arg17[%c0_176, %c0_177] : memref<1x32xf32, #tpu.memory_space<vmem>>, vector<1x32xf32>
    %c0_178 = arith.constant 0 : index
    %c0_179 = arith.constant 0 : index
    %1133 = vector.load %arg18[%c0_178, %c0_179] : memref<1x32xf32, #tpu.memory_space<vmem>>, vector<1x32xf32>
    %cst_180 = arith.constant dense<0.000000e+00> : vector<16xf32>
    %1134 = vector.multi_reduction <add>, %1131, %cst_180 [1] : vector<16x32xf32> to vector<16xf32>
    %1135 = vector.shape_cast %1134 : vector<16xf32> to vector<16x1xf32>
    %cst_181 = arith.constant 3.200000e+01 : f32
    %1136 = vector.broadcast %cst_181 : f32 to vector<16x1xf32>
    %1137 = arith.divf %1135, %1136 : vector<16x1xf32>
    %1138 = vector.broadcast %1137 : vector<16x1xf32> to vector<16x32xf32>
    %1139 = arith.subf %1131, %1138 : vector<16x32xf32>
    %1140 = arith.mulf %1139, %1139 : vector<16x32xf32>
    %cst_182 = arith.constant dense<0.000000e+00> : vector<16xf32>
    %1141 = vector.multi_reduction <add>, %1140, %cst_182 [1] : vector<16x32xf32> to vector<16xf32>
    %1142 = vector.shape_cast %1141 : vector<16xf32> to vector<16x1xf32>
    %cst_183 = arith.constant 3.200000e+01 : f32
    %1143 = vector.broadcast %cst_183 : f32 to vector<16x1xf32>
    %1144 = arith.divf %1142, %1143 : vector<16x1xf32>
    %1145 = vector.broadcast %1137 : vector<16x1xf32> to vector<16x32xf32>
    %1146 = arith.subf %1131, %1145 : vector<16x32xf32>
    %cst_184 = arith.constant 9.99999996E-13 : f32
    %1147 = vector.broadcast %cst_184 : f32 to vector<16x1xf32>
    %1148 = arith.addf %1144, %1147 : vector<16x1xf32>
    %1149 = math.rsqrt %1148 : vector<16x1xf32>
    %1150 = vector.broadcast %1149 : vector<16x1xf32> to vector<16x32xf32>
    %1151 = arith.mulf %1146, %1150 : vector<16x32xf32>
    %1152 = vector.broadcast %1132 : vector<1x32xf32> to vector<16x32xf32>
    %1153 = arith.mulf %1151, %1152 : vector<16x32xf32>
    %1154 = vector.broadcast %1133 : vector<1x32xf32> to vector<16x32xf32>
    %1155 = arith.addf %1153, %1154 : vector<16x32xf32>
    %c0_185 = arith.constant 0 : index
    %c0_186 = arith.constant 0 : index
    %1156 = vector.load %arg19[%c0_185, %c0_186] : memref<32x128xf32, #tpu.memory_space<vmem>>, vector<32x128xf32>
    %cst_187 = arith.constant dense<0.000000e+00> : vector<16x128xf32>
    %1157 = tpu.matmul %1155, %1156, %cst_187 {dimension_numbers = #tpu.dot_dimension_numbers<[1], [0], [0], [1], [0, 0, 1, 1], [], []>} : vector<16x32xf32>, vector<32x128xf32>, vector<16x128xf32> -> vector<16x128xf32>
    %c0_188 = arith.constant 0 : index
    %c0_189 = arith.constant 0 : index
    %1158 = vector.load %arg20[%c0_188, %c0_189] : memref<1x128xf32, #tpu.memory_space<vmem>>, vector<1x128xf32>
    %1159 = vector.broadcast %1158 : vector<1x128xf32> to vector<16x128xf32>
    %1160 = arith.addf %1157, %1159 : vector<16x128xf32>
    %cst_190 = arith.constant 5.000000e-01 : f32
    %1161 = vector.broadcast %cst_190 : f32 to vector<16x128xf32>
    %1162 = arith.mulf %1161, %1160 : vector<16x128xf32>
    %cst_191 = arith.constant 4.471500e-02 : f32
    %1163 = vector.broadcast %cst_191 : f32 to vector<16x128xf32>
    %1164 = arith.mulf %1163, %1160 : vector<16x128xf32>
    %1165 = arith.mulf %1164, %1160 : vector<16x128xf32>
    %1166 = arith.mulf %1165, %1160 : vector<16x128xf32>
    %1167 = arith.addf %1160, %1166 : vector<16x128xf32>
    %cst_192 = arith.constant 0.797884583 : f32
    %1168 = vector.broadcast %cst_192 : f32 to vector<16x128xf32>
    %1169 = arith.mulf %1168, %1167 : vector<16x128xf32>
    %1170 = math.tanh %1169 : vector<16x128xf32>
    %cst_193 = arith.constant 1.000000e+00 : f32
    %1171 = vector.broadcast %cst_193 : f32 to vector<16x128xf32>
    %1172 = arith.addf %1171, %1170 : vector<16x128xf32>
    %1173 = arith.mulf %1162, %1172 : vector<16x128xf32>
    %c0_194 = arith.constant 0 : index
    %c0_195 = arith.constant 0 : index
    %1174 = vector.load %arg21[%c0_194, %c0_195] : memref<128x32xf32, #tpu.memory_space<vmem>>, vector<128x32xf32>
    %cst_196 = arith.constant dense<0.000000e+00> : vector<16x32xf32>
    %1175 = tpu.matmul %1173, %1174, %cst_196 {dimension_numbers = #tpu.dot_dimension_numbers<[1], [0], [0], [1], [0, 0, 1, 1], [], []>} : vector<16x128xf32>, vector<128x32xf32>, vector<16x32xf32> -> vector<16x32xf32>
    %c0_197 = arith.constant 0 : index
    %c0_198 = arith.constant 0 : index
    %1176 = vector.load %arg22[%c0_197, %c0_198] : memref<1x32xf32, #tpu.memory_space<vmem>>, vector<1x32xf32>
    %1177 = vector.broadcast %1176 : vector<1x32xf32> to vector<16x32xf32>
    %1178 = arith.addf %1175, %1177 : vector<16x32xf32>
    %1179 = arith.addf %1155, %1178 : vector<16x32xf32>
    %c0_199 = arith.constant 0 : index
    %c0_200 = arith.constant 0 : index
    %1180 = vector.load %arg23[%c0_199, %c0_200] : memref<1x32xf32, #tpu.memory_space<vmem>>, vector<1x32xf32>
    %c0_201 = arith.constant 0 : index
    %c0_202 = arith.constant 0 : index
    %1181 = vector.load %arg24[%c0_201, %c0_202] : memref<1x32xf32, #tpu.memory_space<vmem>>, vector<1x32xf32>
    %cst_203 = arith.constant dense<0.000000e+00> : vector<16xf32>
    %1182 = vector.multi_reduction <add>, %1179, %cst_203 [1] : vector<16x32xf32> to vector<16xf32>
    %1183 = vector.shape_cast %1182 : vector<16xf32> to vector<16x1xf32>
    %cst_204 = arith.constant 3.200000e+01 : f32
    %1184 = vector.broadcast %cst_204 : f32 to vector<16x1xf32>
    %1185 = arith.divf %1183, %1184 : vector<16x1xf32>
    %1186 = vector.broadcast %1185 : vector<16x1xf32> to vector<16x32xf32>
    %1187 = arith.subf %1179, %1186 : vector<16x32xf32>
    %1188 = arith.mulf %1187, %1187 : vector<16x32xf32>
    %cst_205 = arith.constant dense<0.000000e+00> : vector<16xf32>
    %1189 = vector.multi_reduction <add>, %1188, %cst_205 [1] : vector<16x32xf32> to vector<16xf32>
    %1190 = vector.shape_cast %1189 : vector<16xf32> to vector<16x1xf32>
    %cst_206 = arith.constant 3.200000e+01 : f32
    %1191 = vector.broadcast %cst_206 : f32 to vector<16x1xf32>
    %1192 = arith.divf %1190, %1191 : vector<16x1xf32>
    %1193 = vector.broadcast %1185 : vector<16x1xf32> to vector<16x32xf32>
    %1194 = arith.subf %1179, %1193 : vector<16x32xf32>
    %cst_207 = arith.constant 9.99999996E-13 : f32
    %1195 = vector.broadcast %cst_207 : f32 to vector<16x1xf32>
    %1196 = arith.addf %1192, %1195 : vector<16x1xf32>
    %1197 = math.rsqrt %1196 : vector<16x1xf32>
    %1198 = vector.broadcast %1197 : vector<16x1xf32> to vector<16x32xf32>
    %1199 = arith.mulf %1194, %1198 : vector<16x32xf32>
    %1200 = vector.broadcast %1180 : vector<1x32xf32> to vector<16x32xf32>
    %1201 = arith.mulf %1199, %1200 : vector<16x32xf32>
    %1202 = vector.broadcast %1181 : vector<1x32xf32> to vector<16x32xf32>
    %1203 = arith.addf %1201, %1202 : vector<16x32xf32>
    %1204 = vector.extract_strided_slice %1203 {offsets = [0, 0], sizes = [1, 32], strides = [1, 1]} : vector<16x32xf32> to vector<1x32xf32>
    %1205 = vector.extract_strided_slice %1203 {offsets = [8, 0], sizes = [1, 32], strides = [1, 1]} : vector<16x32xf32> to vector<1x32xf32>
    %1206 = tpu.concatenate %1204, %1205 in 0 : vector<1x32xf32>, vector<1x32xf32> -> vector<2x32xf32>
    %c0_208 = arith.constant 0 : index
    %c0_209 = arith.constant 0 : index
    %1207 = vector.load %arg25[%c0_208, %c0_209] : memref<32x32xf32, #tpu.memory_space<vmem>>, vector<32x32xf32>
    %cst_210 = arith.constant dense<0.000000e+00> : vector<2x32xf32>
    %1208 = tpu.matmul %1206, %1207, %cst_210 {dimension_numbers = #tpu.dot_dimension_numbers<[1], [0], [0], [1], [0, 0, 1, 1], [], []>} : vector<2x32xf32>, vector<32x32xf32>, vector<2x32xf32> -> vector<2x32xf32>
    %c0_211 = arith.constant 0 : index
    %c0_212 = arith.constant 0 : index
    %1209 = vector.load %arg26[%c0_211, %c0_212] : memref<1x32xf32, #tpu.memory_space<vmem>>, vector<1x32xf32>
    %1210 = vector.broadcast %1209 : vector<1x32xf32> to vector<2x32xf32>
    %1211 = arith.addf %1208, %1210 : vector<2x32xf32>
    %1212 = math.tanh %1211 : vector<2x32xf32>
    %c0_213 = arith.constant 0 : index
    %c0_214 = arith.constant 0 : index
    %1213 = vector.load %arg27[%c0_213, %c0_214] : memref<32x32xf32, #tpu.memory_space<vmem>>, vector<32x32xf32>
    %cst_215 = arith.constant dense<0.000000e+00> : vector<2x32xf32>
    %1214 = tpu.matmul %1212, %1213, %cst_215 {dimension_numbers = #tpu.dot_dimension_numbers<[1], [0], [0], [1], [0, 0, 1, 1], [], []>} : vector<2x32xf32>, vector<32x32xf32>, vector<2x32xf32> -> vector<2x32xf32>
    %c0_216 = arith.constant 0 : index
    %c0_217 = arith.constant 0 : index
    %1215 = vector.load %arg28[%c0_216, %c0_217] : memref<1x32xf32, #tpu.memory_space<vmem>>, vector<1x32xf32>
    %1216 = vector.broadcast %1215 : vector<1x32xf32> to vector<2x32xf32>
    %1217 = arith.addf %1214, %1216 : vector<2x32xf32>
    %1218 = math.tanh %1217 : vector<2x32xf32>
    %1219 = tpu.concatenate %1218, %1016 in 1 : vector<2x32xf32>, vector<2x64xf32> -> vector<2x96xf32>
    %c0_218 = arith.constant 0 : index
    %c0_219 = arith.constant 0 : index
    %1220 = vector.load %arg29[%c0_218, %c0_219] : memref<96x3xf32, #tpu.memory_space<vmem>>, vector<96x3xf32>
    %cst_220 = arith.constant dense<0.000000e+00> : vector<2x3xf32>
    %1221 = tpu.matmul %1219, %1220, %cst_220 {dimension_numbers = #tpu.dot_dimension_numbers<[1], [0], [0], [1], [0, 0, 1, 1], [], []>} : vector<2x96xf32>, vector<96x3xf32>, vector<2x3xf32> -> vector<2x3xf32>
    %c0_221 = arith.constant 0 : index
    %c0_222 = arith.constant 0 : index
    %1222 = vector.load %arg30[%c0_221, %c0_222] : memref<1x3xf32, #tpu.memory_space<vmem>>, vector<1x3xf32>
    %1223 = vector.broadcast %1222 : vector<1x3xf32> to vector<2x3xf32>
    %1224 = arith.addf %1221, %1223 : vector<2x3xf32>
    %c0_223 = arith.constant 0 : index
    %c0_224 = arith.constant 0 : index
    %1225 = vector.load %arg32[%c0_223, %c0_224] : memref<2x3xf32, #tpu.memory_space<vmem>>, vector<2x3xf32>
    tpu.vector_store %arg32[%c0_223, %c0_224], %1224 {strides = array<i32>} : memref<2x3xf32, #tpu.memory_space<vmem>>, vector<2x3xf32>,
    %cst_225 = arith.constant dense<0xFF800000> : vector<2xf32>
    %1226 = vector.multi_reduction <maximumf>, %1224, %cst_225 [1] : vector<2x3xf32> to vector<2xf32>
    %1227 = vector.shape_cast %1226 : vector<2xf32> to vector<2x1xf32>
    %1228 = vector.broadcast %1227 : vector<2x1xf32> to vector<2x3xf32>
    %1229 = arith.subf %1224, %1228 : vector<2x3xf32>
    %1230 = math.exp %1229 : vector<2x3xf32>
    %cst_226 = arith.constant dense<0.000000e+00> : vector<2xf32>
    %1231 = vector.multi_reduction <add>, %1230, %cst_226 [1] : vector<2x3xf32> to vector<2xf32>
    %1232 = vector.shape_cast %1231 : vector<2xf32> to vector<2x1xf32>
    %1233 = math.log %1232 : vector<2x1xf32>
    %1234 = arith.addf %1233, %1227 : vector<2x1xf32>
    %1235 = vector.broadcast %1234 : vector<2x1xf32> to vector<2x3xf32>
    %1236 = arith.subf %1235, %1224 : vector<2x3xf32>
    %c0_227 = arith.constant 0 : index
    %c0_228 = arith.constant 0 : index
    %1237 = vector.load %arg31[%c0_227, %c0_228] : memref<2x3xf32, #tpu.memory_space<vmem>>, vector<2x3xf32>
    %1238 = arith.mulf %1236, %1237 : vector<2x3xf32>
    %cst_229 = arith.constant dense<0.000000e+00> : vector<2xf32>
    %1239 = vector.multi_reduction <add>, %1238, %cst_229 [1] : vector<2x3xf32> to vector<2xf32>
    %1240 = vector.shape_cast %1239 : vector<2xf32> to vector<2x1xf32>
    %1241 = vector.shape_cast %1240 : vector<2x1xf32> to vector<1x2x1xf32>
    %cst_230 = arith.constant dense<0.000000e+00> : vector<1xf32>
    %1242 = vector.multi_reduction <add>, %1241, %cst_230 [1, 2] : vector<1x2x1xf32> to vector<1xf32>
    %1243 = vector.shape_cast %1242 : vector<1xf32> to vector<1x1x1xf32>
    %1244 = vector.extract %1243[0, 0, 0] : f32 from vector<1x1x1xf32>
    %1245 = vector.broadcast %1244 : f32 to vector<1x1xf32>
    %cst_231 = arith.constant 2.000000e+00 : f32
    %1246 = vector.broadcast %cst_231 : f32 to vector<1x1xf32>
    %1247 = arith.divf %1245, %1246 : vector<1x1xf32>
    %c0_232 = arith.constant 0 : index
    %c0_233 = arith.constant 0 : index
    %1248 = vector.load %arg33[%c0_232, %c0_233] : memref<1x1xf32, #tpu.memory_space<vmem>>, vector<1x1xf32>
    tpu.vector_store %arg33[%c0_232, %c0_233], %1247 {strides = array<i32>} : memref<1x1xf32, #tpu.memory_space<vmem>>, vector<1x1xf32>,
    return
  }
}

</mosaic_0001>

<bundles_post_ra>
// kernel: re_lckg_forward.1
= control target key start
LH: loop header
LB: loop body
LE: loop exit
PB: predicated region body
PF: predicated region fallthrough
CT: control target
= control target key end

     0   :  { %s4398_s6 = smov 1   ;;  %s4399_s10 = smov 2   ;;  %s5824_s0 = inlined_call_operand.smem [shape: u32[34], index: -1, kind: input, shape index: {}] }
   0x1   :  { %s4451_s5 = sld [smem:[%s5824_s0]]   ;;  %s4400_s14 = smov 3  }
   0x2   :  { %s4456_s9 = sld [smem:[%s5824_s0 + %s4398_s6]]   ;;  %s4401_s18 = smov 4  }
   0x3   :  { %s4461_s13 = sld [smem:[%s5824_s0 + %s4399_s10]]   ;;  %s4402_s22 = smov 5  }
   0x4   :  { %s4466_s17 = sld [smem:[%s5824_s0 + %s4400_s14]]   ;;  %s4403_s26 = smov 6  }
   0x5   :  { %s4471_s21 = sld [smem:[%s5824_s0 + %s4401_s18]]   ;;  %s4404_s30 = smov 7  }
   0x6   :  { %s4476_s25 = sld [smem:[%s5824_s0 + %s4402_s22]]   ;;  %s4405_s4 = smov 8  }
   0x7   :  { %s4481_s29 = sld [smem:[%s5824_s0 + %s4403_s26]]   ;;  %s4406_s10 = smov 9  }
   0x8   :  { %s4486_s3 = sld [smem:[%s5824_s0 + %s4404_s30]]   ;;  %s4407_s15 = smov 10  }
   0x9   :  { %s4491_s8 = sld [smem:[%s5824_s0 + %s4405_s4]]   ;;  %s4408_s20 = smov 11  }
   0xa   :  { %s4496_s14 = sld [smem:[%s5824_s0 + %s4406_s10]]   ;;  %s4409_s26 = smov 12  }
   0xb   :  { %s4501_s19 = sld [smem:[%s5824_s0 + %s4407_s15]]   ;;  %s4410_s1 = smov 13  }
   0xc   :  { %s4506_s24 = sld [smem:[%s5824_s0 + %s4408_s20]]   ;;  %s4411_s7 = smov 14  }
   0xd   :  { %s4511_s30 = sld [smem:[%s5824_s0 + %s4409_s26]]   ;;  %s4412_s15 = smov 15  }
   0xe   :  { %s4516_s6 = sld [smem:[%s5824_s0 + %s4410_s1]]   ;;  %s4413_s22 = smov 16  }
   0xf   :  { %s4521_s12 = sld [smem:[%s5824_s0 + %s4411_s7]]   ;;  %s4414_s28 = smov 17  }
  0x10   :  { %s4526_s20 = sld [smem:[%s5824_s0 + %s4412_s15]]   ;;  %s4415_s7 = smov 18  }
  0x11   :  { %5832 = sst [smem:[#allocation8_spill]] %s4501_s19  ;;  %s4416_s15 = smov 19  }
  0x12   :  { %s4531_s27 = sld [smem:[%s5824_s0 + %s4413_s22]]   ;;  %s4417_s22 = smov 20  }
  0x13   :  { %s4536_s4 = sld [smem:[%s5824_s0 + %s4414_s28]]   ;;  %s4418_s28 = smov 21  }
  0x14   :  { %s4541_s19 = sld [smem:[%s5824_s0 + %s4415_s7]]   ;;  %s4419_s7 = smov 22  }
  0x16   :  { %5833 = sst [smem:[#allocation9_spill]] %s4526_s20 }
  0x17   :  { %s4546_s20 = sld [smem:[%s5824_s0 + %s4416_s15]]   ;;  %s4420_s15 = smov 23  }
  0x18   :  { %5834 = sst [smem:[#allocation10_spill]] %s4531_s27 }
  0x19   :  { %5835 = sst [smem:[#allocation11_spill]] %s4536_s4 }
  0x1a   :  { %5836 = sst [smem:[#allocation12_spill]] %s4541_s19 }
  0x1b   :  { %s4551_s27 = sld [smem:[%s5824_s0 + %s4417_s22]]   ;;  %s4421_s22 = smov 24  }
  0x1c   :  { %s4556_s4 = sld [smem:[%s5824_s0 + %s4418_s28]]   ;;  %s4422_s28 = smov 25  }
  0x1d   :  { %5837 = sst [smem:[#allocation13_spill]] %s4546_s20 }
  0x1e   :  { %s4561_s19 = sld [smem:[%s5824_s0 + %s4419_s7]]   ;;  %s4423_s7 = smov 26  }
  0x1f   :  { %s4566_s20 = sld [smem:[%s5824_s0 + %s4420_s15]]   ;;  %s4424_s15 = smov 27  }
  0x21   :  { %5838 = sst [smem:[#allocation14_spill]] %s4551_s27 }
  0x22   :  { %5839 = sst [smem:[#allocation15_spill]] %s4556_s4 }
  0x23   :  { %s4571_s27 = sld [smem:[%s5824_s0 + %s4421_s22]]   ;;  %s4425_s22 = smov 28  }
  0x24   :  { %5840 = sst [smem:[#allocation16_spill]] %s4561_s19 }
  0x25   :  { %5841 = sst [smem:[#allocation17_spill]] %s4566_s20 }
  0x26   :  { %s4576_s4 = sld [smem:[%s5824_s0 + %s4422_s28]]   ;;  %s4426_s28 = smov 29  }
  0x27   :  { %s4581_s19 = sld [smem:[%s5824_s0 + %s4423_s7]]   ;;  %s4427_s7 = smov 30  }
  0x28   :  { %s4586_s20 = sld [smem:[%s5824_s0 + %s4424_s15]]   ;;  %s4428_s15 = smov 31  }
  0x29   :  { %5842 = sst [smem:[#allocation18_spill]] %s4571_s27 }
  0x2a   :  { %s4591_s27 = sld [smem:[%s5824_s0 + %s4425_s22]]   ;;  %s4429_s22 = smov 32  }
  0x2c   :  { %5843 = sst [smem:[#allocation19_spill]] %s4576_s4 }
  0x2d   :  { %5844 = sst [smem:[#allocation20_spill]] %s4581_s19 }
  0x2e   :  { %5845 = sst [smem:[#allocation21_spill]] %s4586_s20 }
  0x2f   :  { %s4596_s4 = sld [smem:[%s5824_s0 + %s4426_s28]]   ;;  %s4430_s28 = smov 33  }
  0x30   :  { %5846 = sst [smem:[#allocation22_spill]] %s4591_s27 }
  0x31   :  { %s4601_s19 = sld [smem:[%s5824_s0 + %s4427_s7]]  }
  0x32   :  { %s4606_s20 = sld [smem:[%s5824_s0 + %s4428_s15]]  }
  0x33   :  { %s4611_s27 = sld [smem:[%s5824_s0 + %s4429_s22]]  }
  0x35   :  { %5847 = sst [smem:[#allocation23_spill]] %s4596_s4 }
  0x36   :  { %s4616_s4 = sld [smem:[%s5824_s0 + %s4430_s28]]  }
  0x37   :  { %73 = vsyncpa [#allocation3], 0  ;;  %v143_v0 = vld [vmem:[%s4456_s9 + $0x10] sm:$0xff]  ;;  %v144_v1 = vld [vmem:[%s4456_s9 + $0x18] sm:$0xff]  ;;  %vm168_vm0 = vcmask 130048  }
  0x38   :  { %v141_v2 = vld [vmem:[%s4456_s9] sm:$0xff]  ;;  %189 = vmatpush.msra.mxu3 %v143_v0  ;;  %212 = vmatpush.msra.mxu1 %v144_v1  ;;  %v142_v3 = vld [vmem:[%s4456_s9 + $0x8] sm:$0xff]  ;;  %v4624_v5 = vld [vmem:[%s4461_s13 + $0x78] sm:$0xff] }
  0x39   :  { %v139_v4 = vld [vmem:[%s4451_s5] sm:$0xff]  ;;  %v4627_v6 = vld [vmem:[%s4461_s13 + $0x70] sm:$0xff]  ;;  %v4632_v7 = vld [vmem:[%s4461_s13 + $0x68] sm:$0xff] }
  0x3a   :  { %190 = vmatpush.msra.mxu3 %v141_v2  ;;  %213 = vmatpush.msra.mxu1 %v142_v3  ;;  %v4635_v8 = vld [vmem:[%s4461_s13 + $0x60] sm:$0xff]  ;;  %v4640_v9 = vld [vmem:[%s4461_s13 + $0x58] sm:$0xff]  ;;  %v4643_v10 = vld [vmem:[%s4461_s13 + $0x50] sm:$0xff] }
  0x3b   :  { %3863 = vmatmul.msk.f32.vlgmr.msra.gmra.mxu3 %vm168_vm0, %v139_v4  ;;  %3865 = vmatmul.msk.f32.vlgmr.msra.gmra.mxu1 %vm168_vm0, %v139_v4  ;;  %v4646_v11 = vld [vmem:[%s4461_s13 + $0x48] sm:$0xff]  ;;  %v4653_v12 = vld [vmem:[%s4461_s13 + $0x40] sm:$0xff]  ;;  %v4657_v14 = vld [vmem:[%s4461_s13 + $0x38] sm:$0xff] }
  0x3c   :  { %258 = vmatpush.msrb.mxu3 %v4624_v5  ;;  %238 = vmatpush.msrb.mxu1 %v4627_v6  ;;  %v140_v13 = vld [vmem:[%s4451_s5 + $0x8] sm:$0xff]  ;;  %v4660_v15 = vld [vmem:[%s4461_s13 + $0x30] sm:$0xff]  ;;  %v4670_v17 = vld [vmem:[%s4461_s13 + $0x20] sm:$0xff] }
  0x3d   :  { %394 = vmatpush.msra.mxu0 %v4627_v6  ;;  %560 = vmatpush.msra.mxu2 %v4627_v6  ;;  %v4667_v16 = vld [vmem:[%s4461_s13 + $0x28] sm:$0xff] }
  0x3e   :  { %259 = vmatpush.msrb.mxu3 %v4632_v7  ;;  %239 = vmatpush.msrb.mxu1 %v4635_v8 }
  0x3f   :  { %395 = vmatpush.msra.mxu0 %v4635_v8  ;;  %561 = vmatpush.msra.mxu2 %v4635_v8 }
  0x40   :  { %260 = vmatpush.msrb.mxu3 %v4640_v9  ;;  %240 = vmatpush.msrb.mxu1 %v4643_v10 }
  0x41   :  { %396 = vmatpush.msra.mxu0 %v4643_v10  ;;  %562 = vmatpush.msra.mxu2 %v4643_v10 }
  0x42   :  { %261 = vmatpush.msrb.mxu3 %v4646_v11  ;;  %241 = vmatpush.msrb.mxu1 %v4653_v12 }
  0x43   :  { %3864 = vmatmul.msk.f32.gmra.mxu3 %vm168_vm0, %v140_v13  ;;  %3866 = vmatmul.msk.f32.gmra.mxu1 %vm168_vm0, %v140_v13 }
  0x44   :  { %262 = vmatpush.msrb.mxu3 %v4657_v14  ;;  %242 = vmatpush.msrb.mxu1 %v4660_v15 }
  0x45   :  { %74 = vsyncpa [#allocation5], 0  ;;  %v4681_v18 = vld [vmem:[%s4461_s13 + $0x18] sm:$0xff]  ;;  %v4684_v19 = vld [vmem:[%s4461_s13 + $0x10] sm:$0xff]  ;;  %397 = vmatpush.msra.mxu0 %v4653_v12  ;;  %563 = vmatpush.msra.mxu2 %v4653_v12  ;;  %v4431_v22 = vmov 0.0   ;;  %s4432_s0 = smov 64  }
  0x46   :  { %263 = vmatpush.msrb.mxu3 %v4667_v16  ;;  %243 = vmatpush.msrb.mxu1 %v4670_v17  ;;  %v4691_v20 = vld [vmem:[%s4461_s13 + $0x8] sm:$0xff]  ;;  %v4694_v21 = vld [vmem:[%s4461_s13] sm:$0xff]  ;;  %s4433_s5 = smov 96   ;;  %s4434_s9 = smov 32   ;;  %vm381_vm13 = vcmask 261120   ;;  %vm226_vm14 = vcmask 523264  }
  0x47   :  { %398 = vmatpush.msra.mxu0 %v4660_v15  ;;  %564 = vmatpush.msra.mxu2 %v4660_v15  ;;  %v4759_v23 = vld [vmem:[%s4466_s17] sm:$0x3]  ;;  %s4436_s13 = smov 80   ;;  %s4437_s17 = smov 112  }
  0x48   :  { %264 = vmatpush.msrb.mxu3 %v4681_v18  ;;  %244 = vmatpush.msrb.mxu1 %v4684_v19  ;;  %v165_v24 = vperm.slane %v4759_v23, 1  ;;  %v162_v29 = vld [vmem:[%s4471_s21] sm:$0x3]  ;;  %v164_v38 = vperm.slane %v4759_v23, 0  ;;  %s5848_s21 = sld [smem:[#allocation8_spill]]  ;;  %s4440_s26 = smov [#allocation2]  }
  0x49   :  { %399 = vmatpush.msra.mxu0 %v4670_v17  ;;  %565 = vmatpush.msra.mxu2 %v4670_v17  ;;  %v4767_v30 = vperm.slane %v162_v29, 1  ;;  %v4776_v35 = vperm.slane %v162_v29, 0  ;;  %s5856_s7 = sld [smem:[#allocation16_spill]]  ;;  %s3803_s28 = sshll.u32 %s4440_s26, 4  ;;  %s3804_s28 = int_to_ptr.vmem [resolvable:$true] %s3803_s28 }
  0x4a   :  { %265 = vmatpush.msrb.mxu3 %v4691_v20  ;;  %245 = vmatpush.msrb.mxu1 %v4694_v21  ;;  %s5857_s10 = sld [smem:[#allocation19_spill]] }
  0x4b   :  { %246 = vmatmul.f32.vlgmr.msrb.gmra.mxu1 %v4431_v22  ;;  %266 = vmatmul.f32.vlgmr.msrb.gmra.mxu3 %v4431_v22  ;;  %s5858_s11 = sld [smem:[#allocation17_spill]] }
  0x4c   :  { %414 = vmatpush.msra.mxu1 %v4624_v5  ;;  %400 = vmatpush.msra.mxu0 %v4684_v19  ;;  %s5859_s15 = sld [smem:[#allocation18_spill]] }
  0x4d   :  { %580 = vmatpush.msra.mxu3 %v4624_v5  ;;  %566 = vmatpush.msra.mxu2 %v4684_v19  ;;  %s5860_s16 = sld [smem:[#allocation21_spill]] }
  0x4e   :  { %415 = vmatpush.msra.mxu1 %v4632_v7  ;;  %401 = vmatpush.msra.mxu0 %v4694_v21  ;;  %s5861_s18 = sld [smem:[#allocation20_spill]] }
  0x4f   :  { %581 = vmatpush.msra.mxu3 %v4632_v7  ;;  %567 = vmatpush.msra.mxu2 %v4694_v21  ;;  %s5862_s22 = sld [smem:[#allocation23_spill]] }
  0x50   :  { %416 = vmatpush.msra.mxu1 %v4640_v9  ;;  %725 = vmatpush.msrb.mxu0 %v4627_v6  ;;  %s5863_s23 = sld [smem:[#allocation22_spill]] }
  0x51   :  { %582 = vmatpush.msra.mxu3 %v4640_v9  ;;  %886 = vmatpush.msrb.mxu2 %v4627_v6 }
  0x52   :  { %417 = vmatpush.msra.mxu1 %v4646_v11  ;;  %726 = vmatpush.msrb.mxu0 %v4635_v8 }
  0x53   :  { %583 = vmatpush.msra.mxu3 %v4646_v11  ;;  %887 = vmatpush.msrb.mxu2 %v4635_v8 }
  0x54   :  { %418 = vmatpush.msra.mxu1 %v4657_v14  ;;  %727 = vmatpush.msrb.mxu0 %v4643_v10 }
  0x55   :  { %584 = vmatpush.msra.mxu3 %v4657_v14  ;;  %888 = vmatpush.msrb.mxu2 %v4643_v10 }
  0x56   :  { %419 = vmatpush.msra.mxu1 %v4667_v16  ;;  %728 = vmatpush.msrb.mxu0 %v4653_v12 }
  0x57   :  { %585 = vmatpush.msra.mxu3 %v4667_v16  ;;  %889 = vmatpush.msrb.mxu2 %v4653_v12 }
  0x58   :  { %420 = vmatpush.msra.mxu1 %v4681_v18  ;;  %729 = vmatpush.msrb.mxu0 %v4660_v15 }
  0x59   :  { %586 = vmatpush.msra.mxu3 %v4681_v18  ;;  %890 = vmatpush.msrb.mxu2 %v4660_v15 }
  0x5a   :  { %421 = vmatpush.msra.mxu1 %v4691_v20  ;;  %730 = vmatpush.msrb.mxu0 %v4670_v17 }
  0x5b   :  { %587 = vmatpush.msra.mxu3 %v4691_v20  ;;  %891 = vmatpush.msrb.mxu2 %v4670_v17 }
  0x5c   :  { %745 = vmatpush.msrb.mxu1 %v4624_v5  ;;  %731 = vmatpush.msrb.mxu0 %v4684_v19 }
  0x5d   :  { %906 = vmatpush.msrb.mxu3 %v4624_v5  ;;  %892 = vmatpush.msrb.mxu2 %v4684_v19 }
  0x5e   :  { %746 = vmatpush.msrb.mxu1 %v4632_v7  ;;  %732 = vmatpush.msrb.mxu0 %v4694_v21 }
  0x5f   :  { %907 = vmatpush.msrb.mxu3 %v4632_v7  ;;  %893 = vmatpush.msrb.mxu2 %v4694_v21 }
  0x60   :  { %747 = vmatpush.msrb.mxu1 %v4640_v9 }
  0x61   :  { %908 = vmatpush.msrb.mxu3 %v4640_v9 }
  0x62   :  { %748 = vmatpush.msrb.mxu1 %v4646_v11 }
  0x63   :  { %909 = vmatpush.msrb.mxu3 %v4646_v11 }
  0x64   :  { %749 = vmatpush.msrb.mxu1 %v4657_v14 }
  0x65   :  { %910 = vmatpush.msrb.mxu3 %v4657_v14 }
  0x66   :  { %750 = vmatpush.msrb.mxu1 %v4667_v16 }
  0x67   :  { %911 = vmatpush.msrb.mxu3 %v4667_v16 }
  0x68   :  { %751 = vmatpush.msrb.mxu1 %v4681_v18 }
  0x69   :  { %912 = vmatpush.msrb.mxu3 %v4681_v18 }
  0x6a   :  { %752 = vmatpush.msrb.mxu1 %v4691_v20 }
  0x6b   :  { %913 = vmatpush.msrb.mxu3 %v4691_v20 }
  0xb8   :  { %v215_v25 = vpop.f32.mrf.mxu1 }
  0xb9   :  { %v4764_v26 = vadd.f32 %v215_v25, %v165_v24 }
  0xbe   :  { %v192_v27 = vpop.f32.mrf.mxu3 }
  0xbf   :  { %v4784_v43 = vadd.f32 %v192_v27, %v164_v38 }
  0xc0   :  { %v218_v31 = vpop.f32.mrf.mxu1 }
  0xc6   :  { %v195_v28 = vpop.f32.mrf.mxu3 }
  0xc7   :  { %v4781_v40 = vadd.f32 %v195_v28, %v164_v38 }
  0xc8   :  { %v247_v36 = vpop.f32.mrf.mxu1 }
  0xc9   :  { %v248_v37 = vadd.f32 %v247_v36, %v4776_v35 }
  0xcb   :  { %v309_v39 = vrot.slane %v248_v37, 2  ;;  %v270_v44 = vadd.f32 %v248_v37, %v4784_v43 }
  0xcd   :  { %v311_v41 = vadd.f32 %v309_v39, %v4781_v40  ;;  %v3867_v45 = vmul.f32 -1.442695, %v270_v44 }
  0xce   :  { %v267_v32 = vpop.f32.mrf.mxu3 }
  0xcf   :  { %v4770_v33 = vadd.f32 %v267_v32, %v4767_v30  ;;  %v3868_v42 = vmul.f32 -1.442695, %v311_v41  ;;  %v4791_v32 = vadd.f32 %v218_v31, %v165_v24 }
  0xd1   :  { %v332_v34 = vrot.slane %v4770_v33, 2  ;;  %4030 = vpow2.f32 %v3868_v42 }
  0xd2   :  { %4032 = vpow2.f32 %v3867_v45 }
  0xd3   :  { %354 = vrot.lane.b32.xlu0 %v332_v34, %s4432_s0  ;;  %v334_v23 = vadd.f32 %v332_v34, %v4791_v32 }
  0xd5   :  { %v3869_v24 = vmul.f32 -1.442695, %v334_v23 }
  0xd7   :  { %v4031_v46 = vpop.eup %4030 }
  0xd8   :  { %v315_v47 = vadd.f32 1.0, %v4031_v46  ;;  %v4033_v48 = vpop.eup %4032 }
  0xd9   :  { %v274_v49 = vadd.f32 1.0, %v4033_v48 }
  0xda   :  { %4034 = vrcp.f32 %v315_v47  ;;  %v327_v58 = vand.u32 2147483648, %v315_v47  ;;  %vm321_vm2 = vweird.f32 %v315_v47  ;;  %v325_v59 = vand.u32 2147483647, %v315_v47 }
  0xdb   :  { %291 = vrot.lane.b32.xlu0 %v248_v37, %s4432_s0  ;;  %4036 = vrcp.f32 %v274_v49  ;;  %v286_v3 = vand.u32 2147483648, %v274_v49  ;;  %vm280_vm6 = vweird.f32 %v274_v49  ;;  %v284_v4 = vand.u32 2147483647, %v274_v49 }
  0xdc   :  { %v328_v62 = vor.u32 1.1754944e-38, %v327_v58  ;;  %vm326_vm4 = vcmp.eq.f32.partialorder %v325_v59, 8.507059e+37 }
  0xdd   :  { %v287_v25 = vor.u32 1.1754944e-38, %v286_v3  ;;  %vm285_vm8 = vcmp.eq.f32.partialorder %v284_v4, 8.507059e+37 }
  0xe0   :  { %v4035_v50 = vpop.eup %4034 }
  0xe1   :  { %v317_v51 = vmul.f32 %v4035_v50, %v315_v47  ;;  %v4037_v53 = vpop.eup %4036  ;;  %vm322_vm1 = vweird.f32 %v4035_v50 }
  0xe2   :  { %v276_v55 = vmul.f32 %v4037_v53, %v274_v49  ;;  %vm323_vm3 = vmor %vm321_vm2, %vm322_vm1  ;;  %vm281_vm5 = vweird.f32 %v4037_v53 }
  0xe3   :  { %v318_v52 = vsub.f32 1.0, %v317_v51  ;;  %vm282_vm7 = vmor %vm280_vm6, %vm281_vm5 }
  0xe4   :  { %v277_v57 = vsub.f32 1.0, %v276_v55 }
  0xe5   :  { %v319_v54 = vmul.f32 %v4035_v50, %v318_v52 }
  0xe6   :  { %v278_v61 = vmul.f32 %v4037_v53, %v277_v57 }
  0xe7   :  { %v320_v56 = vadd.f32 %v4035_v50, %v319_v54 }
  0xe8   :  { %v279_v2 = vadd.f32 %v4037_v53, %v278_v61 }
  0xe9   :  { %v324_v60 = vsel %vm323_vm3, %v4035_v50, %v320_v56 }
  0xea   :  { %v329_v0 = vsel %vm326_vm4, %v328_v62, %v324_v60  ;;  %v283_v13 = vsel %vm282_vm7, %v4037_v53, %v279_v2 }
  0xeb   :  { %v288_v28 = vsel %vm285_vm8, %v287_v25, %v283_v13 }
  0xec   :  { %v301_v59 = vsub.f32 1.0, %v288_v28  ;;  %v307_v61 = vmul.f32 0.0, %v288_v28 }
 0x145   :  { %v355_v63 = vpop.permute.xlu0 %354 }
 0x146   :  { %v357_v1 = vmul.f32 %v355_v63, %v329_v0 }
 0x148   :  { %359 = vrot.lane.b32.xlu1 %v357_v1, %s4432_s0 }
 0x14d   :  { %v292_v27 = vpop.permute.xlu0 %291 }
 0x14e   :  { %v294_v29 = vmul.f32 %v292_v27, %v288_v28 }
 0x150   :  { %296 = vrot.lane.b32.xlu1 %v294_v29, %s4432_s0 }
 0x1ba   :  { %v360_v36 = vpop.permute.xlu1 %359 }
 0x1bb   :  { %v362_v37 = vadd.f32 %v360_v36, %v4791_v32 }
 0x1bd   :  { %4038 = vtanh.f32 %v362_v37 }
 0x1c2   :  { %v297_v38 = vpop.permute.xlu1 %296 }
 0x1c3   :  { %v4039_v39 = vpop.eup %4038  ;;  %v299_v41 = vadd.f32 %v297_v38, %v4784_v43 }
 0x1c4   :  { %366 = vrot.lane.b32.xlu2 %v4039_v39, %s4433_s5 }
 0x1c5   :  { %4040 = vtanh.f32 %v299_v41 }
 0x1c6   :  { %4042 = vpow2.f32 %v3869_v24 }
 0x1cb   :  { %v4041_v42 = vpop.eup %4040 }
 0x1cc   :  { %303 = vrot.lane.b32.xlu2 %v4041_v42, %s4433_s5  ;;  %v4043_v31 = vpop.eup %4042 }
 0x1cd   :  { %v338_v44 = vadd.f32 1.0, %v4043_v31 }
 0x1cf   :  { %4044 = vrcp.f32 %v338_v44  ;;  %v350_v50 = vand.u32 2147483648, %v338_v44  ;;  %vm344_vm10 = vweird.f32 %v338_v44  ;;  %v348_v51 = vand.u32 2147483647, %v338_v44 }
 0x1d1   :  { %v351_v53 = vor.u32 1.1754944e-38, %v350_v50  ;;  %vm349_vm12 = vcmp.eq.f32.partialorder %v348_v51, 8.507059e+37 }
 0x1d5   :  { %v4045_v45 = vpop.eup %4044 }
 0x1d6   :  { %v340_v46 = vmul.f32 %v4045_v45, %v338_v44  ;;  %vm345_vm9 = vweird.f32 %v4045_v45 }
 0x1d7   :  { %vm346_vm11 = vmor %vm344_vm10, %vm345_vm9 }
 0x1d8   :  { %v341_v47 = vsub.f32 1.0, %v340_v46 }
 0x1da   :  { %v342_v48 = vmul.f32 %v4045_v45, %v341_v47 }
 0x1dc   :  { %v343_v49 = vadd.f32 %v4045_v45, %v342_v48 }
 0x1de   :  { %v347_v52 = vsel %vm346_vm11, %v4045_v45, %v343_v49 }
 0x1df   :  { %v352_v33 = vsel %vm349_vm12, %v351_v53, %v347_v52 }
 0x1e0   :  { %v364_v34 = vsub.f32 1.0, %v352_v33  ;;  %v370_v55 = vmul.f32 0.0, %v352_v33 }
 0x21e   :  { %v367_v54 = vpop.permute.xlu2 %366 }
 0x21f   :  { %v369_v56 = vmul.f32 %v367_v54, %v364_v34 }
 0x221   :  { %v4800_v57 = vadd.f32 %v370_v55, %v369_v56 }
 0x223   :  { %v377_v58 = vrot.slane %v4800_v57, 6 }
 0x225   :  { %378 = vrot.lane.b32.xlu1 %v377_v58, %s4434_s9 }
 0x226   :  { %v304_v60 = vpop.permute.xlu2 %303 }
 0x227   :  { %v306_v62 = vmul.f32 %v304_v60, %v301_v59 }
 0x229   :  { %v308_v63 = vadd.f32 %v307_v61, %v306_v62 }
 0x22b   :  { %373 = vrot.lane.b32.xlu0 %v308_v63, %s4433_s5 }
 0x297   :  { %v379_v0 = vpop.permute.xlu1 %378 }
 0x29d   :  { %v4805_v1 = vpop.permute.xlu0 %373 }
 0x29e   :  { %v4809_v2 = vsel %vm381_vm13, %v4805_v1, %v379_v0 }
 0x29f   :  { %3870 = vmatmul.msk.f32.vlgmr.msra.gmra.mxu0 %vm226_vm14, %v4809_v2  ;;  %3871 = vmatmul.msk.f32.vlgmr.msra.gmra.mxu1 %vm226_vm14, %v4809_v2  ;;  %v532_v55 = vrot.slane %v4809_v2, 4 }
 0x2a0   :  { %1047 = vmatpush.msra.mxu0 %v4627_v6  ;;  %1067 = vmatpush.msra.mxu1 %v4624_v5 }
 0x2a2   :  { %1048 = vmatpush.msra.mxu0 %v4635_v8  ;;  %1068 = vmatpush.msra.mxu1 %v4632_v7 }
 0x2a4   :  { %1049 = vmatpush.msra.mxu0 %v4643_v10  ;;  %1069 = vmatpush.msra.mxu1 %v4640_v9 }
 0x2a6   :  { %1050 = vmatpush.msra.mxu0 %v4653_v12  ;;  %1070 = vmatpush.msra.mxu1 %v4646_v11 }
 0x2a8   :  { %1051 = vmatpush.msra.mxu0 %v4660_v15  ;;  %1071 = vmatpush.msra.mxu1 %v4657_v14 }
 0x2aa   :  { %1052 = vmatpush.msra.mxu0 %v4670_v17  ;;  %1072 = vmatpush.msra.mxu1 %v4667_v16 }
 0x2ac   :  { %1053 = vmatpush.msra.mxu0 %v4684_v19  ;;  %1073 = vmatpush.msra.mxu1 %v4681_v18 }
 0x2ae   :  { %1054 = vmatpush.msra.mxu0 %v4694_v21  ;;  %1074 = vmatpush.msra.mxu1 %v4691_v20 }
 0x31c   :  { %v403_v3 = vpop.f32.mrf.mxu0  ;;  %v423_v4 = vpop.f32.mrf.mxu1 }
 0x31d   :  { %v404_v13 = vadd.f32 %v403_v3, %v4776_v35  ;;  %v4833_v25 = vadd.f32 %v423_v4, %v4767_v30 }
 0x31f   :  { %v427_v27 = vrot.slane %v404_v13, 6  ;;  %v494_v28 = vrot.slane %v4833_v25, 4  ;;  %v471_v29 = vrot.slane %v404_v13, 4 }
 0x321   :  { %516 = vrot.lane.b32.xlu2 %v494_v28, %s4432_s0  ;;  %449 = vrot.lane.b32.xlu0 %v427_v27, %s4432_s0  ;;  %v473_v36 = vadd.f32 %v471_v29, %v4781_v40  ;;  %v429_v41 = vadd.f32 %v427_v27, %v4784_v43 }
 0x323   :  { %v3873_v37 = vmul.f32 -1.442695, %v473_v36  ;;  %v3872_v23 = vmul.f32 -1.442695, %v429_v41  ;;  %v496_v41 = vadd.f32 %v494_v28, %v4791_v32 }
 0x325   :  { %4046 = vpow2.f32 %v3873_v37 }
 0x32b   :  { %v4047_v38 = vpop.eup %4046 }
 0x32c   :  { %v477_v39 = vadd.f32 1.0, %v4047_v38 }
 0x32e   :  { %4048 = vrcp.f32 %v477_v39  ;;  %v489_v48 = vand.u32 2147483648, %v477_v39  ;;  %vm483_vm1 = vweird.f32 %v477_v39  ;;  %v487_v49 = vand.u32 2147483647, %v477_v39 }
 0x32f   :  { %4050 = vpow2.f32 %v3872_v23 }
 0x330   :  { %v490_v51 = vor.u32 1.1754944e-38, %v489_v48  ;;  %vm488_vm3 = vcmp.eq.f32.partialorder %v487_v49, 8.507059e+37 }
 0x334   :  { %v4049_v42 = vpop.eup %4048 }
 0x335   :  { %v479_v24 = vmul.f32 %v4049_v42, %v477_v39  ;;  %v4051_v44 = vpop.eup %4050  ;;  %vm484_vm15 = vweird.f32 %v4049_v42  ;;  %v465_v39 = vrot.slane %v4809_v2, 6 }
 0x336   :  { %v433_v46 = vadd.f32 1.0, %v4051_v44  ;;  %vm485_vm2 = vmor %vm483_vm1, %vm484_vm15 }
 0x337   :  { %v480_v31 = vsub.f32 1.0, %v479_v24 }
 0x338   :  { %4052 = vrcp.f32 %v433_v46  ;;  %v445_v60 = vand.u32 2147483648, %v433_v46  ;;  %vm439_vm5 = vweird.f32 %v433_v46  ;;  %v443_v61 = vand.u32 2147483647, %v433_v46 }
 0x339   :  { %v481_v45 = vmul.f32 %v4049_v42, %v480_v31 }
 0x33a   :  { %v446_v63 = vor.u32 1.1754944e-38, %v445_v60  ;;  %vm444_vm7 = vcmp.eq.f32.partialorder %v443_v61, 8.507059e+37 }
 0x33b   :  { %v482_v47 = vadd.f32 %v4049_v42, %v481_v45 }
 0x33d   :  { %v486_v50 = vsel %vm485_vm2, %v4049_v42, %v482_v47  ;;  %v3874_v42 = vmul.f32 -1.442695, %v496_v41 }
 0x33e   :  { %v491_v53 = vsel %vm488_vm3, %v490_v51, %v486_v50  ;;  %v4053_v34 = vpop.eup %4052 }
 0x33f   :  { %v435_v54 = vmul.f32 %v4053_v34, %v433_v46  ;;  %vm440_vm4 = vweird.f32 %v4053_v34 }
 0x340   :  { %vm441_vm6 = vmor %vm439_vm5, %vm440_vm4 }
 0x341   :  { %v436_v56 = vsub.f32 1.0, %v435_v54 }
 0x343   :  { %v437_v58 = vmul.f32 %v4053_v34, %v436_v56 }
 0x345   :  { %v438_v59 = vadd.f32 %v4053_v34, %v437_v58 }
 0x347   :  { %v442_v62 = vsel %vm441_vm6, %v4053_v34, %v438_v59 }
 0x348   :  { %v447_v3 = vsel %vm444_vm7, %v446_v63, %v442_v62 }
 0x349   :  { %v459_v56 = vsub.f32 1.0, %v447_v3 }
 0x37b   :  { %v517_v52 = vpop.permute.xlu2 %516 }
 0x37c   :  { %v519_v33 = vmul.f32 %v517_v52, %v491_v53 }
 0x37e   :  { %521 = vrot.lane.b32.xlu1 %v519_v33, %s4432_s0 }
 0x386   :  { %533 = vrot.lane.b32.xlu1 %v532_v55, %s4433_s5 }
 0x393   :  { %v450_v0 = vpop.permute.xlu0 %449 }
 0x394   :  { %v452_v4 = vmul.f32 %v450_v0, %v447_v3 }
 0x396   :  { %454 = vrot.lane.b32.xlu2 %v452_v4, %s4432_s0 }
 0x3f0   :  { %v522_v13 = vpop.permute.xlu1 %521  ;;  %v455_v27 = vpop.permute.xlu2 %454 }
 0x3f1   :  { %v524_v29 = vadd.f32 %v522_v13, %v4791_v32  ;;  %v457_v36 = vadd.f32 %v455_v27, %v4784_v43 }
 0x3f3   :  { %4054 = vtanh.f32 %v524_v29 }
 0x3f4   :  { %4056 = vtanh.f32 %v457_v36 }
 0x3f5   :  { %4058 = vpow2.f32 %v3874_v42 }
 0x3f8   :  { %v534_v28 = vpop.permute.xlu1 %533 }
 0x3f9   :  { %v4055_v37 = vpop.eup %4054 }
 0x3fa   :  { %v4057_v38 = vpop.eup %4056  ;;  %528 = vrot.lane.b32.xlu0 %v4055_v37, %s4433_s5 }
 0x3fb   :  { %461 = vrot.lane.b32.xlu2 %v4057_v38, %s4433_s5  ;;  %v4059_v23 = vpop.eup %4058 }
 0x3fc   :  { %v500_v24 = vadd.f32 1.0, %v4059_v23 }
 0x3fe   :  { %4060 = vrcp.f32 %v500_v24  ;;  %v512_v48 = vand.u32 2147483648, %v500_v24  ;;  %vm506_vm9 = vweird.f32 %v500_v24  ;;  %v510_v2 = vand.u32 2147483647, %v500_v24 }
 0x400   :  { %v513_v50 = vor.u32 1.1754944e-38, %v512_v48  ;;  %vm511_vm11 = vcmp.eq.f32.partialorder %v510_v2, 8.507059e+37 }
 0x402   :  { %466 = vrot.lane.b32.xlu0 %v465_v39, %s4434_s9 }
 0x404   :  { %v4061_v31 = vpop.eup %4060 }
 0x405   :  { %v502_v44 = vmul.f32 %v4061_v31, %v500_v24  ;;  %vm507_vm8 = vweird.f32 %v4061_v31 }
 0x406   :  { %vm508_vm10 = vmor %vm506_vm9, %vm507_vm8 }
 0x407   :  { %v503_v45 = vsub.f32 1.0, %v502_v44 }
 0x409   :  { %v504_v46 = vmul.f32 %v4061_v31, %v503_v45 }
 0x40b   :  { %v505_v47 = vadd.f32 %v4061_v31, %v504_v46 }
 0x40d   :  { %v509_v49 = vsel %vm508_vm10, %v4061_v31, %v505_v47 }
 0x40e   :  { %v514_v25 = vsel %vm511_vm11, %v513_v50, %v509_v49 }
 0x40f   :  { %v526_v51 = vsub.f32 1.0, %v514_v25  ;;  %v536_v53 = vmul.f32 %v534_v28, %v514_v25 }
 0x455   :  { %v462_v55 = vpop.permute.xlu2 %461 }
 0x456   :  { %v464_v59 = vmul.f32 %v462_v55, %v459_v56 }
 0x46c   :  { %v529_v52 = vpop.permute.xlu0 %528 }
 0x46d   :  { %v531_v33 = vmul.f32 %v529_v52, %v526_v51 }
 0x46f   :  { %v4855_v34 = vadd.f32 %v536_v53, %v531_v33 }
 0x471   :  { %v543_v54 = vrot.slane %v4855_v34, 2 }
 0x473   :  { %544 = vrot.lane.b32.xlu2 %v543_v54, %s4434_s9 }
 0x474   :  { %v467_v58 = vpop.permute.xlu0 %466 }
 0x475   :  { %v469_v60 = vmul.f32 %v467_v58, %v447_v3 }
 0x477   :  { %v470_v61 = vadd.f32 %v469_v60, %v464_v59 }
 0x479   :  { %539 = vrot.lane.b32.xlu1 %v470_v61, %s4433_s5 }
 0x4cd   :  { %v545_v62 = vpop.permute.xlu2 %544 }
 0x4eb   :  { %v4860_v63 = vpop.permute.xlu1 %539 }
 0x4ec   :  { %v4864_v0 = vsel %vm381_vm13, %v4860_v63, %v545_v62 }
 0x4ed   :  { %v549_v4 = vrot.slane %v4864_v0, 2 }
 0x4ef   :  { %3875 = vmatmul.msk.f32.vlgmr.msra.gmra.mxu2 %vm226_vm14, %v549_v4  ;;  %3876 = vmatmul.msk.f32.vlgmr.msra.gmra.mxu3 %vm226_vm14, %v549_v4 }
 0x4f0   :  { %1213 = vmatpush.msra.mxu2 %v4627_v6  ;;  %1233 = vmatpush.msra.mxu3 %v4624_v5 }
 0x4f2   :  { %1214 = vmatpush.msra.mxu2 %v4635_v8  ;;  %1234 = vmatpush.msra.mxu3 %v4632_v7 }
 0x4f4   :  { %1215 = vmatpush.msra.mxu2 %v4643_v10  ;;  %1235 = vmatpush.msra.mxu3 %v4640_v9 }
 0x4f6   :  { %1216 = vmatpush.msra.mxu2 %v4653_v12  ;;  %1236 = vmatpush.msra.mxu3 %v4646_v11 }
 0x4f8   :  { %1217 = vmatpush.msra.mxu2 %v4660_v15  ;;  %1237 = vmatpush.msra.mxu3 %v4657_v14 }
 0x4fa   :  { %1218 = vmatpush.msra.mxu2 %v4670_v17  ;;  %1238 = vmatpush.msra.mxu3 %v4667_v16 }
 0x4fc   :  { %1219 = vmatpush.msra.mxu2 %v4684_v19  ;;  %1239 = vmatpush.msra.mxu3 %v4681_v18 }
 0x4fe   :  { %1220 = vmatpush.msra.mxu2 %v4694_v21  ;;  %1240 = vmatpush.msra.mxu3 %v4691_v20 }
 0x572   :  { %v569_v3 = vpop.f32.mrf.mxu2  ;;  %v589_v13 = vpop.f32.mrf.mxu3 }
 0x573   :  { %v570_v27 = vadd.f32 %v569_v3, %v4776_v35  ;;  %v4887_v29 = vadd.f32 %v589_v13, %v4767_v30 }
 0x575   :  { %v593_v36 = vrot.slane %v570_v27, 4  ;;  %v660_v37 = vrot.slane %v4887_v29, 6  ;;  %v637_v38 = vrot.slane %v570_v27, 6 }
 0x577   :  { %682 = vrot.lane.b32.xlu0 %v660_v37, %s4432_s0  ;;  %615 = vrot.lane.b32.xlu1 %v593_v36, %s4432_s0  ;;  %v595_v39 = vadd.f32 %v593_v36, %v4784_v43  ;;  %v639_v41 = vadd.f32 %v637_v38, %v4781_v40 }
 0x579   :  { %v3877_v42 = vmul.f32 -1.442695, %v595_v39  ;;  %v3878_v23 = vmul.f32 -1.442695, %v639_v41  ;;  %v631_v41 = vrot.slane %v4864_v0, 6 }
 0x57b   :  { %4062 = vpow2.f32 %v3877_v42 }
 0x57c   :  { %4064 = vpow2.f32 %v3878_v23 }
 0x581   :  { %v4063_v24 = vpop.eup %4062 }
 0x582   :  { %v4065_v31 = vpop.eup %4064  ;;  %v599_v44 = vadd.f32 1.0, %v4063_v24 }
 0x583   :  { %v643_v45 = vadd.f32 1.0, %v4065_v31  ;;  %v662_v31 = vadd.f32 %v660_v37, %v4791_v32 }
 0x584   :  { %4066 = vrcp.f32 %v599_v44  ;;  %vm605_vm1 = vweird.f32 %v599_v44  ;;  %v611_v33 = vand.u32 2147483648, %v599_v44  ;;  %v609_v55 = vand.u32 2147483647, %v599_v44 }
 0x585   :  { %4068 = vrcp.f32 %v643_v45  ;;  %v655_v53 = vand.u32 2147483648, %v643_v45  ;;  %vm649_vm2 = vweird.f32 %v643_v45  ;;  %v653_v54 = vand.u32 2147483647, %v643_v45 }
 0x586   :  { %v612_v60 = vor.u32 1.1754944e-38, %v611_v33  ;;  %vm610_vm6 = vcmp.eq.f32.partialorder %v609_v55, 8.507059e+37 }
 0x587   :  { %v656_v59 = vor.u32 1.1754944e-38, %v655_v53  ;;  %vm654_vm5 = vcmp.eq.f32.partialorder %v653_v54, 8.507059e+37 }
 0x58a   :  { %v4067_v46 = vpop.eup %4066 }
 0x58b   :  { %v4069_v47 = vpop.eup %4068  ;;  %v601_v2 = vmul.f32 %v4067_v46, %v599_v44  ;;  %vm606_vm12 = vweird.f32 %v4067_v46  ;;  %v3879_v44 = vmul.f32 -1.442695, %v662_v31 }
 0x58c   :  { %v645_v48 = vmul.f32 %v4069_v47, %v643_v45  ;;  %vm650_vm15 = vweird.f32 %v4069_v47  ;;  %vm607_vm3 = vmor %vm605_vm1, %vm606_vm12 }
 0x58d   :  { %v602_v50 = vsub.f32 1.0, %v601_v2  ;;  %vm651_vm4 = vmor %vm649_vm2, %vm650_vm15 }
 0x58e   :  { %v646_v49 = vsub.f32 1.0, %v645_v48 }
 0x58f   :  { %v603_v28 = vmul.f32 %v4067_v46, %v602_v50 }
 0x590   :  { %v647_v25 = vmul.f32 %v4069_v47, %v646_v49 }
 0x591   :  { %v604_v52 = vadd.f32 %v4067_v46, %v603_v28 }
 0x592   :  { %v648_v51 = vadd.f32 %v4069_v47, %v647_v25 }
 0x593   :  { %v608_v58 = vsel %vm607_vm3, %v4067_v46, %v604_v52 }
 0x594   :  { %v652_v56 = vsel %vm651_vm4, %v4069_v47, %v648_v51  ;;  %v613_v3 = vsel %vm610_vm6, %v612_v60, %v608_v58 }
 0x595   :  { %v657_v62 = vsel %vm654_vm5, %v656_v59, %v652_v56  ;;  %v625_v59 = vsub.f32 1.0, %v613_v3 }
 0x5e9   :  { %v683_v61 = vpop.permute.xlu0 %682  ;;  %v616_v4 = vpop.permute.xlu1 %615 }
 0x5ea   :  { %v685_v13 = vmul.f32 %v683_v61, %v657_v62  ;;  %v618_v27 = vmul.f32 %v616_v4, %v613_v3 }
 0x5ec   :  { %687 = vrot.lane.b32.xlu2 %v685_v13, %s4432_s0  ;;  %620 = vrot.lane.b32.xlu0 %v618_v27, %s4432_s0 }
 0x5f4   :  { %698 = vrot.lane.b32.xlu2 %v4864_v0, %s4433_s5 }
 0x646   :  { %v688_v36 = vpop.permute.xlu2 %687 }
 0x647   :  { %v690_v38 = vadd.f32 %v688_v36, %v4791_v32 }
 0x649   :  { %4070 = vtanh.f32 %v690_v38 }
 0x64e   :  { %v699_v37 = vpop.permute.xlu2 %698 }
 0x64f   :  { %v4071_v39 = vpop.eup %4070 }
 0x650   :  { %694 = vrot.lane.b32.xlu1 %v4071_v39, %s4433_s5 }
 0x658   :  { %632 = vrot.lane.b32.xlu1 %v631_v41, %s4434_s9 }
 0x65e   :  { %v621_v42 = vpop.permute.xlu0 %620 }
 0x65f   :  { %v623_v23 = vadd.f32 %v621_v42, %v4784_v43 }
 0x661   :  { %4072 = vtanh.f32 %v623_v23 }
 0x662   :  { %4074 = vpow2.f32 %v3879_v44 }
 0x667   :  { %v4073_v24 = vpop.eup %4072 }
 0x668   :  { %627 = vrot.lane.b32.xlu0 %v4073_v24, %s4433_s5  ;;  %v4075_v45 = vpop.eup %4074 }
 0x669   :  { %v666_v46 = vadd.f32 1.0, %v4075_v45 }
 0x66b   :  { %4076 = vrcp.f32 %v666_v46  ;;  %v678_v50 = vand.u32 2147483648, %v666_v46  ;;  %vm672_vm8 = vweird.f32 %v666_v46  ;;  %v676_v25 = vand.u32 2147483647, %v666_v46 }
 0x66d   :  { %v679_v51 = vor.u32 1.1754944e-38, %v678_v50  ;;  %vm677_vm10 = vcmp.eq.f32.partialorder %v676_v25, 8.507059e+37 }
 0x671   :  { %v4077_v47 = vpop.eup %4076 }
 0x672   :  { %v668_v0 = vmul.f32 %v4077_v47, %v666_v46  ;;  %vm673_vm7 = vweird.f32 %v4077_v47 }
 0x673   :  { %vm674_vm9 = vmor %vm672_vm8, %vm673_vm7 }
 0x674   :  { %v669_v48 = vsub.f32 1.0, %v668_v0 }
 0x676   :  { %v670_v2 = vmul.f32 %v4077_v47, %v669_v48 }
 0x678   :  { %v671_v49 = vadd.f32 %v4077_v47, %v670_v2 }
 0x67a   :  { %v675_v28 = vsel %vm674_vm9, %v4077_v47, %v671_v49 }
 0x67b   :  { %v680_v29 = vsel %vm677_vm10, %v679_v51, %v675_v28 }
 0x67c   :  { %v692_v52 = vsub.f32 1.0, %v680_v29  ;;  %v701_v33 = vmul.f32 %v699_v37, %v680_v29 }
 0x6c2   :  { %v695_v53 = vpop.permute.xlu1 %694 }
 0x6c3   :  { %v697_v54 = vmul.f32 %v695_v53, %v692_v52 }
 0x6c5   :  { %v4909_v55 = vadd.f32 %v701_v33, %v697_v54 }
 0x6c7   :  { %v708_v56 = vrot.slane %v4909_v55, 6 }
 0x6c9   :  { %709 = vrot.lane.b32.xlu0 %v708_v56, %s4434_s9 }
 0x6ca   :  { %v633_v58 = vpop.permute.xlu1 %632 }
 0x6cb   :  { %v635_v61 = vmul.f32 %v633_v58, %v613_v3 }
 0x6da   :  { %v628_v60 = vpop.permute.xlu0 %627 }
 0x6db   :  { %v630_v62 = vmul.f32 %v628_v60, %v625_v59 }
 0x6dd   :  { %v636_v4 = vadd.f32 %v635_v61, %v630_v62 }
 0x6df   :  { %704 = vrot.lane.b32.xlu2 %v636_v4, %s4433_s5 }
 0x739   :  { %v4914_v13 = vpop.permute.xlu2 %704 }
 0x73b   :  { %v710_v27 = vpop.permute.xlu0 %709 }
 0x73c   :  { %v4918_v36 = vsel %vm381_vm13, %v4914_v13, %v710_v27 }
 0x73d   :  { %v4921_v38 = vrot.slane %v4918_v36, 4  ;;  %v796_v59 = vrot.slane %v4918_v36, 6 }
 0x73f   :  { %3880 = vmatmul.msk.f32.vlgmr.msrb.gmra.mxu0 %vm226_vm14, %v4921_v38  ;;  %3881 = vmatmul.msk.f32.vlgmr.msrb.gmra.mxu1 %vm226_vm14, %v4921_v38 }
 0x740   :  { %1378 = vmatpush.msrb.mxu0 %v4627_v6  ;;  %1398 = vmatpush.msrb.mxu1 %v4624_v5 }
 0x742   :  { %1379 = vmatpush.msrb.mxu0 %v4635_v8  ;;  %1399 = vmatpush.msrb.mxu1 %v4632_v7 }
 0x744   :  { %1380 = vmatpush.msrb.mxu0 %v4643_v10  ;;  %1400 = vmatpush.msrb.mxu1 %v4640_v9 }
 0x746   :  { %1381 = vmatpush.msrb.mxu0 %v4653_v12  ;;  %1401 = vmatpush.msrb.mxu1 %v4646_v11 }
 0x748   :  { %1382 = vmatpush.msrb.mxu0 %v4660_v15  ;;  %1402 = vmatpush.msrb.mxu1 %v4657_v14 }
 0x74a   :  { %1383 = vmatpush.msrb.mxu0 %v4670_v17  ;;  %1403 = vmatpush.msrb.mxu1 %v4667_v16 }
 0x74c   :  { %1384 = vmatpush.msrb.mxu0 %v4684_v19  ;;  %1404 = vmatpush.msrb.mxu1 %v4681_v18 }
 0x74e   :  { %1385 = vmatpush.msrb.mxu0 %v4694_v21  ;;  %1405 = vmatpush.msrb.mxu1 %v4691_v20 }
 0x7bc   :  { %v734_v5 = vpop.f32.mrf.mxu0  ;;  %v754_v6 = vpop.f32.mrf.mxu1 }
 0x7bd   :  { %v735_v7 = vadd.f32 %v734_v5, %v4776_v35  ;;  %v4945_v8 = vadd.f32 %v754_v6, %v4767_v30 }
 0x7bf   :  { %v758_v9 = vrot.slane %v735_v7, 2  ;;  %843 = vrot.lane.b32.xlu1 %v4945_v8, %s4432_s0  ;;  %v802_v15 = vadd.f32 %v735_v7, %v4781_v40  ;;  %v822_v60 = vadd.f32 %v4945_v8, %v4791_v32 }
 0x7c1   :  { %780 = vrot.lane.b32.xlu2 %v758_v9, %s4432_s0  ;;  %v760_v10 = vadd.f32 %v758_v9, %v4784_v43  ;;  %v3883_v16 = vmul.f32 -1.442695, %v802_v15  ;;  %v3884_v61 = vmul.f32 -1.442695, %v822_v60 }
 0x7c3   :  { %v3882_v11 = vmul.f32 -1.442695, %v760_v10 }
 0x7c5   :  { %4078 = vpow2.f32 %v3882_v11 }
 0x7cb   :  { %v4079_v12 = vpop.eup %4078 }
 0x7cc   :  { %v764_v14 = vadd.f32 1.0, %v4079_v12 }
 0x7ce   :  { %4080 = vrcp.f32 %v764_v14  ;;  %v776_v41 = vand.u32 2147483648, %v764_v14  ;;  %vm770_vm12 = vweird.f32 %v764_v14  ;;  %v774_v42 = vand.u32 2147483647, %v764_v14 }
 0x7cf   :  { %4082 = vpow2.f32 %v3883_v16 }
 0x7d0   :  { %v777_v24 = vor.u32 1.1754944e-38, %v776_v41  ;;  %vm775_vm1 = vcmp.eq.f32.partialorder %v774_v42, 8.507059e+37 }
 0x7d4   :  { %v4081_v17 = vpop.eup %4080 }
 0x7d5   :  { %v766_v18 = vmul.f32 %v4081_v17, %v764_v14  ;;  %v4083_v20 = vpop.eup %4082  ;;  %vm771_vm11 = vweird.f32 %v4081_v17 }
 0x7d6   :  { %v806_v3 = vadd.f32 1.0, %v4083_v20  ;;  %vm772_vm15 = vmor %vm770_vm12, %vm771_vm11 }
 0x7d7   :  { %v767_v19 = vsub.f32 1.0, %v766_v18 }
 0x7d8   :  { %4084 = vrcp.f32 %v806_v3  ;;  %v818_v49 = vand.u32 2147483648, %v806_v3  ;;  %vm812_vm3 = vweird.f32 %v806_v3  ;;  %v816_v50 = vand.u32 2147483647, %v806_v3 }
 0x7d9   :  { %v768_v21 = vmul.f32 %v4081_v17, %v767_v19 }
 0x7da   :  { %v819_v28 = vor.u32 1.1754944e-38, %v818_v49  ;;  %vm817_vm5 = vcmp.eq.f32.partialorder %v816_v50, 8.507059e+37 }
 0x7db   :  { %v769_v39 = vadd.f32 %v4081_v17, %v768_v21 }
 0x7dd   :  { %v773_v23 = vsel %vm772_vm15, %v4081_v17, %v769_v39 }
 0x7de   :  { %v4085_v31 = vpop.eup %4084  ;;  %v4952_v45 = vsel %vm775_vm1, %v777_v24, %v773_v23 }
 0x7df   :  { %v808_v47 = vmul.f32 %v4085_v31, %v806_v3  ;;  %vm813_vm2 = vweird.f32 %v4085_v31  ;;  %v790_v20 = vsub.f32 1.0, %v4952_v45 }
 0x7e0   :  { %vm814_vm4 = vmor %vm812_vm3, %vm813_vm2 }
 0x7e1   :  { %v809_v0 = vsub.f32 1.0, %v808_v47 }
 0x7e3   :  { %v810_v48 = vmul.f32 %v4085_v31, %v809_v0 }
 0x7e5   :  { %v811_v2 = vadd.f32 %v4085_v31, %v810_v48 }
 0x7e7   :  { %v815_v25 = vsel %vm814_vm4, %v4085_v31, %v811_v2 }
 0x7e8   :  { %v820_v29 = vsel %vm817_vm5, %v819_v28, %v815_v25 }
 0x81b   :  { %v781_v44 = vpop.permute.xlu2 %780 }
 0x81c   :  { %v783_v46 = vmul.f32 %v781_v44, %v4952_v45 }
 0x81e   :  { %785 = vrot.lane.b32.xlu1 %v783_v46, %s4432_s0 }
 0x831   :  { %v844_v51 = vpop.permute.xlu1 %843 }
 0x832   :  { %v846_v37 = vmul.f32 %v844_v51, %v820_v29 }
 0x834   :  { %848 = vrot.lane.b32.xlu0 %v846_v37, %s4432_s0 }
 0x83c   :  { %859 = vrot.lane.b32.xlu0 %v4921_v38, %s4433_s5 }
 0x890   :  { %v786_v52 = vpop.permute.xlu1 %785 }
 0x891   :  { %v788_v53 = vadd.f32 %v786_v52, %v4784_v43 }
 0x893   :  { %4086 = vtanh.f32 %v788_v53 }
 0x899   :  { %v4087_v33 = vpop.eup %4086 }
 0x89a   :  { %792 = vrot.lane.b32.xlu1 %v4087_v33, %s4433_s5 }
 0x8a6   :  { %v849_v54 = vpop.permute.xlu0 %848 }
 0x8a7   :  { %v851_v56 = vadd.f32 %v849_v54, %v4791_v32 }
 0x8a9   :  { %4088 = vtanh.f32 %v851_v56 }
 0x8aa   :  { %4090 = vpow2.f32 %v3884_v61 }
 0x8ae   :  { %v860_v32 = vpop.permute.xlu0 %859 }
 0x8af   :  { %v4089_v58 = vpop.eup %4088 }
 0x8b0   :  { %855 = vrot.lane.b32.xlu2 %v4089_v58, %s4433_s5  ;;  %v4091_v62 = vpop.eup %4090 }
 0x8b1   :  { %v826_v4 = vadd.f32 1.0, %v4091_v62 }
 0x8b3   :  { %4092 = vrcp.f32 %v826_v4  ;;  %v838_v9 = vand.u32 2147483648, %v826_v4  ;;  %vm832_vm7 = vweird.f32 %v826_v4  ;;  %v836_v10 = vand.u32 2147483647, %v826_v4 }
 0x8b5   :  { %v839_v11 = vor.u32 1.1754944e-38, %v838_v9  ;;  %vm837_vm9 = vcmp.eq.f32.partialorder %v836_v10, 8.507059e+37 }
 0x8b8   :  { %797 = vrot.lane.b32.xlu2 %v796_v59, %s4434_s9 }
 0x8b9   :  { %v4093_v27 = vpop.eup %4092 }
 0x8ba   :  { %v828_v38 = vmul.f32 %v4093_v27, %v826_v4  ;;  %vm833_vm6 = vweird.f32 %v4093_v27 }
 0x8bb   :  { %vm834_vm8 = vmor %vm832_vm7, %vm833_vm6 }
 0x8bc   :  { %v829_v5 = vsub.f32 1.0, %v828_v38 }
 0x8be   :  { %v830_v6 = vmul.f32 %v4093_v27, %v829_v5 }
 0x8c0   :  { %v831_v7 = vadd.f32 %v4093_v27, %v830_v6 }
 0x8c2   :  { %v835_v36 = vsel %vm834_vm8, %v4093_v27, %v831_v7 }
 0x8c3   :  { %v840_v12 = vsel %vm837_vm9, %v839_v11, %v835_v36 }
 0x8c4   :  { %v853_v8 = vsub.f32 1.0, %v840_v12  ;;  %v862_v15 = vmul.f32 %v860_v32, %v840_v12 }
 0x90a   :  { %v856_v14 = vpop.permute.xlu2 %855 }
 0x90b   :  { %v858_v16 = vmul.f32 %v856_v14, %v853_v8 }
 0x90c   :  { %v793_v19 = vpop.permute.xlu1 %792 }
 0x90d   :  { %v4967_v17 = vadd.f32 %v862_v15, %v858_v16  ;;  %v795_v3 = vmul.f32 %v793_v19, %v790_v20 }
 0x90f   :  { %v869_v18 = vrot.slane %v4967_v17, 2 }
 0x911   :  { %870 = vrot.lane.b32.xlu1 %v869_v18, %s4434_s9 }
 0x912   :  { %v798_v21 = vpop.permute.xlu2 %797 }
 0x913   :  { %v800_v39 = vmul.f32 %v798_v21, %v4952_v45 }
 0x915   :  { %v801_v41 = vadd.f32 %v800_v39, %v795_v3 }
 0x917   :  { %865 = vrot.lane.b32.xlu0 %v801_v41, %s4433_s5 }
 0x983   :  { %v871_v42 = vpop.permute.xlu1 %870 }
 0x989   :  { %v4974_v23 = vpop.permute.xlu0 %865 }
 0x98a   :  { %v873_v24 = vsel %vm381_vm13, %v4974_v23, %v871_v42 }
 0x98b   :  { %v4978_v31 = vrot.slane %v873_v24, 6 }
 0x98d   :  { %3885 = vmatmul.msk.f32.vlgmr.msrb.gmra.mxu2 %vm226_vm14, %v4978_v31  ;;  %3886 = vmatmul.msk.f32.vlgmr.msrb.gmra.mxu3 %vm226_vm14, %v4978_v31 }
 0xa10   :  { %v895_v44 = vpop.f32.mrf.mxu2  ;;  %v915_v46 = vpop.f32.mrf.mxu3 }
 0xa11   :  { %v896_v45 = vadd.f32 %v895_v44, %v4776_v35  ;;  %v4986_v47 = vadd.f32 %v915_v46, %v4767_v30 }
 0xa13   :  { %v983_v0 = vrot.slane %v4986_v47, 2  ;;  %939 = vrot.lane.b32.xlu0 %v896_v45, %s4432_s0  ;;  %v960_v48 = vrot.slane %v896_v45, 2  ;;  %v918_v28 = vadd.f32 %v896_v45, %v4781_v40 }
 0xa15   :  { %1005 = vrot.lane.b32.xlu2 %v983_v0, %s4432_s0  ;;  %v962_v2 = vadd.f32 %v960_v48, %v4784_v43  ;;  %v3887_v51 = vmul.f32 -1.442695, %v918_v28  ;;  %v985_v3 = vadd.f32 %v983_v0, %v4764_v26 }
 0xa17   :  { %v3888_v49 = vmul.f32 -1.442695, %v962_v2  ;;  %v3889_v39 = vmul.f32 -1.442695, %v985_v3 }
 0xa19   :  { %4094 = vpow2.f32 %v3888_v49 }
 0xa1f   :  { %v4095_v50 = vpop.eup %4094 }
 0xa20   :  { %v966_v25 = vadd.f32 1.0, %v4095_v50 }
 0xa22   :  { %4096 = vrcp.f32 %v966_v25  ;;  %v978_v58 = vand.u32 2147483648, %v966_v25  ;;  %vm972_vm11 = vweird.f32 %v966_v25  ;;  %v976_v59 = vand.u32 2147483647, %v966_v25 }
 0xa23   :  { %4098 = vpow2.f32 %v3887_v51 }
 0xa24   :  { %v979_v61 = vor.u32 1.1754944e-38, %v978_v58  ;;  %vm977_vm15 = vcmp.eq.f32.partialorder %v976_v59, 8.507059e+37 }
 0xa28   :  { %v4097_v29 = vpop.eup %4096 }
 0xa29   :  { %v968_v37 = vmul.f32 %v4097_v29, %v966_v25  ;;  %v4099_v53 = vpop.eup %4098  ;;  %vm973_vm10 = vweird.f32 %v4097_v29 }
 0xa2a   :  { %v922_v54 = vadd.f32 1.0, %v4099_v53  ;;  %vm974_vm12 = vmor %vm972_vm11, %vm973_vm10 }
 0xa2b   :  { %v969_v52 = vsub.f32 1.0, %v968_v37 }
 0xa2c   :  { %4100 = vrcp.f32 %v922_v54  ;;  %v934_v10 = vand.u32 2147483648, %v922_v54  ;;  %vm928_vm2 = vweird.f32 %v922_v54  ;;  %v932_v36 = vand.u32 2147483647, %v922_v54 }
 0xa2d   :  { %v970_v33 = vmul.f32 %v4097_v29, %v969_v52 }
 0xa2e   :  { %v935_v12 = vor.u32 1.1754944e-38, %v934_v10  ;;  %vm933_vm4 = vcmp.eq.f32.partialorder %v932_v36, 8.507059e+37 }
 0xa2f   :  { %v971_v56 = vadd.f32 %v4097_v29, %v970_v33 }
 0xa31   :  { %v975_v60 = vsel %vm974_vm12, %v4097_v29, %v971_v56 }
 0xa32   :  { %v4101_v62 = vpop.eup %4100  ;;  %v980_v27 = vsel %vm977_vm15, %v979_v61, %v975_v60 }
 0xa33   :  { %v924_v5 = vmul.f32 %v4101_v62, %v922_v54  ;;  %vm929_vm1 = vweird.f32 %v4101_v62 }
 0xa34   :  { %vm930_vm3 = vmor %vm928_vm2, %vm929_vm1 }
 0xa35   :  { %v925_v6 = vsub.f32 1.0, %v924_v5 }
 0xa37   :  { %v926_v7 = vmul.f32 %v4101_v62, %v925_v6 }
 0xa39   :  { %v927_v9 = vadd.f32 %v4101_v62, %v926_v7 }
 0xa3b   :  { %v931_v11 = vsel %vm930_vm3, %v4101_v62, %v927_v9 }
 0xa3c   :  { %v936_v8 = vsel %vm933_vm4, %v935_v12, %v931_v11 }
 0xa3d   :  { %v949_v33 = vsub.f32 1.0, %v936_v8 }
 0xa6f   :  { %v1006_v4 = vpop.permute.xlu2 %1005 }
 0xa70   :  { %v1008_v38 = vmul.f32 %v1006_v4, %v980_v27 }
 0xa72   :  { %1010 = vrot.lane.b32.xlu1 %v1008_v38, %s4432_s0 }
 0xa7a   :  { %1021 = vrot.lane.b32.xlu1 %v873_v24, %s4433_s5 }
 0xa85   :  { %v940_v32 = vpop.permute.xlu0 %939 }
 0xa86   :  { %v942_v14 = vmul.f32 %v940_v32, %v936_v8 }
 0xa88   :  { %944 = vrot.lane.b32.xlu2 %v942_v14, %s4432_s0 }
 0xae2   :  { %v945_v15 = vpop.permute.xlu2 %944 }
 0xae3   :  { %v947_v16 = vadd.f32 %v945_v15, %v4781_v40 }
 0xae4   :  { %v1011_v18 = vpop.permute.xlu1 %1010 }
 0xae5   :  { %4102 = vtanh.f32 %v947_v16  ;;  %v1013_v19 = vadd.f32 %v1011_v18, %v4764_v26 }
 0xae7   :  { %4104 = vtanh.f32 %v1013_v19 }
 0xae8   :  { %4106 = vpow2.f32 %v3889_v39 }
 0xaeb   :  { %v4103_v20 = vpop.eup %4102 }
 0xaec   :  { %951 = vrot.lane.b32.xlu2 %v4103_v20, %s4433_s5  ;;  %v1022_v0 = vpop.permute.xlu1 %1021 }
 0xaed   :  { %v4105_v21 = vpop.eup %4104 }
 0xaee   :  { %1017 = vrot.lane.b32.xlu0 %v4105_v21, %s4433_s5  ;;  %v4107_v41 = vpop.eup %4106 }
 0xaef   :  { %v989_v42 = vadd.f32 1.0, %v4107_v41 }
 0xaf1   :  { %4108 = vrcp.f32 %v989_v42  ;;  %v1001_v48 = vand.u32 2147483648, %v989_v42  ;;  %vm995_vm6 = vweird.f32 %v989_v42  ;;  %v999_v2 = vand.u32 2147483647, %v989_v42 }
 0xaf3   :  { %v1002_v50 = vor.u32 1.1754944e-38, %v1001_v48  ;;  %vm1000_vm8 = vcmp.eq.f32.partialorder %v999_v2, 8.507059e+37 }
 0xaf6   :  { %955 = vrot.lane.b32.xlu0 %v4978_v31, %s4434_s9 }
 0xaf7   :  { %v4109_v24 = vpop.eup %4108 }
 0xaf8   :  { %v991_v44 = vmul.f32 %v4109_v24, %v989_v42  ;;  %vm996_vm5 = vweird.f32 %v4109_v24 }
 0xaf9   :  { %vm997_vm7 = vmor %vm995_vm6, %vm996_vm5 }
 0xafa   :  { %v992_v46 = vsub.f32 1.0, %v991_v44 }
 0xafc   :  { %v993_v45 = vmul.f32 %v4109_v24, %v992_v46 }
 0xafe   :  { %v994_v47 = vadd.f32 %v4109_v24, %v993_v45 }
 0xb00   :  { %v998_v49 = vsel %vm997_vm7, %v4109_v24, %v994_v47 }
 0xb01   :  { %v1003_v31 = vsel %vm1000_vm8, %v1002_v50, %v998_v49 }
 0xb02   :  { %v1015_v25 = vsub.f32 1.0, %v1003_v31  ;;  %v1024_v51 = vmul.f32 %v1022_v0, %v1003_v31 }
 0xb46   :  { %v952_v53 = vpop.permute.xlu2 %951 }
 0xb47   :  { %v954_v56 = vmul.f32 %v952_v53, %v949_v33 }
 0xb60   :  { %v1018_v28 = vpop.permute.xlu0 %1017 }
 0xb61   :  { %v1020_v29 = vmul.f32 %v1018_v28, %v1015_v25 }
 0xb63   :  { %v5003_v37 = vadd.f32 %v1024_v51, %v1020_v29 }
 0xb65   :  { %v1031_v52 = vrot.slane %v5003_v37, 6 }
 0xb67   :  { %1032 = vrot.lane.b32.xlu2 %v1031_v52, %s4434_s9 }
 0xb68   :  { %v956_v54 = vpop.permute.xlu0 %955 }
 0xb69   :  { %v958_v58 = vmul.f32 %v956_v54, %v936_v8 }
 0xb6b   :  { %v959_v59 = vadd.f32 %v958_v58, %v954_v56 }
 0xb6d   :  { %1027 = vrot.lane.b32.xlu1 %v959_v59, %s4433_s5 }
 0xbc1   :  { %v1033_v60 = vpop.permute.xlu2 %1032 }
 0xbdf   :  { %v5008_v61 = vpop.permute.xlu1 %1027 }
 0xbe0   :  { %v5012_v62 = vsel %vm381_vm13, %v5008_v61, %v1033_v60 }
 0xbe1   :  { %3890 = vmatmul.msk.f32.vlgmr.msra.gmra.mxu0 %vm226_vm14, %v5012_v62  ;;  %3891 = vmatmul.msk.f32.vlgmr.msra.gmra.mxu1 %vm226_vm14, %v5012_v62  ;;  %v1185_v52 = vrot.slane %v5012_v62, 4  ;;  %v1118_v56 = vrot.slane %v5012_v62, 6 }
 0xc5e   :  { %v1056_v4 = vpop.f32.mrf.mxu0  ;;  %v1076_v27 = vpop.f32.mrf.mxu1 }
 0xc5f   :  { %v1057_v38 = vadd.f32 %v1056_v4, %v4776_v35  ;;  %v5020_v5 = vadd.f32 %v1076_v27, %v4767_v30 }
 0xc61   :  { %v1080_v6 = vrot.slane %v1057_v38, 6  ;;  %v1147_v7 = vrot.slane %v5020_v5, 4  ;;  %v1124_v9 = vrot.slane %v1057_v38, 4 }
 0xc63   :  { %1169 = vrot.lane.b32.xlu0 %v1147_v7, %s4432_s0  ;;  %1102 = vrot.lane.b32.xlu1 %v1080_v6, %s4432_s0  ;;  %v1082_v10 = vadd.f32 %v1080_v6, %v4781_v40  ;;  %v1126_v36 = vadd.f32 %v1124_v9, %v4784_v43  ;;  %v1149_v4 = vadd.f32 %v1147_v7, %v4764_v26 }
 0xc65   :  { %v3892_v11 = vmul.f32 -1.442695, %v1082_v10  ;;  %v3893_v12 = vmul.f32 -1.442695, %v1126_v36  ;;  %v3894_v27 = vmul.f32 -1.442695, %v1149_v4 }
 0xc67   :  { %4110 = vpow2.f32 %v3892_v11 }
 0xc68   :  { %4112 = vpow2.f32 %v3893_v12 }
 0xc6d   :  { %v4111_v32 = vpop.eup %4110 }
 0xc6e   :  { %v4113_v8 = vpop.eup %4112  ;;  %v1086_v14 = vadd.f32 1.0, %v4111_v32 }
 0xc6f   :  { %v1130_v15 = vadd.f32 1.0, %v4113_v8 }
 0xc70   :  { %4114 = vrcp.f32 %v1086_v14  ;;  %vm1092_vm11 = vweird.f32 %v1086_v14  ;;  %v1098_v46 = vand.u32 2147483648, %v1086_v14  ;;  %v1096_v47 = vand.u32 2147483647, %v1086_v14 }
 0xc71   :  { %4116 = vrcp.f32 %v1130_v15  ;;  %v1142_v44 = vand.u32 2147483648, %v1130_v15  ;;  %vm1136_vm12 = vweird.f32 %v1130_v15  ;;  %v1140_v45 = vand.u32 2147483647, %v1130_v15 }
 0xc72   :  { %v1099_v50 = vor.u32 1.1754944e-38, %v1098_v46  ;;  %vm1097_vm3 = vcmp.eq.f32.partialorder %v1096_v47, 8.507059e+37 }
 0xc73   :  { %v1143_v49 = vor.u32 1.1754944e-38, %v1142_v44  ;;  %vm1141_vm2 = vcmp.eq.f32.partialorder %v1140_v45, 8.507059e+37 }
 0xc76   :  { %v4115_v16 = vpop.eup %4114 }
 0xc77   :  { %v4117_v18 = vpop.eup %4116  ;;  %v1088_v20 = vmul.f32 %v4115_v16, %v1086_v14  ;;  %vm1093_vm9 = vweird.f32 %v4115_v16 }
 0xc78   :  { %v1132_v19 = vmul.f32 %v4117_v18, %v1130_v15  ;;  %vm1137_vm10 = vweird.f32 %v4117_v18  ;;  %vm1094_vm15 = vmor %vm1092_vm11, %vm1093_vm9 }
 0xc79   :  { %v1089_v3 = vsub.f32 1.0, %v1088_v20  ;;  %vm1138_vm1 = vmor %vm1136_vm12, %vm1137_vm10 }
 0xc7a   :  { %v1133_v21 = vsub.f32 1.0, %v1132_v19 }
 0xc7b   :  { %v1090_v41 = vmul.f32 %v4115_v16, %v1089_v3 }
 0xc7c   :  { %v1134_v39 = vmul.f32 %v4117_v18, %v1133_v21 }
 0xc7d   :  { %v1091_v24 = vadd.f32 %v4115_v16, %v1090_v41 }
 0xc7e   :  { %v1135_v42 = vadd.f32 %v4117_v18, %v1134_v39 }
 0xc7f   :  { %v1095_v2 = vsel %vm1094_vm15, %v4115_v16, %v1091_v24 }
 0xc80   :  { %v1139_v48 = vsel %vm1138_vm1, %v4117_v18, %v1135_v42  ;;  %v1100_v28 = vsel %vm1097_vm3, %v1099_v50, %v1095_v2 }
 0xc81   :  { %v1144_v0 = vsel %vm1141_vm2, %v1143_v49, %v1139_v48  ;;  %v1112_v39 = vsub.f32 1.0, %v1100_v28 }
 0xcd5   :  { %v1170_v31 = vpop.permute.xlu0 %1169  ;;  %v1103_v25 = vpop.permute.xlu1 %1102 }
 0xcd6   :  { %v1172_v51 = vmul.f32 %v1170_v31, %v1144_v0  ;;  %v1105_v29 = vmul.f32 %v1103_v25, %v1100_v28 }
 0xcd8   :  { %1174 = vrot.lane.b32.xlu2 %v1172_v51, %s4432_s0  ;;  %1107 = vrot.lane.b32.xlu0 %v1105_v29, %s4432_s0 }
 0xce0   :  { %1186 = vrot.lane.b32.xlu2 %v1185_v52, %s4433_s5 }
 0xd32   :  { %v1175_v53 = vpop.permute.xlu2 %1174 }
 0xd33   :  { %v1177_v33 = vadd.f32 %v1175_v53, %v4764_v26 }
 0xd35   :  { %4118 = vtanh.f32 %v1177_v33 }
 0xd3a   :  { %v1187_v7 = vpop.permute.xlu2 %1186 }
 0xd3b   :  { %v4119_v54 = vpop.eup %4118 }
 0xd3c   :  { %1181 = vrot.lane.b32.xlu1 %v4119_v54, %s4433_s5 }
 0xd44   :  { %1119 = vrot.lane.b32.xlu1 %v1118_v56, %s4434_s9 }
 0xd4a   :  { %v1108_v58 = vpop.permute.xlu0 %1107 }
 0xd4b   :  { %v1110_v59 = vadd.f32 %v1108_v58, %v4781_v40 }
 0xd4d   :  { %4120 = vtanh.f32 %v1110_v59 }
 0xd4e   :  { %4122 = vpow2.f32 %v3894_v27 }
 0xd53   :  { %v4121_v60 = vpop.eup %4120 }
 0xd54   :  { %1114 = vrot.lane.b32.xlu0 %v4121_v60, %s4433_s5  ;;  %v4123_v38 = vpop.eup %4122 }
 0xd55   :  { %v1153_v6 = vadd.f32 1.0, %v4123_v38 }
 0xd57   :  { %4124 = vrcp.f32 %v1153_v6  ;;  %v1165_v12 = vand.u32 2147483648, %v1153_v6  ;;  %vm1159_vm5 = vweird.f32 %v1153_v6  ;;  %v1163_v32 = vand.u32 2147483647, %v1153_v6 }
 0xd59   :  { %v1166_v14 = vor.u32 1.1754944e-38, %v1165_v12  ;;  %vm1164_vm7 = vcmp.eq.f32.partialorder %v1163_v32, 8.507059e+37 }
 0xd5d   :  { %v4125_v9 = vpop.eup %4124 }
 0xd5e   :  { %v1155_v62 = vmul.f32 %v4125_v9, %v1153_v6  ;;  %vm1160_vm4 = vweird.f32 %v4125_v9 }
 0xd5f   :  { %vm1161_vm6 = vmor %vm1159_vm5, %vm1160_vm4 }
 0xd60   :  { %v1156_v10 = vsub.f32 1.0, %v1155_v62 }
 0xd62   :  { %v1157_v36 = vmul.f32 %v4125_v9, %v1156_v10 }
 0xd64   :  { %v1158_v11 = vadd.f32 %v4125_v9, %v1157_v36 }
 0xd66   :  { %v1162_v8 = vsel %vm1161_vm6, %v4125_v9, %v1158_v11 }
 0xd67   :  { %v1167_v5 = vsel %vm1164_vm7, %v1166_v14, %v1162_v8 }
 0xd68   :  { %v1179_v15 = vsub.f32 1.0, %v1167_v5  ;;  %v1189_v18 = vmul.f32 %v1187_v7, %v1167_v5 }
 0xdae   :  { %v1182_v16 = vpop.permute.xlu1 %1181 }
 0xdaf   :  { %v1184_v19 = vmul.f32 %v1182_v16, %v1179_v15 }
 0xdb1   :  { %v5042_v20 = vadd.f32 %v1189_v18, %v1184_v19 }
 0xdb3   :  { %v1196_v21 = vrot.slane %v5042_v20, 2 }
 0xdb5   :  { %1197 = vrot.lane.b32.xlu0 %v1196_v21, %s4434_s9 }
 0xdb6   :  { %v1120_v3 = vpop.permute.xlu1 %1119 }
 0xdb7   :  { %v1122_v42 = vmul.f32 %v1120_v3, %v1100_v28 }
 0xdc6   :  { %v1115_v41 = vpop.permute.xlu0 %1114 }
 0xdc7   :  { %v1117_v24 = vmul.f32 %v1115_v41, %v1112_v39 }
 0xdc9   :  { %v1123_v44 = vadd.f32 %v1122_v42, %v1117_v24 }
 0xdcb   :  { %1192 = vrot.lane.b32.xlu2 %v1123_v44, %s4433_s5 }
 0xe25   :  { %v5047_v46 = vpop.permute.xlu2 %1192 }
 0xe27   :  { %v1198_v45 = vpop.permute.xlu0 %1197 }
 0xe28   :  { %v5051_v47 = vsel %vm381_vm13, %v5047_v46, %v1198_v45 }
 0xe29   :  { %v1202_v48 = vrot.slane %v5051_v47, 2 }
 0xe2b   :  { %3895 = vmatmul.msk.f32.vlgmr.msra.gmra.mxu2 %vm226_vm14, %v1202_v48  ;;  %3896 = vmatmul.msk.f32.vlgmr.msra.gmra.mxu3 %vm226_vm14, %v1202_v48 }
 0xeae   :  { %v1222_v2 = vpop.f32.mrf.mxu2  ;;  %v1242_v49 = vpop.f32.mrf.mxu3 }
 0xeaf   :  { %v1223_v50 = vadd.f32 %v1222_v2, %v4776_v35  ;;  %v5058_v31 = vadd.f32 %v1242_v49, %v4767_v30  ;;  %v1284_v2 = vrot.slane %v5051_v47, 6 }
 0xeb1   :  { %v1246_v0 = vrot.slane %v1223_v50, 4  ;;  %v1313_v25 = vrot.slane %v5058_v31, 6  ;;  %v1290_v53 = vrot.slane %v1223_v50, 6 }
 0xeb3   :  { %1335 = vrot.lane.b32.xlu1 %v1313_v25, %s4432_s0  ;;  %1268 = vrot.lane.b32.xlu2 %v1246_v0, %s4432_s0  ;;  %v1248_v28 = vadd.f32 %v1246_v0, %v4781_v40  ;;  %v1292_v33 = vadd.f32 %v1290_v53, %v4784_v43  ;;  %v1315_v49 = vadd.f32 %v1313_v25, %v4764_v26 }
 0xeb5   :  { %v3897_v51 = vmul.f32 -1.442695, %v1248_v28  ;;  %v3898_v56 = vmul.f32 -1.442695, %v1292_v33  ;;  %v3899_v50 = vmul.f32 -1.442695, %v1315_v49 }
 0xeb7   :  { %4126 = vpow2.f32 %v3897_v51 }
 0xebd   :  { %v4127_v29 = vpop.eup %4126 }
 0xebe   :  { %v1252_v52 = vadd.f32 1.0, %v4127_v29 }
 0xec0   :  { %4128 = vrcp.f32 %v1252_v52  ;;  %v1264_v6 = vand.u32 2147483648, %v1252_v52  ;;  %vm1258_vm9 = vweird.f32 %v1252_v52  ;;  %v1262_v9 = vand.u32 2147483647, %v1252_v52 }
 0xec1   :  { %4130 = vpow2.f32 %v3898_v56 }
 0xec2   :  { %v1265_v10 = vor.u32 1.1754944e-38, %v1264_v6  ;;  %vm1263_vm11 = vcmp.eq.f32.partialorder %v1262_v9, 8.507059e+37 }
 0xec6   :  { %v4129_v54 = vpop.eup %4128 }
 0xec7   :  { %v1254_v58 = vmul.f32 %v4129_v54, %v1252_v52  ;;  %v4131_v60 = vpop.eup %4130  ;;  %vm1259_vm8 = vweird.f32 %v4129_v54 }
 0xec8   :  { %v1296_v27 = vadd.f32 1.0, %v4131_v60  ;;  %vm1260_vm10 = vmor %vm1258_vm9, %vm1259_vm8 }
 0xec9   :  { %v1255_v59 = vsub.f32 1.0, %v1254_v58 }
 0xeca   :  { %4132 = vrcp.f32 %v1296_v27  ;;  %v1308_v15 = vand.u32 2147483648, %v1296_v27  ;;  %vm1302_vm15 = vweird.f32 %v1296_v27  ;;  %v1306_v16 = vand.u32 2147483647, %v1296_v27 }
 0xecb   :  { %v1256_v4 = vmul.f32 %v4129_v54, %v1255_v59 }
 0xecc   :  { %v1309_v19 = vor.u32 1.1754944e-38, %v1308_v15  ;;  %vm1307_vm2 = vcmp.eq.f32.partialorder %v1306_v16, 8.507059e+37 }
 0xecd   :  { %v1257_v38 = vadd.f32 %v4129_v54, %v1256_v4 }
 0xecf   :  { %v1261_v62 = vsel %vm1260_vm10, %v4129_v54, %v1257_v38 }
 0xed0   :  { %v5067_v11 = vsel %vm1263_vm11, %v1265_v10, %v1261_v62  ;;  %v4133_v32 = vpop.eup %4132 }
 0xed1   :  { %v1298_v8 = vmul.f32 %v4133_v32, %v1296_v27  ;;  %vm1303_vm12 = vweird.f32 %v4133_v32  ;;  %v1278_v62 = vsub.f32 1.0, %v5067_v11 }
 0xed2   :  { %vm1304_vm1 = vmor %vm1302_vm15, %vm1303_vm12 }
 0xed3   :  { %v1299_v14 = vsub.f32 1.0, %v1298_v8 }
 0xed5   :  { %v1300_v5 = vmul.f32 %v4133_v32, %v1299_v14 }
 0xed7   :  { %v1301_v7 = vadd.f32 %v4133_v32, %v1300_v5 }
 0xed9   :  { %v1305_v18 = vsel %vm1304_vm1, %v4133_v32, %v1301_v7 }
 0xeda   :  { %v1310_v3 = vsel %vm1307_vm2, %v1309_v19, %v1305_v18 }
 0xf0d   :  { %v1269_v36 = vpop.permute.xlu2 %1268 }
 0xf0e   :  { %v1271_v12 = vmul.f32 %v1269_v36, %v5067_v11 }
 0xf10   :  { %1273 = vrot.lane.b32.xlu1 %v1271_v12, %s4432_s0 }
 0xf25   :  { %v1336_v21 = vpop.permute.xlu1 %1335 }
 0xf26   :  { %v1338_v39 = vmul.f32 %v1336_v21, %v1310_v3 }
 0xf28   :  { %1340 = vrot.lane.b32.xlu0 %v1338_v39, %s4432_s0 }
 0xf30   :  { %1351 = vrot.lane.b32.xlu0 %v5051_v47, %s4433_s5 }
 0xf82   :  { %v1274_v41 = vpop.permute.xlu1 %1273 }
 0xf83   :  { %v1276_v42 = vadd.f32 %v1274_v41, %v4781_v40 }
 0xf85   :  { %4134 = vtanh.f32 %v1276_v42 }
 0xf8b   :  { %v4135_v24 = vpop.eup %4134 }
 0xf8c   :  { %1280 = vrot.lane.b32.xlu1 %v4135_v24, %s4433_s5 }
 0xf9a   :  { %v1341_v44 = vpop.permute.xlu0 %1340 }
 0xf9b   :  { %v1343_v45 = vadd.f32 %v1341_v44, %v4764_v26 }
 0xf9d   :  { %4136 = vtanh.f32 %v1343_v45 }
 0xf9e   :  { %4138 = vpow2.f32 %v3899_v50 }
 0xfa2   :  { %v1352_v25 = vpop.permute.xlu0 %1351 }
 0xfa3   :  { %v4137_v48 = vpop.eup %4136 }
 0xfa4   :  { %1347 = vrot.lane.b32.xlu2 %v4137_v48, %s4433_s5  ;;  %v4139_v0 = vpop.eup %4138 }
 0xfa5   :  { %v1319_v28 = vadd.f32 1.0, %v4139_v0 }
 0xfa7   :  { %4140 = vrcp.f32 %v1319_v28  ;;  %v1331_v54 = vand.u32 2147483648, %v1319_v28  ;;  %vm1325_vm4 = vweird.f32 %v1319_v28  ;;  %v1329_v47 = vand.u32 2147483647, %v1319_v28 }
 0xfa9   :  { %v1332_v58 = vor.u32 1.1754944e-38, %v1331_v54  ;;  %vm1330_vm6 = vcmp.eq.f32.partialorder %v1329_v47, 8.507059e+37 }
 0xfac   :  { %1285 = vrot.lane.b32.xlu2 %v1284_v2, %s4434_s9 }
 0xfad   :  { %v4141_v51 = vpop.eup %4140 }
 0xfae   :  { %v1321_v29 = vmul.f32 %v4141_v51, %v1319_v28  ;;  %vm1326_vm3 = vweird.f32 %v4141_v51 }
 0xfaf   :  { %vm1327_vm5 = vmor %vm1325_vm4, %vm1326_vm3 }
 0xfb0   :  { %v1322_v52 = vsub.f32 1.0, %v1321_v29 }
 0xfb2   :  { %v1323_v53 = vmul.f32 %v4141_v51, %v1322_v52 }
 0xfb4   :  { %v1324_v33 = vadd.f32 %v4141_v51, %v1323_v53 }
 0xfb6   :  { %v1328_v56 = vsel %vm1327_vm5, %v4141_v51, %v1324_v33 }
 0xfb7   :  { %v1333_v31 = vsel %vm1330_vm6, %v1332_v58, %v1328_v56  ;;  %vm1554_vm6 = vcmask 1041408  }
 0xfb8   :  { %v1345_v59 = vsub.f32 1.0, %v1333_v31  ;;  %v1354_v4 = vmul.f32 %v1352_v25, %v1333_v31 }
 0xffe   :  { %v1348_v60 = vpop.permute.xlu2 %1347  ;;  %v1281_v9 = vpop.permute.xlu1 %1280 }
 0xfff   :  { %v1350_v27 = vmul.f32 %v1348_v60, %v1345_v59  ;;  %v1283_v36 = vmul.f32 %v1281_v9, %v1278_v62 }
0x1001   :  { %v5083_v38 = vadd.f32 %v1354_v4, %v1350_v27 }
0x1003   :  { %v1361_v6 = vrot.slane %v5083_v38, 6 }
0x1005   :  { %1362 = vrot.lane.b32.xlu1 %v1361_v6, %s4434_s9 }
0x1006   :  { %v1286_v10 = vpop.permute.xlu2 %1285 }
0x1007   :  { %v1288_v12 = vmul.f32 %v1286_v10, %v5067_v11 }
0x1009   :  { %v1289_v32 = vadd.f32 %v1288_v12, %v1283_v36 }
0x100b   :  { %1357 = vrot.lane.b32.xlu0 %v1289_v32, %s4433_s5 }
0x1077   :  { %v1363_v8 = vpop.permute.xlu1 %1362 }
0x107d   :  { %v5090_v14 = vpop.permute.xlu0 %1357 }
0x107e   :  { %v5094_v5 = vsel %vm381_vm13, %v5090_v14, %v1363_v8 }
0x107f   :  { %v1367_v7 = vrot.slane %v5094_v5, 4  ;;  %v1449_v32 = vrot.slane %v5094_v5, 6 }
0x1081   :  { %3900 = vmatmul.msk.f32.vlgmr.msrb.gmra.mxu0 %vm226_vm14, %v1367_v7  ;;  %3901 = vmatmul.msk.f32.vlgmr.msrb.gmra.mxu1 %vm226_vm14, %v1367_v7 }
0x10fe   :  { %v1387_v15 = vpop.f32.mrf.mxu0  ;;  %v1407_v16 = vpop.f32.mrf.mxu1 }
0x10ff   :  { %v1388_v11 = vadd.f32 %v1387_v15, %v4776_v35  ;;  %v5101_v18 = vadd.f32 %v1407_v16, %v4767_v30 }
0x1101   :  { %v1411_v19 = vrot.slane %v1388_v11, 2  ;;  %1496 = vrot.lane.b32.xlu2 %v5101_v18, %s4432_s0  ;;  %v1455_v21 = vadd.f32 %v1388_v11, %v4784_v43 }
0x1103   :  { %1433 = vrot.lane.b32.xlu0 %v1411_v19, %s4432_s0  ;;  %v3903_v3 = vmul.f32 -1.442695, %v1455_v21  ;;  %v1413_v42 = vadd.f32 %v1411_v19, %v4781_v40 }
0x1105   :  { %4142 = vpow2.f32 %v3903_v3  ;;  %v3902_v35 = vmul.f32 -1.442695, %v1413_v42 }
0x110b   :  { %v4143_v39 = vpop.eup %4142 }
0x110c   :  { %v1459_v41 = vadd.f32 1.0, %v4143_v39  ;;  %v5133_v39 = vld [vmem:[%s4481_s29 + $0x78] sm:$0xff] }
0x110d   :  { %1687 = vmatpush.msra.mxu1 %v5133_v39 }
0x110e   :  { %4144 = vrcp.f32 %v1459_v41  ;;  %v1471_v50 = vand.u32 2147483648, %v1459_v41  ;;  %vm1465_vm8 = vweird.f32 %v1459_v41  ;;  %v1469_v43 = vand.u32 2147483647, %v1459_v41 }
0x110f   :  { %4146 = vpow2.f32 %v3902_v35  ;;  %v5140_v35 = vld [vmem:[%s4481_s29 + $0x58] sm:$0xff] }
0x1110   :  { %v1472_v28 = vor.u32 1.1754944e-38, %v1471_v50  ;;  %vm1470_vm10 = vcmp.eq.f32.partialorder %v1469_v43, 8.507059e+37  ;;  %v5159_v50 = vld [vmem:[%s4481_s29 + $0x38] sm:$0xff] }
0x1114   :  { %v4145_v24 = vpop.eup %4144 }
0x1115   :  { %v1461_v44 = vmul.f32 %v4145_v24, %v1459_v41  ;;  %v4147_v48 = vpop.eup %4146  ;;  %vm1466_vm7 = vweird.f32 %v4145_v24  ;;  %v5136_v41 = vld [vmem:[%s4481_s29 + $0x68] sm:$0xff] }
0x1116   :  { %v1417_v49 = vadd.f32 1.0, %v4147_v48  ;;  %vm1467_vm9 = vmor %vm1465_vm8, %vm1466_vm7  ;;  %1688 = vmatpush.msra.mxu1 %v5136_v41  ;;  %v5151_v48 = vld [vmem:[%s4481_s29 + $0x48] sm:$0xff]  ;;  %vm1556_vm7 = vcmask 1043456   ;;  %vm1558_vm8 = vcmask 1045504  }
0x1117   :  { %v1462_v30 = vsub.f32 1.0, %v1461_v44  ;;  %v5143_v44 = vld [vmem:[%s4481_s29 + $0x70] sm:$0xff] }
0x1118   :  { %4148 = vrcp.f32 %v1417_v49  ;;  %v1429_v58 = vand.u32 2147483648, %v1417_v49  ;;  %vm1423_vm12 = vweird.f32 %v1417_v49  ;;  %v1427_v31 = vand.u32 2147483647, %v1417_v49  ;;  %1667 = vmatpush.msra.mxu0 %v5143_v44  ;;  %1689 = vmatpush.msra.mxu1 %v5140_v35 }
0x1119   :  { %v1463_v45 = vmul.f32 %v4145_v24, %v1462_v30 }
0x111a   :  { %v1430_v59 = vor.u32 1.1754944e-38, %v1429_v58  ;;  %vm1428_vm1 = vcmp.eq.f32.partialorder %v1427_v31, 8.507059e+37  ;;  %1690 = vmatpush.msra.mxu1 %v5151_v48  ;;  %v5192_v58 = vld [vmem:[%s4481_s29 + $0x10] sm:$0xff]  ;;  %v5197_v31 = vld [vmem:[%s4481_s29] sm:$0xff] }
0x111b   :  { %v1464_v2 = vadd.f32 %v4145_v24, %v1463_v45  ;;  %v5148_v45 = vld [vmem:[%s4481_s29 + $0x60] sm:$0xff] }
0x111c   :  { %1668 = vmatpush.msra.mxu0 %v5148_v45  ;;  %1691 = vmatpush.msra.mxu1 %v5159_v50 }
0x111d   :  { %v1468_v0 = vsel %vm1467_vm9, %v4145_v24, %v1464_v2  ;;  %v5156_v2 = vld [vmem:[%s4481_s29 + $0x50] sm:$0xff] }
0x111e   :  { %v1473_v29 = vsel %vm1470_vm10, %v1472_v28, %v1468_v0  ;;  %v4149_v53 = vpop.eup %4148  ;;  %v5165_v0 = vld [vmem:[%s4481_s29 + $0x40] sm:$0xff]  ;;  %1669 = vmatpush.msra.mxu0 %v5156_v2 }
0x111f   :  { %v1419_v33 = vmul.f32 %v4149_v53, %v1417_v49  ;;  %vm1424_vm11 = vweird.f32 %v4149_v53 }
0x1120   :  { %vm1425_vm15 = vmor %vm1423_vm12, %vm1424_vm11  ;;  %1670 = vmatpush.msra.mxu0 %v5165_v0 }
0x1121   :  { %v1420_v54 = vsub.f32 1.0, %v1419_v33 }
0x1123   :  { %v1421_v47 = vmul.f32 %v4149_v53, %v1420_v54  ;;  %v5179_v54 = vld [vmem:[%s4481_s29 + $0x18] sm:$0xff] }
0x1125   :  { %v1422_v56 = vadd.f32 %v4149_v53, %v1421_v47  ;;  %v5182_v47 = vld [vmem:[%s4481_s29 + $0x20] sm:$0xff] }
0x1127   :  { %v1426_v25 = vsel %vm1425_vm15, %v4149_v53, %v1422_v56  ;;  %v5174_v53 = vld [vmem:[%s4481_s29 + $0x30] sm:$0xff]  ;;  %v5189_v56 = vld [vmem:[%s4481_s29 + $0x8] sm:$0xff] }
0x1128   :  { %v5110_v4 = vsel %vm1428_vm1, %v1430_v59, %v1426_v25  ;;  %1671 = vmatpush.msra.mxu0 %v5174_v53  ;;  %v1576_v25 = vld [vmem:[%s4476_s25 + $0x68] sm:$0xff]  ;;  %v1573_v59 = vld [vmem:[%s4476_s25 + $0x50] sm:$0xff] }
0x1129   :  { %v1443_v43 = vsub.f32 1.0, %v5110_v4 }
0x112a   :  { %1672 = vmatpush.msra.mxu0 %v5182_v47 }
0x112c   :  { %1673 = vmatpush.msra.mxu0 %v5192_v58 }
0x112e   :  { %1674 = vmatpush.msra.mxu0 %v5197_v31 }
0x112f   :  { %1675 = vmatmul.f32.vlgmr.msra.gmra.mxu0 %v4431_v22 }
0x1130   :  { %1988 = vmatpush.msrb.mxu0 %v5143_v44 }
0x1132   :  { %1989 = vmatpush.msrb.mxu0 %v5148_v45 }
0x1134   :  { %1990 = vmatpush.msrb.mxu0 %v5156_v2 }
0x1136   :  { %1991 = vmatpush.msrb.mxu0 %v5165_v0 }
0x1138   :  { %1992 = vmatpush.msrb.mxu0 %v5174_v53 }
0x113a   :  { %1993 = vmatpush.msrb.mxu0 %v5182_v47 }
0x113c   :  { %1994 = vmatpush.msrb.mxu0 %v5192_v58 }
0x113e   :  { %1995 = vmatpush.msrb.mxu0 %v5197_v31 }
0x1140   :  { %2314 = vmatpush.msra.mxu0 %v5143_v44 }
0x1142   :  { %2315 = vmatpush.msra.mxu0 %v5148_v45 }
0x1144   :  { %2316 = vmatpush.msra.mxu0 %v5156_v2 }
0x1146   :  { %2317 = vmatpush.msra.mxu0 %v5165_v0 }
0x1148   :  { %2318 = vmatpush.msra.mxu0 %v5174_v53 }
0x114a   :  { %2319 = vmatpush.msra.mxu0 %v5182_v47 }
0x114c   :  { %2320 = vmatpush.msra.mxu0 %v5192_v58 }
0x114e   :  { %2321 = vmatpush.msra.mxu0 %v5197_v31 }
0x115b   :  { %v1497_v51 = vpop.permute.xlu2 %1496 }
0x115c   :  { %v1499_v52 = vmul.f32 %v1497_v51, %v1473_v29  ;;  %v5168_v51 = vld [vmem:[%s4481_s29 + $0x28] sm:$0xff] }
0x115d   :  { %1692 = vmatpush.msra.mxu1 %v5168_v51 }
0x115e   :  { %1501 = vrot.lane.b32.xlu1 %v1499_v52, %s4432_s0 }
0x115f   :  { %1693 = vmatpush.msra.mxu1 %v5179_v54 }
0x1161   :  { %1694 = vmatpush.msra.mxu1 %v5189_v56 }
0x1162   :  { %1695 = vmatmul.f32.vlgmr.msra.gmra.mxu1 %v4431_v22  ;;  %v1577_v22 = vld [vmem:[%s4476_s25 + $0x70] sm:$0xff] }
0x1163   :  { %2008 = vmatpush.msrb.mxu1 %v5133_v39  ;;  %1616 = vmatpush.msrb.mxu2 %v1577_v22 }
0x1165   :  { %2009 = vmatpush.msrb.mxu1 %v5136_v41 }
0x1166   :  { %1512 = vrot.lane.b32.xlu1 %v1367_v7, %s4433_s5 }
0x1167   :  { %2010 = vmatpush.msrb.mxu1 %v5140_v35 }
0x1169   :  { %2011 = vmatpush.msrb.mxu1 %v5151_v48 }
0x116b   :  { %2012 = vmatpush.msrb.mxu1 %v5159_v50 }
0x116d   :  { %2013 = vmatpush.msrb.mxu1 %v5168_v51 }
0x116f   :  { %2014 = vmatpush.msrb.mxu1 %v5179_v54 }
0x1171   :  { %2015 = vmatpush.msrb.mxu1 %v5189_v56 }
0x1173   :  { %2334 = vmatpush.msra.mxu1 %v5133_v39 }
0x1175   :  { %v1434_v60 = vpop.permute.xlu0 %1433  ;;  %2335 = vmatpush.msra.mxu1 %v5136_v41 }
0x1176   :  { %v1436_v27 = vmul.f32 %v1434_v60, %v5110_v4  ;;  %v1574_v60 = vld [vmem:[%s4476_s25 + $0x58] sm:$0xff] }
0x1177   :  { %2336 = vmatpush.msra.mxu1 %v5140_v35 }
0x1178   :  { %1438 = vrot.lane.b32.xlu2 %v1436_v27, %s4432_s0  ;;  %v1572_v27 = vld [vmem:[%s4476_s25 + $0x48] sm:$0xff] }
0x1179   :  { %2337 = vmatpush.msra.mxu1 %v5151_v48 }
0x117b   :  { %2338 = vmatpush.msra.mxu1 %v5159_v50 }
0x117d   :  { %2339 = vmatpush.msra.mxu1 %v5168_v51 }
0x117f   :  { %2340 = vmatpush.msra.mxu1 %v5179_v54 }
0x1181   :  { %2341 = vmatpush.msra.mxu1 %v5189_v56 }
0x11d0   :  { %v1502_v6 = vpop.permute.xlu1 %1501 }
0x11d1   :  { %v1504_v9 = vadd.f32 %v1502_v6, %v4764_v26  ;;  %v1569_v6 = vld [vmem:[%s4476_s25 + $0x30] sm:$0xff] }
0x11d2   :  { %v1439_v62 = vpop.permute.xlu2 %1438 }
0x11d3   :  { %4150 = vtanh.f32 %v1504_v9  ;;  %v1441_v10 = vadd.f32 %v1439_v62, %v4781_v40  ;;  %v1475_v40 = vadd.f32 %v5101_v18, %v4764_v26  ;;  %v1570_v9 = vld [vmem:[%s4476_s25 + $0x38] sm:$0xff]  ;;  %v1567_v62 = vld [vmem:[%s4476_s25 + $0x20] sm:$0xff] }
0x11d5   :  { %4152 = vtanh.f32 %v1441_v10  ;;  %v3904_v8 = vmul.f32 -1.442695, %v1475_v40  ;;  %v1568_v10 = vld [vmem:[%s4476_s25 + $0x28] sm:$0xff] }
0x11d6   :  { %v1564_v40 = vld [vmem:[%s4476_s25 + $0x8] sm:$0xff] }
0x11d7   :  { %4154 = vpow2.f32 %v3904_v8 }
0x11d8   :  { %v1513_v19 = vpop.permute.xlu1 %1512 }
0x11d9   :  { %v4151_v36 = vpop.eup %4150 }
0x11da   :  { %1508 = vrot.lane.b32.xlu0 %v4151_v36, %s4433_s5  ;;  %v1565_v36 = vld [vmem:[%s4476_s25 + $0x10] sm:$0xff] }
0x11db   :  { %v4153_v12 = vpop.eup %4152 }
0x11dc   :  { %1445 = vrot.lane.b32.xlu2 %v4153_v12, %s4433_s5  ;;  %v1566_v12 = vld [vmem:[%s4476_s25 + $0x18] sm:$0xff] }
0x11dd   :  { %v4155_v5 = vpop.eup %4154 }
0x11de   :  { %v1479_v7 = vadd.f32 1.0, %v4155_v5 }
0x11e0   :  { %4156 = vrcp.f32 %v1479_v7  ;;  %vm1485_vm3 = vweird.f32 %v1479_v7 }
0x11e2   :  { %1450 = vrot.lane.b32.xlu0 %v1449_v32, %s4434_s9  ;;  %v1563_v32 = vld [vmem:[%s4476_s25] sm:$0xff] }
0x11e4   :  { %1522 = vrot.lane.b32.xlu2 %v5083_v38, %s4434_s9 }
0x11e6   :  { %v4157_v38 = vpop.eup %4156 }
0x11e7   :  { %v1481_v15 = vmul.f32 %v4157_v38, %v1479_v7  ;;  %vm1486_vm2 = vweird.f32 %v4157_v38 }
0x11e8   :  { %vm1487_vm4 = vmor %vm1485_vm3, %vm1486_vm2 }
0x11ea   :  { %1526 = vrot.lane.b32.xlu0 %v5042_v20, %s4434_s9  ;;  %v1482_v20 = vsub.f32 1.0, %v1481_v15 }
0x11ec   :  { %1534 = vrot.lane.b32.xlu2 %v4967_v17, %s4434_s9  ;;  %v1483_v17 = vmul.f32 %v4157_v38, %v1482_v20 }
0x11ee   :  { %v1484_v16 = vadd.f32 %v4157_v38, %v1483_v17 }
0x11f0   :  { %v1488_v26 = vsel %vm1487_vm4, %v4157_v38, %v1484_v16 }
0x11f2   :  { %1538 = vrot.lane.b32.xlu0 %v4909_v55, %s4434_s9  ;;  %v1491_v55 = vand.u32 2147483648, %v1479_v7 }
0x11f4   :  { %v1492_v11 = vor.u32 1.1754944e-38, %v1491_v55 }
0x11fa   :  { %1550 = vrot.lane.b32.xlu0 %v4800_v57, %s4434_s9  ;;  %v1489_v57 = vand.u32 2147483647, %v1479_v7 }
0x11fc   :  { %vm1490_vm5 = vcmp.eq.f32.partialorder %v1489_v57, 8.507059e+37 }
0x11fd   :  { %v1493_v18 = vsel %vm1490_vm5, %v1492_v11, %v1488_v26 }
0x11fe   :  { %v1506_v21 = vsub.f32 1.0, %v1493_v18  ;;  %v1515_v42 = vmul.f32 %v1513_v19, %v1493_v18 }
0x1236   :  { %v1446_v49 = vpop.permute.xlu2 %1445 }
0x1237   :  { %v1448_v29 = vmul.f32 %v1446_v49, %v1443_v43  ;;  %v1696_v49 = vpop.f32.mrf.mxu1 }
0x123e   :  { %v1523_v8 = vpop.permute.xlu2 %1522 }
0x123f   :  { %v1525_v15 = vsel %vm381_vm13, %v4860_v63, %v1523_v8 }
0x1246   :  { %v1535_v17 = vpop.permute.xlu2 %1534 }
0x124c   :  { %v1509_v3 = vpop.permute.xlu0 %1508 }
0x124d   :  { %v1511_v24 = vmul.f32 %v1509_v3, %v1506_v21 }
0x124f   :  { %v1516_v30 = vadd.f32 %v1515_v42, %v1511_v24 }
0x1251   :  { %1518 = vrot.lane.b32.xlu1 %v1516_v30, %s4434_s9 }
0x1254   :  { %v1451_v28 = vpop.permute.xlu0 %1450 }
0x1255   :  { %v1453_v52 = vmul.f32 %v1451_v28, %v5110_v4  ;;  %v1571_v4 = vld [vmem:[%s4476_s25 + $0x40] sm:$0xff]  ;;  %v1676_v28 = vpop.f32.mrf.mxu0 }
0x1257   :  { %v1454_v33 = vadd.f32 %v1453_v52, %v1448_v29 }
0x1259   :  { %1530 = vrot.lane.b32.xlu1 %v5003_v37, %s4434_s9  ;;  %1547 = vrot.lane.b32.xlu2 %v1454_v33, %s4433_s5  ;;  %v1575_v37 = vld [vmem:[%s4476_s25 + $0x60] sm:$0xff] }
0x125a   :  { %1617 = vmatpush.msrb.mxu2 %v1575_v37  ;;  %v1579_v33 = vld [vmem:[%s4486_s3] sm:$0x3]  ;;  %s4439_s3 = smov 16  }
0x125b   :  { %v1598_v22 = vperm.slane %v1579_v33, 0 }
0x125c   :  { %1618 = vmatpush.msrb.mxu2 %v1573_v59  ;;  %v1527_v5 = vpop.permute.xlu0 %1526 }
0x125d   :  { %v1529_v55 = vsel %vm381_vm13, %v4914_v13, %v1527_v5 }
0x125e   :  { %1619 = vmatpush.msrb.mxu2 %v1571_v4 }
0x1260   :  { %1620 = vmatpush.msrb.mxu2 %v1569_v6 }
0x1261   :  { %1542 = vrot.lane.b32.xlu1 %v4855_v34, %s4434_s9  ;;  %v1578_v34 = vld [vmem:[%s4476_s25 + $0x78] sm:$0xff]  ;;  %s4438_s25 = smov 48  }
0x1262   :  { %1639 = vmatpush.msrb.mxu3 %v1578_v34  ;;  %1621 = vmatpush.msrb.mxu2 %v1567_v62  ;;  %v1599_v34 = vperm.slane %v1579_v33, 1 }
0x1264   :  { %1640 = vmatpush.msrb.mxu3 %v1576_v25  ;;  %1622 = vmatpush.msrb.mxu2 %v1565_v36  ;;  %v1539_v16 = vpop.permute.xlu0 %1538 }
0x1265   :  { %v1541_v63 = vsel %vm381_vm13, %v5047_v46, %v1539_v16  ;;  %v1596_v46 = vld [vmem:[%s4491_s8] sm:$0x3]  ;;  %s5850_s8 = sld [smem:[#allocation10_spill]] }
0x1266   :  { %1641 = vmatpush.msrb.mxu3 %v1574_v60  ;;  %1623 = vmatpush.msrb.mxu2 %v1563_v32  ;;  %v5304_v30 = vperm.slane %v1596_v46, 1 }
0x1268   :  { %1642 = vmatpush.msrb.mxu3 %v1572_v27  ;;  %1822 = vmatpush.msra.mxu2 %v5143_v44  ;;  %v5313_v43 = vadd.f32 %v1696_v49, %v5304_v30 }
0x126a   :  { %1643 = vmatpush.msrb.mxu3 %v1570_v9  ;;  %1823 = vmatpush.msra.mxu2 %v5148_v45  ;;  %v1761_v29 = vrot.slane %v5313_v43, 2 }
0x126c   :  { %1644 = vmatpush.msrb.mxu3 %v1568_v10  ;;  %1824 = vmatpush.msra.mxu2 %v5156_v2  ;;  %v1551_v21 = vpop.permute.xlu0 %1550 }
0x126d   :  { %1783 = vrot.lane.b32.xlu1 %v1761_v29, %s4432_s0 }
0x126e   :  { %1645 = vmatpush.msrb.mxu3 %v1566_v12  ;;  %1825 = vmatpush.msra.mxu2 %v5165_v0 }
0x1270   :  { %1646 = vmatpush.msrb.mxu3 %v1564_v40  ;;  %1826 = vmatpush.msra.mxu2 %v5174_v53 }
0x1272   :  { %1842 = vmatpush.msra.mxu3 %v5133_v39  ;;  %1827 = vmatpush.msra.mxu2 %v5182_v47 }
0x1274   :  { %1843 = vmatpush.msra.mxu3 %v5136_v41  ;;  %1828 = vmatpush.msra.mxu2 %v5192_v58 }
0x1276   :  { %1844 = vmatpush.msra.mxu3 %v5140_v35  ;;  %1829 = vmatpush.msra.mxu2 %v5197_v31 }
0x1278   :  { %1845 = vmatpush.msra.mxu3 %v5151_v48 }
0x127a   :  { %1846 = vmatpush.msra.mxu3 %v5159_v50 }
0x127c   :  { %1847 = vmatpush.msra.mxu3 %v5168_v51 }
0x127e   :  { %1848 = vmatpush.msra.mxu3 %v5179_v54 }
0x1280   :  { %1849 = vmatpush.msra.mxu3 %v5189_v56 }
0x12b3   :  { %v1548_v13 = vpop.permute.xlu2 %1547 }
0x12b4   :  { %v1553_v42 = vsel %vm381_vm13, %v1548_v13, %v1551_v21 }
0x12c3   :  { %v1519_v7 = vpop.permute.xlu1 %1518 }
0x12c4   :  { %v1521_v38 = vsel %vm381_vm13, %v4805_v1, %v1519_v7 }
0x12c5   :  { %v1555_v20 = vsel %vm1554_vm6, %v1521_v38, %v1525_v15 }
0x12c6   :  { %v1557_v11 = vsel %vm1556_vm7, %v1555_v20, %v1529_v55 }
0x12cb   :  { %v1531_v57 = vpop.permute.xlu1 %1530 }
0x12cc   :  { %v1533_v26 = vsel %vm381_vm13, %v4974_v23, %v1531_v57  ;;  %v1537_v23 = vsel %vm381_vm13, %v5008_v61, %v1535_v17 }
0x12cd   :  { %v1559_v1 = vsel %vm1558_vm8, %v1557_v11, %v1533_v26  ;;  %v1560_v19 = vsel %vm1554_vm6, %v1537_v23, %v1541_v63 }
0x12ce   :  { %3905 = vmatmul.msk.f32.vlgmr.msrb.gmra.mxu2 %vm226_vm14, %v1559_v1  ;;  %3907 = vmatmul.msk.f32.vlgmr.msrb.gmra.mxu3 %vm226_vm14, %v1559_v1 }
0x12cf   :  { %2153 = vmatpush.msrb.mxu2 %v5143_v44  ;;  %2173 = vmatpush.msrb.mxu3 %v5133_v39 }
0x12d1   :  { %2154 = vmatpush.msrb.mxu2 %v5148_v45  ;;  %2174 = vmatpush.msrb.mxu3 %v5136_v41 }
0x12d3   :  { %v1543_v18 = vpop.permute.xlu1 %1542  ;;  %2155 = vmatpush.msrb.mxu2 %v5156_v2  ;;  %2175 = vmatpush.msrb.mxu3 %v5140_v35 }
0x12d4   :  { %v1545_v3 = vsel %vm381_vm13, %v5090_v14, %v1543_v18  ;;  %v5308_v14 = vperm.slane %v1596_v46, 0 }
0x12d5   :  { %v1561_v24 = vsel %vm1556_vm7, %v1560_v19, %v1545_v3  ;;  %2156 = vmatpush.msrb.mxu2 %v5165_v0  ;;  %2176 = vmatpush.msrb.mxu3 %v5151_v48 }
0x12d6   :  { %v1562_v61 = vsel %vm1558_vm8, %v1561_v24, %v1553_v42  ;;  %v1677_v52 = vadd.f32 %v1676_v28, %v5308_v14 }
0x12d7   :  { %3906 = vmatmul.msk.f32.gmra.mxu2 %vm226_vm14, %v1562_v61  ;;  %3908 = vmatmul.msk.f32.gmra.mxu3 %vm226_vm14, %v1562_v61 }
0x12d8   :  { %2157 = vmatpush.msrb.mxu2 %v5174_v53  ;;  %2177 = vmatpush.msrb.mxu3 %v5159_v50  ;;  %v1738_v9 = vrot.slane %v1677_v52, 2 }
0x12d9   :  { %1720 = vrot.lane.b32.xlu2 %v1677_v52, %s4432_s0 }
0x12da   :  { %2158 = vmatpush.msrb.mxu2 %v5182_v47  ;;  %2178 = vmatpush.msrb.mxu3 %v5168_v51 }
0x12dc   :  { %2159 = vmatpush.msrb.mxu2 %v5192_v58  ;;  %2179 = vmatpush.msrb.mxu3 %v5179_v54 }
0x12de   :  { %2160 = vmatpush.msrb.mxu2 %v5197_v31  ;;  %2180 = vmatpush.msrb.mxu3 %v5189_v56 }
0x12df   :  { %v1784_v46 = vpop.permute.xlu1 %1783 }
0x1333   :  { %v1721_v57 = vpop.permute.xlu2 %1720 }
0x1351   :  { %v1625_v37 = vpop.f32.mrf.mxu2  ;;  %v1648_v25 = vpop.f32.mrf.mxu3 }
0x1352   :  { %v5326_v59 = vadd.f32 %v1625_v37, %v1598_v22  ;;  %v5328_v60 = vadd.f32 %v1648_v25, %v1599_v34 }
0x1354   :  { %v1699_v4 = vadd.f32 %v1677_v52, %v5326_v59 }
0x1356   :  { %v3909_v27 = vmul.f32 -1.442695, %v1699_v4 }
0x1358   :  { %4158 = vpow2.f32 %v3909_v27 }
0x135a   :  { %v1628_v6 = vpop.f32.mrf.mxu2  ;;  %v1651_v33 = vpop.f32.mrf.mxu3 }
0x135b   :  { %v5331_v62 = vadd.f32 %v1628_v6, %v1598_v22  ;;  %v5337_v37 = vadd.f32 %v1651_v33, %v1599_v34 }
0x135d   :  { %v1740_v10 = vadd.f32 %v1738_v9, %v5331_v62  ;;  %v1763_v6 = vadd.f32 %v1761_v29, %v5337_v37 }
0x135e   :  { %v4159_v36 = vpop.eup %4158 }
0x135f   :  { %v1703_v12 = vadd.f32 1.0, %v4159_v36  ;;  %v3910_v32 = vmul.f32 -1.442695, %v1740_v10  ;;  %v3911_v9 = vmul.f32 -1.442695, %v1763_v6 }
0x1361   :  { %4160 = vrcp.f32 %v1703_v12  ;;  %v1715_v15 = vand.u32 2147483648, %v1703_v12  ;;  %v1713_v17 = vand.u32 2147483647, %v1703_v12  ;;  %vm1709_vm10 = vweird.f32 %v1703_v12 }
0x1362   :  { %4162 = vpow2.f32 %v3910_v32 }
0x1363   :  { %v1716_v55 = vor.u32 1.1754944e-38, %v1715_v15  ;;  %vm1714_vm12 = vcmp.eq.f32.partialorder %v1713_v17, 8.507059e+37 }
0x1367   :  { %v4161_v40 = vpop.eup %4160 }
0x1368   :  { %v4163_v8 = vpop.eup %4162  ;;  %v1705_v5 = vmul.f32 %v4161_v40, %v1703_v12  ;;  %vm1710_vm9 = vweird.f32 %v4161_v40 }
0x1369   :  { %v1744_v7 = vadd.f32 1.0, %v4163_v8  ;;  %vm1711_vm11 = vmor %vm1709_vm10, %vm1710_vm9 }
0x136a   :  { %v1706_v38 = vsub.f32 1.0, %v1705_v5 }
0x136b   :  { %4164 = vrcp.f32 %v1744_v7  ;;  %v1756_v18 = vand.u32 2147483648, %v1744_v7  ;;  %v1754_v21 = vand.u32 2147483647, %v1744_v7  ;;  %vm1750_vm1 = vweird.f32 %v1744_v7 }
0x136c   :  { %v1707_v20 = vmul.f32 %v4161_v40, %v1706_v38 }
0x136d   :  { %v1757_v42 = vor.u32 1.1754944e-38, %v1756_v18  ;;  %vm1755_vm3 = vcmp.eq.f32.partialorder %v1754_v21, 8.507059e+37 }
0x136e   :  { %v1708_v16 = vadd.f32 %v4161_v40, %v1707_v20 }
0x1370   :  { %v1712_v26 = vsel %vm1711_vm11, %v4161_v40, %v1708_v16 }
0x1371   :  { %v4165_v11 = vpop.eup %4164  ;;  %v1717_v1 = vsel %vm1714_vm12, %v1716_v55, %v1712_v26 }
0x1372   :  { %v1723_v63 = vmul.f32 %v1721_v57, %v1717_v1  ;;  %v1746_v13 = vmul.f32 %v4165_v11, %v1744_v7  ;;  %vm1751_vm15 = vweird.f32 %v4165_v11  ;;  %v1730_v26 = vsub.f32 1.0, %v1717_v1 }
0x1373   :  { %vm1752_vm2 = vmor %vm1750_vm1, %vm1751_vm15 }
0x1374   :  { %1725 = vrot.lane.b32.xlu1 %v1723_v63, %s4432_s0  ;;  %v1747_v23 = vsub.f32 1.0, %v1746_v13  ;;  %v1736_v63 = vmul.f32 0.0, %v1717_v1 }
0x1376   :  { %v1748_v19 = vmul.f32 %v4165_v11, %v1747_v23 }
0x1378   :  { %v1749_v3 = vadd.f32 %v4165_v11, %v1748_v19 }
0x137a   :  { %v1753_v24 = vsel %vm1752_vm2, %v4165_v11, %v1749_v3 }
0x137b   :  { %v1758_v61 = vsel %vm1755_vm3, %v1757_v42, %v1753_v24 }
0x137c   :  { %v1786_v49 = vmul.f32 %v1784_v46, %v1758_v61 }
0x137e   :  { %1788 = vrot.lane.b32.xlu0 %v1786_v49, %s4432_s0 }
0x13e6   :  { %v1726_v28 = vpop.permute.xlu1 %1725 }
0x13e7   :  { %v1728_v52 = vadd.f32 %v1726_v28, %v5326_v59 }
0x13e9   :  { %4166 = vtanh.f32 %v1728_v52 }
0x13ef   :  { %v4167_v22 = vpop.eup %4166 }
0x13f0   :  { %v1789_v25 = vpop.permute.xlu0 %1788  ;;  %1732 = vrot.lane.b32.xlu0 %v4167_v22, %s4433_s5 }
0x13f1   :  { %v1791_v4 = vadd.f32 %v1789_v25, %v5337_v37 }
0x13f3   :  { %4168 = vtanh.f32 %v1791_v4 }
0x13f4   :  { %4170 = vpow2.f32 %v3911_v9 }
0x13f9   :  { %v4169_v27 = vpop.eup %4168 }
0x13fa   :  { %1795 = vrot.lane.b32.xlu2 %v4169_v27, %s4433_s5  ;;  %v4171_v10 = vpop.eup %4170 }
0x13fb   :  { %v1767_v36 = vadd.f32 1.0, %v4171_v10 }
0x13fd   :  { %4172 = vrcp.f32 %v1767_v36  ;;  %v1779_v5 = vand.u32 2147483648, %v1767_v36  ;;  %vm1773_vm5 = vweird.f32 %v1767_v36  ;;  %v1777_v7 = vand.u32 2147483647, %v1767_v36 }
0x13ff   :  { %v1780_v15 = vor.u32 1.1754944e-38, %v1779_v5  ;;  %vm1778_vm7 = vcmp.eq.f32.partialorder %v1777_v7, 8.507059e+37 }
0x1403   :  { %v4173_v34 = vpop.eup %4172 }
0x1404   :  { %v1769_v12 = vmul.f32 %v4173_v34, %v1767_v36  ;;  %vm1774_vm4 = vweird.f32 %v4173_v34 }
0x1405   :  { %vm1775_vm6 = vmor %vm1773_vm5, %vm1774_vm4 }
0x1406   :  { %v1770_v32 = vsub.f32 1.0, %v1769_v12 }
0x1408   :  { %v1771_v40 = vmul.f32 %v4173_v34, %v1770_v32 }
0x140a   :  { %v1772_v8 = vadd.f32 %v4173_v34, %v1771_v40 }
0x140c   :  { %v1776_v38 = vsel %vm1775_vm6, %v4173_v34, %v1772_v8 }
0x140d   :  { %v1781_v43 = vsel %vm1778_vm7, %v1780_v15, %v1776_v38 }
0x140e   :  { %v1793_v29 = vsub.f32 1.0, %v1781_v43  ;;  %v1799_v17 = vmul.f32 0.0, %v1781_v43 }
0x1454   :  { %v1796_v20 = vpop.permute.xlu2 %1795 }
0x1455   :  { %v1798_v16 = vmul.f32 %v1796_v20, %v1793_v29 }
0x1457   :  { %v1800_v55 = vadd.f32 %v1799_v17, %v1798_v16 }
0x1459   :  { %v1806_v57 = vrot.slane %v1800_v55, 6 }
0x145b   :  { %1807 = vrot.lane.b32.xlu2 %v1806_v57, %s4434_s9 }
0x1462   :  { %v1733_v11 = vpop.permute.xlu0 %1732 }
0x1463   :  { %v1735_v13 = vmul.f32 %v1733_v11, %v1730_v26 }
0x1465   :  { %v1737_v23 = vadd.f32 %v1736_v63, %v1735_v13 }
0x1467   :  { %1802 = vrot.lane.b32.xlu1 %v1737_v23, %s4433_s5 }
0x14b5   :  { %v1808_v18 = vpop.permute.xlu2 %1807 }
0x14d9   :  { %v1803_v19 = vpop.permute.xlu1 %1802 }
0x14da   :  { %v5348_v21 = vsel %vm381_vm13, %v1803_v19, %v1808_v18 }
0x14db   :  { %3912 = vmatmul.msk.f32.vlgmr.msra.gmra.mxu2 %vm226_vm14, %v5348_v21  ;;  %3913 = vmatmul.msk.f32.vlgmr.msra.gmra.mxu3 %vm226_vm14, %v5348_v21  ;;  %v1960_v18 = vrot.slane %v5348_v21, 4 }
0x14dc   :  { %2475 = vmatpush.msra.mxu2 %v5143_v44  ;;  %2495 = vmatpush.msra.mxu3 %v5133_v39 }
0x14de   :  { %2476 = vmatpush.msra.mxu2 %v5148_v45  ;;  %2496 = vmatpush.msra.mxu3 %v5136_v41 }
0x14e0   :  { %2477 = vmatpush.msra.mxu2 %v5156_v2  ;;  %2497 = vmatpush.msra.mxu3 %v5140_v35 }
0x14e2   :  { %2478 = vmatpush.msra.mxu2 %v5165_v0  ;;  %2498 = vmatpush.msra.mxu3 %v5151_v48 }
0x14e4   :  { %2479 = vmatpush.msra.mxu2 %v5174_v53  ;;  %2499 = vmatpush.msra.mxu3 %v5159_v50 }
0x14e6   :  { %2480 = vmatpush.msra.mxu2 %v5182_v47  ;;  %2500 = vmatpush.msra.mxu3 %v5168_v51 }
0x14e8   :  { %2481 = vmatpush.msra.mxu2 %v5192_v58  ;;  %2501 = vmatpush.msra.mxu3 %v5179_v54 }
0x14ea   :  { %2482 = vmatpush.msra.mxu2 %v5197_v31  ;;  %2502 = vmatpush.msra.mxu3 %v5189_v56 }
0x155e   :  { %v1831_v1 = vpop.f32.mrf.mxu2  ;;  %v1851_v3 = vpop.f32.mrf.mxu3 }
0x155f   :  { %v1832_v46 = vadd.f32 %v1831_v1, %v5308_v14  ;;  %v5372_v42 = vadd.f32 %v1851_v3, %v5304_v30 }
0x1561   :  { %v1855_v24 = vrot.slane %v1832_v46, 6  ;;  %v1922_v61 = vrot.slane %v5372_v42, 4  ;;  %v1899_v49 = vrot.slane %v1832_v46, 4  ;;  %v1893_v46 = vrot.slane %v5348_v21, 6 }
0x1563   :  { %1944 = vrot.lane.b32.xlu0 %v1922_v61, %s4432_s0  ;;  %1877 = vrot.lane.b32.xlu1 %v1855_v24, %s4432_s0  ;;  %v1857_v28 = vadd.f32 %v1855_v24, %v5326_v59  ;;  %v1901_v52 = vadd.f32 %v1899_v49, %v5331_v62 }
0x1565   :  { %v3914_v33 = vmul.f32 -1.442695, %v1857_v28  ;;  %v3915_v22 = vmul.f32 -1.442695, %v1901_v52  ;;  %v1924_v52 = vadd.f32 %v1922_v61, %v5337_v37 }
0x1567   :  { %4174 = vpow2.f32 %v3914_v33  ;;  %v3916_v33 = vmul.f32 -1.442695, %v1924_v52 }
0x1568   :  { %4176 = vpow2.f32 %v3915_v22 }
0x156d   :  { %v4175_v25 = vpop.eup %4174 }
0x156e   :  { %v4177_v4 = vpop.eup %4176  ;;  %v1861_v27 = vadd.f32 1.0, %v4175_v25 }
0x156f   :  { %v1905_v6 = vadd.f32 1.0, %v4177_v4 }
0x1570   :  { %4178 = vrcp.f32 %v1861_v27  ;;  %vm1867_vm10 = vweird.f32 %v1861_v27  ;;  %v1873_v15 = vand.u32 2147483648, %v1861_v27  ;;  %v1871_v29 = vand.u32 2147483647, %v1861_v27 }
0x1571   :  { %4180 = vrcp.f32 %v1905_v6  ;;  %v1917_v38 = vand.u32 2147483648, %v1905_v6  ;;  %vm1911_vm11 = vweird.f32 %v1905_v6  ;;  %v1915_v43 = vand.u32 2147483647, %v1905_v6 }
0x1572   :  { %v1874_v55 = vor.u32 1.1754944e-38, %v1873_v15  ;;  %vm1872_vm2 = vcmp.eq.f32.partialorder %v1871_v29, 8.507059e+37 }
0x1573   :  { %v1918_v16 = vor.u32 1.1754944e-38, %v1917_v38  ;;  %vm1916_vm1 = vcmp.eq.f32.partialorder %v1915_v43, 8.507059e+37 }
0x1576   :  { %v4179_v9 = vpop.eup %4178 }
0x1577   :  { %v4181_v10 = vpop.eup %4180  ;;  %v1863_v34 = vmul.f32 %v4179_v9, %v1861_v27  ;;  %vm1868_vm8 = vweird.f32 %v4179_v9 }
0x1578   :  { %v1907_v36 = vmul.f32 %v4181_v10, %v1905_v6  ;;  %vm1912_vm9 = vweird.f32 %v4181_v10  ;;  %vm1869_vm12 = vmor %vm1867_vm10, %vm1868_vm8 }
0x1579   :  { %v1864_v32 = vsub.f32 1.0, %v1863_v34  ;;  %vm1913_vm15 = vmor %vm1911_vm11, %vm1912_vm9 }
0x157a   :  { %v1908_v12 = vsub.f32 1.0, %v1907_v36 }
0x157b   :  { %v1865_v8 = vmul.f32 %v4179_v9, %v1864_v32 }
0x157c   :  { %v1909_v40 = vmul.f32 %v4181_v10, %v1908_v12 }
0x157d   :  { %v1866_v7 = vadd.f32 %v4179_v9, %v1865_v8 }
0x157e   :  { %v1910_v5 = vadd.f32 %v4181_v10, %v1909_v40 }
0x157f   :  { %v1870_v17 = vsel %vm1869_vm12, %v4179_v9, %v1866_v7 }
0x1580   :  { %v1914_v20 = vsel %vm1913_vm15, %v4181_v10, %v1910_v5  ;;  %v1875_v63 = vsel %vm1872_vm2, %v1874_v55, %v1870_v17 }
0x1581   :  { %v1919_v26 = vsel %vm1916_vm1, %v1918_v16, %v1914_v20  ;;  %v1887_v43 = vsub.f32 1.0, %v1875_v63 }
0x15d5   :  { %v1945_v57 = vpop.permute.xlu0 %1944  ;;  %v1878_v11 = vpop.permute.xlu1 %1877 }
0x15d6   :  { %v1947_v13 = vmul.f32 %v1945_v57, %v1919_v26  ;;  %v1880_v23 = vmul.f32 %v1878_v11, %v1875_v63 }
0x15d8   :  { %1949 = vrot.lane.b32.xlu2 %v1947_v13, %s4432_s0  ;;  %1882 = vrot.lane.b32.xlu0 %v1880_v23, %s4432_s0 }
0x15e0   :  { %1961 = vrot.lane.b32.xlu2 %v1960_v18, %s4433_s5 }
0x1632   :  { %v1950_v19 = vpop.permute.xlu2 %1949 }
0x1633   :  { %v1952_v1 = vadd.f32 %v1950_v19, %v5337_v37 }
0x1635   :  { %4182 = vtanh.f32 %v1952_v1 }
0x163a   :  { %v1962_v61 = vpop.permute.xlu2 %1961 }
0x163b   :  { %v4183_v3 = vpop.eup %4182 }
0x163c   :  { %1956 = vrot.lane.b32.xlu1 %v4183_v3, %s4433_s5 }
0x1644   :  { %1894 = vrot.lane.b32.xlu1 %v1893_v46, %s4434_s9 }
0x164a   :  { %v1883_v24 = vpop.permute.xlu0 %1882 }
0x164b   :  { %v1885_v49 = vadd.f32 %v1883_v24, %v5326_v59 }
0x164d   :  { %4184 = vtanh.f32 %v1885_v49 }
0x164e   :  { %4186 = vpow2.f32 %v3916_v33 }
0x1653   :  { %v4185_v28 = vpop.eup %4184 }
0x1654   :  { %1889 = vrot.lane.b32.xlu0 %v4185_v28, %s4433_s5  ;;  %v4187_v22 = vpop.eup %4186 }
0x1655   :  { %v1928_v25 = vadd.f32 1.0, %v4187_v22 }
0x1657   :  { %4188 = vrcp.f32 %v1928_v25  ;;  %v1940_v10 = vand.u32 2147483648, %v1928_v25  ;;  %vm1934_vm4 = vweird.f32 %v1928_v25  ;;  %v1938_v36 = vand.u32 2147483647, %v1928_v25 }
0x1659   :  { %v1941_v12 = vor.u32 1.1754944e-38, %v1940_v10  ;;  %vm1939_vm6 = vcmp.eq.f32.partialorder %v1938_v36, 8.507059e+37 }
0x165d   :  { %v4189_v4 = vpop.eup %4188 }
0x165e   :  { %v1930_v21 = vmul.f32 %v4189_v4, %v1928_v25  ;;  %vm1935_vm3 = vweird.f32 %v4189_v4 }
0x165f   :  { %vm1936_vm5 = vmor %vm1934_vm4, %vm1935_vm3 }
0x1660   :  { %v1931_v27 = vsub.f32 1.0, %v1930_v21 }
0x1662   :  { %v1932_v6 = vmul.f32 %v4189_v4, %v1931_v27 }
0x1664   :  { %v1933_v9 = vadd.f32 %v4189_v4, %v1932_v6 }
0x1666   :  { %v1937_v34 = vsel %vm1936_vm5, %v4189_v4, %v1933_v9 }
0x1667   :  { %v1942_v42 = vsel %vm1939_vm6, %v1941_v12, %v1937_v34 }
0x1668   :  { %v1954_v32 = vsub.f32 1.0, %v1942_v42  ;;  %v1964_v8 = vmul.f32 %v1962_v61, %v1942_v42 }
0x16ae   :  { %v1957_v40 = vpop.permute.xlu1 %1956 }
0x16af   :  { %v1959_v5 = vmul.f32 %v1957_v40, %v1954_v32 }
0x16b1   :  { %v1965_v7 = vadd.f32 %v1964_v8, %v1959_v5 }
0x16b3   :  { %v1971_v38 = vrot.slane %v1965_v7, 2 }
0x16b5   :  { %1972 = vrot.lane.b32.xlu0 %v1971_v38, %s4434_s9 }
0x16b6   :  { %v1895_v15 = vpop.permute.xlu1 %1894 }
0x16b7   :  { %v1897_v20 = vmul.f32 %v1895_v15, %v1875_v63 }
0x16c6   :  { %v1890_v29 = vpop.permute.xlu0 %1889 }
0x16c7   :  { %v1892_v17 = vmul.f32 %v1890_v29, %v1887_v43 }
0x16c9   :  { %v1898_v16 = vadd.f32 %v1897_v20, %v1892_v17 }
0x16cb   :  { %1967 = vrot.lane.b32.xlu2 %v1898_v16, %s4433_s5 }
0x1725   :  { %v1968_v55 = vpop.permute.xlu2 %1967 }
0x1727   :  { %v1973_v57 = vpop.permute.xlu0 %1972 }
0x1728   :  { %v5397_v26 = vsel %vm381_vm13, %v1968_v55, %v1973_v57 }
0x1729   :  { %v1977_v11 = vrot.slane %v5397_v26, 2  ;;  %v2059_v5 = vrot.slane %v5397_v26, 6 }
0x172b   :  { %3917 = vmatmul.msk.f32.vlgmr.msrb.gmra.mxu0 %vm226_vm14, %v1977_v11  ;;  %3918 = vmatmul.msk.f32.vlgmr.msrb.gmra.mxu1 %vm226_vm14, %v1977_v11 }
0x172c   :  { %2641 = vmatpush.msrb.mxu0 %v5143_v44  ;;  %2661 = vmatpush.msrb.mxu1 %v5133_v39 }
0x172e   :  { %2642 = vmatpush.msrb.mxu0 %v5148_v45  ;;  %2662 = vmatpush.msrb.mxu1 %v5136_v41 }
0x1730   :  { %2643 = vmatpush.msrb.mxu0 %v5156_v2  ;;  %2663 = vmatpush.msrb.mxu1 %v5140_v35 }
0x1732   :  { %2644 = vmatpush.msrb.mxu0 %v5165_v0  ;;  %2664 = vmatpush.msrb.mxu1 %v5151_v48 }
0x1734   :  { %2645 = vmatpush.msrb.mxu0 %v5174_v53  ;;  %2665 = vmatpush.msrb.mxu1 %v5159_v50 }
0x1736   :  { %2646 = vmatpush.msrb.mxu0 %v5182_v47  ;;  %2666 = vmatpush.msrb.mxu1 %v5168_v51 }
0x1738   :  { %2647 = vmatpush.msrb.mxu0 %v5192_v58  ;;  %2667 = vmatpush.msrb.mxu1 %v5179_v54 }
0x173a   :  { %2648 = vmatpush.msrb.mxu0 %v5197_v31  ;;  %2668 = vmatpush.msrb.mxu1 %v5189_v56 }
0x17a8   :  { %v1997_v39 = vpop.f32.mrf.mxu0  ;;  %v2017_v41 = vpop.f32.mrf.mxu1 }
0x17a9   :  { %v1998_v35 = vadd.f32 %v1997_v39, %v5308_v14  ;;  %v5420_v44 = vadd.f32 %v2017_v41, %v5304_v30 }
0x17ab   :  { %v2021_v45 = vrot.slane %v1998_v35, 4  ;;  %v2088_v48 = vrot.slane %v5420_v44, 6  ;;  %v2065_v53 = vrot.slane %v1998_v35, 6 }
0x17ad   :  { %2110 = vrot.lane.b32.xlu1 %v2088_v48, %s4432_s0  ;;  %2043 = vrot.lane.b32.xlu2 %v2021_v45, %s4432_s0  ;;  %v2023_v2 = vadd.f32 %v2021_v45, %v5326_v59  ;;  %v2067_v54 = vadd.f32 %v2065_v53, %v5331_v62  ;;  %v2090_v7 = vadd.f32 %v2088_v48, %v5337_v37 }
0x17af   :  { %v3919_v50 = vmul.f32 -1.442695, %v2023_v2  ;;  %v3920_v56 = vmul.f32 -1.442695, %v2067_v54  ;;  %v3921_v38 = vmul.f32 -1.442695, %v2090_v7 }
0x17b1   :  { %4190 = vpow2.f32 %v3919_v50 }
0x17b7   :  { %v4191_v0 = vpop.eup %4190 }
0x17b8   :  { %v2027_v51 = vadd.f32 1.0, %v4191_v0 }
0x17ba   :  { %4192 = vrcp.f32 %v2027_v51  ;;  %v2039_v19 = vand.u32 2147483648, %v2027_v51  ;;  %vm2033_vm8 = vweird.f32 %v2027_v51  ;;  %v2037_v1 = vand.u32 2147483647, %v2027_v51 }
0x17bb   :  { %4194 = vpow2.f32 %v3920_v56 }
0x17bc   :  { %v2040_v46 = vor.u32 1.1754944e-38, %v2039_v19  ;;  %vm2038_vm10 = vcmp.eq.f32.partialorder %v2037_v1, 8.507059e+37  ;;  %v4331_v19 = vld [vmem:[%s4481_s29 + $0x78] sm:$0xff]  ;;  %v4332_v1 = vld [vmem:[%s4481_s29 + $0x60] sm:$0xff] }
0x17c0   :  { %v4193_v47 = vpop.eup %4192 }
0x17c1   :  { %v2029_v58 = vmul.f32 %v4193_v47, %v2027_v51  ;;  %v4195_v63 = vpop.eup %4194  ;;  %vm2034_vm7 = vweird.f32 %v4193_v47 }
0x17c2   :  { %v2071_v23 = vadd.f32 1.0, %v4195_v63  ;;  %vm2035_vm9 = vmor %vm2033_vm8, %vm2034_vm7 }
0x17c3   :  { %v2030_v31 = vsub.f32 1.0, %v2029_v58 }
0x17c4   :  { %4196 = vrcp.f32 %v2071_v23  ;;  %v2083_v21 = vand.u32 2147483648, %v2071_v23  ;;  %vm2077_vm12 = vweird.f32 %v2071_v23  ;;  %v2081_v27 = vand.u32 2147483647, %v2071_v23 }
0x17c5   :  { %v2031_v13 = vmul.f32 %v4193_v47, %v2030_v31 }
0x17c6   :  { %v2084_v9 = vor.u32 1.1754944e-38, %v2083_v21  ;;  %vm2082_vm1 = vcmp.eq.f32.partialorder %v2081_v27, 8.507059e+37  ;;  %v4343_v21 = vld [vmem:[%s4481_s29 + $0x18] sm:$0xff]  ;;  %v4344_v27 = vld [vmem:[%s4481_s29] sm:$0xff] }
0x17c7   :  { %v2032_v18 = vadd.f32 %v4193_v47, %v2031_v13 }
0x17c9   :  { %v2036_v3 = vsel %vm2035_vm9, %v4193_v47, %v2032_v18  ;;  %v4330_v18 = vld [vmem:[%s4481_s29 + $0x70] sm:$0xff] }
0x17ca   :  { %v5429_v49 = vsel %vm2038_vm10, %v2040_v46, %v2036_v3  ;;  %v4197_v52 = vpop.eup %4196  ;;  %v4333_v3 = vld [vmem:[%s4481_s29 + $0x68] sm:$0xff]  ;;  %v4334_v46 = vld [vmem:[%s4481_s29 + $0x50] sm:$0xff] }
0x17cb   :  { %v2073_v33 = vmul.f32 %v4197_v52, %v2071_v23  ;;  %vm2078_vm11 = vweird.f32 %v4197_v52  ;;  %v2053_v53 = vsub.f32 1.0, %v5429_v49 }
0x17cc   :  { %vm2079_vm15 = vmor %vm2077_vm12, %vm2078_vm11 }
0x17cd   :  { %v2074_v22 = vsub.f32 1.0, %v2073_v33  ;;  %v4339_v33 = vld [vmem:[%s4481_s29 + $0x38] sm:$0xff] }
0x17cf   :  { %v2075_v25 = vmul.f32 %v4197_v52, %v2074_v22  ;;  %v4340_v22 = vld [vmem:[%s4481_s29 + $0x20] sm:$0xff] }
0x17d1   :  { %v2076_v4 = vadd.f32 %v4197_v52, %v2075_v25  ;;  %v4341_v25 = vld [vmem:[%s4481_s29 + $0x28] sm:$0xff] }
0x17d3   :  { %v2080_v6 = vsel %vm2079_vm15, %v4197_v52, %v2076_v4  ;;  %v4338_v52 = vld [vmem:[%s4481_s29 + $0x30] sm:$0xff] }
0x17d4   :  { %v2085_v36 = vsel %vm2082_vm1, %v2084_v9, %v2080_v6  ;;  %v4342_v4 = vld [vmem:[%s4481_s29 + $0x10] sm:$0xff]  ;;  %v4345_v6 = vld [vmem:[%s4481_s29 + $0x8] sm:$0xff] }
0x1807   :  { %v2044_v24 = vpop.permute.xlu2 %2043 }
0x1808   :  { %v2046_v28 = vmul.f32 %v2044_v24, %v5429_v49  ;;  %v4335_v24 = vld [vmem:[%s4481_s29 + $0x58] sm:$0xff] }
0x180a   :  { %2048 = vrot.lane.b32.xlu1 %v2046_v28, %s4432_s0  ;;  %v4337_v28 = vld [vmem:[%s4481_s29 + $0x48] sm:$0xff] }
0x181f   :  { %v2111_v10 = vpop.permute.xlu1 %2110 }
0x1820   :  { %v2113_v34 = vmul.f32 %v2111_v10, %v2085_v36 }
0x1822   :  { %2115 = vrot.lane.b32.xlu0 %v2113_v34, %s4432_s0 }
0x182a   :  { %2126 = vrot.lane.b32.xlu0 %v5397_v26, %s4433_s5 }
0x187c   :  { %v2049_v12 = vpop.permute.xlu1 %2048 }
0x187d   :  { %v2051_v42 = vadd.f32 %v2049_v12, %v5326_v59 }
0x187f   :  { %4198 = vtanh.f32 %v2051_v42 }
0x1885   :  { %v4199_v61 = vpop.eup %4198 }
0x1886   :  { %2055 = vrot.lane.b32.xlu1 %v4199_v61, %s4433_s5 }
0x1894   :  { %v2116_v32 = vpop.permute.xlu0 %2115 }
0x1895   :  { %v2118_v40 = vadd.f32 %v2116_v32, %v5337_v37 }
0x1897   :  { %4200 = vtanh.f32 %v2118_v40 }
0x1898   :  { %4202 = vpow2.f32 %v3921_v38 }
0x189c   :  { %v2127_v35 = vpop.permute.xlu0 %2126 }
0x189d   :  { %v4201_v8 = vpop.eup %4200 }
0x189e   :  { %2122 = vrot.lane.b32.xlu2 %v4201_v8, %s4433_s5  ;;  %v4203_v15 = vpop.eup %4202 }
0x189f   :  { %v2094_v43 = vadd.f32 1.0, %v4203_v15 }
0x18a1   :  { %4204 = vrcp.f32 %v2094_v43  ;;  %v2106_v57 = vand.u32 2147483648, %v2094_v43  ;;  %vm2100_vm3 = vweird.f32 %v2094_v43  ;;  %v2104_v26 = vand.u32 2147483647, %v2094_v43 }
0x18a3   :  { %v2107_v39 = vor.u32 1.1754944e-38, %v2106_v57  ;;  %vm2105_vm5 = vcmp.eq.f32.partialorder %v2104_v26, 8.507059e+37 }
0x18a6   :  { %2060 = vrot.lane.b32.xlu2 %v2059_v5, %s4434_s9 }
0x18a7   :  { %v4205_v29 = vpop.eup %4204 }
0x18a8   :  { %v2096_v20 = vmul.f32 %v4205_v29, %v2094_v43  ;;  %vm2101_vm2 = vweird.f32 %v4205_v29 }
0x18a9   :  { %vm2102_vm4 = vmor %vm2100_vm3, %vm2101_vm2 }
0x18aa   :  { %v2097_v17 = vsub.f32 1.0, %v2096_v20 }
0x18ac   :  { %v2098_v16 = vmul.f32 %v4205_v29, %v2097_v17 }
0x18ae   :  { %v2099_v55 = vadd.f32 %v4205_v29, %v2098_v16 }
0x18b0   :  { %v2103_v11 = vsel %vm2102_vm4, %v4205_v29, %v2099_v55 }
0x18b1   :  { %v2108_v41 = vsel %vm2105_vm5, %v2107_v39, %v2103_v11 }
0x18b2   :  { %v2120_v44 = vsub.f32 1.0, %v2108_v41  ;;  %v2129_v48 = vmul.f32 %v2127_v35, %v2108_v41 }
0x18f8   :  { %v2123_v45 = vpop.permute.xlu2 %2122  ;;  %v2056_v51 = vpop.permute.xlu1 %2055 }
0x18f9   :  { %v2125_v2 = vmul.f32 %v2123_v45, %v2120_v44  ;;  %v2058_v47 = vmul.f32 %v2056_v51, %v2053_v53 }
0x18fb   :  { %v2130_v50 = vadd.f32 %v2129_v48, %v2125_v2 }
0x18fd   :  { %v2136_v0 = vrot.slane %v2130_v50, 6 }
0x18ff   :  { %2137 = vrot.lane.b32.xlu1 %v2136_v0, %s4434_s9 }
0x1900   :  { %v2061_v54 = vpop.permute.xlu2 %2060 }
0x1901   :  { %v2063_v56 = vmul.f32 %v2061_v54, %v5429_v49  ;;  %v4336_v49 = vld [vmem:[%s4481_s29 + $0x40] sm:$0xff]  ;;  %s5849_s29 = sld [smem:[#allocation9_spill]] }
0x1903   :  { %v2064_v58 = vadd.f32 %v2063_v56, %v2058_v47 }
0x1905   :  { %2132 = vrot.lane.b32.xlu0 %v2064_v58, %s4433_s5 }
0x1971   :  { %v2138_v31 = vpop.permute.xlu1 %2137 }
0x1977   :  { %v2133_v63 = vpop.permute.xlu0 %2132 }
0x1978   :  { %v5450_v13 = vsel %vm381_vm13, %v2133_v63, %v2138_v31 }
0x1979   :  { %v5453_v23 = vrot.slane %v5450_v13, 4 }
0x197b   :  { %3922 = vmatmul.msk.f32.vlgmr.msrb.gmra.mxu2 %vm226_vm14, %v5453_v23  ;;  %3923 = vmatmul.msk.f32.vlgmr.msrb.gmra.mxu3 %vm226_vm14, %v5453_v23 }
0x197c   :  { %2806 = vmatpush.msrb.mxu2 %v4330_v18  ;;  %2826 = vmatpush.msrb.mxu3 %v4331_v19 }
0x197e   :  { %2807 = vmatpush.msrb.mxu2 %v4332_v1  ;;  %2827 = vmatpush.msrb.mxu3 %v4333_v3  ;;  %v2224_v1 = vrot.slane %v5450_v13, 6 }
0x1980   :  { %2808 = vmatpush.msrb.mxu2 %v4334_v46  ;;  %2828 = vmatpush.msrb.mxu3 %v4335_v24 }
0x1982   :  { %2809 = vmatpush.msrb.mxu2 %v4336_v49  ;;  %2829 = vmatpush.msrb.mxu3 %v4337_v28 }
0x1984   :  { %2810 = vmatpush.msrb.mxu2 %v4338_v52  ;;  %2830 = vmatpush.msrb.mxu3 %v4339_v33 }
0x1986   :  { %2811 = vmatpush.msrb.mxu2 %v4340_v22  ;;  %2831 = vmatpush.msrb.mxu3 %v4341_v25 }
0x1988   :  { %2812 = vmatpush.msrb.mxu2 %v4342_v4  ;;  %2832 = vmatpush.msrb.mxu3 %v4343_v21 }
0x198a   :  { %2813 = vmatpush.msrb.mxu2 %v4344_v27  ;;  %2833 = vmatpush.msrb.mxu3 %v4345_v6 }
0x19fe   :  { %v2162_v9 = vpop.f32.mrf.mxu2  ;;  %v2182_v10 = vpop.f32.mrf.mxu3 }
0x19ff   :  { %v2163_v36 = vadd.f32 %v2162_v9, %v5308_v14  ;;  %v5477_v34 = vadd.f32 %v2182_v10, %v5304_v30 }
0x1a01   :  { %v2186_v12 = vrot.slane %v2163_v36, 2  ;;  %2271 = vrot.lane.b32.xlu2 %v5477_v34, %s4432_s0  ;;  %v2230_v42 = vadd.f32 %v2163_v36, %v5331_v62  ;;  %v2250_v3 = vadd.f32 %v5477_v34, %v5337_v37 }
0x1a03   :  { %2208 = vrot.lane.b32.xlu0 %v2186_v12, %s4432_s0  ;;  %v3925_v61 = vmul.f32 -1.442695, %v2230_v42  ;;  %v2188_v8 = vadd.f32 %v2186_v12, %v5326_v59  ;;  %v3926_v46 = vmul.f32 -1.442695, %v2250_v3 }
0x1a05   :  { %4206 = vpow2.f32 %v3925_v61  ;;  %v3924_v7 = vmul.f32 -1.442695, %v2188_v8 }
0x1a0b   :  { %v4207_v32 = vpop.eup %4206 }
0x1a0c   :  { %v2234_v40 = vadd.f32 1.0, %v4207_v32 }
0x1a0e   :  { %4208 = vrcp.f32 %v2234_v40  ;;  %v2246_v16 = vand.u32 2147483648, %v2234_v40  ;;  %vm2240_vm7 = vweird.f32 %v2234_v40  ;;  %v2244_v55 = vand.u32 2147483647, %v2234_v40 }
0x1a0f   :  { %4210 = vpow2.f32 %v3924_v7 }
0x1a10   :  { %v2247_v26 = vor.u32 1.1754944e-38, %v2246_v16  ;;  %vm2245_vm9 = vcmp.eq.f32.partialorder %v2244_v55, 8.507059e+37 }
0x1a14   :  { %v4209_v5 = vpop.eup %4208 }
0x1a15   :  { %v2236_v38 = vmul.f32 %v4209_v5, %v2234_v40  ;;  %v4211_v29 = vpop.eup %4210  ;;  %vm2241_vm6 = vweird.f32 %v4209_v5 }
0x1a16   :  { %v2192_v17 = vadd.f32 1.0, %v4211_v29  ;;  %vm2242_vm8 = vmor %vm2240_vm7, %vm2241_vm6 }
0x1a17   :  { %v2237_v15 = vsub.f32 1.0, %v2236_v38 }
0x1a18   :  { %4212 = vrcp.f32 %v2192_v17  ;;  %v2204_v50 = vand.u32 2147483648, %v2192_v17  ;;  %vm2198_vm11 = vweird.f32 %v2192_v17  ;;  %v2202_v0 = vand.u32 2147483647, %v2192_v17 }
0x1a19   :  { %v2238_v43 = vmul.f32 %v4209_v5, %v2237_v15 }
0x1a1a   :  { %v2205_v53 = vor.u32 1.1754944e-38, %v2204_v50  ;;  %vm2203_vm15 = vcmp.eq.f32.partialorder %v2202_v0, 8.507059e+37 }
0x1a1b   :  { %v2239_v20 = vadd.f32 %v4209_v5, %v2238_v43 }
0x1a1d   :  { %v2243_v57 = vsel %vm2242_vm8, %v4209_v5, %v2239_v20 }
0x1a1e   :  { %v2248_v39 = vsel %vm2245_vm9, %v2247_v26, %v2243_v57  ;;  %v4213_v35 = vpop.eup %4212 }
0x1a1f   :  { %v2194_v44 = vmul.f32 %v4213_v35, %v2192_v17  ;;  %vm2199_vm10 = vweird.f32 %v4213_v35 }
0x1a20   :  { %vm2200_vm12 = vmor %vm2198_vm11, %vm2199_vm10 }
0x1a21   :  { %v2195_v45 = vsub.f32 1.0, %v2194_v44 }
0x1a23   :  { %v2196_v48 = vmul.f32 %v4213_v35, %v2195_v45 }
0x1a25   :  { %v2197_v2 = vadd.f32 %v4213_v35, %v2196_v48 }
0x1a27   :  { %v2201_v51 = vsel %vm2200_vm12, %v4213_v35, %v2197_v2 }
0x1a28   :  { %v2206_v47 = vsel %vm2203_vm15, %v2205_v53, %v2201_v51 }
0x1a29   :  { %v2218_v32 = vsub.f32 1.0, %v2206_v47 }
0x1a5b   :  { %v2272_v11 = vpop.permute.xlu2 %2271 }
0x1a5c   :  { %v2274_v41 = vmul.f32 %v2272_v11, %v2248_v39 }
0x1a5e   :  { %2276 = vrot.lane.b32.xlu1 %v2274_v41, %s4432_s0 }
0x1a66   :  { %2287 = vrot.lane.b32.xlu1 %v5453_v23, %s4433_s5 }
0x1a75   :  { %v2209_v54 = vpop.permute.xlu0 %2208 }
0x1a76   :  { %v2211_v56 = vmul.f32 %v2209_v54, %v2206_v47 }
0x1a78   :  { %2213 = vrot.lane.b32.xlu2 %v2211_v56, %s4432_s0 }
0x1ad0   :  { %v2277_v58 = vpop.permute.xlu1 %2276 }
0x1ad1   :  { %v2279_v31 = vadd.f32 %v2277_v58, %v5337_v37 }
0x1ad2   :  { %v2214_v63 = vpop.permute.xlu2 %2213 }
0x1ad3   :  { %4214 = vtanh.f32 %v2279_v31  ;;  %v2216_v23 = vadd.f32 %v2214_v63, %v5326_v59 }
0x1ad5   :  { %4216 = vtanh.f32 %v2216_v23 }
0x1ad6   :  { %4218 = vpow2.f32 %v3926_v46 }
0x1ad8   :  { %v2288_v37 = vpop.permute.xlu1 %2287 }
0x1ad9   :  { %v4215_v18 = vpop.eup %4214 }
0x1ada   :  { %2283 = vrot.lane.b32.xlu0 %v4215_v18, %s4433_s5 }
0x1adb   :  { %v4217_v19 = vpop.eup %4216 }
0x1adc   :  { %2220 = vrot.lane.b32.xlu2 %v4217_v19, %s4433_s5  ;;  %v4219_v24 = vpop.eup %4218 }
0x1add   :  { %v2254_v49 = vadd.f32 1.0, %v4219_v24 }
0x1adf   :  { %4220 = vrcp.f32 %v2254_v49  ;;  %v2266_v4 = vand.u32 2147483648, %v2254_v49  ;;  %vm2260_vm2 = vweird.f32 %v2254_v49  ;;  %v2264_v21 = vand.u32 2147483647, %v2254_v49 }
0x1ae1   :  { %v2267_v27 = vor.u32 1.1754944e-38, %v2266_v4  ;;  %vm2265_vm4 = vcmp.eq.f32.partialorder %v2264_v21, 8.507059e+37 }
0x1ae2   :  { %2225 = vrot.lane.b32.xlu0 %v2224_v1, %s4434_s9 }
0x1ae5   :  { %v4221_v28 = vpop.eup %4220 }
0x1ae6   :  { %v2256_v52 = vmul.f32 %v4221_v28, %v2254_v49  ;;  %vm2261_vm1 = vweird.f32 %v4221_v28 }
0x1ae7   :  { %vm2262_vm3 = vmor %vm2260_vm2, %vm2261_vm1 }
0x1ae8   :  { %v2257_v33 = vsub.f32 1.0, %v2256_v52 }
0x1aea   :  { %v2258_v22 = vmul.f32 %v4221_v28, %v2257_v33 }
0x1aec   :  { %v2259_v25 = vadd.f32 %v4221_v28, %v2258_v22 }
0x1aee   :  { %v2263_v13 = vsel %vm2262_vm3, %v4221_v28, %v2259_v25 }
0x1aef   :  { %v2268_v6 = vsel %vm2265_vm4, %v2267_v27, %v2263_v13 }
0x1af0   :  { %v2281_v9 = vsub.f32 1.0, %v2268_v6  ;;  %v2290_v36 = vmul.f32 %v2288_v37, %v2268_v6 }
0x1b36   :  { %v2221_v61 = vpop.permute.xlu2 %2220 }
0x1b37   :  { %v2223_v8 = vmul.f32 %v2221_v61, %v2218_v32 }
0x1b4c   :  { %v2284_v10 = vpop.permute.xlu0 %2283 }
0x1b4d   :  { %v2286_v34 = vmul.f32 %v2284_v10, %v2281_v9 }
0x1b4f   :  { %v2291_v12 = vadd.f32 %v2290_v36, %v2286_v34 }
0x1b51   :  { %v2297_v42 = vrot.slane %v2291_v12, 2 }
0x1b53   :  { %2298 = vrot.lane.b32.xlu2 %v2297_v42, %s4434_s9 }
0x1b54   :  { %v2226_v40 = vpop.permute.xlu0 %2225 }
0x1b55   :  { %v2228_v5 = vmul.f32 %v2226_v40, %v2206_v47 }
0x1b57   :  { %v2229_v7 = vadd.f32 %v2228_v5, %v2223_v8 }
0x1b59   :  { %2293 = vrot.lane.b32.xlu1 %v2229_v7, %s4433_s5 }
0x1bad   :  { %v2299_v38 = vpop.permute.xlu2 %2298 }
0x1bcb   :  { %v2294_v15 = vpop.permute.xlu1 %2293 }
0x1bcc   :  { %v2301_v43 = vsel %vm381_vm13, %v2294_v15, %v2299_v38 }
0x1bcd   :  { %v2303_v29 = vrot.slane %v2301_v43, 6 }
0x1bcf   :  { %3927 = vmatmul.msk.f32.vlgmr.msra.gmra.mxu0 %vm226_vm14, %v2303_v29  ;;  %3928 = vmatmul.msk.f32.vlgmr.msra.gmra.mxu1 %vm226_vm14, %v2303_v29 }
0x1c4c   :  { %v2323_v20 = vpop.f32.mrf.mxu0  ;;  %v2343_v17 = vpop.f32.mrf.mxu1 }
0x1c4d   :  { %v2324_v16 = vadd.f32 %v2323_v20, %v5308_v14  ;;  %v5503_v55 = vadd.f32 %v2343_v17, %v5304_v30 }
0x1c4f   :  { %v2411_v57 = vrot.slane %v5503_v55, 2  ;;  %2367 = vrot.lane.b32.xlu1 %v2324_v16, %s4432_s0  ;;  %v2388_v26 = vrot.slane %v2324_v16, 2  ;;  %v2346_v11 = vadd.f32 %v2324_v16, %v5331_v62 }
0x1c51   :  { %2433 = vrot.lane.b32.xlu0 %v2411_v57, %s4432_s0  ;;  %v2390_v39 = vadd.f32 %v2388_v26, %v5326_v59  ;;  %v3929_v41 = vmul.f32 -1.442695, %v2346_v11  ;;  %v2413_v10 = vadd.f32 %v2411_v57, %v5328_v60 }
0x1c53   :  { %v3930_v35 = vmul.f32 -1.442695, %v2390_v39  ;;  %4222 = vpow2.f32 %v3929_v41  ;;  %v3931_v36 = vmul.f32 -1.442695, %v2413_v10 }
0x1c55   :  { %4224 = vpow2.f32 %v3930_v35 }
0x1c59   :  { %v4223_v44 = vpop.eup %4222 }
0x1c5a   :  { %v2350_v48 = vadd.f32 1.0, %v4223_v44 }
0x1c5b   :  { %v4225_v45 = vpop.eup %4224 }
0x1c5c   :  { %v2394_v2 = vadd.f32 1.0, %v4225_v45  ;;  %4226 = vrcp.f32 %v2350_v48  ;;  %v2362_v63 = vand.u32 2147483648, %v2350_v48  ;;  %vm2356_vm6 = vweird.f32 %v2350_v48 }
0x1c5d   :  { %v2360_v23 = vand.u32 2147483647, %v2350_v48 }
0x1c5e   :  { %4228 = vrcp.f32 %v2394_v2  ;;  %v2406_v19 = vand.u32 2147483648, %v2394_v2  ;;  %vm2400_vm9 = vweird.f32 %v2394_v2  ;;  %v2404_v3 = vand.u32 2147483647, %v2394_v2 }
0x1c5f   :  { %v2363_v46 = vor.u32 1.1754944e-38, %v2362_v63  ;;  %vm2361_vm11 = vcmp.eq.f32.partialorder %v2360_v23, 8.507059e+37 }
0x1c60   :  { %v2407_v52 = vor.u32 1.1754944e-38, %v2406_v19  ;;  %vm2405_vm12 = vcmp.eq.f32.partialorder %v2404_v3, 8.507059e+37 }
0x1c62   :  { %v4227_v50 = vpop.eup %4226 }
0x1c63   :  { %v2352_v51 = vmul.f32 %v4227_v50, %v2350_v48  ;;  %vm2357_vm5 = vweird.f32 %v4227_v50 }
0x1c64   :  { %v4229_v0 = vpop.eup %4228  ;;  %vm2358_vm8 = vmor %vm2356_vm6, %vm2357_vm5 }
0x1c65   :  { %v2396_v53 = vmul.f32 %v4229_v0, %v2394_v2  ;;  %v2353_v54 = vsub.f32 1.0, %v2352_v51  ;;  %vm2401_vm7 = vweird.f32 %v4229_v0 }
0x1c66   :  { %vm2402_vm10 = vmor %vm2400_vm9, %vm2401_vm7 }
0x1c67   :  { %v2397_v47 = vsub.f32 1.0, %v2396_v53  ;;  %v2354_v56 = vmul.f32 %v4227_v50, %v2353_v54 }
0x1c69   :  { %v2398_v58 = vmul.f32 %v4229_v0, %v2397_v47  ;;  %v2355_v31 = vadd.f32 %v4227_v50, %v2354_v56 }
0x1c6b   :  { %v2399_v18 = vadd.f32 %v4229_v0, %v2398_v58  ;;  %v2359_v1 = vsel %vm2358_vm8, %v4227_v50, %v2355_v31 }
0x1c6c   :  { %v2364_v28 = vsel %vm2361_vm11, %v2363_v46, %v2359_v1 }
0x1c6d   :  { %v2403_v24 = vsel %vm2402_vm10, %v4229_v0, %v2399_v18  ;;  %v2377_v39 = vsub.f32 1.0, %v2364_v28 }
0x1c6e   :  { %v2408_v25 = vsel %vm2405_vm12, %v2407_v52, %v2403_v24 }
0x1cc1   :  { %v2368_v49 = vpop.permute.xlu1 %2367 }
0x1cc2   :  { %v2370_v33 = vmul.f32 %v2368_v49, %v2364_v28 }
0x1cc3   :  { %v2434_v22 = vpop.permute.xlu0 %2433 }
0x1cc4   :  { %v2436_v4 = vmul.f32 %v2434_v22, %v2408_v25  ;;  %2372 = vrot.lane.b32.xlu0 %v2370_v33, %s4432_s0 }
0x1cc6   :  { %2438 = vrot.lane.b32.xlu2 %v2436_v4, %s4432_s0 }
0x1cce   :  { %2449 = vrot.lane.b32.xlu2 %v2301_v43, %s4433_s5 }
0x1d20   :  { %v2439_v21 = vpop.permute.xlu2 %2438 }
0x1d21   :  { %v2441_v13 = vadd.f32 %v2439_v21, %v5328_v60 }
0x1d23   :  { %4230 = vtanh.f32 %v2441_v13 }
0x1d29   :  { %v4231_v27 = vpop.eup %4230 }
0x1d2a   :  { %2445 = vrot.lane.b32.xlu1 %v4231_v27, %s4433_s5 }
0x1d32   :  { %2383 = vrot.lane.b32.xlu1 %v2303_v29, %s4434_s9  ;;  %v2450_v29 = vpop.permute.xlu2 %2449 }
0x1d36   :  { %v2373_v6 = vpop.permute.xlu0 %2372 }
0x1d37   :  { %v2375_v37 = vadd.f32 %v2373_v6, %v5331_v62 }
0x1d39   :  { %4232 = vtanh.f32 %v2375_v37 }
0x1d3a   :  { %4234 = vpow2.f32 %v3931_v36 }
0x1d3f   :  { %v4233_v9 = vpop.eup %4232 }
0x1d40   :  { %2379 = vrot.lane.b32.xlu0 %v4233_v9, %s4433_s5  ;;  %v4235_v34 = vpop.eup %4234 }
0x1d41   :  { %v2417_v12 = vadd.f32 1.0, %v4235_v34 }
0x1d43   :  { %4236 = vrcp.f32 %v2417_v12  ;;  %v2429_v5 = vand.u32 2147483648, %v2417_v12  ;;  %vm2423_vm1 = vweird.f32 %v2417_v12  ;;  %v2427_v7 = vand.u32 2147483647, %v2417_v12 }
0x1d45   :  { %v2430_v15 = vor.u32 1.1754944e-38, %v2429_v5  ;;  %vm2428_vm3 = vcmp.eq.f32.partialorder %v2427_v7, 8.507059e+37 }
0x1d49   :  { %v4237_v42 = vpop.eup %4236 }
0x1d4a   :  { %v2419_v61 = vmul.f32 %v4237_v42, %v2417_v12  ;;  %vm2424_vm15 = vweird.f32 %v4237_v42 }
0x1d4b   :  { %vm2425_vm2 = vmor %vm2423_vm1, %vm2424_vm15 }
0x1d4c   :  { %v2420_v32 = vsub.f32 1.0, %v2419_v61 }
0x1d4e   :  { %v2421_v40 = vmul.f32 %v4237_v42, %v2420_v32 }
0x1d50   :  { %v2422_v8 = vadd.f32 %v4237_v42, %v2421_v40 }
0x1d52   :  { %v2426_v38 = vsel %vm2425_vm2, %v4237_v42, %v2422_v8 }
0x1d53   :  { %v2431_v43 = vsel %vm2428_vm3, %v2430_v15, %v2426_v38 }
0x1d54   :  { %v2443_v20 = vsub.f32 1.0, %v2431_v43  ;;  %v2452_v16 = vmul.f32 %v2450_v29, %v2431_v43 }
0x1d9c   :  { %v2446_v17 = vpop.permute.xlu1 %2445 }
0x1d9d   :  { %v2448_v55 = vmul.f32 %v2446_v17, %v2443_v20 }
0x1d9f   :  { %v2453_v57 = vadd.f32 %v2452_v16, %v2448_v55 }
0x1da1   :  { %v2459_v26 = vrot.slane %v2453_v57, 6 }
0x1da3   :  { %2460 = vrot.lane.b32.xlu0 %v2459_v26, %s4434_s9 }
0x1da4   :  { %v2384_v11 = vpop.permute.xlu1 %2383 }
0x1da5   :  { %v2386_v35 = vmul.f32 %v2384_v11, %v2364_v28 }
0x1db2   :  { %v2380_v41 = vpop.permute.xlu0 %2379 }
0x1db3   :  { %v2382_v44 = vmul.f32 %v2380_v41, %v2377_v39 }
0x1db5   :  { %v2387_v45 = vadd.f32 %v2386_v35, %v2382_v44  ;;  %v2955_v44 = vld [vmem:[%s4496_s14] sm:$0xff] }
0x1db7   :  { %2455 = vrot.lane.b32.xlu2 %v2387_v45, %s4433_s5  ;;  %v2959_v45 = vsel %vm381_vm13, %v2955_v44, 0.0 }
0x1e11   :  { %v2456_v48 = vpop.permute.xlu2 %2455 }
0x1e15   :  { %v2461_v2 = vpop.permute.xlu0 %2460 }
0x1e16   :  { %v5522_v50 = vsel %vm381_vm13, %v2456_v48, %v2461_v2 }
0x1e17   :  { %3932 = vmatmul.msk.f32.vlgmr.msra.gmra.mxu2 %vm226_vm14, %v5522_v50  ;;  %3933 = vmatmul.msk.f32.vlgmr.msra.gmra.mxu3 %vm226_vm14, %v5522_v50  ;;  %v2613_v7 = vrot.slane %v5522_v50, 4  ;;  %v2546_v16 = vrot.slane %v5522_v50, 6 }
0x1e9a   :  { %v2484_v0 = vpop.f32.mrf.mxu2  ;;  %v2504_v51 = vpop.f32.mrf.mxu3 }
0x1e9b   :  { %v2485_v53 = vadd.f32 %v2484_v0, %v5308_v14  ;;  %v5530_v54 = vadd.f32 %v2504_v51, %v5304_v30 }
0x1e9d   :  { %v2508_v47 = vrot.slane %v2485_v53, 6  ;;  %v2575_v56 = vrot.slane %v5530_v54, 4  ;;  %v2552_v18 = vrot.slane %v2485_v53, 4 }
0x1e9f   :  { %2597 = vrot.lane.b32.xlu1 %v2575_v56, %s4432_s0  ;;  %2530 = vrot.lane.b32.xlu2 %v2508_v47, %s4432_s0  ;;  %v2510_v58 = vadd.f32 %v2508_v47, %v5331_v62  ;;  %v2554_v19 = vadd.f32 %v2552_v18, %v5326_v59  ;;  %v2577_v55 = vadd.f32 %v2575_v56, %v5328_v60 }
0x1ea1   :  { %v3934_v31 = vmul.f32 -1.442695, %v2510_v58  ;;  %v3935_v3 = vmul.f32 -1.442695, %v2554_v19  ;;  %v3936_v57 = vmul.f32 -1.442695, %v2577_v55 }
0x1ea3   :  { %4238 = vpow2.f32 %v3934_v31 }
0x1ea9   :  { %v4239_v63 = vpop.eup %4238 }
0x1eaa   :  { %v2514_v23 = vadd.f32 1.0, %v4239_v63 }
0x1eac   :  { %4240 = vrcp.f32 %v2514_v23  ;;  %v2526_v22 = vand.u32 2147483648, %v2514_v23  ;;  %vm2520_vm5 = vweird.f32 %v2514_v23  ;;  %v2524_v25 = vand.u32 2147483647, %v2514_v23 }
0x1ead   :  { %4242 = vpow2.f32 %v3935_v3 }
0x1eae   :  { %v2527_v21 = vor.u32 1.1754944e-38, %v2526_v22  ;;  %vm2525_vm7 = vcmp.eq.f32.partialorder %v2524_v25, 8.507059e+37 }
0x1eb2   :  { %v4241_v1 = vpop.eup %4240 }
0x1eb3   :  { %v2516_v46 = vmul.f32 %v4241_v1, %v2514_v23  ;;  %v4243_v49 = vpop.eup %4242  ;;  %vm2521_vm4 = vweird.f32 %v4241_v1 }
0x1eb4   :  { %v2558_v52 = vadd.f32 1.0, %v4243_v49  ;;  %vm2522_vm6 = vmor %vm2520_vm5, %vm2521_vm4 }
0x1eb5   :  { %v2517_v24 = vsub.f32 1.0, %v2516_v46 }
0x1eb6   :  { %4244 = vrcp.f32 %v2558_v52  ;;  %v2570_v12 = vand.u32 2147483648, %v2558_v52  ;;  %vm2564_vm9 = vweird.f32 %v2558_v52  ;;  %v2568_v42 = vand.u32 2147483647, %v2558_v52 }
0x1eb7   :  { %v2518_v28 = vmul.f32 %v4241_v1, %v2517_v24 }
0x1eb8   :  { %v2571_v32 = vor.u32 1.1754944e-38, %v2570_v12  ;;  %vm2569_vm11 = vcmp.eq.f32.partialorder %v2568_v42, 8.507059e+37 }
0x1eb9   :  { %v2519_v33 = vadd.f32 %v4241_v1, %v2518_v28  ;;  %v2956_v28 = vld [vmem:[%s4496_s14 + $0x8] sm:$0xff]  ;;  %s5851_s14 = sld [smem:[#allocation13_spill]] }
0x1ebb   :  { %v2523_v4 = vsel %vm2522_vm6, %v4241_v1, %v2519_v33  ;;  %v4435_v33 = vmov 32.0  }
0x1ebc   :  { %v5539_v27 = vsel %vm2525_vm7, %v2527_v21, %v2523_v4  ;;  %v4245_v37 = vpop.eup %4244 }
0x1ebd   :  { %v2560_v9 = vmul.f32 %v4245_v37, %v2558_v52  ;;  %vm2565_vm8 = vweird.f32 %v4245_v37  ;;  %v2540_v1 = vsub.f32 1.0, %v5539_v27  ;;  %v2962_v52 = vsel %vm381_vm13, %v2956_v28, 0.0 }
0x1ebe   :  { %vm2566_vm10 = vmor %vm2564_vm9, %vm2565_vm8 }
0x1ebf   :  { %v2561_v10 = vsub.f32 1.0, %v2560_v9 }
0x1ec1   :  { %v2562_v36 = vmul.f32 %v4245_v37, %v2561_v10 }
0x1ec3   :  { %v2563_v34 = vadd.f32 %v4245_v37, %v2562_v36 }
0x1ec5   :  { %v2567_v61 = vsel %vm2566_vm10, %v4245_v37, %v2563_v34 }
0x1ec6   :  { %v2572_v8 = vsel %vm2569_vm11, %v2571_v32, %v2567_v61 }
0x1ef9   :  { %v2531_v13 = vpop.permute.xlu2 %2530 }
0x1efa   :  { %v2533_v6 = vmul.f32 %v2531_v13, %v5539_v27 }
0x1efc   :  { %2535 = vrot.lane.b32.xlu1 %v2533_v6, %s4432_s0 }
0x1f11   :  { %v2598_v40 = vpop.permute.xlu1 %2597 }
0x1f12   :  { %v2600_v5 = vmul.f32 %v2598_v40, %v2572_v8 }
0x1f14   :  { %2602 = vrot.lane.b32.xlu0 %v2600_v5, %s4432_s0 }
0x1f1c   :  { %2614 = vrot.lane.b32.xlu0 %v2613_v7, %s4433_s5 }
0x1f6e   :  { %v2536_v38 = vpop.permute.xlu1 %2535 }
0x1f6f   :  { %v2538_v15 = vadd.f32 %v2536_v38, %v5331_v62 }
0x1f71   :  { %4246 = vtanh.f32 %v2538_v15 }
0x1f77   :  { %v4247_v43 = vpop.eup %4246 }
0x1f78   :  { %2542 = vrot.lane.b32.xlu1 %v4247_v43, %s4433_s5 }
0x1f86   :  { %v2603_v29 = vpop.permute.xlu0 %2602 }
0x1f87   :  { %v2605_v20 = vadd.f32 %v2603_v29, %v5328_v60 }
0x1f89   :  { %4248 = vtanh.f32 %v2605_v20 }
0x1f8a   :  { %4250 = vpow2.f32 %v3936_v57 }
0x1f8e   :  { %v2615_v47 = vpop.permute.xlu0 %2614 }
0x1f8f   :  { %v4249_v17 = vpop.eup %4248 }
0x1f90   :  { %2609 = vrot.lane.b32.xlu2 %v4249_v17, %s4433_s5  ;;  %v4251_v26 = vpop.eup %4250 }
0x1f91   :  { %v2581_v11 = vadd.f32 1.0, %v4251_v26 }
0x1f93   :  { %4252 = vrcp.f32 %v2581_v11  ;;  %v2593_v50 = vand.u32 2147483648, %v2581_v11  ;;  %vm2587_vm15 = vweird.f32 %v2581_v11  ;;  %v2591_v0 = vand.u32 2147483647, %v2581_v11 }
0x1f94   :  { %4254 = vrcp.f32 %v4435_v33 }
0x1f95   :  { %v2594_v53 = vor.u32 1.1754944e-38, %v2593_v50  ;;  %vm2592_vm2 = vcmp.eq.f32.partialorder %v2591_v0, 8.507059e+37  ;;  %v3023_v50 = vld [vmem:[%s4516_s6 + $0x18] sm:$0xff] }
0x1f96   :  { %3046 = vmatpush.msra.mxu0 %v3023_v50 }
0x1f98   :  { %2547 = vrot.lane.b32.xlu2 %v2546_v16, %s4434_s9 }
0x1f99   :  { %v4253_v39 = vpop.eup %4252 }
0x1f9a   :  { %v2583_v41 = vmul.f32 %v4253_v39, %v2581_v11  ;;  %vm2588_vm12 = vweird.f32 %v4253_v39  ;;  %v4255_v22 = vpop.eup %4254 }
0x1f9b   :  { %vm2589_vm1 = vmor %vm2587_vm15, %vm2588_vm12  ;;  %v2966_v25 = vmul.f32 32.0, %v4255_v22  ;;  %vm2970_vm3 = vweird.f32 %v4255_v22 }
0x1f9c   :  { %v2584_v35 = vsub.f32 1.0, %v2583_v41 }
0x1f9d   :  { %v2967_v4 = vsub.f32 1.0, %v2966_v25 }
0x1f9e   :  { %v2585_v48 = vmul.f32 %v4253_v39, %v2584_v35 }
0x1f9f   :  { %v2968_v21 = vmul.f32 %v4255_v22, %v2967_v4 }
0x1fa0   :  { %v2586_v2 = vadd.f32 %v4253_v39, %v2585_v48  ;;  %v4015_v48 = vld [vmem:[%s4506_s24] ss:$0 sm:$0xff]  ;;  %s5852_s24 = sld [smem:[#allocation15_spill]] }
0x1fa1   :  { %v2969_v13 = vadd.f32 %v4255_v22, %v2968_v21 }
0x1fa2   :  { %v2590_v51 = vsel %vm2589_vm1, %v4253_v39, %v2586_v2 }
0x1fa3   :  { %v2595_v54 = vsel %vm2592_vm2, %v2594_v53, %v2590_v51  ;;  %v5563_v37 = vsel %vm2970_vm3, %v4255_v22, %v2969_v13  ;;  %v3022_v51 = vld [vmem:[%s4516_s6 + $0x10] sm:$0xff]  ;;  %v3021_v53 = vld [vmem:[%s4516_s6 + $0x8] sm:$0xff] }
0x1fa4   :  { %v2607_v56 = vsub.f32 1.0, %v2595_v54  ;;  %v2617_v31 = vmul.f32 %v2615_v47, %v2595_v54  ;;  %3047 = vmatpush.msra.mxu0 %v3022_v51  ;;  %v4016_v54 = vld [vmem:[%s4511_s30] ss:$0 sm:$0xff]  ;;  %s5853_s30 = sld [smem:[#allocation11_spill]] }
0x1fa5   :  { %v3020_v47 = vld [vmem:[%s4516_s6] sm:$0xff]  ;;  %s5854_s6 = sld [smem:[#allocation12_spill]] }
0x1fa6   :  { %3048 = vmatpush.msra.mxu0 %v3021_v53  ;;  %v4017_v53 = vld [vmem:[%s4521_s12] ss:$0 sm:$0xff]  ;;  %s5855_s12 = sld [smem:[#allocation14_spill]] }
0x1fa8   :  { %3049 = vmatpush.msra.mxu0 %v3020_v47 }
0x1fc1   :  { %2960 = vadd.xlane.f32.xlu2 %v2959_v45 }
0x1fea   :  { %v2610_v58 = vpop.permute.xlu2 %2609  ;;  %v2543_v19 = vpop.permute.xlu1 %2542 }
0x1feb   :  { %v2612_v63 = vmul.f32 %v2610_v58, %v2607_v56  ;;  %v2545_v46 = vmul.f32 %v2543_v19, %v2540_v1 }
0x1fed   :  { %v2618_v23 = vadd.f32 %v2617_v31, %v2612_v63 }
0x1fef   :  { %v2624_v18 = vrot.slane %v2618_v23, 2 }
0x1ff1   :  { %2625 = vrot.lane.b32.xlu1 %v2624_v18, %s4434_s9 }
0x1ff2   :  { %v2548_v3 = vpop.permute.xlu2 %2547 }
0x1ff3   :  { %v2550_v24 = vmul.f32 %v2548_v3, %v5539_v27 }
0x1ff5   :  { %v2551_v49 = vadd.f32 %v2550_v24, %v2545_v46 }
0x1ff7   :  { %2620 = vrot.lane.b32.xlu0 %v2551_v49, %s4433_s5 }
0x2021   :  { %2963 = vadd.xlane.f32.xlu0 %v2962_v52 }
0x2034   :  { %v2961_v6 = vpop.xlane.xlu2 %2960 }
0x2035   :  { %v2972_v27 = vmul.f32 %v5563_v37, %v2961_v6 }
0x2037   :  { %v2974_v9 = vsub.f32 %v2955_v44, %v2972_v27 }
0x2039   :  { %v2976_v10 = vmul.f32 %v2974_v9, %v2974_v9 }
0x203b   :  { %v2978_v36 = vsel %vm381_vm13, %v2976_v10, 0.0 }
0x203c   :  { %2979 = vadd.xlane.f32.xlu1 %v2978_v36 }
0x2063   :  { %v2626_v34 = vpop.permute.xlu1 %2625 }
0x2069   :  { %v2621_v12 = vpop.permute.xlu0 %2620 }
0x206a   :  { %v5568_v42 = vsel %vm381_vm13, %v2621_v12, %v2626_v34 }
0x206b   :  { %v2630_v61 = vrot.slane %v5568_v42, 2 }
0x206d   :  { %3937 = vmatmul.msk.f32.vlgmr.msrb.gmra.mxu0 %vm226_vm14, %v2630_v61  ;;  %3938 = vmatmul.msk.f32.vlgmr.msrb.gmra.mxu1 %vm226_vm14, %v2630_v61 }
0x2094   :  { %v2964_v32 = vpop.xlane.xlu0 %2963 }
0x2095   :  { %v2973_v40 = vmul.f32 %v5563_v37, %v2964_v32 }
0x2097   :  { %v2975_v8 = vsub.f32 %v2956_v28, %v2973_v40 }
0x2099   :  { %v2977_v5 = vmul.f32 %v2975_v8, %v2975_v8 }
0x209b   :  { %v2981_v7 = vsel %vm381_vm13, %v2977_v5, 0.0 }
0x209c   :  { %2982 = vadd.xlane.f32.xlu2 %v2981_v7 }
0x20af   :  { %v2980_v38 = vpop.xlane.xlu1 %2979 }
0x20b0   :  { %v2984_v15 = vmul.f32 %v2980_v38, %v5563_v37 }
0x20b2   :  { %v2986_v43 = vadd.f32 1e-12, %v2984_v15 }
0x20b4   :  { %4256 = vrsqrt.f32 %v2986_v43  ;;  %vm2994_vm4 = vweird.f32 %v2986_v43 }
0x20ba   :  { %v4257_v29 = vpop.eup %4256 }
0x20bb   :  { %v2989_v16 = vmul.f32 %v4257_v29, %v2986_v43  ;;  %vm2995_vm5 = vweird.f32 %v4257_v29 }
0x20bc   :  { %vm2996_vm6 = vmor %vm2994_vm4, %vm2995_vm5 }
0x20bd   :  { %v2990_v26 = vmul.f32 %v4257_v29, %v2989_v16 }
0x20bf   :  { %v2991_v41 = vmul.f32 0.5, %v2990_v26 }
0x20c1   :  { %v2992_v35 = vsub.f32 1.5, %v2991_v41 }
0x20c3   :  { %v2993_v44 = vmul.f32 %v4257_v29, %v2992_v35 }
0x20c5   :  { %v2997_v45 = vsel %vm2996_vm6, %v4257_v29, %v2993_v44 }
0x20c6   :  { %v3008_v2 = vmul.f32 %v2997_v45, %v2974_v9 }
0x20c8   :  { %v3013_v0 = vmul.f32 %v4015_v48, %v3008_v2 }
0x20ca   :  { %v5591_v56 = vadd.f32 %v4016_v54, %v3013_v0  ;;  %v2712_v0 = vrot.slane %v5568_v42, 6 }
0x20cc   :  { %3947 = vmatmul.msk.f32.vlgmr.msra.gmra.mxu0 %vm381_vm13, %v5591_v56 }
0x20ea   :  { %v2650_v20 = vpop.f32.mrf.mxu0  ;;  %v2670_v17 = vpop.f32.mrf.mxu1 }
0x20eb   :  { %v2651_v55 = vadd.f32 %v2650_v20, %v5308_v14  ;;  %v5578_v57 = vadd.f32 %v2670_v17, %v5304_v30 }
0x20ed   :  { %v2674_v11 = vrot.slane %v2651_v55, 4  ;;  %v2741_v39 = vrot.slane %v5578_v57, 6  ;;  %v2718_v23 = vrot.slane %v2651_v55, 6 }
0x20ef   :  { %2763 = vrot.lane.b32.xlu2 %v2741_v39, %s4432_s0  ;;  %2696 = vrot.lane.b32.xlu0 %v2674_v11, %s4432_s0  ;;  %v2720_v18 = vadd.f32 %v2718_v23, %v5326_v59  ;;  %v2676_v13 = vadd.f32 %v2674_v11, %v5331_v62 }
0x20f1   :  { %v3940_v3 = vmul.f32 -1.442695, %v2720_v18  ;;  %v3939_v27 = vmul.f32 -1.442695, %v2676_v13 }
0x210f   :  { %v2983_v58 = vpop.xlane.xlu2 %2982 }
0x2110   :  { %v2985_v31 = vmul.f32 %v2983_v58, %v5563_v37 }
0x2112   :  { %v2987_v63 = vadd.f32 1e-12, %v2985_v31 }
0x2114   :  { %4258 = vrsqrt.f32 %v2987_v63  ;;  %vm3004_vm7 = vweird.f32 %v2987_v63 }
0x2115   :  { %4260 = vpow2.f32 %v3940_v3 }
0x211a   :  { %v4259_v19 = vpop.eup %4258 }
0x211b   :  { %v2999_v1 = vmul.f32 %v4259_v19, %v2987_v63  ;;  %vm3005_vm8 = vweird.f32 %v4259_v19  ;;  %v4261_v33 = vpop.eup %4260 }
0x211c   :  { %vm3006_vm9 = vmor %vm3004_vm7, %vm3005_vm8  ;;  %v2724_v4 = vadd.f32 1.0, %v4261_v33 }
0x211d   :  { %v3000_v46 = vmul.f32 %v4259_v19, %v2999_v1 }
0x211e   :  { %4262 = vrcp.f32 %v2724_v4  ;;  %v2736_v32 = vand.u32 2147483648, %v2724_v4  ;;  %vm2730_vm11 = vweird.f32 %v2724_v4  ;;  %v2734_v40 = vand.u32 2147483647, %v2724_v4 }
0x211f   :  { %v3001_v24 = vmul.f32 0.5, %v3000_v46  ;;  %4264 = vpow2.f32 %v3939_v27 }
0x2120   :  { %v2737_v5 = vor.u32 1.1754944e-38, %v2736_v32  ;;  %vm2735_vm15 = vcmp.eq.f32.partialorder %v2734_v40, 8.507059e+37 }
0x2121   :  { %v3002_v49 = vsub.f32 1.5, %v3001_v24 }
0x2123   :  { %v3003_v28 = vmul.f32 %v4259_v19, %v3002_v49 }
0x2124   :  { %v4263_v6 = vpop.eup %4262 }
0x2125   :  { %v3007_v52 = vsel %vm3006_vm9, %v4259_v19, %v3003_v28  ;;  %v2726_v9 = vmul.f32 %v4263_v6, %v2724_v4  ;;  %v4265_v36 = vpop.eup %4264  ;;  %vm2731_vm10 = vweird.f32 %v4263_v6 }
0x2126   :  { %v3009_v22 = vmul.f32 %v3007_v52, %v2975_v8  ;;  %v2680_v12 = vadd.f32 1.0, %v4265_v36  ;;  %vm2732_vm12 = vmor %vm2730_vm11, %vm2731_vm10 }
0x2127   :  { %v2727_v10 = vsub.f32 1.0, %v2726_v9 }
0x2128   :  { %v3014_v25 = vmul.f32 %v4015_v48, %v3009_v22  ;;  %4266 = vrcp.f32 %v2680_v12  ;;  %v2692_v55 = vand.u32 2147483648, %v2680_v12  ;;  %vm2686_vm2 = vweird.f32 %v2680_v12 }
0x2129   :  { %v2728_v34 = vmul.f32 %v4263_v6, %v2727_v10  ;;  %v2690_v26 = vand.u32 2147483647, %v2680_v12 }
0x212a   :  { %v5597_v21 = vadd.f32 %v4016_v54, %v3014_v25  ;;  %v2693_v41 = vor.u32 1.1754944e-38, %v2692_v55 }
0x212b   :  { %v2729_v61 = vadd.f32 %v4263_v6, %v2728_v34  ;;  %vm2691_vm4 = vcmp.eq.f32.partialorder %v2690_v26, 8.507059e+37  ;;  %v4019_v26 = vld [vmem:[%s5848_s21] ss:$0 sm:$0xff] }
0x212c   :  { %3948 = vmatmul.msk.f32.gmra.mxu0 %vm381_vm13, %v5597_v21 }
0x212d   :  { %v2733_v8 = vsel %vm2732_vm12, %v4263_v6, %v2729_v61 }
0x212e   :  { %v2738_v38 = vsel %vm2735_vm15, %v2737_v5, %v2733_v8  ;;  %v4267_v43 = vpop.eup %4266 }
0x212f   :  { %v2682_v29 = vmul.f32 %v4267_v43, %v2680_v12  ;;  %vm2687_vm1 = vweird.f32 %v4267_v43 }
0x2130   :  { %vm2688_vm3 = vmor %vm2686_vm2, %vm2687_vm1 }
0x2131   :  { %v2683_v20 = vsub.f32 1.0, %v2682_v29 }
0x2133   :  { %v2684_v17 = vmul.f32 %v4267_v43, %v2683_v20 }
0x2135   :  { %v2685_v16 = vadd.f32 %v4267_v43, %v2684_v17 }
0x2137   :  { %v2689_v11 = vsel %vm2688_vm3, %v4267_v43, %v2685_v16 }
0x2138   :  { %v2694_v44 = vsel %vm2691_vm4, %v2693_v41, %v2689_v11 }
0x2139   :  { %v2706_v12 = vsub.f32 1.0, %v2694_v44 }
0x2149   :  { %v2764_v7 = vpop.permute.xlu2 %2763  ;;  %v3051_v51 = vpop.f32.mrf.mxu0 }
0x214a   :  { %v2766_v15 = vmul.f32 %v2764_v7, %v2738_v38  ;;  %v5611_v54 = vadd.f32 %v4017_v53, %v3051_v51  ;;  %v4018_v51 = vld [vmem:[%s5848_s21 + $0x1] ss:$0 sm:$0xff] }
0x214c   :  { %2768 = vrot.lane.b32.xlu1 %v2766_v15, %s4432_s0 }
0x2154   :  { %2779 = vrot.lane.b32.xlu1 %v5568_v42, %s4433_s5  ;;  %v2743_v42 = vadd.f32 %v2741_v39, %v5328_v60 }
0x2156   :  { %v3941_v18 = vmul.f32 -1.442695, %v2743_v42 }
0x2161   :  { %v2697_v35 = vpop.permute.xlu0 %2696 }
0x2162   :  { %v2699_v45 = vmul.f32 %v2697_v35, %v2694_v44 }
0x2164   :  { %2701 = vrot.lane.b32.xlu0 %v2699_v45, %s4432_s0 }
0x21a9   :  { %v3054_v31 = vpop.f32.mrf.mxu0 }
0x21aa   :  { %v5616_v63 = vadd.f32 %v4017_v53, %v3054_v31 }
0x21be   :  { %v2769_v48 = vpop.permute.xlu1 %2768 }
0x21bf   :  { %v2771_v2 = vadd.f32 %v2769_v48, %v5328_v60 }
0x21c1   :  { %4268 = vtanh.f32 %v2771_v2 }
0x21c6   :  { %v2780_v39 = vpop.permute.xlu1 %2779 }
0x21c7   :  { %v4269_v50 = vpop.eup %4268 }
0x21c8   :  { %2775 = vrot.lane.b32.xlu2 %v4269_v50, %s4433_s5 }
0x21d0   :  { %2713 = vrot.lane.b32.xlu2 %v2712_v0, %s4434_s9 }
0x21d6   :  { %v2702_v47 = vpop.permute.xlu0 %2701 }
0x21d7   :  { %v2704_v58 = vadd.f32 %v2702_v47, %v5331_v62 }
0x21d8   :  { %3141 = vrot.lane.b32.xlu2 %v5611_v54, %s4436_s13 }
0x21d9   :  { %4270 = vtanh.f32 %v2704_v58 }
0x21da   :  { %4272 = vpow2.f32 %v3941_v18 }
0x21df   :  { %v4271_v23 = vpop.eup %4270 }
0x21e0   :  { %2708 = vrot.lane.b32.xlu0 %v4271_v23, %s4433_s5  ;;  %3305 = vrot.lane.b32.xlu2 %v5616_v63, %s4437_s17  ;;  %v4273_v19 = vpop.eup %4272 }
0x21e1   :  { %v2747_v1 = vadd.f32 1.0, %v4273_v19 }
0x21e3   :  { %4274 = vrcp.f32 %v2747_v1  ;;  %v2759_v52 = vand.u32 2147483648, %v2747_v1  ;;  %vm2753_vm6 = vweird.f32 %v2747_v1  ;;  %v2757_v33 = vand.u32 2147483647, %v2747_v1 }
0x21e5   :  { %v2760_v25 = vor.u32 1.1754944e-38, %v2759_v52  ;;  %vm2758_vm8 = vcmp.eq.f32.partialorder %v2757_v33, 8.507059e+37 }
0x21e9   :  { %v4275_v3 = vpop.eup %4274 }
0x21ea   :  { %v2749_v46 = vmul.f32 %v4275_v3, %v2747_v1  ;;  %vm2754_vm5 = vweird.f32 %v4275_v3 }
0x21eb   :  { %vm2755_vm7 = vmor %vm2753_vm6, %vm2754_vm5 }
0x21ec   :  { %v2750_v24 = vsub.f32 1.0, %v2749_v46 }
0x21ee   :  { %v2751_v49 = vmul.f32 %v4275_v3, %v2750_v24 }
0x21f0   :  { %v2752_v28 = vadd.f32 %v4275_v3, %v2751_v49 }
0x21f2   :  { %v2756_v22 = vsel %vm2755_vm7, %v4275_v3, %v2752_v28 }
0x21f3   :  { %v2761_v57 = vsel %vm2758_vm8, %v2760_v25, %v2756_v22 }
0x21f4   :  { %v2773_v4 = vsub.f32 1.0, %v2761_v57  ;;  %v2782_v6 = vmul.f32 %v2780_v39, %v2761_v57 }
0x2222   :  { %v2776_v13 = vpop.permute.xlu2 %2775 }
0x2223   :  { %v2778_v27 = vmul.f32 %v2776_v13, %v2773_v4 }
0x2225   :  { %v2783_v9 = vadd.f32 %v2782_v6, %v2778_v27 }
0x2227   :  { %v2789_v10 = vrot.slane %v2783_v9, 6 }
0x2229   :  { %2790 = vrot.lane.b32.xlu0 %v2789_v10, %s4434_s9 }
0x222a   :  { %v2714_v36 = vpop.permute.xlu2 %2713 }
0x222b   :  { %v2716_v32 = vmul.f32 %v2714_v36, %v2694_v44 }
0x2231   :  { %3307 = vrot.lane.b32.xlu0 %v5616_v63, %s4436_s13 }
0x2232   :  { %v3142_v34 = vpop.permute.xlu2 %3141 }
0x2233   :  { %3952 = vmatpush.xpose.msk.msra.mxu2 %vm168_vm0, %v3142_v34 }
0x2239   :  { %3226 = vrot.lane.b32.xlu0 %v5616_v63, %s4433_s5 }
0x223a   :  { %v3306_v16 = vpop.permute.xlu2 %3305 }
0x2252   :  { %v2709_v61 = vpop.permute.xlu0 %2708 }
0x2253   :  { %v2711_v40 = vmul.f32 %v2709_v61, %v2706_v12 }
0x2255   :  { %v2717_v8 = vadd.f32 %v2716_v32, %v2711_v40 }
0x2257   :  { %2785 = vrot.lane.b32.xlu1 %v2717_v8, %s4433_s5 }
0x225f   :  { %3139 = vrot.lane.b32.xlu1 %v5611_v54, %s4437_s17 }
0x2267   :  { %3059 = vrot.lane.b32.xlu1 %v5611_v54, %s4433_s5 }
0x229b   :  { %v2791_v5 = vpop.permute.xlu0 %2790 }
0x22a3   :  { %v3308_v7 = vpop.permute.xlu0 %3307 }
0x22ab   :  { %v3227_v38 = vpop.permute.xlu0 %3226 }
0x22ac   :  { %3955 = vmatpush.xpose.msk.msrb.mxu0 %vm168_vm0, %v3227_v38 }
0x22af   :  { %3956 = vmatmul.msk.f32.vlgmr.msrb.gmra.mxu0 %vm168_vm0, %v5616_v63 }
0x22c9   :  { %v2786_v15 = vpop.permute.xlu1 %2785 }
0x22ca   :  { %v5639_v43 = vsel %vm381_vm13, %v2786_v15, %v2791_v5 }
0x22cb   :  { %v5642_v29 = vrot.slane %v5639_v43, 4 }
0x22cd   :  { %3942 = vmatmul.msk.f32.vlgmr.msrb.gmra.mxu2 %vm226_vm14, %v5642_v29  ;;  %3943 = vmatmul.msk.f32.vlgmr.msrb.gmra.mxu3 %vm226_vm14, %v5642_v29  ;;  %vm3088_vm14 = vcmask 64512  }
0x22ce   :  { %3958 = vmatpush.xpose.msk.msrb.mxu2 %vm168_vm0, %v3308_v7 }
0x22d1   :  { %v3140_v20 = vpop.permute.xlu1 %3139 }
0x22d5   :  { %3953 = vmatmul.msk.f32.vlgmr.msra.gmra.mxu2 %vm168_vm0, %v3140_v20 }
0x22d9   :  { %v3060_v17 = vpop.permute.xlu1 %3059 }
0x22da   :  { %3949 = vmatpush.xpose.msk.msra.mxu1 %vm168_vm0, %v3060_v17 }
0x22dd   :  { %3950 = vmatmul.msk.f32.vlgmr.msra.gmra.mxu1 %vm168_vm0, %v5611_v54  ;;  %3959 = vmatmul.msk.f32.vlgmr.msrb.gmra.mxu2 %vm168_vm0, %v3306_v16 }
0x232c   :  { %v3249_v47 = vpop.f32.mrf.mxu0 }
0x232d   :  { %v3252_v31 = vmul.f32 0.25, %v3249_v47 }
0x232f   :  { %v3254_v42 = vadd.f32 %v4018_v51, %v3252_v31 }
0x2331   :  { %v3255_v18 = vsel %vm3088_vm14, %v3254_v42, -inf }
0x2350   :  { %v5654_v55 = vpop.f32.mrf.mxu2 }
0x2358   :  { %v3164_v11 = vpop.f32.mrf.mxu2 }
0x2359   :  { %v3167_v41 = vmul.f32 0.25, %v3164_v11 }
0x235a   :  { %v3082_v35 = vpop.f32.mrf.mxu1 }
0x235b   :  { %v3168_v44 = vadd.f32 %v4019_v26, %v3167_v41  ;;  %v3085_v45 = vmul.f32 0.25, %v3082_v35 }
0x235d   :  { %v3087_v48 = vadd.f32 %v4019_v26, %v3085_v45  ;;  %v3169_v2 = vsel %vm3088_vm14, %v3168_v44, -inf }
0x235e   :  { %3170 = vmax.xlane.f32.xlu2 %v3169_v2 }
0x235f   :  { %v3089_v50 = vsel %vm3088_vm14, %v3087_v48, -inf }
0x2360   :  { %v3330_v0 = vpop.f32.mrf.mxu2  ;;  %3090 = vmax.xlane.f32.xlu0 %v3089_v50 }
0x2361   :  { %v3333_v53 = vmul.f32 0.25, %v3330_v0 }
0x2363   :  { %v3334_v58 = vadd.f32 %v4018_v51, %v3333_v53 }
0x2365   :  { %v3335_v23 = vsel %vm3088_vm14, %v3334_v58, -inf }
0x2366   :  { %3336 = vmax.xlane.f32.xlu1 %v3335_v23 }
0x236e   :  { %3256 = vmax.xlane.f32.xlu1 %v3255_v18 }
0x2387   :  { %3359 = vrot.lane.b32.xlu1 %v5616_v63, %s4438_s25 }
0x23d1   :  { %v3171_v19 = vpop.xlane.xlu2 %3170 }
0x23d2   :  { %v3172_v1 = vsub.f32 %v3168_v44, %v3171_v19 }
0x23d3   :  { %v3091_v46 = vpop.xlane.xlu0 %3090 }
0x23d4   :  { %v3173_v3 = vmul.f32 1.442695, %v3172_v1  ;;  %v3092_v52 = vsub.f32 %v3087_v48, %v3091_v46 }
0x23d6   :  { %4276 = vpow2.f32 %v3173_v3  ;;  %v3093_v25 = vmul.f32 1.442695, %v3092_v52 }
0x23d9   :  { %v3337_v24 = vpop.xlane.xlu1 %3336 }
0x23da   :  { %v3338_v49 = vsub.f32 %v3334_v58, %v3337_v24 }
0x23dc   :  { %v4277_v28 = vpop.eup %4276  ;;  %v3339_v33 = vmul.f32 1.442695, %v3338_v49 }
0x23dd   :  { %v3175_v22 = vsel %vm3088_vm14, %v4277_v28, 0.0 }
0x23de   :  { %4278 = vpow2.f32 %v3339_v33  ;;  %3176 = vadd.xlane.f32.xlu2 %v3175_v22 }
0x23df   :  { %4280 = vpow2.f32 %v3093_v25 }
0x23e1   :  { %v3257_v57 = vpop.xlane.xlu1 %3256 }
0x23e2   :  { %v3258_v4 = vsub.f32 %v3254_v42, %v3257_v57 }
0x23e4   :  { %v4279_v39 = vpop.eup %4278  ;;  %v3259_v6 = vmul.f32 1.442695, %v3258_v4 }
0x23e5   :  { %v3341_v13 = vsel %vm3088_vm14, %v4279_v39, 0.0  ;;  %v5665_v27 = vpop.eup %4280 }
0x23e6   :  { %3342 = vadd.xlane.f32.xlu0 %v3341_v13  ;;  %4282 = vpow2.f32 %v3259_v6  ;;  %v3095_v9 = vsel %vm3088_vm14, %v5665_v27, 0.0 }
0x23ec   :  { %v5669_v10 = vpop.eup %4282 }
0x23ed   :  { %v3261_v36 = vsel %vm3088_vm14, %v5669_v10, 0.0 }
0x23ee   :  { %3096 = vadd.xlane.f32.xlu0 %v3095_v9 }
0x23f6   :  { %3193 = vrot.lane.b32.xlu2 %v5611_v54, %s4438_s25  ;;  %3262 = vadd.xlane.f32.xlu0 %v3261_v36 }
0x23f9   :  { %v3360_v8 = vpop.permute.xlu1 %3359 }
0x23fe   :  { %3279 = vrot.lane.b32.xlu2 %v5616_v63, %s4432_s0 }
0x240a   :  { %3113 = vrot.lane.b32.xlu0 %v5611_v54, %s4432_s0 }
0x2451   :  { %v3177_v34 = vpop.xlane.xlu2 %3176 }
0x2452   :  { %4284 = vrcp.f32 %v3177_v34  ;;  %v3189_v7 = vand.u32 2147483648, %v3177_v34  ;;  %v3187_v15 = vand.u32 2147483647, %v3177_v34  ;;  %vm3183_vm10 = vweird.f32 %v3177_v34 }
0x2454   :  { %v3190_v54 = vor.u32 1.1754944e-38, %v3189_v7  ;;  %vm3188_vm12 = vcmp.eq.f32.partialorder %v3187_v15, 8.507059e+37 }
0x2458   :  { %v4285_v12 = vpop.eup %4284 }
0x2459   :  { %v3179_v61 = vmul.f32 %v4285_v12, %v3177_v34  ;;  %v3194_v32 = vpop.permute.xlu2 %3193  ;;  %v3343_v40 = vpop.xlane.xlu0 %3342  ;;  %vm3184_vm9 = vweird.f32 %v4285_v12 }
0x245a   :  { %4286 = vrcp.f32 %v3343_v40  ;;  %3214 = vmatpush.msra.mxu3 %v3194_v32  ;;  %vm3185_vm11 = vmor %vm3183_vm10, %vm3184_vm9  ;;  %v3355_v44 = vand.u32 2147483648, %v3343_v40  ;;  %v3353_v48 = vand.u32 2147483647, %v3343_v40  ;;  %vm3349_vm1 = vweird.f32 %v3343_v40  ;;  %v3393_v32 = vld [vmem:[%s5849_s29 + $0x18] sm:$0xff] }
0x245b   :  { %v3180_v5 = vsub.f32 1.0, %v3179_v61  ;;  %3416 = vmatpush.msra.mxu0 %v3393_v32 }
0x245c   :  { %3380 = vmatpush.msrb.mxu3 %v3360_v8  ;;  %v3356_v0 = vor.u32 1.1754944e-38, %v3355_v44  ;;  %vm3354_vm3 = vcmp.eq.f32.partialorder %v3353_v48, 8.507059e+37  ;;  %v3391_v8 = vld [vmem:[%s5849_s29 + $0x8] sm:$0xff] }
0x245d   :  { %v3181_v38 = vmul.f32 %v4285_v12, %v3180_v5  ;;  %v3390_v5 = vld [vmem:[%s5849_s29] sm:$0xff] }
0x245f   :  { %v3182_v20 = vadd.f32 %v4285_v12, %v3181_v38 }
0x2460   :  { %v4287_v63 = vpop.eup %4286 }
0x2461   :  { %v3186_v17 = vsel %vm3185_vm11, %v4285_v12, %v3182_v20  ;;  %v3345_v16 = vmul.f32 %v4287_v63, %v3343_v40  ;;  %v3097_v26 = vpop.xlane.xlu0 %3096  ;;  %vm3350_vm15 = vweird.f32 %v4287_v63  ;;  %v3280_v13 = vpop.permute.xlu2 %3279  ;;  %v3392_v40 = vld [vmem:[%s5849_s29 + $0x10] sm:$0xff] }
0x2462   :  { %v3191_v11 = vsel %vm3188_vm12, %v3190_v54, %v3186_v17  ;;  %4288 = vrcp.f32 %v3097_v26  ;;  %vm3351_vm2 = vmor %vm3349_vm1, %vm3350_vm15  ;;  %v3109_v3 = vand.u32 2147483648, %v3097_v26  ;;  %vm3103_vm5 = vweird.f32 %v3097_v26  ;;  %v5684_v12 = vpop.f32.mrf.mxu3  ;;  %3417 = vmatpush.msra.mxu0 %v3392_v40  ;;  %v4020_v54 = vld [vmem:[%s5850_s8] ss:$0 sm:$0xff] }
0x2463   :  { %v3346_v41 = vsub.f32 1.0, %v3345_v16  ;;  %v3192_v35 = vmul.f32 %v4277_v28, %v3191_v11  ;;  %v3107_v24 = vand.u32 2147483647, %v3097_v26  ;;  %v4022_v40 = vld [vmem:[%s5854_s6] ss:$0 sm:$0xff] }
0x2464   :  { %v3110_v52 = vor.u32 1.1754944e-38, %v3109_v3  ;;  %3418 = vmatpush.msra.mxu0 %v3391_v8 }
0x2465   :  { %v3347_v45 = vmul.f32 %v4287_v63, %v3346_v41  ;;  %3954 = vmatmul.msk.f32.vlgmr.msra.gmra.mxu3 %vm3088_vm14, %v3192_v35  ;;  %vm3108_vm7 = vcmp.eq.f32.partialorder %v3107_v24, 8.507059e+37  ;;  %v3554_v24 = vld [vmem:[%s5852_s24 + $0x70] sm:$0xff] }
0x2466   :  { %3419 = vmatpush.msra.mxu0 %v3390_v5 }
0x2467   :  { %v3348_v2 = vadd.f32 %v4287_v63, %v3347_v45 }
0x2468   :  { %v4289_v50 = vpop.eup %4288 }
0x2469   :  { %v3352_v51 = vsel %vm3351_vm2, %v4287_v63, %v3348_v2  ;;  %v3099_v53 = vmul.f32 %v4289_v50, %v3097_v26  ;;  %v3263_v47 = vpop.xlane.xlu0 %3262  ;;  %vm3104_vm4 = vweird.f32 %v4289_v50 }
0x246a   :  { %v3357_v58 = vsel %vm3354_vm3, %v3356_v0, %v3352_v51  ;;  %4290 = vrcp.f32 %v3263_v47  ;;  %vm3105_vm6 = vmor %vm3103_vm5, %vm3104_vm4  ;;  %v3275_v25 = vand.u32 2147483648, %v3263_v47  ;;  %vm3269_vm9 = vweird.f32 %v3263_v47 }
0x246b   :  { %v3100_v31 = vsub.f32 1.0, %v3099_v53  ;;  %v3358_v23 = vmul.f32 %v4279_v39, %v3357_v58  ;;  %v3273_v57 = vand.u32 2147483647, %v3263_v47 }
0x246c   :  { %v3276_v9 = vor.u32 1.1754944e-38, %v3275_v25 }
0x246d   :  { %3960 = vmatmul.msk.f32.vlgmr.msrb.gmra.mxu3 %vm3088_vm14, %v3358_v23  ;;  %v3101_v42 = vmul.f32 %v4289_v50, %v3100_v31  ;;  %vm3274_vm11 = vcmp.eq.f32.partialorder %v3273_v57, 8.507059e+37  ;;  %v3488_v31 = vld [vmem:[%s5851_s14 + $0x18] sm:$0xff]  ;;  %v3487_v23 = vld [vmem:[%s5851_s14 + $0x10] sm:$0xff] }
0x246f   :  { %v3102_v1 = vadd.f32 %v4289_v50, %v3101_v42  ;;  %v3486_v42 = vld [vmem:[%s5851_s14 + $0x8] sm:$0xff] }
0x2470   :  { %v4291_v18 = vpop.eup %4290 }
0x2471   :  { %v3265_v19 = vmul.f32 %v4291_v18, %v3263_v47  ;;  %v3106_v49 = vsel %vm3105_vm6, %v4289_v50, %v3102_v1  ;;  %vm3270_vm8 = vweird.f32 %v4291_v18 }
0x2472   :  { %v3111_v33 = vsel %vm3108_vm7, %v3110_v52, %v3106_v49  ;;  %vm3271_vm10 = vmor %vm3269_vm9, %vm3270_vm8  ;;  %v3553_v49 = vld [vmem:[%s5852_s24 + $0x68] sm:$0xff] }
0x2473   :  { %v3266_v46 = vsub.f32 1.0, %v3265_v19  ;;  %v3112_v4 = vmul.f32 %v5665_v27, %v3111_v33  ;;  %v3552_v33 = vld [vmem:[%s5852_s24 + $0x60] sm:$0xff] }
0x2475   :  { %v3267_v28 = vmul.f32 %v4291_v18, %v3266_v46  ;;  %v3555_v46 = vld [vmem:[%s5852_s24 + $0x78] sm:$0xff] }
0x2476   :  { %3560 = vmatpush.msra.mxu2 %v3555_v46 }
0x2477   :  { %v3268_v22 = vadd.f32 %v4291_v18, %v3267_v28 }
0x2478   :  { %3561 = vmatpush.msra.mxu2 %v3554_v24 }
0x2479   :  { %v3272_v6 = vsel %vm3271_vm10, %v4291_v18, %v3268_v22  ;;  %v3485_v18 = vld [vmem:[%s5851_s14] sm:$0xff] }
0x247a   :  { %v3277_v36 = vsel %vm3274_vm11, %v3276_v9, %v3272_v6  ;;  %3562 = vmatpush.msra.mxu2 %v3553_v49 }
0x247b   :  { %v3278_v34 = vmul.f32 %v5669_v10, %v3277_v36 }
0x247c   :  { %v3114_v39 = vpop.permute.xlu0 %3113  ;;  %3563 = vmatpush.msra.mxu2 %v3552_v33 }
0x247d   :  { %3134 = vmatpush.msrb.mxu1 %v3114_v39 }
0x247e   :  { %3951 = vmatmul.msk.f32.vlgmr.msrb.gmra.mxu1 %vm3088_vm14, %v3112_v4 }
0x247f   :  { %3300 = vmatpush.msra.mxu1 %v3280_v13 }
0x2481   :  { %3511 = vmatpush.msrb.mxu1 %v3488_v31 }
0x2483   :  { %3512 = vmatpush.msrb.mxu1 %v3487_v23 }
0x2485   :  { %3513 = vmatpush.msrb.mxu1 %v3486_v42 }
0x2486   :  { %3957 = vmatmul.msk.f32.vlgmr.msra.gmra.mxu1 %vm3088_vm14, %v3278_v34  ;;  %v4021_v34 = vld [vmem:[%s5853_s30] ss:$0 sm:$0xff] }
0x2487   :  { %3514 = vmatpush.msrb.mxu1 %v3485_v18 }
0x24e8   :  { %v3216_v27 = vpop.f32.mrf.mxu3 }
0x24e9   :  { %3220 = vrot.lane.b32.xlu1 %v3216_v27, %s4439_s3 }
0x24f0   :  { %v3382_v61 = vpop.f32.mrf.mxu3 }
0x24f1   :  { %3386 = vrot.lane.b32.xlu2 %v3382_v61, %s4439_s3 }
0x24fb   :  { %v3136_v7 = vpop.f32.mrf.mxu1 }
0x2503   :  { %v3302_v20 = vpop.f32.mrf.mxu1 }
0x254b   :  { %v3387_v15 = vpop.permute.xlu2 %3386 }
0x254c   :  { %v3389_v63 = vsel %vm168_vm0, %v3302_v20, %v3387_v15 }
0x255b   :  { %v3221_v10 = vpop.permute.xlu1 %3220 }
0x255c   :  { %v3223_v38 = vsel %vm168_vm0, %v3136_v7, %v3221_v10 }
0x255d   :  { %3961 = vmatmul.msk.f32.vlgmr.msra.gmra.mxu0 %vm381_vm13, %v3223_v38 }
0x2565   :  { %3962 = vmatmul.msk.f32.gmra.mxu0 %vm381_vm13, %v3389_v63 }
0x25da   :  { %v3421_v17 = vpop.f32.mrf.mxu0 }
0x25db   :  { %v3422_v16 = vadd.f32 %v4020_v54, %v3421_v17  ;;  %v3551_v17 = vld [vmem:[%s5852_s24 + $0x58] sm:$0xff] }
0x25dc   :  { %3564 = vmatpush.msra.mxu2 %v3551_v17 }
0x25dd   :  { %v3427_v26 = vadd.f32 %v3422_v16, %v5591_v56  ;;  %v3550_v16 = vld [vmem:[%s5852_s24 + $0x50] sm:$0xff] }
0x25de   :  { %3565 = vmatpush.msra.mxu2 %v3550_v16 }
0x25df   :  { %v3431_v11 = vsel %vm381_vm13, %v3427_v26, 0.0 }
0x25e0   :  { %3432 = vadd.xlane.f32.xlu1 %v3431_v11  ;;  %v3548_v11 = vld [vmem:[%s5852_s24 + $0x40] sm:$0xff] }
0x25e2   :  { %v3424_v41 = vpop.f32.mrf.mxu0 }
0x25e3   :  { %v3425_v35 = vadd.f32 %v4020_v54, %v3424_v41  ;;  %v3547_v41 = vld [vmem:[%s5852_s24 + $0x38] sm:$0xff] }
0x25e5   :  { %v3428_v44 = vadd.f32 %v3425_v35, %v5597_v21  ;;  %v3546_v35 = vld [vmem:[%s5852_s24 + $0x30] sm:$0xff] }
0x25e7   :  { %v3434_v45 = vsel %vm381_vm13, %v3428_v44, 0.0 }
0x25e8   :  { %3435 = vadd.xlane.f32.xlu2 %v3434_v45  ;;  %v3544_v45 = vld [vmem:[%s5852_s24 + $0x20] sm:$0xff] }
0x2653   :  { %v3433_v48 = vpop.xlane.xlu1 %3432 }
0x2654   :  { %v3437_v2 = vmul.f32 %v3433_v48, %v5563_v37  ;;  %v3543_v48 = vld [vmem:[%s5852_s24 + $0x18] sm:$0xff] }
0x2656   :  { %v3439_v50 = vsub.f32 %v3427_v26, %v3437_v2  ;;  %v3549_v26 = vld [vmem:[%s5852_s24 + $0x48] sm:$0xff]  ;;  %v3542_v2 = vld [vmem:[%s5852_s24 + $0x10] sm:$0xff] }
0x2657   :  { %3566 = vmatpush.msra.mxu2 %v3549_v26 }
0x2658   :  { %v3441_v0 = vmul.f32 %v3439_v50, %v3439_v50 }
0x2659   :  { %3567 = vmatpush.msra.mxu2 %v3548_v11 }
0x265a   :  { %v3443_v56 = vsel %vm381_vm13, %v3441_v0, 0.0  ;;  %v3540_v0 = vld [vmem:[%s5852_s24] sm:$0xff] }
0x265b   :  { %v3436_v51 = vpop.xlane.xlu2 %3435  ;;  %3444 = vadd.xlane.f32.xlu0 %v3443_v56  ;;  %3568 = vmatpush.msra.mxu2 %v3547_v41  ;;  %v4023_v56 = vld [vmem:[%s5855_s12] ss:$0 sm:$0xff] }
0x265c   :  { %v3438_v53 = vmul.f32 %v3436_v51, %v5563_v37 }
0x265d   :  { %3569 = vmatpush.msra.mxu2 %v3546_v35 }
0x265e   :  { %v3440_v47 = vsub.f32 %v3428_v44, %v3438_v53  ;;  %v3545_v44 = vld [vmem:[%s5852_s24 + $0x28] sm:$0xff] }
0x265f   :  { %3570 = vmatpush.msra.mxu2 %v3545_v44 }
0x2660   :  { %v3442_v21 = vmul.f32 %v3440_v47, %v3440_v47 }
0x2661   :  { %3571 = vmatpush.msra.mxu2 %v3544_v45 }
0x2662   :  { %v3446_v58 = vsel %vm381_vm13, %v3442_v21, 0.0 }
0x2663   :  { %3447 = vadd.xlane.f32.xlu1 %v3446_v58  ;;  %3572 = vmatpush.msra.mxu2 %v3543_v48 }
0x2665   :  { %3573 = vmatpush.msra.mxu2 %v3542_v2 }
0x26ce   :  { %v3445_v19 = vpop.xlane.xlu0 %3444 }
0x26cf   :  { %v3449_v1 = vmul.f32 %v3445_v19, %v5563_v37 }
0x26d1   :  { %v3451_v3 = vadd.f32 1e-12, %v3449_v1 }
0x26d3   :  { %4292 = vrsqrt.f32 %v3451_v3  ;;  %vm3459_vm14 = vweird.f32 %v3451_v3 }
0x26d6   :  { %v3448_v28 = vpop.xlane.xlu1 %3447 }
0x26d7   :  { %v3450_v52 = vmul.f32 %v3448_v28, %v5563_v37 }
0x26d9   :  { %v4293_v22 = vpop.eup %4292  ;;  %v3452_v25 = vadd.f32 1e-12, %v3450_v52 }
0x26da   :  { %v3454_v57 = vmul.f32 %v4293_v22, %v3451_v3  ;;  %vm3460_vm0 = vweird.f32 %v4293_v22 }
0x26db   :  { %4294 = vrsqrt.f32 %v3452_v25  ;;  %vm3461_vm12 = vmor %vm3459_vm14, %vm3460_vm0  ;;  %vm3469_vm1 = vweird.f32 %v3452_v25 }
0x26dc   :  { %v3455_v39 = vmul.f32 %v4293_v22, %v3454_v57 }
0x26de   :  { %v3456_v4 = vmul.f32 0.5, %v3455_v39 }
0x26e0   :  { %v3457_v13 = vsub.f32 1.5, %v3456_v4  ;;  %v4024_v4 = vld [vmem:[%s5856_s7] ss:$0 sm:$0xff] }
0x26e1   :  { %v4295_v6 = vpop.eup %4294 }
0x26e2   :  { %v3458_v9 = vmul.f32 %v4293_v22, %v3457_v13  ;;  %v3464_v36 = vmul.f32 %v4295_v6, %v3452_v25  ;;  %vm3470_vm15 = vweird.f32 %v4295_v6 }
0x26e3   :  { %vm3471_vm2 = vmor %vm3469_vm1, %vm3470_vm15 }
0x26e4   :  { %v3462_v27 = vsel %vm3461_vm12, %v4293_v22, %v3458_v9  ;;  %v3465_v61 = vmul.f32 %v4295_v6, %v3464_v36 }
0x26e5   :  { %v3473_v32 = vmul.f32 %v3462_v27, %v3439_v50  ;;  %v3541_v50 = vld [vmem:[%s5852_s24 + $0x8] sm:$0xff] }
0x26e6   :  { %v3466_v8 = vmul.f32 0.5, %v3465_v61  ;;  %3574 = vmatpush.msra.mxu2 %v3541_v50 }
0x26e7   :  { %v3478_v5 = vmul.f32 %v4021_v34, %v3473_v32 }
0x26e8   :  { %v3467_v7 = vsub.f32 1.5, %v3466_v8  ;;  %3575 = vmatpush.msra.mxu2 %v3540_v0  ;;  %v2816_v8 = vadd.f32 %v5654_v55, %v5308_v14 }
0x26e9   :  { %v5715_v10 = vadd.f32 %v4022_v40, %v3478_v5 }
0x26ea   :  { %v3468_v38 = vmul.f32 %v4295_v6, %v3467_v7  ;;  %v2883_v5 = vadd.f32 %v2816_v8, %v5326_v59 }
0x26eb   :  { %3963 = vmatmul.msk.f32.vlgmr.msrb.gmra.mxu1 %vm381_vm13, %v5715_v10 }
0x26ec   :  { %v3472_v15 = vsel %vm3471_vm2, %v4295_v6, %v3468_v38  ;;  %v3945_v7 = vmul.f32 -1.442695, %v2883_v5  ;;  %vm3644_vm2 = vcmask 1040384  }
0x26ed   :  { %v3474_v20 = vmul.f32 %v3472_v15, %v3440_v47 }
0x26ef   :  { %v3479_v63 = vmul.f32 %v4021_v34, %v3474_v20 }
0x26f1   :  { %v3484_v54 = vadd.f32 %v4022_v40, %v3479_v63  ;;  %v5739_v40 = vadd.f32 %v5684_v12, %v5304_v30 }
0x26f3   :  { %3964 = vmatmul.msk.f32.gmra.mxu1 %vm381_vm13, %v3484_v54 }
0x2768   :  { %v3516_v51 = vpop.f32.mrf.mxu1 }
0x2769   :  { %v3517_v53 = vadd.f32 %v4023_v56, %v3516_v51  ;;  %v2839_v51 = vrot.slane %v2816_v8, 2 }
0x276b   :  { %v3524_v47 = vmul.f32 0.044715, %v3517_v53  ;;  %v3522_v28 = vmul.f32 0.5, %v3517_v53 }
0x276d   :  { %v3526_v21 = vmul.f32 %v3524_v47, %v3517_v53 }
0x276f   :  { %v3528_v58 = vmul.f32 %v3526_v21, %v3517_v53 }
0x2770   :  { %v3519_v31 = vpop.f32.mrf.mxu1 }
0x2771   :  { %v3520_v23 = vadd.f32 %v4023_v56, %v3519_v31  ;;  %v3530_v42 = vadd.f32 %v3528_v58, %v3517_v53  ;;  %v2841_v53 = vadd.f32 %v2839_v51, %v5331_v62 }
0x2773   :  { %v3532_v18 = vmul.f32 0.7978846, %v3530_v42  ;;  %v3525_v19 = vmul.f32 0.044715, %v3520_v23  ;;  %v3523_v25 = vmul.f32 0.5, %v3520_v23  ;;  %v3649_v42 = vld [vmem:[%s5857_s10 + $0x18] sm:$0xff] }
0x2774   :  { %v3944_v47 = vmul.f32 -1.442695, %v2841_v53  ;;  %3669 = vmatpush.msra.mxu3 %v3649_v42 }
0x2775   :  { %4296 = vtanh.f32 %v3532_v18  ;;  %v3527_v1 = vmul.f32 %v3525_v19, %v3520_v23  ;;  %v3648_v18 = vld [vmem:[%s5857_s10 + $0x10] sm:$0xff] }
0x2776   :  { %3670 = vmatpush.msra.mxu3 %v3648_v18 }
0x2777   :  { %v3529_v3 = vmul.f32 %v3527_v1, %v3520_v23  ;;  %v3647_v1 = vld [vmem:[%s5857_s10 + $0x8] sm:$0xff] }
0x2778   :  { %3671 = vmatpush.msra.mxu3 %v3647_v1 }
0x2779   :  { %v3531_v46 = vadd.f32 %v3529_v3, %v3520_v23  ;;  %v3646_v3 = vld [vmem:[%s5857_s10] sm:$0xff] }
0x277a   :  { %3672 = vmatpush.msra.mxu3 %v3646_v3 }
0x277b   :  { %v4297_v24 = vpop.eup %4296  ;;  %v3533_v49 = vmul.f32 0.7978846, %v3531_v46 }
0x277c   :  { %v3536_v52 = vadd.f32 1.0, %v4297_v24 }
0x277d   :  { %4298 = vtanh.f32 %v3533_v49 }
0x277e   :  { %v3538_v33 = vmul.f32 %v3536_v52, %v3522_v28  ;;  %4300 = vpow2.f32 %v3945_v7 }
0x2780   :  { %3576 = vmatmul.f32.vlgmr.msra.gmra.mxu2 %v3538_v33 }
0x2783   :  { %v4299_v22 = vpop.eup %4298 }
0x2784   :  { %v3537_v57 = vadd.f32 1.0, %v4299_v22 }
0x2786   :  { %v3539_v39 = vmul.f32 %v3537_v57, %v3523_v25 }
0x2788   :  { %3579 = vmatmul.f32.gmra.mxu2 %v3539_v39 }
0x2803   :  { %v3577_v13 = vpop.f32.mrf.mxu2 }
0x2804   :  { %v3578_v6 = vadd.f32 %v4024_v4, %v3577_v13 }
0x2806   :  { %v3583_v9 = vadd.f32 %v3578_v6, %v5715_v10  ;;  %v4301_v10 = vpop.eup %4300 }
0x2807   :  { %v2887_v38 = vadd.f32 1.0, %v4301_v10 }
0x2808   :  { %v3587_v36 = vsel %vm381_vm13, %v3583_v9, 0.0 }
0x2809   :  { %3588 = vadd.xlane.f32.xlu0 %v3587_v36  ;;  %4302 = vrcp.f32 %v2887_v38  ;;  %v2899_v44 = vand.u32 2147483648, %v2887_v38  ;;  %vm2893_vm4 = vweird.f32 %v2887_v38  ;;  %v2897_v45 = vand.u32 2147483647, %v2887_v38 }
0x280a   :  { %4304 = vpow2.f32 %v3944_v47  ;;  %v3681_v47 = vld [vmem:[%s5860_s16 + $0x18] sm:$0xff] }
0x280b   :  { %v3580_v34 = vpop.f32.mrf.mxu2  ;;  %v2900_v2 = vor.u32 1.1754944e-38, %v2899_v44  ;;  %vm2898_vm6 = vcmp.eq.f32.partialorder %v2897_v45, 8.507059e+37  ;;  %3701 = vmatpush.msrb.mxu3 %v3681_v47 }
0x280c   :  { %v3581_v27 = vadd.f32 %v4024_v4, %v3580_v34 }
0x280e   :  { %v3584_v61 = vadd.f32 %v3581_v27, %v3484_v54 }
0x280f   :  { %v4303_v12 = vpop.eup %4302 }
0x2810   :  { %v3590_v32 = vsel %vm381_vm13, %v3584_v61, 0.0  ;;  %v2889_v55 = vmul.f32 %v4303_v12, %v2887_v38  ;;  %vm2894_vm3 = vweird.f32 %v4303_v12  ;;  %v4305_v21 = vpop.eup %4304 }
0x2811   :  { %3591 = vadd.xlane.f32.xlu2 %v3590_v32  ;;  %vm2895_vm5 = vmor %vm2893_vm4, %vm2894_vm3  ;;  %v2845_v58 = vadd.f32 1.0, %v4305_v21  ;;  %v2877_v32 = vrot.slane %v5639_v43, 6  ;;  %v3680_v21 = vld [vmem:[%s5860_s16 + $0x10] sm:$0xff] }
0x2812   :  { %v2890_v26 = vsub.f32 1.0, %v2889_v55  ;;  %3702 = vmatpush.msrb.mxu3 %v3680_v21 }
0x2813   :  { %4306 = vrcp.f32 %v2845_v58  ;;  %v2857_v38 = vand.u32 2147483648, %v2845_v58  ;;  %vm2851_vm0 = vweird.f32 %v2845_v58 }
0x2814   :  { %v2891_v41 = vmul.f32 %v4303_v12, %v2890_v26 }
0x2816   :  { %v2892_v35 = vadd.f32 %v4303_v12, %v2891_v41 }
0x2818   :  { %v2896_v48 = vsel %vm2895_vm5, %v4303_v12, %v2892_v35  ;;  %v4026_v35 = vld [vmem:[%s5859_s15] ss:$0 sm:$0xff] }
0x2819   :  { %v2901_v0 = vsel %vm2898_vm6, %v2900_v2, %v2896_v48  ;;  %v4307_v52 = vpop.eup %4306 }
0x281a   :  { %v2847_v57 = vmul.f32 %v4307_v52, %v2845_v58  ;;  %vm2852_vm10 = vweird.f32 %v4307_v52 }
0x281b   :  { %vm2853_vm12 = vmor %vm2851_vm0, %vm2852_vm10 }
0x281c   :  { %v2848_v6 = vsub.f32 1.0, %v2847_v57 }
0x281d   :  { %2924 = vrot.lane.b32.xlu0 %v5739_v40, %s4432_s0 }
0x281e   :  { %v2849_v27 = vmul.f32 %v4307_v52, %v2848_v6 }
0x2820   :  { %v2850_v5 = vadd.f32 %v4307_v52, %v2849_v27 }
0x2822   :  { %v2854_v12 = vsel %vm2853_vm12, %v4307_v52, %v2850_v5  ;;  %v3723_v5 = vld [vmem:[%s5862_s22 + $0x38] sm:$0xff] }
0x287c   :  { %v3589_v15 = vpop.xlane.xlu0 %3588 }
0x287d   :  { %v3593_v20 = vmul.f32 %v3589_v15, %v5563_v37  ;;  %v2855_v15 = vand.u32 2147483647, %v2845_v58 }
0x287f   :  { %v5747_v63 = vsub.f32 %v3583_v9, %v3593_v20  ;;  %vm2856_vm1 = vcmp.eq.f32.partialorder %v2855_v15, 8.507059e+37  ;;  %v3719_v15 = vld [vmem:[%s5862_s22 + $0x18] sm:$0xff] }
0x2881   :  { %v3597_v30 = vmul.f32 %v5747_v63, %v5747_v63 }
0x2883   :  { %v3599_v54 = vsel %vm381_vm13, %v3597_v30, 0.0  ;;  %v4025_v30 = vld [vmem:[%s5858_s11] ss:$0 sm:$0xff] }
0x2884   :  { %3600 = vadd.xlane.f32.xlu2 %v3599_v54  ;;  %v3592_v14 = vpop.xlane.xlu2 %3591 }
0x2885   :  { %v3594_v59 = vmul.f32 %v3592_v14, %v5563_v37  ;;  %v2858_v14 = vor.u32 1.1754944e-38, %v2857_v38  ;;  %v3720_v38 = vld [vmem:[%s5862_s22 + $0x20] sm:$0xff] }
0x2887   :  { %v5753_v17 = vsub.f32 %v3584_v61, %v3594_v59  ;;  %v5774_v55 = vsel %vm2856_vm1, %v2858_v14, %v2854_v12 }
0x2888   :  { %v2871_v6 = vsub.f32 1.0, %v5774_v55 }
0x2889   :  { %v3598_v16 = vmul.f32 %v5753_v17, %v5753_v17 }
0x288b   :  { %v3602_v11 = vsel %vm381_vm13, %v3598_v16, 0.0 }
0x288c   :  { %3603 = vadd.xlane.f32.xlu1 %v3602_v11 }
0x288f   :  { %v2925_v50 = vpop.permute.xlu0 %2924 }
0x2890   :  { %v2927_v56 = vmul.f32 %v2925_v50, %v2901_v0 }
0x289c   :  { %2929 = vrot.lane.b32.xlu2 %v2927_v56, %s4432_s0 }
0x28a5   :  { %2861 = vrot.lane.b32.xlu1 %v2839_v51, %s4432_s0 }
0x28f7   :  { %v3601_v31 = vpop.xlane.xlu2 %3600 }
0x28f8   :  { %v3605_v23 = vmul.f32 %v3601_v31, %v5563_v37  ;;  %v3679_v31 = vld [vmem:[%s5860_s16 + $0x8] sm:$0xff] }
0x28f9   :  { %3703 = vmatpush.msrb.mxu3 %v3679_v31 }
0x28fa   :  { %v3607_v19 = vadd.f32 1e-12, %v3605_v23  ;;  %v3678_v23 = vld [vmem:[%s5860_s16] sm:$0xff] }
0x28fb   :  { %3704 = vmatpush.msrb.mxu3 %v3678_v23 }
0x28fc   :  { %4308 = vrsqrt.f32 %v3607_v19  ;;  %vm3615_vm8 = vweird.f32 %v3607_v19 }
0x28ff   :  { %v3604_v46 = vpop.xlane.xlu1 %3603  ;;  %v2930_v24 = vpop.permute.xlu2 %2929 }
0x2900   :  { %v3606_v49 = vmul.f32 %v3604_v46, %v5563_v37  ;;  %v2932_v28 = vadd.f32 %v2930_v24, %v5328_v60 }
0x2902   :  { %v4309_v33 = vpop.eup %4308  ;;  %v3608_v22 = vadd.f32 1e-12, %v3606_v49  ;;  %4310 = vtanh.f32 %v2932_v28 }
0x2903   :  { %v3610_v25 = vmul.f32 %v4309_v33, %v3607_v19  ;;  %vm3616_vm7 = vweird.f32 %v4309_v33 }
0x2904   :  { %4312 = vrsqrt.f32 %v3608_v22  ;;  %vm3617_vm9 = vmor %vm3615_vm8, %vm3616_vm7  ;;  %vm3625_vm14 = vweird.f32 %v3608_v22  ;;  %vm3732_vm7 = vcmask 785408   ;;  %vm3756_vm8 = vcmask 17408  }
0x2905   :  { %v3611_v39 = vmul.f32 %v4309_v33, %v3610_v25 }
0x2907   :  { %v3612_v4 = vmul.f32 0.5, %v3611_v39 }
0x2908   :  { %v4311_v13 = vpop.eup %4310 }
0x2909   :  { %v3613_v9 = vsub.f32 1.5, %v3612_v4  ;;  %2936 = vrot.lane.b32.xlu1 %v4311_v13, %s4433_s5 }
0x290a   :  { %v4313_v36 = vpop.eup %4312 }
0x290b   :  { %v3620_v34 = vmul.f32 %v4313_v36, %v3608_v22  ;;  %v3614_v37 = vmul.f32 %v4309_v33, %v3613_v9  ;;  %vm3626_vm11 = vweird.f32 %v4313_v36 }
0x290c   :  { %vm3627_vm15 = vmor %vm3625_vm14, %vm3626_vm11 }
0x290d   :  { %v3621_v61 = vmul.f32 %v4313_v36, %v3620_v34  ;;  %v3618_v7 = vsel %vm3617_vm9, %v4309_v33, %v3614_v37  ;;  %v3727_v37 = vld [vmem:[%s5862_s22 + $0x58] sm:$0xff] }
0x290e   :  { %v3629_v43 = vmul.f32 %v3618_v7, %v5747_v63  ;;  %3740 = vmatpush.msrb.mxu0 %v3727_v37  ;;  %v3722_v7 = vld [vmem:[%s5862_s22 + $0x30] sm:$0xff] }
0x290f   :  { %v3622_v8 = vmul.f32 0.5, %v3621_v61  ;;  %v3726_v61 = vld [vmem:[%s5862_s22 + $0x50] sm:$0xff] }
0x2910   :  { %v3634_v26 = vmul.f32 %v4025_v30, %v3629_v43  ;;  %3741 = vmatpush.msrb.mxu0 %v3726_v61 }
0x2911   :  { %v3623_v10 = vsub.f32 1.5, %v3622_v8  ;;  %2878 = vrot.lane.b32.xlu1 %v2877_v32, %s4434_s9  ;;  %v3725_v32 = vld [vmem:[%s5862_s22 + $0x48] sm:$0xff]  ;;  %v3724_v8 = vld [vmem:[%s5862_s22 + $0x40] sm:$0xff] }
0x2912   :  { %v3639_v63 = vadd.f32 %v4026_v35, %v3634_v26  ;;  %3742 = vmatpush.msrb.mxu0 %v3725_v32 }
0x2913   :  { %v3624_v20 = vmul.f32 %v4313_v36, %v3623_v10  ;;  %v3721_v10 = vld [vmem:[%s5862_s22 + $0x28] sm:$0xff] }
0x2914   :  { %3743 = vmatpush.msrb.mxu0 %v3724_v8 }
0x2915   :  { %v3628_v54 = vsel %vm3627_vm15, %v4313_v36, %v3624_v20  ;;  %v3718_v20 = vld [vmem:[%s5862_s22 + $0x10] sm:$0xff] }
0x2916   :  { %v3630_v59 = vmul.f32 %v3628_v54, %v5753_v17  ;;  %v2903_v17 = vadd.f32 %v5739_v40, %v5328_v60  ;;  %3744 = vmatpush.msrb.mxu0 %v3723_v5 }
0x2917   :  { %v2862_v16 = vpop.permute.xlu1 %2861 }
0x2918   :  { %v3635_v11 = vmul.f32 %v4025_v30, %v3630_v59  ;;  %v2864_v41 = vmul.f32 %v2862_v16, %v5774_v55  ;;  %v3946_v2 = vmul.f32 -1.442695, %v2903_v17  ;;  %3745 = vmatpush.msrb.mxu0 %v3722_v7  ;;  %v3717_v30 = vld [vmem:[%s5862_s22 + $0x8] sm:$0xff]  ;;  %v3716_v59 = vld [vmem:[%s5862_s22] sm:$0xff] }
0x291a   :  { %2866 = vrot.lane.b32.xlu0 %v2864_v41, %s4432_s0  ;;  %v3640_v44 = vadd.f32 %v4026_v35, %v3635_v11  ;;  %4314 = vpow2.f32 %v3946_v2  ;;  %3746 = vmatpush.msrb.mxu0 %v3721_v10 }
0x291c   :  { %v3642_v45 = vrot.slane %v3640_v44, 7  ;;  %3747 = vmatpush.msrb.mxu0 %v3720_v38  ;;  %v4029_v44 = vld [vmem:[%s4601_s19] ss:$0 sm:$0xff]  ;;  %s3805_s19 = sshll.u32 %s4611_s27, 4  ;;  %s3806_s19 = int_to_ptr.hbm [resolvable:$true] %s3805_s19 }
0x291d   :  { %s4358_s1 = sshra.s32 %s3806_s19, 4  ;;  %s4359_s1 = int_to_ptr.hbm [resolvable:$true] %s4358_s1 }
0x291e   :  { %v3645_v48 = vsel %vm3644_vm2, %v3639_v63, %v3642_v45  ;;  %3748 = vmatpush.msrb.mxu0 %v3719_v15  ;;  %s4360_s2 = scalar_lea.hbm %s4359_s1, 2  ;;  %p4363_p1 = scmp.lt.s32.totalorder %s4359_s1, %s4611_s27 }
0x291f   :  { %3965 = vmatmul.msk.f32.vlgmr.msra.gmra.mxu3 %vm381_vm13, %v3645_v48  ;;  %p4361_p0 = scmp.ne.s32.totalorder %s4359_s1, %s4360_s2 }
0x2920   :  { %v4315_v50 = vpop.eup %4314  ;;  %3749 = vmatpush.msrb.mxu0 %v3718_v20 }
0x2921   :  { %v2907_v0 = vadd.f32 1.0, %v4315_v50 }
0x2922   :  { %2940 = vrot.lane.b32.xlu0 %v5642_v29, %s4433_s5  ;;  %3750 = vmatpush.msrb.mxu0 %v3717_v30 }
0x2923   :  { %4316 = vrcp.f32 %v2907_v0  ;;  %v2919_v42 = vand.u32 2147483648, %v2907_v0  ;;  %vm2913_vm4 = vweird.f32 %v2907_v0  ;;  %v2917_v60 = vand.u32 2147483647, %v2907_v0 }
0x2924   :  { %3751 = vmatpush.msrb.mxu0 %v3716_v59 }
0x2925   :  { %v2920_v1 = vor.u32 1.1754944e-38, %v2919_v42  ;;  %vm2918_vm6 = vcmp.eq.f32.partialorder %v2917_v60, 8.507059e+37 }
0x2929   :  { %v4317_v56 = vpop.eup %4316 }
0x292a   :  { %v2909_v51 = vmul.f32 %v4317_v56, %v2907_v0  ;;  %vm2914_vm3 = vweird.f32 %v4317_v56 }
0x292b   :  { %vm2915_vm5 = vmor %vm2913_vm4, %vm2914_vm3 }
0x292c   :  { %v2910_v53 = vsub.f32 1.0, %v2909_v51 }
0x292e   :  { %v2911_v58 = vmul.f32 %v4317_v56, %v2910_v53 }
0x2930   :  { %v2912_v29 = vadd.f32 %v4317_v56, %v2911_v58  ;;  %v3771_v58 = vld [vmem:[%s4606_s20] sm:$0x3]  ;;  %s4362_s20 = scalar_lea.hbm %s4611_s27, 2 }
0x2931   :  { %p4364_p2 = scmp.lt.s32.totalorder %s4362_s20, %s4360_s2 }
0x2932   :  { %v2916_v19 = vsel %vm2915_vm5, %v4317_v56, %v2912_v29 }
0x2933   :  { %v2921_v3 = vsel %vm2918_vm6, %v2920_v1, %v2916_v19  ;;  %p4365_p3 = por %p4364_p2, %p4363_p1 }
0x2934   :  { %v2934_v24 = vsub.f32 1.0, %v2921_v3 }
0x2935   :  { %p4366_p4 = pnand %p4365_p3, %p4361_p0 }
0x297b   :  { %v2937_v46 = vpop.permute.xlu1 %2936 }
0x297c   :  { %v2939_v33 = vmul.f32 %v2937_v46, %v2934_v24 }
0x2983   :  { %v2879_v13 = vpop.permute.xlu1 %2878 }
0x2984   :  { %v2881_v36 = vmul.f32 %v2879_v13, %v5774_v55  ;;  %v4028_v55 = vld [vmem:[%s5863_s23] ss:$0 sm:$0xff] }
0x298c   :  { %v2867_v40 = vpop.permute.xlu0 %2866 }
0x298d   :  { %v2869_v18 = vadd.f32 %v2867_v40, %v5331_v62  ;;  %v4027_v62 = vld [vmem:[%s5861_s18] ss:$0 sm:$0xff] }
0x298f   :  { %4318 = vtanh.f32 %v2869_v18 }
0x2994   :  { %v2941_v49 = vpop.permute.xlu0 %2940 }
0x2995   :  { %v4319_v28 = vpop.eup %4318  ;;  %v2943_v52 = vmul.f32 %v2941_v49, %v2921_v3 }
0x2996   :  { %2873 = vrot.lane.b32.xlu2 %v4319_v28, %s4433_s5 }
0x2997   :  { %v2944_v22 = vadd.f32 %v2943_v52, %v2939_v33 }
0x2999   :  { %v2950_v25 = vrot.slane %v2944_v22, 2 }
0x299e   :  { %2951 = vrot.lane.b32.xlu2 %v2950_v25, %s4434_s9 }
0x29a2   :  { %v3674_v57 = vpop.f32.mrf.mxu3 }
0x29a3   :  { %v3675_v39 = vadd.f32 %v4027_v62, %v3674_v57 }
0x29a5   :  { %4320 = vtanh.f32 %v3675_v39 }
0x29ab   :  { %v4321_v4 = vpop.eup %4320 }
0x29ac   :  { %3966 = vmatmul.msk.f32.vlgmr.msrb.gmra.mxu3 %vm381_vm13, %v4321_v4 }
0x29f0   :  { %v2874_v9 = vpop.permute.xlu2 %2873 }
0x29f1   :  { %v2876_v34 = vmul.f32 %v2874_v9, %v2871_v6 }
0x29f3   :  { %v2882_v27 = vadd.f32 %v2881_v36, %v2876_v34 }
0x29f5   :  { %2946 = vrot.lane.b32.xlu0 %v2882_v27, %s4433_s5 }
0x29f8   :  { %v2952_v43 = vpop.permute.xlu2 %2951 }
0x2a2f   :  { %v3706_v16 = vpop.f32.mrf.mxu3 }
0x2a30   :  { %v3707_v26 = vadd.f32 %v4028_v55, %v3706_v16 }
0x2a32   :  { %4322 = vtanh.f32 %v3707_v26 }
0x2a38   :  { %v4323_v11 = vpop.eup %4322 }
0x2a67   :  { %v2947_v12 = vpop.permute.xlu0 %2946 }
0x2a68   :  { %v2954_v54 = vsel %vm381_vm13, %v2947_v12, %v2952_v43 }
0x2a69   :  { %v3711_v14 = vrot.slane %v2954_v54, 6 }
0x2a6b   :  { %3712 = vrot.lane.b32.xlu1 %v3711_v14, %s4434_s9 }
0x2add   :  { %v3713_v41 = vpop.permute.xlu1 %3712 }
0x2ade   :  { %v3715_v35 = vsel %vm381_vm13, %v4323_v11, %v3713_v41  ;;  %vm3776_vm13 = vcmask 1024  }
0x2adf   :  { %3967 = vmatmul.msk.f32.vlgmr.msrb.gmra.mxu0 %vm3732_vm7, %v3715_v35 }
0x2b5c   :  { %v3753_v63 = vpop.f32.mrf.mxu0 }
0x2b5d   :  { %v3754_v45 = vadd.f32 %v4029_v44, %v3753_v63 }
0x2b5f   :  { %v3758_v48 = vsel %vm3756_vm8, %v3754_v45, -inf  ;;  %3757 = vst.msk [vmem:[#allocation2] sm:$0x3] %vm3756_vm8, %v3754_v45 }
0x2b60   :  { %3759 = vmax.xlane.f32.xlu0 %v3758_v48 }
0x2bd3   :  { %v3760_v17 = vpop.xlane.xlu0 %3759 }
0x2bd4   :  { %v3761_v2 = vsub.f32 %v3754_v45, %v3760_v17 }
0x2bd6   :  { %v3762_v50 = vmul.f32 1.442695, %v3761_v2 }
0x2bd8   :  { %4324 = vpow2.f32 %v3762_v50 }
0x2bde   :  { %v4325_v0 = vpop.eup %4324 }
0x2bdf   :  { %v3764_v56 = vsel %vm3756_vm8, %v4325_v0, 0.0 }
0x2be0   :  { %3765 = vadd.xlane.f32.xlu2 %v3764_v56 }
0x2c53   :  { %v3766_v51 = vpop.xlane.xlu2 %3765 }
0x2c54   :  { %4326 = vlog2.f32 %v3766_v51 }
0x2c5a   :  { %v4327_v53 = vpop.eup %4326 }
0x2c5b   :  { %v3768_v47 = vmul.f32 0.6931472, %v4327_v53 }
0x2c5d   :  { %v3769_v21 = vadd.f32 %v3768_v47, %v3760_v17 }
0x2c5f   :  { %v3770_v31 = vsub.f32 %v3769_v21, %v3754_v45 }
0x2c61   :  { %v3772_v23 = vmul.f32 %v3771_v58, %v3770_v31 }
0x2c63   :  { %v3773_v29 = vsel %vm3756_vm8, %v3772_v23, 0.0 }
0x2c64   :  { %3774 = vadd.xlane.f32.xlu1 %v3773_v29 }
0x2cd7   :  { %v3775_v42 = vpop.xlane.xlu1 %3774 }
0x2cd8   :  { %v3777_v60 = vsel %vm3776_vm13, %v3775_v42, 0.0 }
0x2cd9   :  { %3778 = vadd.xlane.f32.xlu0 %v3777_v60 }
0x2cda   :  { %4369 = shalt.err (!%p4366_p4)
}
0x2cdb   :  { %3808 = dma.vmem_to_hbm [thread:$0]  %s3804_s28, 32, %s3806_s19, [#allocation3]   ;;  %v4441_v49 = vmov 2.0   ;;  %vm3796_vm10 = vcmask 0  }
0x2cdc   :  { %4328 = vrcp.f32 %v4441_v49  ;;  %s4442_s27 = smov [#allocation4]   ;;  %s3816_s5 = sshll.u32 %s4616_s4, 4  ;;  %s3817_s5 = int_to_ptr.hbm [resolvable:$true] %s3816_s5 }
0x2cdd   :  { %s3814_s0 = sshll.u32 %s4442_s27, 4  ;;  %s4382_s13 = sshra.s32 %s3817_s5, 4  ;;  %s3815_s0 = int_to_ptr.vmem [resolvable:$true] %s3814_s0  ;;  %s4383_s13 = int_to_ptr.hbm [resolvable:$true] %s4382_s13 }
0x2cde   :  { %s4384_s17 = scalar_lea.hbm %s4383_s13, 1  ;;  %s4386_s21 = scalar_lea.hbm %s4616_s4, 1 }
0x2cdf   :  { %p4385_p5 = scmp.ne.s32.totalorder %s4383_s13, %s4384_s17  ;;  %p4387_p6 = scmp.lt.s32.totalorder %s4383_s13, %s4616_s4 }
0x2ce0   :  { %p4388_p7 = scmp.lt.s32.totalorder %s4386_s21, %s4384_s17 }
0x2ce2   :  { %v4329_v28 = vpop.eup %4328  ;;  %p4389_p8 = por %p4388_p7, %p4387_p6 }
0x2ce3   :  { %v3789_v52 = vmul.f32 2.0, %v4329_v28  ;;  %vm3793_vm9 = vweird.f32 %v4329_v28 }
0x2ce4   :  { %p4390_p9 = pnand %p4389_p8, %p4385_p5 }
0x2ce5   :  { %v3790_v33 = vsub.f32 1.0, %v3789_v52 }
0x2ce7   :  { %v3791_v22 = vmul.f32 %v4329_v28, %v3790_v33 }
0x2ce9   :  { %v3792_v25 = vadd.f32 %v4329_v28, %v3791_v22 }
0x2ceb   :  { %v3794_v62 = vsel %vm3793_vm9, %v4329_v28, %v3792_v25 }
0x2d4c   :  { %v3779_v40 = vpop.xlane.xlu0 %3778 }
0x2d4d   :  { %v3780_v18 = vrot.slane %v3779_v40, 4 }
0x2d4f   :  { %v3781_v19 = vadd.f32 %v3780_v18, %v3779_v40 }
0x2d51   :  { %v3782_v1 = vrot.slane %v3781_v19, 2 }
0x2d53   :  { %v3783_v3 = vadd.f32 %v3782_v1, %v3781_v19 }
0x2d55   :  { %v3784_v46 = vrot.slane %v3783_v3, 1 }
0x2d57   :  { %v3785_v24 = vadd.f32 %v3784_v46, %v3783_v3 }
0x2d59   :  { %3968 = vpush %v3785_v24 }
0x2d8a   :  { %s3969_s9 = spop %3968 }
0x2d8b   :  { %v3787_v57 = vstv %s3969_s9 }
0x2d8c   :  { %v3795_v39 = vmul.f32 %v3794_v62, %v3787_v57 }
0x2d8e   :  { %3797 = vst.msk [vmem:[#allocation4] sm:$0x1] %vm3796_vm10, %v3795_v39 }
0x2d8f   :  { %4393 = shalt.err (!%p4390_p9)
}
0x2d90   :  { %3819 = dma.vmem_to_hbm [thread:$0]  %s3815_s0, 16, %s3817_s5, [#allocation5]  }
0x2d91   :  { %4394 = dma.done.wait [#allocation3], 32  }
0x2d92   :  { %4395 = vsyncadd [#allocation3], 4294967264 }
0x2d93   :  { %4396 = dma.done.wait [#allocation5], 16  }
0x2d94   :  { %4397 = vsyncadd [#allocation5], 4294967280 }
0x2d95   :  { %3828 = vsyncpa [#allocation3], 1 }
0x2d96   :  { %3829 = vsyncpa [#allocation5], 1 }

</bundles_post_ra>
